<compile_context>
chip_gen: v7x
topology: tpu7x:2x2x1
jax: 0.10.0
libtpu: 0.0.40
codegen_flags: <defaults>
</compile_context>

<pallas_src>
from functools import partial

import jax
import jax.numpy as jnp
from jax.experimental import pallas as pl
from jax.experimental.pallas import tpu as pltpu


# ----------------------------- helpers -----------------------------

def _pick_tile(dim, cap):
    """Largest tile <= cap that exactly divides dim (avoids ragged blocks)."""
    t = min(dim, cap)
    while dim % t:
        t -= 1
    return t


# ----------------------------- Pallas kernels -----------------------------

def pallas_matmul(a, b, *, activation=None, out_dtype=jnp.float32,
                  tm_cap=256, tn_cap=512):
    """(M, K) @ (K, N) -> (M, N). bf16 inputs, f32 MXU accumulation, fused epilogue.

    K is kept as a single full tile (K <= 2048 for every layer of this model), so there
    is no reduction grid axis and no accumulator scratch; both grid axes are parallel.
    """
    M, K = a.shape
    K2, N = b.shape
    assert K == K2
    a = a.astype(jnp.bfloat16)
    b = b.astype(jnp.bfloat16)

    tm = _pick_tile(M, tm_cap)
    tn = _pick_tile(N, tn_cap)
    grid = (M // tm, N // tn)

    def kernel(a_ref, b_ref, o_ref):
        acc = jnp.dot(a_ref[...], b_ref[...], preferred_element_type=jnp.float32)
        if activation is not None:
            acc = activation(acc)
        o_ref[...] = acc.astype(o_ref.dtype)

    return pl.pallas_call(
        kernel,
        out_shape=jax.ShapeDtypeStruct((M, N), out_dtype),
        grid_spec=pltpu.PrefetchScalarGridSpec(
            num_scalar_prefetch=0,
            grid=grid,
            in_specs=[pl.BlockSpec((tm, K), lambda i, j: (i, 0)),
                      pl.BlockSpec((K, tn), lambda i, j: (0, j))],
            out_specs=pl.BlockSpec((tm, tn), lambda i, j: (i, j))),
        compiler_params=pltpu.CompilerParams(
            dimension_semantics=("parallel", "parallel")),
    )(a, b)


def _bn_stats_kernel(x_ref, sum_ref, ssq_ref):
    @pl.when(pl.program_id(0) == 0)
    def _():
        sum_ref[...] = jnp.zeros_like(sum_ref)
        ssq_ref[...] = jnp.zeros_like(ssq_ref)

    x = x_ref[...].astype(jnp.float32)
    sum_ref[...] += jnp.sum(x, axis=0, keepdims=True)
    ssq_ref[...] += jnp.sum(x * x, axis=0, keepdims=True)


def _bn_apply_relu_kernel(x_ref, sum_ref, ssq_ref, g_ref, b_ref, o_ref, *, inv_m):
    mu = sum_ref[...] * inv_m
    var = jnp.maximum(ssq_ref[...] * inv_m - mu * mu, 0.0)   # biased batch variance
    scale = g_ref[...] * jax.lax.rsqrt(var + 1e-5)
    shift = b_ref[...] - mu * scale
    y = x_ref[...].astype(jnp.float32) * scale + shift
    o_ref[...] = jnp.maximum(y, 0.0).astype(o_ref.dtype)


def pallas_bn_relu(x2d, gamma, beta, *, out_dtype=jnp.bfloat16, tm_cap=1024):
    """BatchNorm2d (training-mode batch stats, eps=1e-5) + ReLU on an (M, C) matrix."""
    M, C = x2d.shape
    tm = _pick_tile(M, tm_cap)
    grid = (M // tm,)
    g2 = gamma.reshape(1, C).astype(jnp.float32)
    b2 = beta.reshape(1, C).astype(jnp.float32)

    # Pass 1: per-channel sum / sum-of-squares, accumulated across the M grid axis.
    s, ssq = pl.pallas_call(
        _bn_stats_kernel,
        out_shape=(jax.ShapeDtypeStruct((1, C), jnp.float32),
                   jax.ShapeDtypeStruct((1, C), jnp.float32)),
        grid_spec=pltpu.PrefetchScalarGridSpec(
            num_scalar_prefetch=0,
            grid=grid,
            in_specs=[pl.BlockSpec((tm, C), lambda i: (i, 0))],
            out_specs=(pl.BlockSpec((1, C), lambda i: (0, 0)),
                       pl.BlockSpec((1, C), lambda i: (0, 0)))),
        compiler_params=pltpu.CompilerParams(
            dimension_semantics=("arbitrary",)),
    )(x2d)

    # Pass 2: normalize + affine + ReLU, tiled over M (parallel).
    return pl.pallas_call(
        partial(_bn_apply_relu_kernel, inv_m=1.0 / M),
        out_shape=jax.ShapeDtypeStruct((M, C), out_dtype),
        grid_spec=pltpu.PrefetchScalarGridSpec(
            num_scalar_prefetch=0,
            grid=grid,
            in_specs=[pl.BlockSpec((tm, C), lambda i: (i, 0)),
                      pl.BlockSpec((1, C), lambda i: (0, 0)),
                      pl.BlockSpec((1, C), lambda i: (0, 0)),
                      pl.BlockSpec((1, C), lambda i: (0, 0)),
                      pl.BlockSpec((1, C), lambda i: (0, 0))],
            out_specs=pl.BlockSpec((tm, C), lambda i: (i, 0))),
        compiler_params=pltpu.CompilerParams(
            dimension_semantics=("parallel",)),
    )(x2d, s, ssq, g2, b2)


# ----------------------------- JAX glue (layout only) -----------------------------

def bn_relu_nhwc(x_nhwc, gamma, beta):
    N, H, W, C = x_nhwc.shape
    y = pallas_bn_relu(x_nhwc.reshape(N * H * W, C), gamma, beta)
    return y.reshape(N, H, W, C)


def conv_transpose_s2(x_nhwc, w, *, activation=None, out_dtype=jnp.bfloat16,
                      pad_cout_to=None):
    """ConvTranspose2d(Cin, Cout, k=4, stride=2, padding=1, bias=False).

    4-phase (sub-pixel) decomposition: for output parity (py, px) only the kernel taps
    with kh' = py (mod 2), kw' = px (mod 2) (in flipped-kernel coordinates) are non-zero,
    so each phase is a GEMM with K = 4 * Cin over shifted slices of the 1-padded input.

    x_nhwc: (N, H, W, Cin); w: (Cin, Cout, 4, 4) in PyTorch layout.
    Returns (N, 2H, 2W, Cout).
    """
    N, H, W, Cin = x_nhwc.shape
    Cout = w.shape[1]

    xp = jnp.pad(x_nhwc.astype(jnp.bfloat16), ((0, 0), (1, 1), (1, 1), (0, 0)))
    wr = w[:, :, ::-1, ::-1]                    # spatially flipped, (Cin, Cout, 4, 4)

    phase_outs = []
    for py in (0, 1):
        for px in (0, 1):
            khs = (0, 2) if py == 0 else (1, 3)
            kws = (0, 2) if px == 0 else (1, 3)
            taps = [(kh, kw) for kh in khs for kw in kws]

            # patches: tap-major / channel-minor along K, pure shifted slices of xp.
            cols = [xp[:, (py + kh) // 2:(py + kh) // 2 + H,
                          (px + kw) // 2:(px + kw) // 2 + W, :]
                    for (kh, kw) in taps]
            a = jnp.concatenate(cols, axis=-1).reshape(N * H * W, 4 * Cin)

            wp = jnp.stack([wr[:, :, kh, kw] for (kh, kw) in taps], axis=0)
            wp = wp.reshape(4 * Cin, Cout)
            padded = pad_cout_to is not None and Cout < pad_cout_to
            if padded:
                wp = jnp.pad(wp, ((0, 0), (0, pad_cout_to - Cout)))

            y = pallas_matmul(a, wp.astype(jnp.bfloat16),
                              activation=activation, out_dtype=out_dtype)
            if padded:
                y = y[:, :Cout]
            phase_outs.append(y.reshape(N, H, W, Cout))

    # Interleave phases: out[n, 2*iy+py, 2*ix+px, c] = phase(py, px)[n, iy, ix, c]
    y = jnp.stack(phase_outs, axis=3)                    # (N, H, W, 4, Cout)
    y = y.reshape(N, H, W, 2, 2, Cout)
    y = y.transpose(0, 1, 3, 2, 4, 5)                    # (N, H, py, W, px, Cout)
    return y.reshape(N, 2 * H, 2 * W, Cout)


def conv1_1x1(z2d, w1):
    """ConvTranspose2d(latent, 512, 4, 1, 0) on a 1x1 spatial input == plain GEMM.

    Weight is pre-permuted to (latent, kh, kw, Cout) so the GEMM output reshapes
    directly into NHWC (no transpose of the large activation).
    """
    N, latent = z2d.shape
    Cout = w1.shape[1]
    wmat = w1.transpose(0, 2, 3, 1).reshape(latent, 16 * Cout)
    y = pallas_matmul(z2d, wmat, out_dtype=jnp.bfloat16)       # (N, 16*Cout)
    return y.reshape(N, 4, 4, Cout)                             # NHWC


# ----------------------------- Generator -----------------------------

def init_generator_params(key, latent_size):
    ks = jax.random.split(key, 5)

    def conv_w(k, cin, cout):
        return (0.02 * jax.random.normal(k, (cin, cout, 4, 4))).astype(jnp.float32)

    p = {
        "w1": conv_w(ks[0], latent_size, 512),
        "w2": conv_w(ks[1], 512, 256),
        "w3": conv_w(ks[2], 256, 128),
        "w4": conv_w(ks[3], 128, 64),
        "w5": conv_w(ks[4], 64, 3),
    }
    for i, c in zip(range(1, 5), (512, 256, 128, 64)):
        p[f"g{i}"] = jnp.ones((c,), jnp.float32)    # BatchNorm weight init
        p[f"b{i}"] = jnp.zeros((c,), jnp.float32)   # BatchNorm bias init
    return p


def generator_forward(params, z_nchw):
    """z_nchw: (N, latent, 1, 1) -> image (N, 3, 64, 64), matching PyTorch."""
    N, latent = z_nchw.shape[0], z_nchw.shape[1]
    z2d = z_nchw.reshape(N, latent).astype(jnp.bfloat16)

    x = conv1_1x1(z2d, params["w1"])                       # (N, 4, 4, 512)
    x = bn_relu_nhwc(x, params["g1"], params["b1"])

    x = conv_transpose_s2(x, params["w2"])                 # (N, 8, 8, 256)
    x = bn_relu_nhwc(x, params["g2"], params["b2"])

    x = conv_transpose_s2(x, params["w3"])                 # (N, 16, 16, 128)
    x = bn_relu_nhwc(x, params["g3"], params["b3"])

    x = conv_transpose_s2(x, params["w4"])                 # (N, 32, 32, 64)
    x = bn_relu_nhwc(x, params["g4"], params["b4"])

    # conv5 with tanh fused into the GEMM epilogue; Cout padded 3 -> 128 for
    # lane-dense stores, sliced back inside conv_transpose_s2.
    x = conv_transpose_s2(x, params["w5"], activation=jnp.tanh,
                          out_dtype=jnp.float32, pad_cout_to=128)   # (N, 64, 64, 3)

    return x.transpose(0, 3, 1, 2)                          # NCHW


if __name__ == "__main__":
    latent_size = 64
    batch = 2

    key = jax.random.PRNGKey(0)
    k_param, k_z = jax.random.split(key)
    params = init_generator_params(k_param, latent_size)
    z = jax.random.normal(k_z, (batch, latent_size, 1, 1), dtype=jnp.float32)

    fwd = jax.jit(generator_forward)
    img = fwd(params, z)
    img = jax.block_until_ready(img)

    assert img.shape == (batch, 3, 64, 64), img.shape
    assert bool(jnp.all(jnp.isfinite(img)))
    assert bool(jnp.max(jnp.abs(img)) <= 1.0 + 1e-6)  # tanh range
    print("KERNEL_OK")
</pallas_src>

<mosaic_0001>
module attributes {stable_mosaic.version = 11 : i64} {
  func.func @kernel(%arg0: i32, %arg1: i32, %arg2: memref<2x64xbf16, #tpu.memory_space<vmem>>, %arg3: memref<64x512xbf16, #tpu.memory_space<vmem>>, %arg4: memref<2x512xbf16, #tpu.memory_space<vmem>>) attributes {dimension_semantics = [#tpu.dimension_semantics<parallel>, #tpu.dimension_semantics<parallel>], iteration_bounds = array<i64: 1, 16>, scalar_prefetch = 0 : i64, scratch_operands = 0 : i64, tpu.core_type = #tpu.core_type<tc>, window_params = [{transform_indices = @transform_0, window_bounds = array<i64: 2, 64>}, {transform_indices = @transform_1, window_bounds = array<i64: 64, 512>}, {transform_indices = @transform_2, window_bounds = array<i64: 2, 512>}]} {
    %c0 = arith.constant 0 : index
    %c0_0 = arith.constant 0 : index
    %0 = vector.load %arg2[%c0, %c0_0] : memref<2x64xbf16, #tpu.memory_space<vmem>>, vector<2x64xbf16>
    %c0_1 = arith.constant 0 : index
    %c0_2 = arith.constant 0 : index
    %1 = vector.load %arg3[%c0_1, %c0_2] : memref<64x512xbf16, #tpu.memory_space<vmem>>, vector<64x512xbf16>
    %cst = arith.constant dense<0.000000e+00> : vector<2x512xf32>
    %2 = tpu.matmul %0, %1, %cst {dimension_numbers = #tpu.dot_dimension_numbers<[1], [0], [0], [1], [0, 0, 1, 1], [], []>} : vector<2x64xbf16>, vector<64x512xbf16>, vector<2x512xf32> -> vector<2x512xf32>
    %3 = arith.truncf %2 : vector<2x512xf32> to vector<2x512xbf16>
    %c0_3 = arith.constant 0 : index
    %c0_4 = arith.constant 0 : index
    %4 = vector.load %arg4[%c0_3, %c0_4] : memref<2x512xbf16, #tpu.memory_space<vmem>>, vector<2x512xbf16>
    tpu.vector_store %arg4[%c0_3, %c0_4], %3 {strides = array<i32>} : memref<2x512xbf16, #tpu.memory_space<vmem>>, vector<2x512xbf16>,
    return
  }
  func.func @transform_0(%arg0: i32, %arg1: i32) -> (i32, i32) {
    %c0_i32 = arith.constant 0 : i32
    %c0_i32_0 = arith.constant 0 : i32
    return %arg0, %c0_i32 : i32, i32
  }
  func.func @transform_1(%arg0: i32, %arg1: i32) -> (i32, i32) {
    %c0_i32 = arith.constant 0 : i32
    %c0_i32_0 = arith.constant 0 : i32
    return %c0_i32, %arg1 : i32, i32
  }
  func.func @transform_2(%arg0: i32, %arg1: i32) -> (i32, i32) {
    %c0_i32 = arith.constant 0 : i32
    return %arg0, %arg1 : i32, i32
  }
}

module attributes {stable_mosaic.version = 11 : i64} {
  func.func @_bn_stats_kernel(%arg0: i32, %arg1: memref<32x512xbf16, #tpu.memory_space<vmem>>, %arg2: memref<1x512xf32, #tpu.memory_space<vmem>>, %arg3: memref<1x512xf32, #tpu.memory_space<vmem>>) attributes {dimension_semantics = [#tpu.dimension_semantics<arbitrary>], iteration_bounds = array<i64: 1>, scalar_prefetch = 0 : i64, scratch_operands = 0 : i64, tpu.core_type = #tpu.core_type<tc>, window_params = [{transform_indices = @transform_0, window_bounds = array<i64: 32, 512>}, {pipeline_mode = #tpu.pipeline_mode<synchronous>, transform_indices = @transform_1, window_bounds = array<i64: 1, 512>}, {pipeline_mode = #tpu.pipeline_mode<synchronous>, transform_indices = @transform_2, window_bounds = array<i64: 1, 512>}]} {
    %c0_i32 = arith.constant 0 : i32
    %0 = arith.cmpi eq, %arg0, %c0_i32 : i32
    %1 = arith.extui %0 : i1 to i32
    %c0_i32_0 = arith.constant 0 : i32
    %2 = arith.cmpi ne, %1, %c0_i32_0 : i32
    scf.if %2 {
      %cst_11 = arith.constant 0.000000e+00 : f32
      %16 = vector.broadcast %cst_11 : f32 to vector<1x512xf32>
      %c0_12 = arith.constant 0 : index
      %c0_13 = arith.constant 0 : index
      %17 = vector.load %arg2[%c0_12, %c0_13] : memref<1x512xf32, #tpu.memory_space<vmem>>, vector<1x512xf32>
      tpu.vector_store %arg2[%c0_12, %c0_13], %16 {strides = array<i32>} : memref<1x512xf32, #tpu.memory_space<vmem>>, vector<1x512xf32>,
      %cst_14 = arith.constant 0.000000e+00 : f32
      %18 = vector.broadcast %cst_14 : f32 to vector<1x512xf32>
      %c0_15 = arith.constant 0 : index
      %c0_16 = arith.constant 0 : index
      %19 = vector.load %arg3[%c0_15, %c0_16] : memref<1x512xf32, #tpu.memory_space<vmem>>, vector<1x512xf32>
      tpu.vector_store %arg3[%c0_15, %c0_16], %18 {strides = array<i32>} : memref<1x512xf32, #tpu.memory_space<vmem>>, vector<1x512xf32>,
    } else {
    }
    %c0 = arith.constant 0 : index
    %c0_1 = arith.constant 0 : index
    %3 = vector.load %arg1[%c0, %c0_1] : memref<32x512xbf16, #tpu.memory_space<vmem>>, vector<32x512xbf16>
    %4 = arith.extf %3 : vector<32x512xbf16> to vector<32x512xf32>
    %c0_2 = arith.constant 0 : index
    %c0_3 = arith.constant 0 : index
    %5 = vector.load %arg2[%c0_2, %c0_3] : memref<1x512xf32, #tpu.memory_space<vmem>>, vector<1x512xf32>
    %cst = arith.constant dense<0.000000e+00> : vector<512xf32>
    %6 = vector.multi_reduction <add>, %4, %cst [0] : vector<32x512xf32> to vector<512xf32>
    %7 = vector.shape_cast %6 : vector<512xf32> to vector<1x512xf32>
    %8 = arith.addf %5, %7 : vector<1x512xf32>
    %c0_4 = arith.constant 0 : index
    %c0_5 = arith.constant 0 : index
    %9 = vector.load %arg2[%c0_4, %c0_5] : memref<1x512xf32, #tpu.memory_space<vmem>>, vector<1x512xf32>
    tpu.vector_store %arg2[%c0_4, %c0_5], %8 {strides = array<i32>} : memref<1x512xf32, #tpu.memory_space<vmem>>, vector<1x512xf32>,
    %c0_6 = arith.constant 0 : index
    %c0_7 = arith.constant 0 : index
    %10 = vector.load %arg3[%c0_6, %c0_7] : memref<1x512xf32, #tpu.memory_space<vmem>>, vector<1x512xf32>
    %11 = arith.mulf %4, %4 : vector<32x512xf32>
    %cst_8 = arith.constant dense<0.000000e+00> : vector<512xf32>
    %12 = vector.multi_reduction <add>, %11, %cst_8 [0] : vector<32x512xf32> to vector<512xf32>
    %13 = vector.shape_cast %12 : vector<512xf32> to vector<1x512xf32>
    %14 = arith.addf %10, %13 : vector<1x512xf32>
    %c0_9 = arith.constant 0 : index
    %c0_10 = arith.constant 0 : index
    %15 = vector.load %arg3[%c0_9, %c0_10] : memref<1x512xf32, #tpu.memory_space<vmem>>, vector<1x512xf32>
    tpu.vector_store %arg3[%c0_9, %c0_10], %14 {strides = array<i32>} : memref<1x512xf32, #tpu.memory_space<vmem>>, vector<1x512xf32>,
    return
  }
  func.func @transform_0(%arg0: i32) -> (i32, i32) {
    %c0_i32 = arith.constant 0 : i32
    %c0_i32_0 = arith.constant 0 : i32
    return %arg0, %c0_i32 : i32, i32
  }
  func.func @transform_1(%arg0: i32) -> (i32, i32) {
    %c0_i32 = arith.constant 0 : i32
    %c0_i32_0 = arith.constant 0 : i32
    %c0_i32_1 = arith.constant 0 : i32
    return %c0_i32, %c0_i32_0 : i32, i32
  }
  func.func @transform_2(%arg0: i32) -> (i32, i32) {
    %c0_i32 = arith.constant 0 : i32
    %c0_i32_0 = arith.constant 0 : i32
    %c0_i32_1 = arith.constant 0 : i32
    return %c0_i32, %c0_i32_0 : i32, i32
  }
}

module attributes {stable_mosaic.version = 11 : i64} {
  func.func @_bn_apply_relu_kernel(%arg0: i32, %arg1: memref<32x512xbf16, #tpu.memory_space<vmem>>, %arg2: memref<1x512xf32, #tpu.memory_space<vmem>>, %arg3: memref<1x512xf32, #tpu.memory_space<vmem>>, %arg4: memref<1x512xf32, #tpu.memory_space<vmem>>, %arg5: memref<1x512xf32, #tpu.memory_space<vmem>>, %arg6: memref<32x512xbf16, #tpu.memory_space<vmem>>) attributes {dimension_semantics = [#tpu.dimension_semantics<parallel>], iteration_bounds = array<i64: 1>, scalar_prefetch = 0 : i64, scratch_operands = 0 : i64, tpu.core_type = #tpu.core_type<tc>, window_params = [{transform_indices = @transform_0, window_bounds = array<i64: 32, 512>}, {pipeline_mode = #tpu.pipeline_mode<synchronous>, transform_indices = @transform_1, window_bounds = array<i64: 1, 512>}, {pipeline_mode = #tpu.pipeline_mode<synchronous>, transform_indices = @transform_2, window_bounds = array<i64: 1, 512>}, {pipeline_mode = #tpu.pipeline_mode<synchronous>, transform_indices = @transform_3, window_bounds = array<i64: 1, 512>}, {pipeline_mode = #tpu.pipeline_mode<synchronous>, transform_indices = @transform_4, window_bounds = array<i64: 1, 512>}, {transform_indices = @transform_5, window_bounds = array<i64: 32, 512>}]} {
    %c0 = arith.constant 0 : index
    %c0_0 = arith.constant 0 : index
    %0 = vector.load %arg2[%c0, %c0_0] : memref<1x512xf32, #tpu.memory_space<vmem>>, vector<1x512xf32>
    %cst = arith.constant 3.125000e-02 : f32
    %1 = vector.broadcast %cst : f32 to vector<1x512xf32>
    %2 = arith.mulf %0, %1 : vector<1x512xf32>
    %c0_1 = arith.constant 0 : index
    %c0_2 = arith.constant 0 : index
    %3 = vector.load %arg3[%c0_1, %c0_2] : memref<1x512xf32, #tpu.memory_space<vmem>>, vector<1x512xf32>
    %cst_3 = arith.constant 3.125000e-02 : f32
    %4 = vector.broadcast %cst_3 : f32 to vector<1x512xf32>
    %5 = arith.mulf %3, %4 : vector<1x512xf32>
    %6 = arith.mulf %2, %2 : vector<1x512xf32>
    %7 = arith.subf %5, %6 : vector<1x512xf32>
    %cst_4 = arith.constant 0.000000e+00 : f32
    %8 = vector.broadcast %cst_4 : f32 to vector<1x512xf32>
    %9 = arith.maximumf %7, %8 : vector<1x512xf32>
    %c0_5 = arith.constant 0 : index
    %c0_6 = arith.constant 0 : index
    %10 = vector.load %arg4[%c0_5, %c0_6] : memref<1x512xf32, #tpu.memory_space<vmem>>, vector<1x512xf32>
    %cst_7 = arith.constant 9.99999974E-6 : f32
    %11 = vector.broadcast %cst_7 : f32 to vector<1x512xf32>
    %12 = arith.addf %9, %11 : vector<1x512xf32>
    %13 = math.rsqrt %12 : vector<1x512xf32>
    %14 = arith.mulf %10, %13 : vector<1x512xf32>
    %c0_8 = arith.constant 0 : index
    %c0_9 = arith.constant 0 : index
    %15 = vector.load %arg5[%c0_8, %c0_9] : memref<1x512xf32, #tpu.memory_space<vmem>>, vector<1x512xf32>
    %16 = arith.mulf %2, %14 : vector<1x512xf32>
    %17 = arith.subf %15, %16 : vector<1x512xf32>
    %c0_10 = arith.constant 0 : index
    %c0_11 = arith.constant 0 : index
    %18 = vector.load %arg1[%c0_10, %c0_11] : memref<32x512xbf16, #tpu.memory_space<vmem>>, vector<32x512xbf16>
    %19 = arith.extf %18 : vector<32x512xbf16> to vector<32x512xf32>
    %20 = vector.broadcast %14 : vector<1x512xf32> to vector<32x512xf32>
    %21 = arith.mulf %19, %20 : vector<32x512xf32>
    %22 = vector.broadcast %17 : vector<1x512xf32> to vector<32x512xf32>
    %23 = arith.addf %21, %22 : vector<32x512xf32>
    %cst_12 = arith.constant 0.000000e+00 : f32
    %24 = vector.broadcast %cst_12 : f32 to vector<32x512xf32>
    %25 = arith.maximumf %23, %24 : vector<32x512xf32>
    %26 = arith.truncf %25 : vector<32x512xf32> to vector<32x512xbf16>
    %c0_13 = arith.constant 0 : index
    %c0_14 = arith.constant 0 : index
    %27 = vector.load %arg6[%c0_13, %c0_14] : memref<32x512xbf16, #tpu.memory_space<vmem>>, vector<32x512xbf16>
    tpu.vector_store %arg6[%c0_13, %c0_14], %26 {strides = array<i32>} : memref<32x512xbf16, #tpu.memory_space<vmem>>, vector<32x512xbf16>,
    return
  }
  func.func @transform_0(%arg0: i32) -> (i32, i32) {
    %c0_i32 = arith.constant 0 : i32
    %c0_i32_0 = arith.constant 0 : i32
    return %arg0, %c0_i32 : i32, i32
  }
  func.func @transform_1(%arg0: i32) -> (i32, i32) {
    %c0_i32 = arith.constant 0 : i32
    %c0_i32_0 = arith.constant 0 : i32
    %c0_i32_1 = arith.constant 0 : i32
    return %c0_i32, %c0_i32_0 : i32, i32
  }
  func.func @transform_2(%arg0: i32) -> (i32, i32) {
    %c0_i32 = arith.constant 0 : i32
    %c0_i32_0 = arith.constant 0 : i32
    %c0_i32_1 = arith.constant 0 : i32
    return %c0_i32, %c0_i32_0 : i32, i32
  }
  func.func @transform_3(%arg0: i32) -> (i32, i32) {
    %c0_i32 = arith.constant 0 : i32
    %c0_i32_0 = arith.constant 0 : i32
    %c0_i32_1 = arith.constant 0 : i32
    return %c0_i32, %c0_i32_0 : i32, i32
  }
  func.func @transform_4(%arg0: i32) -> (i32, i32) {
    %c0_i32 = arith.constant 0 : i32
    %c0_i32_0 = arith.constant 0 : i32
    %c0_i32_1 = arith.constant 0 : i32
    return %c0_i32, %c0_i32_0 : i32, i32
  }
  func.func @transform_5(%arg0: i32) -> (i32, i32) {
    %c0_i32 = arith.constant 0 : i32
    %c0_i32_0 = arith.constant 0 : i32
    return %arg0, %c0_i32 : i32, i32
  }
}

module attributes {stable_mosaic.version = 11 : i64} {
  func.func @kernel(%arg0: i32, %arg1: i32, %arg2: memref<32x2048xbf16, #tpu.memory_space<vmem>>, %arg3: memref<2048x256xbf16, #tpu.memory_space<vmem>>, %arg4: memref<32x256xbf16, #tpu.memory_space<vmem>>) attributes {dimension_semantics = [#tpu.dimension_semantics<parallel>, #tpu.dimension_semantics<parallel>], iteration_bounds = array<i64: 1, 1>, scalar_prefetch = 0 : i64, scratch_operands = 0 : i64, tpu.core_type = #tpu.core_type<tc>, window_params = [{transform_indices = @transform_0, window_bounds = array<i64: 32, 2048>}, {transform_indices = @transform_1, window_bounds = array<i64: 2048, 256>}, {transform_indices = @transform_2, window_bounds = array<i64: 32, 256>}]} {
    %c0 = arith.constant 0 : index
    %c0_0 = arith.constant 0 : index
    %0 = vector.load %arg2[%c0, %c0_0] : memref<32x2048xbf16, #tpu.memory_space<vmem>>, vector<32x2048xbf16>
    %c0_1 = arith.constant 0 : index
    %c0_2 = arith.constant 0 : index
    %1 = vector.load %arg3[%c0_1, %c0_2] : memref<2048x256xbf16, #tpu.memory_space<vmem>>, vector<2048x256xbf16>
    %cst = arith.constant dense<0.000000e+00> : vector<32x256xf32>
    %2 = tpu.matmul %0, %1, %cst {dimension_numbers = #tpu.dot_dimension_numbers<[1], [0], [0], [1], [0, 0, 1, 1], [], []>} : vector<32x2048xbf16>, vector<2048x256xbf16>, vector<32x256xf32> -> vector<32x256xf32>
    %3 = arith.truncf %2 : vector<32x256xf32> to vector<32x256xbf16>
    %c0_3 = arith.constant 0 : index
    %c0_4 = arith.constant 0 : index
    %4 = vector.load %arg4[%c0_3, %c0_4] : memref<32x256xbf16, #tpu.memory_space<vmem>>, vector<32x256xbf16>
    tpu.vector_store %arg4[%c0_3, %c0_4], %3 {strides = array<i32>} : memref<32x256xbf16, #tpu.memory_space<vmem>>, vector<32x256xbf16>,
    return
  }
  func.func @transform_0(%arg0: i32, %arg1: i32) -> (i32, i32) {
    %c0_i32 = arith.constant 0 : i32
    %c0_i32_0 = arith.constant 0 : i32
    return %arg0, %c0_i32 : i32, i32
  }
  func.func @transform_1(%arg0: i32, %arg1: i32) -> (i32, i32) {
    %c0_i32 = arith.constant 0 : i32
    %c0_i32_0 = arith.constant 0 : i32
    return %c0_i32, %arg1 : i32, i32
  }
  func.func @transform_2(%arg0: i32, %arg1: i32) -> (i32, i32) {
    %c0_i32 = arith.constant 0 : i32
    return %arg0, %arg1 : i32, i32
  }
}

module attributes {stable_mosaic.version = 11 : i64} {
  func.func @_bn_stats_kernel(%arg0: i32, %arg1: memref<128x256xbf16, #tpu.memory_space<vmem>>, %arg2: memref<1x256xf32, #tpu.memory_space<vmem>>, %arg3: memref<1x256xf32, #tpu.memory_space<vmem>>) attributes {dimension_semantics = [#tpu.dimension_semantics<arbitrary>], iteration_bounds = array<i64: 1>, scalar_prefetch = 0 : i64, scratch_operands = 0 : i64, tpu.core_type = #tpu.core_type<tc>, window_params = [{transform_indices = @transform_0, window_bounds = array<i64: 128, 256>}, {pipeline_mode = #tpu.pipeline_mode<synchronous>, transform_indices = @transform_1, window_bounds = array<i64: 1, 256>}, {pipeline_mode = #tpu.pipeline_mode<synchronous>, transform_indices = @transform_2, window_bounds = array<i64: 1, 256>}]} {
    %c0_i32 = arith.constant 0 : i32
    %0 = arith.cmpi eq, %arg0, %c0_i32 : i32
    %1 = arith.extui %0 : i1 to i32
    %c0_i32_0 = arith.constant 0 : i32
    %2 = arith.cmpi ne, %1, %c0_i32_0 : i32
    scf.if %2 {
      %cst_11 = arith.constant 0.000000e+00 : f32
      %16 = vector.broadcast %cst_11 : f32 to vector<1x256xf32>
      %c0_12 = arith.constant 0 : index
      %c0_13 = arith.constant 0 : index
      %17 = vector.load %arg2[%c0_12, %c0_13] : memref<1x256xf32, #tpu.memory_space<vmem>>, vector<1x256xf32>
      tpu.vector_store %arg2[%c0_12, %c0_13], %16 {strides = array<i32>} : memref<1x256xf32, #tpu.memory_space<vmem>>, vector<1x256xf32>,
      %cst_14 = arith.constant 0.000000e+00 : f32
      %18 = vector.broadcast %cst_14 : f32 to vector<1x256xf32>
      %c0_15 = arith.constant 0 : index
      %c0_16 = arith.constant 0 : index
      %19 = vector.load %arg3[%c0_15, %c0_16] : memref<1x256xf32, #tpu.memory_space<vmem>>, vector<1x256xf32>
      tpu.vector_store %arg3[%c0_15, %c0_16], %18 {strides = array<i32>} : memref<1x256xf32, #tpu.memory_space<vmem>>, vector<1x256xf32>,
    } else {
    }
    %c0 = arith.constant 0 : index
    %c0_1 = arith.constant 0 : index
    %3 = vector.load %arg1[%c0, %c0_1] : memref<128x256xbf16, #tpu.memory_space<vmem>>, vector<128x256xbf16>
    %4 = arith.extf %3 : vector<128x256xbf16> to vector<128x256xf32>
    %c0_2 = arith.constant 0 : index
    %c0_3 = arith.constant 0 : index
    %5 = vector.load %arg2[%c0_2, %c0_3] : memref<1x256xf32, #tpu.memory_space<vmem>>, vector<1x256xf32>
    %cst = arith.constant dense<0.000000e+00> : vector<256xf32>
    %6 = vector.multi_reduction <add>, %4, %cst [0] : vector<128x256xf32> to vector<256xf32>
    %7 = vector.shape_cast %6 : vector<256xf32> to vector<1x256xf32>
    %8 = arith.addf %5, %7 : vector<1x256xf32>
    %c0_4 = arith.constant 0 : index
    %c0_5 = arith.constant 0 : index
    %9 = vector.load %arg2[%c0_4, %c0_5] : memref<1x256xf32, #tpu.memory_space<vmem>>, vector<1x256xf32>
    tpu.vector_store %arg2[%c0_4, %c0_5], %8 {strides = array<i32>} : memref<1x256xf32, #tpu.memory_space<vmem>>, vector<1x256xf32>,
    %c0_6 = arith.constant 0 : index
    %c0_7 = arith.constant 0 : index
    %10 = vector.load %arg3[%c0_6, %c0_7] : memref<1x256xf32, #tpu.memory_space<vmem>>, vector<1x256xf32>
    %11 = arith.mulf %4, %4 : vector<128x256xf32>
    %cst_8 = arith.constant dense<0.000000e+00> : vector<256xf32>
    %12 = vector.multi_reduction <add>, %11, %cst_8 [0] : vector<128x256xf32> to vector<256xf32>
    %13 = vector.shape_cast %12 : vector<256xf32> to vector<1x256xf32>
    %14 = arith.addf %10, %13 : vector<1x256xf32>
    %c0_9 = arith.constant 0 : index
    %c0_10 = arith.constant 0 : index
    %15 = vector.load %arg3[%c0_9, %c0_10] : memref<1x256xf32, #tpu.memory_space<vmem>>, vector<1x256xf32>
    tpu.vector_store %arg3[%c0_9, %c0_10], %14 {strides = array<i32>} : memref<1x256xf32, #tpu.memory_space<vmem>>, vector<1x256xf32>,
    return
  }
  func.func @transform_0(%arg0: i32) -> (i32, i32) {
    %c0_i32 = arith.constant 0 : i32
    %c0_i32_0 = arith.constant 0 : i32
    return %arg0, %c0_i32 : i32, i32
  }
  func.func @transform_1(%arg0: i32) -> (i32, i32) {
    %c0_i32 = arith.constant 0 : i32
    %c0_i32_0 = arith.constant 0 : i32
    %c0_i32_1 = arith.constant 0 : i32
    return %c0_i32, %c0_i32_0 : i32, i32
  }
  func.func @transform_2(%arg0: i32) -> (i32, i32) {
    %c0_i32 = arith.constant 0 : i32
    %c0_i32_0 = arith.constant 0 : i32
    %c0_i32_1 = arith.constant 0 : i32
    return %c0_i32, %c0_i32_0 : i32, i32
  }
}

module attributes {stable_mosaic.version = 11 : i64} {
  func.func @_bn_apply_relu_kernel(%arg0: i32, %arg1: memref<128x256xbf16, #tpu.memory_space<vmem>>, %arg2: memref<1x256xf32, #tpu.memory_space<vmem>>, %arg3: memref<1x256xf32, #tpu.memory_space<vmem>>, %arg4: memref<1x256xf32, #tpu.memory_space<vmem>>, %arg5: memref<1x256xf32, #tpu.memory_space<vmem>>, %arg6: memref<128x256xbf16, #tpu.memory_space<vmem>>) attributes {dimension_semantics = [#tpu.dimension_semantics<parallel>], iteration_bounds = array<i64: 1>, scalar_prefetch = 0 : i64, scratch_operands = 0 : i64, tpu.core_type = #tpu.core_type<tc>, window_params = [{transform_indices = @transform_0, window_bounds = array<i64: 128, 256>}, {pipeline_mode = #tpu.pipeline_mode<synchronous>, transform_indices = @transform_1, window_bounds = array<i64: 1, 256>}, {pipeline_mode = #tpu.pipeline_mode<synchronous>, transform_indices = @transform_2, window_bounds = array<i64: 1, 256>}, {pipeline_mode = #tpu.pipeline_mode<synchronous>, transform_indices = @transform_3, window_bounds = array<i64: 1, 256>}, {pipeline_mode = #tpu.pipeline_mode<synchronous>, transform_indices = @transform_4, window_bounds = array<i64: 1, 256>}, {transform_indices = @transform_5, window_bounds = array<i64: 128, 256>}]} {
    %c0 = arith.constant 0 : index
    %c0_0 = arith.constant 0 : index
    %0 = vector.load %arg2[%c0, %c0_0] : memref<1x256xf32, #tpu.memory_space<vmem>>, vector<1x256xf32>
    %cst = arith.constant 7.812500e-03 : f32
    %1 = vector.broadcast %cst : f32 to vector<1x256xf32>
    %2 = arith.mulf %0, %1 : vector<1x256xf32>
    %c0_1 = arith.constant 0 : index
    %c0_2 = arith.constant 0 : index
    %3 = vector.load %arg3[%c0_1, %c0_2] : memref<1x256xf32, #tpu.memory_space<vmem>>, vector<1x256xf32>
    %cst_3 = arith.constant 7.812500e-03 : f32
    %4 = vector.broadcast %cst_3 : f32 to vector<1x256xf32>
    %5 = arith.mulf %3, %4 : vector<1x256xf32>
    %6 = arith.mulf %2, %2 : vector<1x256xf32>
    %7 = arith.subf %5, %6 : vector<1x256xf32>
    %cst_4 = arith.constant 0.000000e+00 : f32
    %8 = vector.broadcast %cst_4 : f32 to vector<1x256xf32>
    %9 = arith.maximumf %7, %8 : vector<1x256xf32>
    %c0_5 = arith.constant 0 : index
    %c0_6 = arith.constant 0 : index
    %10 = vector.load %arg4[%c0_5, %c0_6] : memref<1x256xf32, #tpu.memory_space<vmem>>, vector<1x256xf32>
    %cst_7 = arith.constant 9.99999974E-6 : f32
    %11 = vector.broadcast %cst_7 : f32 to vector<1x256xf32>
    %12 = arith.addf %9, %11 : vector<1x256xf32>
    %13 = math.rsqrt %12 : vector<1x256xf32>
    %14 = arith.mulf %10, %13 : vector<1x256xf32>
    %c0_8 = arith.constant 0 : index
    %c0_9 = arith.constant 0 : index
    %15 = vector.load %arg5[%c0_8, %c0_9] : memref<1x256xf32, #tpu.memory_space<vmem>>, vector<1x256xf32>
    %16 = arith.mulf %2, %14 : vector<1x256xf32>
    %17 = arith.subf %15, %16 : vector<1x256xf32>
    %c0_10 = arith.constant 0 : index
    %c0_11 = arith.constant 0 : index
    %18 = vector.load %arg1[%c0_10, %c0_11] : memref<128x256xbf16, #tpu.memory_space<vmem>>, vector<128x256xbf16>
    %19 = arith.extf %18 : vector<128x256xbf16> to vector<128x256xf32>
    %20 = vector.broadcast %14 : vector<1x256xf32> to vector<128x256xf32>
    %21 = arith.mulf %19, %20 : vector<128x256xf32>
    %22 = vector.broadcast %17 : vector<1x256xf32> to vector<128x256xf32>
    %23 = arith.addf %21, %22 : vector<128x256xf32>
    %cst_12 = arith.constant 0.000000e+00 : f32
    %24 = vector.broadcast %cst_12 : f32 to vector<128x256xf32>
    %25 = arith.maximumf %23, %24 : vector<128x256xf32>
    %26 = arith.truncf %25 : vector<128x256xf32> to vector<128x256xbf16>
    %c0_13 = arith.constant 0 : index
    %c0_14 = arith.constant 0 : index
    %27 = vector.load %arg6[%c0_13, %c0_14] : memref<128x256xbf16, #tpu.memory_space<vmem>>, vector<128x256xbf16>
    tpu.vector_store %arg6[%c0_13, %c0_14], %26 {strides = array<i32>} : memref<128x256xbf16, #tpu.memory_space<vmem>>, vector<128x256xbf16>,
    return
  }
  func.func @transform_0(%arg0: i32) -> (i32, i32) {
    %c0_i32 = arith.constant 0 : i32
    %c0_i32_0 = arith.constant 0 : i32
    return %arg0, %c0_i32 : i32, i32
  }
  func.func @transform_1(%arg0: i32) -> (i32, i32) {
    %c0_i32 = arith.constant 0 : i32
    %c0_i32_0 = arith.constant 0 : i32
    %c0_i32_1 = arith.constant 0 : i32
    return %c0_i32, %c0_i32_0 : i32, i32
  }
  func.func @transform_2(%arg0: i32) -> (i32, i32) {
    %c0_i32 = arith.constant 0 : i32
    %c0_i32_0 = arith.constant 0 : i32
    %c0_i32_1 = arith.constant 0 : i32
    return %c0_i32, %c0_i32_0 : i32, i32
  }
  func.func @transform_3(%arg0: i32) -> (i32, i32) {
    %c0_i32 = arith.constant 0 : i32
    %c0_i32_0 = arith.constant 0 : i32
    %c0_i32_1 = arith.constant 0 : i32
    return %c0_i32, %c0_i32_0 : i32, i32
  }
  func.func @transform_4(%arg0: i32) -> (i32, i32) {
    %c0_i32 = arith.constant 0 : i32
    %c0_i32_0 = arith.constant 0 : i32
    %c0_i32_1 = arith.constant 0 : i32
    return %c0_i32, %c0_i32_0 : i32, i32
  }
  func.func @transform_5(%arg0: i32) -> (i32, i32) {
    %c0_i32 = arith.constant 0 : i32
    %c0_i32_0 = arith.constant 0 : i32
    return %arg0, %c0_i32 : i32, i32
  }
}

module attributes {stable_mosaic.version = 11 : i64} {
  func.func @kernel(%arg0: i32, %arg1: i32, %arg2: memref<128x1024xbf16, #tpu.memory_space<vmem>>, %arg3: memref<1024x128xbf16, #tpu.memory_space<vmem>>, %arg4: memref<128x128xbf16, #tpu.memory_space<vmem>>) attributes {dimension_semantics = [#tpu.dimension_semantics<parallel>, #tpu.dimension_semantics<parallel>], iteration_bounds = array<i64: 1, 1>, scalar_prefetch = 0 : i64, scratch_operands = 0 : i64, tpu.core_type = #tpu.core_type<tc>, window_params = [{transform_indices = @transform_0, window_bounds = array<i64: 128, 1024>}, {transform_indices = @transform_1, window_bounds = array<i64: 1024, 128>}, {transform_indices = @transform_2, window_bounds = array<i64: 128, 128>}]} {
    %c0 = arith.constant 0 : index
    %c0_0 = arith.constant 0 : index
    %0 = vector.load %arg2[%c0, %c0_0] : memref<128x1024xbf16, #tpu.memory_space<vmem>>, vector<128x1024xbf16>
    %c0_1 = arith.constant 0 : index
    %c0_2 = arith.constant 0 : index
    %1 = vector.load %arg3[%c0_1, %c0_2] : memref<1024x128xbf16, #tpu.memory_space<vmem>>, vector<1024x128xbf16>
    %cst = arith.constant dense<0.000000e+00> : vector<128x128xf32>
    %2 = tpu.matmul %0, %1, %cst {dimension_numbers = #tpu.dot_dimension_numbers<[1], [0], [0], [1], [0, 0, 1, 1], [], []>} : vector<128x1024xbf16>, vector<1024x128xbf16>, vector<128x128xf32> -> vector<128x128xf32>
    %3 = arith.truncf %2 : vector<128x128xf32> to vector<128x128xbf16>
    %c0_3 = arith.constant 0 : index
    %c0_4 = arith.constant 0 : index
    %4 = vector.load %arg4[%c0_3, %c0_4] : memref<128x128xbf16, #tpu.memory_space<vmem>>, vector<128x128xbf16>
    tpu.vector_store %arg4[%c0_3, %c0_4], %3 {strides = array<i32>} : memref<128x128xbf16, #tpu.memory_space<vmem>>, vector<128x128xbf16>,
    return
  }
  func.func @transform_0(%arg0: i32, %arg1: i32) -> (i32, i32) {
    %c0_i32 = arith.constant 0 : i32
    %c0_i32_0 = arith.constant 0 : i32
    return %arg0, %c0_i32 : i32, i32
  }
  func.func @transform_1(%arg0: i32, %arg1: i32) -> (i32, i32) {
    %c0_i32 = arith.constant 0 : i32
    %c0_i32_0 = arith.constant 0 : i32
    return %c0_i32, %arg1 : i32, i32
  }
  func.func @transform_2(%arg0: i32, %arg1: i32) -> (i32, i32) {
    %c0_i32 = arith.constant 0 : i32
    return %arg0, %arg1 : i32, i32
  }
}

module attributes {stable_mosaic.version = 11 : i64} {
  func.func @_bn_stats_kernel(%arg0: i32, %arg1: memref<512x128xbf16, #tpu.memory_space<vmem>>, %arg2: memref<1x128xf32, #tpu.memory_space<vmem>>, %arg3: memref<1x128xf32, #tpu.memory_space<vmem>>) attributes {dimension_semantics = [#tpu.dimension_semantics<arbitrary>], iteration_bounds = array<i64: 1>, scalar_prefetch = 0 : i64, scratch_operands = 0 : i64, tpu.core_type = #tpu.core_type<tc>, window_params = [{transform_indices = @transform_0, window_bounds = array<i64: 512, 128>}, {pipeline_mode = #tpu.pipeline_mode<synchronous>, transform_indices = @transform_1, window_bounds = array<i64: 1, 128>}, {pipeline_mode = #tpu.pipeline_mode<synchronous>, transform_indices = @transform_2, window_bounds = array<i64: 1, 128>}]} {
    %c0_i32 = arith.constant 0 : i32
    %0 = arith.cmpi eq, %arg0, %c0_i32 : i32
    %1 = arith.extui %0 : i1 to i32
    %c0_i32_0 = arith.constant 0 : i32
    %2 = arith.cmpi ne, %1, %c0_i32_0 : i32
    scf.if %2 {
      %cst_11 = arith.constant 0.000000e+00 : f32
      %16 = vector.broadcast %cst_11 : f32 to vector<1x128xf32>
      %c0_12 = arith.constant 0 : index
      %c0_13 = arith.constant 0 : index
      %17 = vector.load %arg2[%c0_12, %c0_13] : memref<1x128xf32, #tpu.memory_space<vmem>>, vector<1x128xf32>
      tpu.vector_store %arg2[%c0_12, %c0_13], %16 {strides = array<i32>} : memref<1x128xf32, #tpu.memory_space<vmem>>, vector<1x128xf32>,
      %cst_14 = arith.constant 0.000000e+00 : f32
      %18 = vector.broadcast %cst_14 : f32 to vector<1x128xf32>
      %c0_15 = arith.constant 0 : index
      %c0_16 = arith.constant 0 : index
      %19 = vector.load %arg3[%c0_15, %c0_16] : memref<1x128xf32, #tpu.memory_space<vmem>>, vector<1x128xf32>
      tpu.vector_store %arg3[%c0_15, %c0_16], %18 {strides = array<i32>} : memref<1x128xf32, #tpu.memory_space<vmem>>, vector<1x128xf32>,
    } else {
    }
    %c0 = arith.constant 0 : index
    %c0_1 = arith.constant 0 : index
    %3 = vector.load %arg1[%c0, %c0_1] : memref<512x128xbf16, #tpu.memory_space<vmem>>, vector<512x128xbf16>
    %4 = arith.extf %3 : vector<512x128xbf16> to vector<512x128xf32>
    %c0_2 = arith.constant 0 : index
    %c0_3 = arith.constant 0 : index
    %5 = vector.load %arg2[%c0_2, %c0_3] : memref<1x128xf32, #tpu.memory_space<vmem>>, vector<1x128xf32>
    %cst = arith.constant dense<0.000000e+00> : vector<128xf32>
    %6 = vector.multi_reduction <add>, %4, %cst [0] : vector<512x128xf32> to vector<128xf32>
    %7 = vector.shape_cast %6 : vector<128xf32> to vector<1x128xf32>
    %8 = arith.addf %5, %7 : vector<1x128xf32>
    %c0_4 = arith.constant 0 : index
    %c0_5 = arith.constant 0 : index
    %9 = vector.load %arg2[%c0_4, %c0_5] : memref<1x128xf32, #tpu.memory_space<vmem>>, vector<1x128xf32>
    tpu.vector_store %arg2[%c0_4, %c0_5], %8 {strides = array<i32>} : memref<1x128xf32, #tpu.memory_space<vmem>>, vector<1x128xf32>,
    %c0_6 = arith.constant 0 : index
    %c0_7 = arith.constant 0 : index
    %10 = vector.load %arg3[%c0_6, %c0_7] : memref<1x128xf32, #tpu.memory_space<vmem>>, vector<1x128xf32>
    %11 = arith.mulf %4, %4 : vector<512x128xf32>
    %cst_8 = arith.constant dense<0.000000e+00> : vector<128xf32>
    %12 = vector.multi_reduction <add>, %11, %cst_8 [0] : vector<512x128xf32> to vector<128xf32>
    %13 = vector.shape_cast %12 : vector<128xf32> to vector<1x128xf32>
    %14 = arith.addf %10, %13 : vector<1x128xf32>
    %c0_9 = arith.constant 0 : index
    %c0_10 = arith.constant 0 : index
    %15 = vector.load %arg3[%c0_9, %c0_10] : memref<1x128xf32, #tpu.memory_space<vmem>>, vector<1x128xf32>
    tpu.vector_store %arg3[%c0_9, %c0_10], %14 {strides = array<i32>} : memref<1x128xf32, #tpu.memory_space<vmem>>, vector<1x128xf32>,
    return
  }
  func.func @transform_0(%arg0: i32) -> (i32, i32) {
    %c0_i32 = arith.constant 0 : i32
    %c0_i32_0 = arith.constant 0 : i32
    return %arg0, %c0_i32 : i32, i32
  }
  func.func @transform_1(%arg0: i32) -> (i32, i32) {
    %c0_i32 = arith.constant 0 : i32
    %c0_i32_0 = arith.constant 0 : i32
    %c0_i32_1 = arith.constant 0 : i32
    return %c0_i32, %c0_i32_0 : i32, i32
  }
  func.func @transform_2(%arg0: i32) -> (i32, i32) {
    %c0_i32 = arith.constant 0 : i32
    %c0_i32_0 = arith.constant 0 : i32
    %c0_i32_1 = arith.constant 0 : i32
    return %c0_i32, %c0_i32_0 : i32, i32
  }
}

module attributes {stable_mosaic.version = 11 : i64} {
  func.func @_bn_apply_relu_kernel(%arg0: i32, %arg1: memref<512x128xbf16, #tpu.memory_space<vmem>>, %arg2: memref<1x128xf32, #tpu.memory_space<vmem>>, %arg3: memref<1x128xf32, #tpu.memory_space<vmem>>, %arg4: memref<1x128xf32, #tpu.memory_space<vmem>>, %arg5: memref<1x128xf32, #tpu.memory_space<vmem>>, %arg6: memref<512x128xbf16, #tpu.memory_space<vmem>>) attributes {dimension_semantics = [#tpu.dimension_semantics<parallel>], iteration_bounds = array<i64: 1>, scalar_prefetch = 0 : i64, scratch_operands = 0 : i64, tpu.core_type = #tpu.core_type<tc>, window_params = [{transform_indices = @transform_0, window_bounds = array<i64: 512, 128>}, {pipeline_mode = #tpu.pipeline_mode<synchronous>, transform_indices = @transform_1, window_bounds = array<i64: 1, 128>}, {pipeline_mode = #tpu.pipeline_mode<synchronous>, transform_indices = @transform_2, window_bounds = array<i64: 1, 128>}, {pipeline_mode = #tpu.pipeline_mode<synchronous>, transform_indices = @transform_3, window_bounds = array<i64: 1, 128>}, {pipeline_mode = #tpu.pipeline_mode<synchronous>, transform_indices = @transform_4, window_bounds = array<i64: 1, 128>}, {transform_indices = @transform_5, window_bounds = array<i64: 512, 128>}]} {
    %c0 = arith.constant 0 : index
    %c0_0 = arith.constant 0 : index
    %0 = vector.load %arg2[%c0, %c0_0] : memref<1x128xf32, #tpu.memory_space<vmem>>, vector<1x128xf32>
    %cst = arith.constant 0.001953125 : f32
    %1 = vector.broadcast %cst : f32 to vector<1x128xf32>
    %2 = arith.mulf %0, %1 : vector<1x128xf32>
    %c0_1 = arith.constant 0 : index
    %c0_2 = arith.constant 0 : index
    %3 = vector.load %arg3[%c0_1, %c0_2] : memref<1x128xf32, #tpu.memory_space<vmem>>, vector<1x128xf32>
    %cst_3 = arith.constant 0.001953125 : f32
    %4 = vector.broadcast %cst_3 : f32 to vector<1x128xf32>
    %5 = arith.mulf %3, %4 : vector<1x128xf32>
    %6 = arith.mulf %2, %2 : vector<1x128xf32>
    %7 = arith.subf %5, %6 : vector<1x128xf32>
    %cst_4 = arith.constant 0.000000e+00 : f32
    %8 = vector.broadcast %cst_4 : f32 to vector<1x128xf32>
    %9 = arith.maximumf %7, %8 : vector<1x128xf32>
    %c0_5 = arith.constant 0 : index
    %c0_6 = arith.constant 0 : index
    %10 = vector.load %arg4[%c0_5, %c0_6] : memref<1x128xf32, #tpu.memory_space<vmem>>, vector<1x128xf32>
    %cst_7 = arith.constant 9.99999974E-6 : f32
    %11 = vector.broadcast %cst_7 : f32 to vector<1x128xf32>
    %12 = arith.addf %9, %11 : vector<1x128xf32>
    %13 = math.rsqrt %12 : vector<1x128xf32>
    %14 = arith.mulf %10, %13 : vector<1x128xf32>
    %c0_8 = arith.constant 0 : index
    %c0_9 = arith.constant 0 : index
    %15 = vector.load %arg5[%c0_8, %c0_9] : memref<1x128xf32, #tpu.memory_space<vmem>>, vector<1x128xf32>
    %16 = arith.mulf %2, %14 : vector<1x128xf32>
    %17 = arith.subf %15, %16 : vector<1x128xf32>
    %c0_10 = arith.constant 0 : index
    %c0_11 = arith.constant 0 : index
    %18 = vector.load %arg1[%c0_10, %c0_11] : memref<512x128xbf16, #tpu.memory_space<vmem>>, vector<512x128xbf16>
    %19 = arith.extf %18 : vector<512x128xbf16> to vector<512x128xf32>
    %20 = vector.broadcast %14 : vector<1x128xf32> to vector<512x128xf32>
    %21 = arith.mulf %19, %20 : vector<512x128xf32>
    %22 = vector.broadcast %17 : vector<1x128xf32> to vector<512x128xf32>
    %23 = arith.addf %21, %22 : vector<512x128xf32>
    %cst_12 = arith.constant 0.000000e+00 : f32
    %24 = vector.broadcast %cst_12 : f32 to vector<512x128xf32>
    %25 = arith.maximumf %23, %24 : vector<512x128xf32>
    %26 = arith.truncf %25 : vector<512x128xf32> to vector<512x128xbf16>
    %c0_13 = arith.constant 0 : index
    %c0_14 = arith.constant 0 : index
    %27 = vector.load %arg6[%c0_13, %c0_14] : memref<512x128xbf16, #tpu.memory_space<vmem>>, vector<512x128xbf16>
    tpu.vector_store %arg6[%c0_13, %c0_14], %26 {strides = array<i32>} : memref<512x128xbf16, #tpu.memory_space<vmem>>, vector<512x128xbf16>,
    return
  }
  func.func @transform_0(%arg0: i32) -> (i32, i32) {
    %c0_i32 = arith.constant 0 : i32
    %c0_i32_0 = arith.constant 0 : i32
    return %arg0, %c0_i32 : i32, i32
  }
  func.func @transform_1(%arg0: i32) -> (i32, i32) {
    %c0_i32 = arith.constant 0 : i32
    %c0_i32_0 = arith.constant 0 : i32
    %c0_i32_1 = arith.constant 0 : i32
    return %c0_i32, %c0_i32_0 : i32, i32
  }
  func.func @transform_2(%arg0: i32) -> (i32, i32) {
    %c0_i32 = arith.constant 0 : i32
    %c0_i32_0 = arith.constant 0 : i32
    %c0_i32_1 = arith.constant 0 : i32
    return %c0_i32, %c0_i32_0 : i32, i32
  }
  func.func @transform_3(%arg0: i32) -> (i32, i32) {
    %c0_i32 = arith.constant 0 : i32
    %c0_i32_0 = arith.constant 0 : i32
    %c0_i32_1 = arith.constant 0 : i32
    return %c0_i32, %c0_i32_0 : i32, i32
  }
  func.func @transform_4(%arg0: i32) -> (i32, i32) {
    %c0_i32 = arith.constant 0 : i32
    %c0_i32_0 = arith.constant 0 : i32
    %c0_i32_1 = arith.constant 0 : i32
    return %c0_i32, %c0_i32_0 : i32, i32
  }
  func.func @transform_5(%arg0: i32) -> (i32, i32) {
    %c0_i32 = arith.constant 0 : i32
    %c0_i32_0 = arith.constant 0 : i32
    return %arg0, %c0_i32 : i32, i32
  }
}

module attributes {stable_mosaic.version = 11 : i64} {
  func.func @kernel(%arg0: i32, %arg1: i32, %arg2: memref<256x512xbf16, #tpu.memory_space<vmem>>, %arg3: memref<512x64xbf16, #tpu.memory_space<vmem>>, %arg4: memref<256x64xbf16, #tpu.memory_space<vmem>>) attributes {dimension_semantics = [#tpu.dimension_semantics<parallel>, #tpu.dimension_semantics<parallel>], iteration_bounds = array<i64: 2, 1>, scalar_prefetch = 0 : i64, scratch_operands = 0 : i64, tpu.core_type = #tpu.core_type<tc>, window_params = [{transform_indices = @transform_0, window_bounds = array<i64: 256, 512>}, {transform_indices = @transform_1, window_bounds = array<i64: 512, 64>}, {transform_indices = @transform_2, window_bounds = array<i64: 256, 64>}]} {
    %c0 = arith.constant 0 : index
    %c0_0 = arith.constant 0 : index
    %0 = vector.load %arg2[%c0, %c0_0] : memref<256x512xbf16, #tpu.memory_space<vmem>>, vector<256x512xbf16>
    %c0_1 = arith.constant 0 : index
    %c0_2 = arith.constant 0 : index
    %1 = vector.load %arg3[%c0_1, %c0_2] : memref<512x64xbf16, #tpu.memory_space<vmem>>, vector<512x64xbf16>
    %cst = arith.constant dense<0.000000e+00> : vector<256x64xf32>
    %2 = tpu.matmul %0, %1, %cst {dimension_numbers = #tpu.dot_dimension_numbers<[1], [0], [0], [1], [0, 0, 1, 1], [], []>} : vector<256x512xbf16>, vector<512x64xbf16>, vector<256x64xf32> -> vector<256x64xf32>
    %3 = arith.truncf %2 : vector<256x64xf32> to vector<256x64xbf16>
    %c0_3 = arith.constant 0 : index
    %c0_4 = arith.constant 0 : index
    %4 = vector.load %arg4[%c0_3, %c0_4] : memref<256x64xbf16, #tpu.memory_space<vmem>>, vector<256x64xbf16>
    tpu.vector_store %arg4[%c0_3, %c0_4], %3 {strides = array<i32>} : memref<256x64xbf16, #tpu.memory_space<vmem>>, vector<256x64xbf16>,
    return
  }
  func.func @transform_0(%arg0: i32, %arg1: i32) -> (i32, i32) {
    %c0_i32 = arith.constant 0 : i32
    %c0_i32_0 = arith.constant 0 : i32
    return %arg0, %c0_i32 : i32, i32
  }
  func.func @transform_1(%arg0: i32, %arg1: i32) -> (i32, i32) {
    %c0_i32 = arith.constant 0 : i32
    %c0_i32_0 = arith.constant 0 : i32
    return %c0_i32, %arg1 : i32, i32
  }
  func.func @transform_2(%arg0: i32, %arg1: i32) -> (i32, i32) {
    %c0_i32 = arith.constant 0 : i32
    return %arg0, %arg1 : i32, i32
  }
}

module attributes {stable_mosaic.version = 11 : i64} {
  func.func @_bn_stats_kernel(%arg0: i32, %arg1: memref<1024x64xbf16, #tpu.memory_space<vmem>>, %arg2: memref<1x64xf32, #tpu.memory_space<vmem>>, %arg3: memref<1x64xf32, #tpu.memory_space<vmem>>) attributes {dimension_semantics = [#tpu.dimension_semantics<arbitrary>], iteration_bounds = array<i64: 2>, scalar_prefetch = 0 : i64, scratch_operands = 0 : i64, tpu.core_type = #tpu.core_type<tc>, window_params = [{transform_indices = @transform_0, window_bounds = array<i64: 1024, 64>}, {pipeline_mode = #tpu.pipeline_mode<synchronous>, transform_indices = @transform_1, window_bounds = array<i64: 1, 64>}, {pipeline_mode = #tpu.pipeline_mode<synchronous>, transform_indices = @transform_2, window_bounds = array<i64: 1, 64>}]} {
    %c0_i32 = arith.constant 0 : i32
    %0 = arith.cmpi eq, %arg0, %c0_i32 : i32
    %1 = arith.extui %0 : i1 to i32
    %c0_i32_0 = arith.constant 0 : i32
    %2 = arith.cmpi ne, %1, %c0_i32_0 : i32
    scf.if %2 {
      %cst_11 = arith.constant 0.000000e+00 : f32
      %16 = vector.broadcast %cst_11 : f32 to vector<1x64xf32>
      %c0_12 = arith.constant 0 : index
      %c0_13 = arith.constant 0 : index
      %17 = vector.load %arg2[%c0_12, %c0_13] : memref<1x64xf32, #tpu.memory_space<vmem>>, vector<1x64xf32>
      tpu.vector_store %arg2[%c0_12, %c0_13], %16 {strides = array<i32>} : memref<1x64xf32, #tpu.memory_space<vmem>>, vector<1x64xf32>,
      %cst_14 = arith.constant 0.000000e+00 : f32
      %18 = vector.broadcast %cst_14 : f32 to vector<1x64xf32>
      %c0_15 = arith.constant 0 : index
      %c0_16 = arith.constant 0 : index
      %19 = vector.load %arg3[%c0_15, %c0_16] : memref<1x64xf32, #tpu.memory_space<vmem>>, vector<1x64xf32>
      tpu.vector_store %arg3[%c0_15, %c0_16], %18 {strides = array<i32>} : memref<1x64xf32, #tpu.memory_space<vmem>>, vector<1x64xf32>,
    } else {
    }
    %c0 = arith.constant 0 : index
    %c0_1 = arith.constant 0 : index
    %3 = vector.load %arg1[%c0, %c0_1] : memref<1024x64xbf16, #tpu.memory_space<vmem>>, vector<1024x64xbf16>
    %4 = arith.extf %3 : vector<1024x64xbf16> to vector<1024x64xf32>
    %c0_2 = arith.constant 0 : index
    %c0_3 = arith.constant 0 : index
    %5 = vector.load %arg2[%c0_2, %c0_3] : memref<1x64xf32, #tpu.memory_space<vmem>>, vector<1x64xf32>
    %cst = arith.constant dense<0.000000e+00> : vector<64xf32>
    %6 = vector.multi_reduction <add>, %4, %cst [0] : vector<1024x64xf32> to vector<64xf32>
    %7 = vector.shape_cast %6 : vector<64xf32> to vector<1x64xf32>
    %8 = arith.addf %5, %7 : vector<1x64xf32>
    %c0_4 = arith.constant 0 : index
    %c0_5 = arith.constant 0 : index
    %9 = vector.load %arg2[%c0_4, %c0_5] : memref<1x64xf32, #tpu.memory_space<vmem>>, vector<1x64xf32>
    tpu.vector_store %arg2[%c0_4, %c0_5], %8 {strides = array<i32>} : memref<1x64xf32, #tpu.memory_space<vmem>>, vector<1x64xf32>,
    %c0_6 = arith.constant 0 : index
    %c0_7 = arith.constant 0 : index
    %10 = vector.load %arg3[%c0_6, %c0_7] : memref<1x64xf32, #tpu.memory_space<vmem>>, vector<1x64xf32>
    %11 = arith.mulf %4, %4 : vector<1024x64xf32>
    %cst_8 = arith.constant dense<0.000000e+00> : vector<64xf32>
    %12 = vector.multi_reduction <add>, %11, %cst_8 [0] : vector<1024x64xf32> to vector<64xf32>
    %13 = vector.shape_cast %12 : vector<64xf32> to vector<1x64xf32>
    %14 = arith.addf %10, %13 : vector<1x64xf32>
    %c0_9 = arith.constant 0 : index
    %c0_10 = arith.constant 0 : index
    %15 = vector.load %arg3[%c0_9, %c0_10] : memref<1x64xf32, #tpu.memory_space<vmem>>, vector<1x64xf32>
    tpu.vector_store %arg3[%c0_9, %c0_10], %14 {strides = array<i32>} : memref<1x64xf32, #tpu.memory_space<vmem>>, vector<1x64xf32>,
    return
  }
  func.func @transform_0(%arg0: i32) -> (i32, i32) {
    %c0_i32 = arith.constant 0 : i32
    %c0_i32_0 = arith.constant 0 : i32
    return %arg0, %c0_i32 : i32, i32
  }
  func.func @transform_1(%arg0: i32) -> (i32, i32) {
    %c0_i32 = arith.constant 0 : i32
    %c0_i32_0 = arith.constant 0 : i32
    %c0_i32_1 = arith.constant 0 : i32
    return %c0_i32, %c0_i32_0 : i32, i32
  }
  func.func @transform_2(%arg0: i32) -> (i32, i32) {
    %c0_i32 = arith.constant 0 : i32
    %c0_i32_0 = arith.constant 0 : i32
    %c0_i32_1 = arith.constant 0 : i32
    return %c0_i32, %c0_i32_0 : i32, i32
  }
}

module attributes {stable_mosaic.version = 11 : i64} {
  func.func @_bn_apply_relu_kernel(%arg0: i32, %arg1: memref<1024x64xbf16, #tpu.memory_space<vmem>>, %arg2: memref<1x64xf32, #tpu.memory_space<vmem>>, %arg3: memref<1x64xf32, #tpu.memory_space<vmem>>, %arg4: memref<1x64xf32, #tpu.memory_space<vmem>>, %arg5: memref<1x64xf32, #tpu.memory_space<vmem>>, %arg6: memref<1024x64xbf16, #tpu.memory_space<vmem>>) attributes {dimension_semantics = [#tpu.dimension_semantics<parallel>], iteration_bounds = array<i64: 2>, scalar_prefetch = 0 : i64, scratch_operands = 0 : i64, tpu.core_type = #tpu.core_type<tc>, window_params = [{transform_indices = @transform_0, window_bounds = array<i64: 1024, 64>}, {pipeline_mode = #tpu.pipeline_mode<synchronous>, transform_indices = @transform_1, window_bounds = array<i64: 1, 64>}, {pipeline_mode = #tpu.pipeline_mode<synchronous>, transform_indices = @transform_2, window_bounds = array<i64: 1, 64>}, {pipeline_mode = #tpu.pipeline_mode<synchronous>, transform_indices = @transform_3, window_bounds = array<i64: 1, 64>}, {pipeline_mode = #tpu.pipeline_mode<synchronous>, transform_indices = @transform_4, window_bounds = array<i64: 1, 64>}, {transform_indices = @transform_5, window_bounds = array<i64: 1024, 64>}]} {
    %c0 = arith.constant 0 : index
    %c0_0 = arith.constant 0 : index
    %0 = vector.load %arg2[%c0, %c0_0] : memref<1x64xf32, #tpu.memory_space<vmem>>, vector<1x64xf32>
    %cst = arith.constant 4.8828125E-4 : f32
    %1 = vector.broadcast %cst : f32 to vector<1x64xf32>
    %2 = arith.mulf %0, %1 : vector<1x64xf32>
    %c0_1 = arith.constant 0 : index
    %c0_2 = arith.constant 0 : index
    %3 = vector.load %arg3[%c0_1, %c0_2] : memref<1x64xf32, #tpu.memory_space<vmem>>, vector<1x64xf32>
    %cst_3 = arith.constant 4.8828125E-4 : f32
    %4 = vector.broadcast %cst_3 : f32 to vector<1x64xf32>
    %5 = arith.mulf %3, %4 : vector<1x64xf32>
    %6 = arith.mulf %2, %2 : vector<1x64xf32>
    %7 = arith.subf %5, %6 : vector<1x64xf32>
    %cst_4 = arith.constant 0.000000e+00 : f32
    %8 = vector.broadcast %cst_4 : f32 to vector<1x64xf32>
    %9 = arith.maximumf %7, %8 : vector<1x64xf32>
    %c0_5 = arith.constant 0 : index
    %c0_6 = arith.constant 0 : index
    %10 = vector.load %arg4[%c0_5, %c0_6] : memref<1x64xf32, #tpu.memory_space<vmem>>, vector<1x64xf32>
    %cst_7 = arith.constant 9.99999974E-6 : f32
    %11 = vector.broadcast %cst_7 : f32 to vector<1x64xf32>
    %12 = arith.addf %9, %11 : vector<1x64xf32>
    %13 = math.rsqrt %12 : vector<1x64xf32>
    %14 = arith.mulf %10, %13 : vector<1x64xf32>
    %c0_8 = arith.constant 0 : index
    %c0_9 = arith.constant 0 : index
    %15 = vector.load %arg5[%c0_8, %c0_9] : memref<1x64xf32, #tpu.memory_space<vmem>>, vector<1x64xf32>
    %16 = arith.mulf %2, %14 : vector<1x64xf32>
    %17 = arith.subf %15, %16 : vector<1x64xf32>
    %c0_10 = arith.constant 0 : index
    %c0_11 = arith.constant 0 : index
    %18 = vector.load %arg1[%c0_10, %c0_11] : memref<1024x64xbf16, #tpu.memory_space<vmem>>, vector<1024x64xbf16>
    %19 = arith.extf %18 : vector<1024x64xbf16> to vector<1024x64xf32>
    %20 = vector.broadcast %14 : vector<1x64xf32> to vector<1024x64xf32>
    %21 = arith.mulf %19, %20 : vector<1024x64xf32>
    %22 = vector.broadcast %17 : vector<1x64xf32> to vector<1024x64xf32>
    %23 = arith.addf %21, %22 : vector<1024x64xf32>
    %cst_12 = arith.constant 0.000000e+00 : f32
    %24 = vector.broadcast %cst_12 : f32 to vector<1024x64xf32>
    %25 = arith.maximumf %23, %24 : vector<1024x64xf32>
    %26 = arith.truncf %25 : vector<1024x64xf32> to vector<1024x64xbf16>
    %c0_13 = arith.constant 0 : index
    %c0_14 = arith.constant 0 : index
    %27 = vector.load %arg6[%c0_13, %c0_14] : memref<1024x64xbf16, #tpu.memory_space<vmem>>, vector<1024x64xbf16>
    tpu.vector_store %arg6[%c0_13, %c0_14], %26 {strides = array<i32>} : memref<1024x64xbf16, #tpu.memory_space<vmem>>, vector<1024x64xbf16>,
    return
  }
  func.func @transform_0(%arg0: i32) -> (i32, i32) {
    %c0_i32 = arith.constant 0 : i32
    %c0_i32_0 = arith.constant 0 : i32
    return %arg0, %c0_i32 : i32, i32
  }
  func.func @transform_1(%arg0: i32) -> (i32, i32) {
    %c0_i32 = arith.constant 0 : i32
    %c0_i32_0 = arith.constant 0 : i32
    %c0_i32_1 = arith.constant 0 : i32
    return %c0_i32, %c0_i32_0 : i32, i32
  }
  func.func @transform_2(%arg0: i32) -> (i32, i32) {
    %c0_i32 = arith.constant 0 : i32
    %c0_i32_0 = arith.constant 0 : i32
    %c0_i32_1 = arith.constant 0 : i32
    return %c0_i32, %c0_i32_0 : i32, i32
  }
  func.func @transform_3(%arg0: i32) -> (i32, i32) {
    %c0_i32 = arith.constant 0 : i32
    %c0_i32_0 = arith.constant 0 : i32
    %c0_i32_1 = arith.constant 0 : i32
    return %c0_i32, %c0_i32_0 : i32, i32
  }
  func.func @transform_4(%arg0: i32) -> (i32, i32) {
    %c0_i32 = arith.constant 0 : i32
    %c0_i32_0 = arith.constant 0 : i32
    %c0_i32_1 = arith.constant 0 : i32
    return %c0_i32, %c0_i32_0 : i32, i32
  }
  func.func @transform_5(%arg0: i32) -> (i32, i32) {
    %c0_i32 = arith.constant 0 : i32
    %c0_i32_0 = arith.constant 0 : i32
    return %arg0, %c0_i32 : i32, i32
  }
}

module attributes {stable_mosaic.version = 11 : i64} {
  func.func @kernel(%arg0: i32, %arg1: i32, %arg2: memref<256x256xbf16, #tpu.memory_space<vmem>>, %arg3: memref<256x128xbf16, #tpu.memory_space<vmem>>, %arg4: memref<256x128xf32, #tpu.memory_space<vmem>>) attributes {dimension_semantics = [#tpu.dimension_semantics<parallel>, #tpu.dimension_semantics<parallel>], iteration_bounds = array<i64: 8, 1>, scalar_prefetch = 0 : i64, scratch_operands = 0 : i64, tpu.core_type = #tpu.core_type<tc>, window_params = [{transform_indices = @transform_0, window_bounds = array<i64: 256, 256>}, {transform_indices = @transform_1, window_bounds = array<i64: 256, 128>}, {transform_indices = @transform_2, window_bounds = array<i64: 256, 128>}]} {
    %c0 = arith.constant 0 : index
    %c0_0 = arith.constant 0 : index
    %0 = vector.load %arg2[%c0, %c0_0] : memref<256x256xbf16, #tpu.memory_space<vmem>>, vector<256x256xbf16>
    %c0_1 = arith.constant 0 : index
    %c0_2 = arith.constant 0 : index
    %1 = vector.load %arg3[%c0_1, %c0_2] : memref<256x128xbf16, #tpu.memory_space<vmem>>, vector<256x128xbf16>
    %cst = arith.constant dense<0.000000e+00> : vector<256x128xf32>
    %2 = tpu.matmul %0, %1, %cst {dimension_numbers = #tpu.dot_dimension_numbers<[1], [0], [0], [1], [0, 0, 1, 1], [], []>} : vector<256x256xbf16>, vector<256x128xbf16>, vector<256x128xf32> -> vector<256x128xf32>
    %3 = math.tanh %2 : vector<256x128xf32>
    %c0_3 = arith.constant 0 : index
    %c0_4 = arith.constant 0 : index
    %4 = vector.load %arg4[%c0_3, %c0_4] : memref<256x128xf32, #tpu.memory_space<vmem>>, vector<256x128xf32>
    tpu.vector_store %arg4[%c0_3, %c0_4], %3 {strides = array<i32>} : memref<256x128xf32, #tpu.memory_space<vmem>>, vector<256x128xf32>,
    return
  }
  func.func @transform_0(%arg0: i32, %arg1: i32) -> (i32, i32) {
    %c0_i32 = arith.constant 0 : i32
    %c0_i32_0 = arith.constant 0 : i32
    return %arg0, %c0_i32 : i32, i32
  }
  func.func @transform_1(%arg0: i32, %arg1: i32) -> (i32, i32) {
    %c0_i32 = arith.constant 0 : i32
    %c0_i32_0 = arith.constant 0 : i32
    return %c0_i32, %arg1 : i32, i32
  }
  func.func @transform_2(%arg0: i32, %arg1: i32) -> (i32, i32) {
    %c0_i32 = arith.constant 0 : i32
    return %arg0, %arg1 : i32, i32
  }
}

</mosaic_0001>

<bundles_post_ra>
// kernel: generator_forward.25
= control target key start
LH: loop header
LB: loop body
LE: loop exit
PB: predicated region body
PF: predicated region fallthrough
CT: control target
= control target key end

     0   :  { %s699_s9 = smov 0   ;;  %s701_s10 = smov 0   ;;  %s785_s0 = inlined_call_operand.vmem [shape: bf16[2,64], index: 0, kind: input, shape index: {}]   ;;  %s786_s1 = inlined_call_operand.vmem [shape: bf16[64,8192], index: 1, kind: input, shape index: {}]   ;;  %s787_s2 = inlined_call_operand.vmem [shape: bf16[2,8192], index: 2, kind: output, shape index: {}]  }
   0x1   :  { %s703_s11 = smov 0   ;;  %s705_s12 = smov 0  }
   0x2   :  { %s707_s13 = smov 0  }
   0x3 LB: > { %s21_s14 = sadd.s32 1, %s676_s12  ;;  %p64_p1 = scmp.ne.s32.totalorder %s668_s10, %s664_s9  ;;  %s680_s13 = sphi %s707_s13, %s12_s13   ;;  %s676_s12 = sphi %s705_s12, %s791_s12   ;;  %s672_s11 = sphi %s703_s11, %s790_s11   ;;  %s668_s10 = sphi %s701_s10, %s789_s10   ;;  %s664_s9 = sphi %s699_s9, %s788_s9  }
   0x4   : > { %p22_p0 = scmp.ge.s32.totalorder %s21_s14, 16  ;;  %p65_p2 = scmp.eq.s32.totalorder %s680_s13, 0 }
   0x5   : > { %s57_s16 = sadd.s32 1, %s668_s10  ;;  %p545_p5 = scmp.ge.s32.totalorder %s680_s13, 16 }
   0x6   : > { %s793_s14 = smov (%p22_p0, %s21_s14), 0  ;;  %p66_p3 = por %p65_p2, %p64_p1 }
   0x7   : > { %s54_s15 = ssub.s32 %s676_s12, %s793_s14  ;;  %124 = sbr.rel (%p545_p5) target bundleno = 26 (0x1a), region = 20 }
   0x8   : > { %p55_p4 = scmp.eq.s32.totalorder %s54_s15, 0 }
   0xa   : > { %s734_s17 = scalar_select %p55_p4, %s668_s10, %s57_s16  }
   0xe   : > { %127 = sbr.rel (!%p66_p3) target bundleno = 26 (0x1a), region = 24  ;;  %s129_s18 = sand.u32 (%p66_p3), 1, %s668_s10  }
   0xf   : > { %s575_s19 = sshll.u32 (%p66_p3), %s676_s12, 4  ;;  %s546_s20 = sshll.u32 (%p66_p3), %s129_s18, 7 }
  0x10   : > { %s742_s23 = scalar_lea.vmem (%p66_p3), %s786_s1, %s575_s19  ;;  %s131_s24 = scalar_lea.vmem (%p66_p3), [#allocation2], %s546_s20 }
  0x11   : > { %v147_v0 = vld [vmem:[%s742_s23] sm:$0xff] (%p66_p3)  ;;  %v149_v1 = vld [vmem:[%s742_s23 + $0x8] sm:$0xff] (%p66_p3) }
  0x12   : > { %v151_v2 = vld [vmem:[%s742_s23 + $0x100] sm:$0xff] (%p66_p3)  ;;  %148 = vst [vmem:[%s131_s24] sm:$0xff] (%p66_p3), %v147_v0  ;;  %150 = vst [vmem:[%s131_s24 + $0x8] sm:$0xff] (%p66_p3), %v149_v1  ;;  %v153_v3 = vld [vmem:[%s742_s23 + $0x108] sm:$0xff] (%p66_p3) }
  0x13   : > { %152 = vst [vmem:[%s131_s24 + $0x10] sm:$0xff] (%p66_p3), %v151_v2  ;;  %v155_v4 = vld [vmem:[%s742_s23 + $0x200] sm:$0xff] (%p66_p3)  ;;  %v157_v5 = vld [vmem:[%s742_s23 + $0x208] sm:$0xff] (%p66_p3)  ;;  %154 = vst [vmem:[%s131_s24 + $0x18] sm:$0xff] (%p66_p3), %v153_v3 }
  0x14   : > { %156 = vst [vmem:[%s131_s24 + $0x20] sm:$0xff] (%p66_p3), %v155_v4  ;;  %158 = vst [vmem:[%s131_s24 + $0x28] sm:$0xff] (%p66_p3), %v157_v5  ;;  %v159_v6 = vld [vmem:[%s742_s23 + $0x300] sm:$0xff] (%p66_p3)  ;;  %v161_v7 = vld [vmem:[%s742_s23 + $0x308] sm:$0xff] (%p66_p3) }
  0x15   : > { %v163_v8 = vld [vmem:[%s742_s23 + $0x400] sm:$0xff]  ;;  %160 = vst [vmem:[%s131_s24 + $0x30] sm:$0xff] %v159_v6  ;;  %162 = vst [vmem:[%s131_s24 + $0x38] sm:$0xff] %v161_v7  ;;  %v165_v9 = vld [vmem:[%s742_s23 + $0x408] sm:$0xff] }
  0x16   : > { %164 = vst [vmem:[%s131_s24 + $0x40] sm:$0xff] %v163_v8  ;;  %v167_v10 = vld [vmem:[%s742_s23 + $0x500] sm:$0xff]  ;;  %v169_v11 = vld [vmem:[%s742_s23 + $0x508] sm:$0xff]  ;;  %166 = vst [vmem:[%s131_s24 + $0x48] sm:$0xff] %v165_v9 }
  0x17   : > { %168 = vst [vmem:[%s131_s24 + $0x50] sm:$0xff] %v167_v10  ;;  %170 = vst [vmem:[%s131_s24 + $0x58] sm:$0xff] %v169_v11  ;;  %v171_v12 = vld [vmem:[%s742_s23 + $0x600] sm:$0xff]  ;;  %v173_v13 = vld [vmem:[%s742_s23 + $0x608] sm:$0xff] }
  0x18   : > { %v175_v14 = vld [vmem:[%s742_s23 + $0x700] sm:$0xff]  ;;  %172 = vst [vmem:[%s131_s24 + $0x60] sm:$0xff] %v171_v12  ;;  %174 = vst [vmem:[%s131_s24 + $0x68] sm:$0xff] %v173_v13  ;;  %v177_v15 = vld [vmem:[%s742_s23 + $0x708] sm:$0xff] }
  0x19   : > { %176 = vst [vmem:[%s131_s24 + $0x70] sm:$0xff] %v175_v14  ;;  %178 = vst [vmem:[%s131_s24 + $0x78] sm:$0xff] %v177_v15 }
  0x1a PF: > { %p549_p6 = scmp.ge.s32.totalorder %s680_s13, 1  ;;  %p183_p7 = scmp.lt.s32.totalorder %s680_s13, 17 }
  0x1c   : > { %p184_p8 = pnand %p549_p6, %p183_p7 }
  0x1d   : > { %s190_s25 = sand.u32 (!%p184_p8), 1, %s664_s9   ;;  %v682_v16 = vmov (!%p184_p8), 0   ;;  %v231_v33 = vld [vmem:[%s785_s0] sm:$0x1] (!%p184_p8)  ;;  %vm328_vm0 = vcmask (!%p184_p8), 523264   ;;  %v427_v36 = vlaneseq (!%p184_p8)  ;;  %s551_s30 = sshll.u32 (!%p184_p8), %s672_s11, 2 }
  0x1e   : > { %187 = sbr.rel (%p184_p8) target bundleno = 269 (0x10d), region = 47  ;;  %s550_s26 = sshll.u32 (!%p184_p8), %s190_s25, 7  ;;  %364 = vmatprep.mubr.bf16.mxu0 (!%p184_p8), %v682_v16  ;;  %405 = vmatprep.mubr.bf16.mxu1 (!%p184_p8), %v682_v16  ;;  %v683_v34 = vmov (!%p184_p8), 1966171168  }
  0x1f   : > { %s192_s27 = scalar_lea.vmem (!%p184_p8), [#allocation2], %s550_s26  ;;  %v425_v35 = vunpack.c.l.s4 (!%p184_p8), %v683_v34  ;;  %v428_v38 = vshrl.u32 (!%p184_p8), %v427_v36, 7  ;;  %p224_p9 = scmp.lt.s32.totalorder (!%p184_p8), %s551_s30, 63 }
  0x20   : > { %v618_v17 = vld [vmem:[%s192_s27 + $0x4] ss:$16 sps:$4 sm:$0xff] (!%p184_p8)   ;;  %v620_v18 = vld [vmem:[%s192_s27 + $0xc] ss:$16 sps:$4 sm:$0xff] (!%p184_p8)   ;;  %v622_v19 = vld [vmem:[%s192_s27] ss:$16 sps:$4 sm:$0xff] (!%p184_p8)  }
  0x21   : > { %332 = vmatprep.subr.bf16.mxu0 (!%p184_p8), %v618_v17  ;;  %v623_v20 = vld [vmem:[%s192_s27 + $0x8] ss:$16 sps:$4 sm:$0xff] (!%p184_p8)   ;;  %373 = vmatprep.subr.bf16.mxu1 (!%p184_p8), %v620_v18  ;;  %v624_v21 = vld [vmem:[%s192_s27 + $0x24] ss:$16 sps:$4 sm:$0xff] (!%p184_p8)   ;;  %v626_v22 = vld [vmem:[%s192_s27 + $0x2c] ss:$16 sps:$4 sm:$0xff] (!%p184_p8)   ;;  %v426_v37 = vunpack.c.0.s8 (!%p184_p8), %v425_v35 }
  0x22   : > { %333 = vmatpush1.bf16.msra.mxu0 (!%p184_p8), %v622_v19  ;;  %374 = vmatpush1.bf16.msra.mxu1 (!%p184_p8), %v623_v20  ;;  %v628_v23 = vld [vmem:[%s192_s27 + $0x20] ss:$16 sps:$4 sm:$0xff] (!%p184_p8)   ;;  %v629_v24 = vld [vmem:[%s192_s27 + $0x28] ss:$16 sps:$4 sm:$0xff] (!%p184_p8)   ;;  %v630_v25 = vld [vmem:[%s192_s27 + $0x44] ss:$16 sps:$4 sm:$0xff] (!%p184_p8)  }
  0x23   : > { %334 = vmatprep.subr.bf16.mxu0 (!%p184_p8), %v624_v21  ;;  %375 = vmatprep.subr.bf16.mxu1 (!%p184_p8), %v626_v22  ;;  %v632_v26 = vld [vmem:[%s192_s27 + $0x4c] ss:$16 sps:$4 sm:$0xff] (!%p184_p8)   ;;  %v634_v27 = vld [vmem:[%s192_s27 + $0x40] ss:$16 sps:$4 sm:$0xff] (!%p184_p8)   ;;  %v635_v28 = vld [vmem:[%s192_s27 + $0x48] ss:$16 sps:$4 sm:$0xff] (!%p184_p8)   ;;  %v429_v41 = vsub.s32 (!%p184_p8), %v426_v37, %v428_v38 }
  0x24   : > { %v636_v29 = vld [vmem:[%s192_s27 + $0x64] ss:$16 sps:$4 sm:$0xff] (!%p184_p8)   ;;  %v638_v30 = vld [vmem:[%s192_s27 + $0x6c] ss:$16 sps:$4 sm:$0xff] (!%p184_p8)   ;;  %v640_v31 = vld [vmem:[%s192_s27 + $0x60] ss:$16 sps:$4 sm:$0xff] (!%p184_p8)  }
  0x25   : > { %v641_v32 = vld [vmem:[%s192_s27 + $0x68] ss:$16 sps:$4 sm:$0xff]   ;;  %s795_s30 = smov (!%p224_p9, %s551_s30), 63 }
  0x26   : > { %335 = vmatpush1.bf16.msra.mxu0 %v628_v23  ;;  %376 = vmatpush1.bf16.msra.mxu1 %v629_v24  ;;  %s228_s5 = scalar_lea.vmem %s787_s2, %s795_s30 }
  0x27   : > { %336 = vmatprep.subr.bf16.mxu0 %v630_v25  ;;  %377 = vmatprep.subr.bf16.mxu1 %v632_v26 }
  0x2a   : > { %337 = vmatpush1.bf16.msra.mxu0 %v634_v27  ;;  %378 = vmatpush1.bf16.msra.mxu1 %v635_v28 }
  0x2b   : > { %338 = vmatprep.subr.bf16.mxu0 %v636_v29  ;;  %379 = vmatprep.subr.bf16.mxu1 %v638_v30 }
  0x2e   : > { %339 = vmatpush1.bf16.msra.mxu0 %v640_v31  ;;  %380 = vmatpush1.bf16.msra.mxu1 %v641_v32 }
  0x31   : > { %568 = vmatmul.mubr.msk.bf16.vlgmr.msra.gmra.mrb[0].mxu0 %vm328_vm0, %v231_v33  ;;  %569 = vmatmul.mubr.msk.bf16.vlgmr.msra.gmra.mrb[0].mxu1 %vm328_vm0, %v231_v33 }
 0x104   : > { %v366_v39 = vpop.f32.mrb[0].mxu0  ;;  %v407_v40 = vpop.f32.mrb[0].mxu1 }
 0x105   : > { %v368_v42 = vpop.f32.mrb[1].mxu0  ;;  %v409_v43 = vpop.f32.mrb[1].mxu1 }
 0x106   : > { %v570_v44 = vpack.c.bf16 %v368_v42, %v366_v39  ;;  %v571_v45 = vpack.c.bf16 %v409_v43, %v407_v40  ;;  %v370_v46 = vpop.f32.mrb[2].mxu0  ;;  %v411_v47 = vpop.f32.mrb[2].mxu1 }
 0x107   : > { %v371_v48 = vpop.f32.mrb[3].mxu0  ;;  %v412_v49 = vpop.f32.mrb[3].mxu1 }
 0x108   : > { %v430_v50 = vrot.slane %v570_v44, %v429_v41  ;;  %v437_v51 = vrot.slane %v571_v45, %v429_v41 }
 0x10a   : > { %v438_v52 = vcombine.low %v430_v50, %v437_v51 }
 0x10c   : > { %572 = vst.sshfl [vmem:[%s228_s5] sm:$0x55 pattern:$0x73625140] %v438_v52 }
 0x10d PF: > { %s12_s13 = sadd.s32 1, %s680_s13   ;;  %s788_s9 = smov %s668_s10 }
 0x10e   : > { %p9_p10 = scmp.ge.s32.totalorder %s12_s13, 18   ;;  %s789_s10 = smov %s734_s17 }
 0x10f   : > { %s790_s11 = smov %s676_s12  ;;  %s791_s12 = smov %s793_s14 }
 0x110   :  { %11 = sbr.rel (!%p9_p10) target bundleno = 3 (0x3), region = 89 }

// kernel: generator_forward.26
= control target key start
LH: loop header
LB: loop body
LE: loop exit
PB: predicated region body
PF: predicated region fallthrough
CT: control target
= control target key end

     0   :  { %v14_v0 = vlaneseq  ;;  %v250_v4 = vmov 1966171168   ;;  %v251_v13 = vmov 0.0   ;;  %s336_s0 = inlined_call_operand.vmem [shape: bf16[32,512], index: 0, kind: input, shape index: {}]   ;;  %s337_s1 = inlined_call_operand.vmem [shape: f32[1,512], index: 1, kind: output, shape index: {0}]   ;;  %s338_s2 = inlined_call_operand.vmem [shape: f32[1,512], index: 2, kind: output, shape index: {1}]  }
   0x1   :  { %v20_v1 = vld [vmem:[%s336_s0] sm:$0xff]  ;;  %v21_v2 = vld [vmem:[%s336_s0 + $0x8] sm:$0xff]  ;;  %v22_v3 = vld [vmem:[%s336_s0 + $0x10] sm:$0xff]  ;;  %v88_v5 = vunpack.c.l.s4 %v250_v4 }
   0x2   :  { %vm277_vm0 = vcmp.lt.s32.totalorder %v14_v0, 512  ;;  %v23_v7 = vld [vmem:[%s336_s0 + $0x18] sm:$0xff]  ;;  %v24_v8 = vld [vmem:[%s336_s0 + $0x20] sm:$0xff]  ;;  %v25_v9 = vld [vmem:[%s336_s0 + $0x28] sm:$0xff]  ;;  %v28_v10 = vunpack.c.l.bf16 %v20_v1  ;;  %v29_v11 = vunpack.c.h.bf16 %v20_v1  ;;  %v30_v12 = vunpack.c.l.bf16 %v21_v2 }
   0x3   :  { %18 = vst.msk [vmem:[%s337_s1] sm:$0xf] %vm277_vm0, %v251_v13  ;;  %v26_v14 = vld [vmem:[%s336_s0 + $0x30] sm:$0xff]  ;;  %v301_v15 = vld [vmem:[%s336_s0 + $0x38] sm:$0xff]  ;;  %v31_v16 = vunpack.c.h.bf16 %v21_v2  ;;  %v32_v17 = vunpack.c.l.bf16 %v22_v3  ;;  %v33_v18 = vunpack.c.h.bf16 %v22_v3  ;;  %v34_v19 = vunpack.c.l.bf16 %v23_v7  ;;  %19 = vst.msk [vmem:[%s338_s2] sm:$0xf] %vm277_vm0, %v251_v13 }
   0x4   :  { %v35_v20 = vunpack.c.h.bf16 %v23_v7  ;;  %v36_v21 = vunpack.c.l.bf16 %v24_v8  ;;  %v37_v22 = vunpack.c.h.bf16 %v24_v8  ;;  %v38_v23 = vunpack.c.l.bf16 %v25_v9 }
   0x5   :  { %v39_v24 = vunpack.c.h.bf16 %v25_v9  ;;  %v40_v25 = vunpack.c.l.bf16 %v26_v14  ;;  %v41_v26 = vunpack.c.h.bf16 %v26_v14  ;;  %v42_v27 = vunpack.c.l.bf16 %v301_v15 }
   0x6   :  { %v43_v28 = vunpack.c.h.bf16 %v301_v15  ;;  %v45_v29 = vadd.f32 %v32_v17, %v28_v10  ;;  %v54_v30 = vadd.f32 %v33_v18, %v29_v11  ;;  %v63_v31 = vadd.f32 %v34_v19, %v30_v12 }
   0x7   :  { %v72_v32 = vadd.f32 %v35_v20, %v31_v16  ;;  %v89_v33 = vunpack.c.0.s8 %v88_v5  ;;  %v91_v34 = vshrl.u32 %v14_v0, 7  ;;  %210 = vmul.bf16.f32.vacc0 %v20_v1, %v20_v1 }
   0x8   :  { %v46_v35 = vadd.f32 %v45_v29, %v36_v21  ;;  %v55_v36 = vadd.f32 %v54_v30, %v37_v22  ;;  %v64_v37 = vadd.f32 %v63_v31, %v38_v23  ;;  %211 = vmac.bf16.f32.vacc0 %v22_v3, %v22_v3 }
   0x9   :  { %v73_v38 = vadd.f32 %v72_v32, %v39_v24  ;;  %v310_v39 = vsub.s32 %v89_v33, %v91_v34  ;;  %230 = vmul.bf16.f32.vacc1 %v21_v2, %v21_v2  ;;  %212 = vmac.bf16.f32.vacc0 %v24_v8, %v24_v8 }
   0xa   :  { %v47_v40 = vadd.f32 %v46_v35, %v40_v25  ;;  %v56_v41 = vadd.f32 %v55_v36, %v41_v26  ;;  %v65_v42 = vadd.f32 %v64_v37, %v42_v27  ;;  %231 = vmac.bf16.f32.vacc1 %v23_v7, %v23_v7 }
   0xb   :  { %v74_v43 = vadd.f32 %v73_v38, %v43_v28  ;;  %232 = vmac.bf16.f32.vacc1 %v25_v9, %v25_v9  ;;  %213 = vmac.bf16.f32.vacc0 %v26_v14, %v26_v14  ;;  %v252_v10 = vmov 1935823168  }
   0xc   :  { %v48_v44 = vrot.slane %v47_v40, 4  ;;  %v57_v45 = vrot.slane %v56_v41, 4  ;;  %v66_v46 = vrot.slane %v65_v42, 4  ;;  %v218_v1 = vunpack.c.l.s4 %v252_v10 }
   0xd   :  { %v75_v47 = vrot.slane %v74_v43, 4  ;;  %v214_v63 = vmovacc.add.low.vacc0  ;;  %233 = vmac.bf16.f32.vacc1 %v301_v15, %v301_v15 }
   0xe   :  { %v49_v48 = vadd.f32 %v48_v44, %v47_v40  ;;  %v58_v49 = vadd.f32 %v57_v45, %v56_v41  ;;  %v67_v50 = vadd.f32 %v66_v46, %v65_v42  ;;  %v215_v0 = vmovacc.add.high.vacc0 }
   0xf   :  { %v76_v51 = vadd.f32 %v75_v47, %v74_v43  ;;  %v219_v3 = vunpack.c.0.s8 %v218_v1  ;;  %v234_v8 = vmovacc.add.low.vacc1  ;;  %v44_v43 = vld [vmem:[%s337_s1] sm:$0xf] }
  0x10   :  { %v50_v52 = vrot.slane %v49_v48, 2  ;;  %v59_v53 = vrot.slane %v58_v49, 2  ;;  %v68_v54 = vrot.slane %v67_v50, 2  ;;  %v216_v4 = vcombine.low %v214_v63, %v215_v0 }
  0x11   :  { %v77_v55 = vrot.slane %v76_v51, 2  ;;  %v217_v5 = vcombine.high %v214_v63, %v215_v0  ;;  %v222_v11 = vsub.s32 %v219_v3, %v91_v34  ;;  %v235_v9 = vmovacc.add.high.vacc1 }
  0x12   :  { %v51_v56 = vadd.f32 %v50_v52, %v49_v48  ;;  %v60_v57 = vadd.f32 %v59_v53, %v58_v49  ;;  %v69_v58 = vadd.f32 %v68_v54, %v67_v50 }
  0x13   :  { %v78_v59 = vadd.f32 %v77_v55, %v76_v51  ;;  %v223_v2 = vrot.slane %v216_v4, %v222_v11  ;;  %v229_v7 = vrot.slane %v217_v5, %v222_v11  ;;  %v236_v13 = vcombine.low %v234_v8, %v235_v9 }
  0x14   :  { %v52_v60 = vrot.slane %v51_v56, 1  ;;  %v61_v61 = vrot.slane %v60_v57, 1  ;;  %v70_v62 = vrot.slane %v69_v58, 1  ;;  %v237_v16 = vcombine.high %v234_v8, %v235_v9 }
  0x15   :  { %v79_v12 = vrot.slane %v78_v59, 1  ;;  %v243_v17 = vrot.slane %v236_v13, %v222_v11  ;;  %v136_v21 = vrot.slane %v223_v2, 4  ;;  %v145_v23 = vrot.slane %v229_v7, 4 }
  0x16   :  { %v249_v14 = vrot.slane %v237_v16, %v222_v11  ;;  %v53_v18 = vadd.f32 %v52_v60, %v51_v56  ;;  %v62_v19 = vadd.f32 %v61_v61, %v60_v57  ;;  %v71_v20 = vadd.f32 %v70_v62, %v69_v58 }
  0x17   :  { %v80_v22 = vadd.f32 %v79_v12, %v78_v59  ;;  %v154_v24 = vrot.slane %v243_v17, 4  ;;  %v137_v27 = vadd.f32 %v223_v2, %v136_v21  ;;  %v146_v29 = vadd.f32 %v229_v7, %v145_v23  ;;  %v116_v59 = vld [vmem:[%s338_s2] sm:$0xf] }
  0x18   :  { %v163_v25 = vrot.slane %v249_v14, 4  ;;  %v85_v26 = vcombine.low %v53_v18, %v62_v19 }
  0x19   :  { %v86_v28 = vcombine.low %v71_v20, %v80_v22  ;;  %v155_v30 = vadd.f32 %v243_v17, %v154_v24  ;;  %v138_v32 = vrot.slane %v137_v27, 2  ;;  %v147_v34 = vrot.slane %v146_v29, 2 }
  0x1a   :  { %v164_v15 = vadd.f32 %v249_v14, %v163_v25  ;;  %v93_v31 = vrot.slane %v85_v26, %v310_v39 }
  0x1b   :  { %v100_v33 = vrot.slane %v86_v28, %v310_v39  ;;  %v156_v35 = vrot.slane %v155_v30, 2  ;;  %v139_v37 = vadd.f32 %v138_v32, %v137_v27  ;;  %v148_v40 = vadd.f32 %v147_v34, %v146_v29 }
  0x1c   :  { %v165_v36 = vrot.slane %v164_v15, 2 }
  0x1d   :  { %v101_v38 = vcombine.low %v93_v31, %v100_v33  ;;  %v157_v41 = vadd.f32 %v156_v35, %v155_v30  ;;  %v140_v44 = vrot.slane %v139_v37, 1  ;;  %v149_v46 = vrot.slane %v148_v40, 1 }
  0x1e   :  { %v166_v42 = vadd.f32 %v165_v36, %v164_v15 }
  0x1f   :  { %v108_v45 = vrot.slane %v101_v38, %v310_v39  ;;  %v158_v47 = vrot.slane %v157_v41, 1  ;;  %v141_v49 = vadd.f32 %v140_v44, %v139_v37  ;;  %v150_v51 = vadd.f32 %v149_v46, %v148_v40 }
  0x20   :  { %v167_v48 = vrot.slane %v166_v42, 1 }
  0x21   :  { %v110_v50 = vadd.f32 %v108_v45, %v44_v43  ;;  %v159_v52 = vadd.f32 %v158_v47, %v157_v41  ;;  %v173_v54 = vcombine.low %v141_v49, %v150_v51 }
  0x22   :  { %v168_v53 = vadd.f32 %v167_v48, %v166_v42 }
  0x23   :  { %115 = vst.msk [vmem:[%s337_s1] sm:$0xf] %vm277_vm0, %v110_v50  ;;  %v181_v56 = vrot.slane %v173_v54, %v310_v39 }
  0x24   :  { %v174_v55 = vcombine.low %v159_v52, %v168_v53 }
  0x26   :  { %v188_v57 = vrot.slane %v174_v55, %v310_v39 }
  0x28   :  { %v189_v58 = vcombine.low %v181_v56, %v188_v57 }
  0x2a   :  { %v196_v60 = vrot.slane %v189_v58, %v310_v39 }
  0x2c   :  { %v198_v61 = vadd.f32 %v196_v60, %v116_v59 }
  0x2e   :  { %199 = vst.msk [vmem:[%s338_s2] sm:$0xf] %vm277_vm0, %v198_v61 }

// kernel: generator_forward.27
= control target key start
LH: loop header
LB: loop body
LE: loop exit
PB: predicated region body
PF: predicated region fallthrough
CT: control target
= control target key end

     0   :  { %v59_v8 = vlaneseq  ;;  %s328_s1 = inlined_call_operand.vmem [shape: f32[1,512], index: 1, kind: input, shape index: {}]   ;;  %s329_s2 = inlined_call_operand.vmem [shape: f32[1,512], index: 2, kind: input, shape index: {}]   ;;  %s330_s0 = inlined_call_operand.vmem [shape: bf16[32,512], index: 0, kind: input, shape index: {}]   ;;  %s331_s3 = inlined_call_operand.vmem [shape: f32[1,512], index: 3, kind: input, shape index: {}]   ;;  %s332_s4 = inlined_call_operand.vmem [shape: f32[1,512], index: 4, kind: input, shape index: {}]   ;;  %s333_s5 = inlined_call_operand.vmem [shape: bf16[32,512], index: 5, kind: output, shape index: {}]  }
   0x1   :  { %v20_v0 = vld [vmem:[%s328_s1] sm:$0xf]  ;;  %v35_v11 = vld [vmem:[%s330_s0 + $0x8] sm:$0xff]  ;;  %v36_v12 = vld [vmem:[%s330_s0 + $0x10] sm:$0xff] }
   0x2   :  { %v22_v1 = vld [vmem:[%s329_s2] sm:$0xf]  ;;  %v21_v2 = vmul.f32 0.03125, %v20_v0  ;;  %v60_v10 = vshrl.u32 %v59_v8, 7  ;;  %v37_v16 = vld [vmem:[%s330_s0 + $0x18] sm:$0xff]  ;;  %v44_v20 = vunpack.c.l.bf16 %v35_v11  ;;  %v283_v22 = vld [vmem:[%s330_s0 + $0x28] sm:$0xff]  ;;  %v45_v25 = vunpack.c.h.bf16 %v35_v11 }
   0x3   :  { %v23_v3 = vmul.f32 0.03125, %v22_v1  ;;  %v34_v9 = vld [vmem:[%s330_s0] sm:$0xff]  ;;  %v288_v23 = vld [vmem:[%s330_s0 + $0x30] sm:$0xff]  ;;  %v46_v27 = vunpack.c.l.bf16 %v36_v12  ;;  %v47_v28 = vunpack.c.h.bf16 %v36_v12  ;;  %v48_v30 = vunpack.c.l.bf16 %v37_v16  ;;  %v293_v33 = vld [vmem:[%s330_s0 + $0x38] sm:$0xff] }
   0x4   :  { %v24_v4 = vmul.f32 %v21_v2, %v21_v2  ;;  %v27_v13 = vld [vmem:[%s331_s3] sm:$0xf]  ;;  %v42_v14 = vunpack.c.l.bf16 %v34_v9  ;;  %v43_v15 = vunpack.c.h.bf16 %v34_v9  ;;  %v61_v18 = vsub.s32 0, %v60_v10 }
   0x5   :  { %v38_v17 = vld [vmem:[%s330_s0 + $0x20] sm:$0xff]  ;;  %v65_v19 = vsub.s32 1, %v60_v10  ;;  %v69_v21 = vsub.s32 2, %v60_v10  ;;  %v73_v26 = vsub.s32 3, %v60_v10  ;;  %v49_v31 = vunpack.c.h.bf16 %v37_v16 }
   0x6   :  { %v25_v5 = vsub.f32 %v23_v3, %v24_v4  ;;  %v50_v32 = vunpack.c.l.bf16 %v38_v17  ;;  %v31_v34 = vld [vmem:[%s332_s4] sm:$0xf]  ;;  %v51_v35 = vunpack.c.h.bf16 %v38_v17  ;;  %v52_v36 = vunpack.c.l.bf16 %v283_v22 }
   0x7   :  { %v53_v37 = vunpack.c.h.bf16 %v283_v22  ;;  %v54_v38 = vunpack.c.l.bf16 %v288_v23  ;;  %v55_v44 = vunpack.c.h.bf16 %v288_v23  ;;  %v56_v45 = vunpack.c.l.bf16 %v293_v33 }
   0x8   :  { %v26_v6 = vmax.f32 %v25_v5, 0.0  ;;  %v57_v46 = vunpack.c.h.bf16 %v293_v33 }
   0xa   :  { %v28_v7 = vadd.f32 1e-05, %v26_v6 }
   0xc   :  { %224 = vrsqrt.f32 %v28_v7 }
  0x16   :  { %v225_v24 = vpop.eup %224 }
  0x17   :  { %v30_v29 = vmul.f32 %v225_v24, %v27_v13 }
  0x19   :  { %v32_v39 = vmul.f32 %v30_v29, %v21_v2  ;;  %v62_v40 = vrot.slane %v30_v29, %v61_v18  ;;  %v66_v41 = vrot.slane %v30_v29, %v65_v19  ;;  %v70_v42 = vrot.slane %v30_v29, %v69_v21 }
  0x1a   :  { %v74_v43 = vrot.slane %v30_v29, %v73_v26 }
  0x1b   :  { %v33_v47 = vsub.f32 %v31_v34, %v32_v39  ;;  %v79_v48 = vmul.f32 %v62_v40, %v42_v14  ;;  %v80_v49 = vmul.f32 %v66_v41, %v43_v15  ;;  %v81_v50 = vmul.f32 %v70_v42, %v44_v20 }
  0x1c   :  { %v82_v51 = vmul.f32 %v74_v43, %v45_v25  ;;  %v83_v52 = vmul.f32 %v62_v40, %v46_v27  ;;  %v84_v53 = vmul.f32 %v66_v41, %v47_v28  ;;  %v85_v54 = vmul.f32 %v70_v42, %v48_v30 }
  0x1d   :  { %v99_v55 = vrot.slane %v33_v47, %v61_v18  ;;  %v103_v56 = vrot.slane %v33_v47, %v65_v19  ;;  %v107_v57 = vrot.slane %v33_v47, %v69_v21  ;;  %v111_v58 = vrot.slane %v33_v47, %v73_v26 }
  0x1e   :  { %v86_v59 = vmul.f32 %v74_v43, %v49_v31  ;;  %v87_v60 = vmul.f32 %v62_v40, %v50_v32  ;;  %v88_v61 = vmul.f32 %v66_v41, %v51_v35  ;;  %v89_v62 = vmul.f32 %v70_v42, %v52_v36 }
  0x1f   :  { %v116_v63 = vadd.f32 %v99_v55, %v79_v48  ;;  %v117_v0 = vadd.f32 %v103_v56, %v80_v49  ;;  %v118_v1 = vadd.f32 %v107_v57, %v81_v50  ;;  %v119_v2 = vadd.f32 %v111_v58, %v82_v51 }
  0x20   :  { %v120_v3 = vadd.f32 %v99_v55, %v83_v52  ;;  %v121_v4 = vadd.f32 %v103_v56, %v84_v53  ;;  %v122_v5 = vadd.f32 %v107_v57, %v85_v54  ;;  %v123_v6 = vadd.f32 %v111_v58, %v86_v59 }
  0x21   :  { %v132_v7 = vmax.f32 %v116_v63, 0.0  ;;  %v133_v8 = vmax.f32 %v117_v0, 0.0  ;;  %v134_v9 = vmax.f32 %v118_v1, 0.0  ;;  %v135_v10 = vmax.f32 %v119_v2, 0.0 }
  0x22   :  { %v136_v11 = vmax.f32 %v120_v3, 0.0  ;;  %v137_v12 = vmax.f32 %v121_v4, 0.0  ;;  %v138_v13 = vmax.f32 %v122_v5, 0.0  ;;  %v139_v14 = vmax.f32 %v123_v6, 0.0 }
  0x23   :  { %v216_v15 = vpack.c.bf16 %v133_v8, %v132_v7  ;;  %v217_v16 = vpack.c.bf16 %v135_v10, %v134_v9  ;;  %v124_v17 = vadd.f32 %v99_v55, %v87_v60  ;;  %v125_v18 = vadd.f32 %v103_v56, %v88_v61 }
  0x24   :  { %v218_v19 = vpack.c.bf16 %v137_v12, %v136_v11  ;;  %v219_v20 = vpack.c.bf16 %v139_v14, %v138_v13  ;;  %v90_v21 = vmul.f32 %v74_v43, %v53_v37  ;;  %v126_v22 = vadd.f32 %v107_v57, %v89_v62 }
  0x25   :  { %196 = vst [vmem:[%s333_s5] sm:$0xff] %v216_v15  ;;  %197 = vst [vmem:[%s333_s5 + $0x8] sm:$0xff] %v217_v16  ;;  %v140_v23 = vmax.f32 %v124_v17, 0.0  ;;  %v141_v24 = vmax.f32 %v125_v18, 0.0  ;;  %v91_v25 = vmul.f32 %v62_v40, %v54_v38  ;;  %v92_v26 = vmul.f32 %v66_v41, %v55_v44 }
  0x26   :  { %198 = vst [vmem:[%s333_s5 + $0x10] sm:$0xff] %v218_v19  ;;  %199 = vst [vmem:[%s333_s5 + $0x18] sm:$0xff] %v219_v20  ;;  %v127_v27 = vadd.f32 %v111_v58, %v90_v21  ;;  %v142_v28 = vmax.f32 %v126_v22, 0.0  ;;  %v93_v29 = vmul.f32 %v70_v42, %v56_v45  ;;  %v94_v30 = vmul.f32 %v74_v43, %v57_v46 }
  0x27   :  { %v220_v31 = vpack.c.bf16 %v141_v24, %v140_v23  ;;  %v128_v32 = vadd.f32 %v99_v55, %v91_v25  ;;  %v129_v33 = vadd.f32 %v103_v56, %v92_v26 }
  0x28   :  { %v143_v34 = vmax.f32 %v127_v27, 0.0  ;;  %v130_v35 = vadd.f32 %v107_v57, %v93_v29  ;;  %v131_v36 = vadd.f32 %v111_v58, %v94_v30 }
  0x29   :  { %200 = vst [vmem:[%s333_s5 + $0x20] sm:$0xff] %v220_v31  ;;  %v144_v37 = vmax.f32 %v128_v32, 0.0  ;;  %v145_v38 = vmax.f32 %v129_v33, 0.0 }
  0x2a   :  { %v221_v39 = vpack.c.bf16 %v143_v34, %v142_v28  ;;  %v146_v40 = vmax.f32 %v130_v35, 0.0  ;;  %v147_v41 = vmax.f32 %v131_v36, 0.0 }
  0x2b   :  { %v222_v44 = vpack.c.bf16 %v145_v38, %v144_v37 }
  0x2c   :  { %201 = vst [vmem:[%s333_s5 + $0x28] sm:$0xff] %v221_v39  ;;  %v223_v42 = vpack.c.bf16 %v147_v41, %v146_v40 }
  0x2d   :  { %202 = vst [vmem:[%s333_s5 + $0x30] sm:$0xff] %v222_v44 }
  0x2e   :  { %203 = vst [vmem:[%s333_s5 + $0x38] sm:$0xff] %v223_v42 }

// kernel: generator_forward.28
= control target key start
LH: loop header
LB: loop body
LE: loop exit
PB: predicated region body
PF: predicated region fallthrough
CT: control target
= control target key end

     0   :  { %s3870_s1 = inlined_call_operand.vmem [shape: bf16[2048,256], index: 1, kind: input, shape index: {}]   ;;  %s3871_s0 = inlined_call_operand.vmem [shape: bf16[32,2048], index: 0, kind: input, shape index: {}]   ;;  %s3872_s2 = inlined_call_operand.vmem [shape: bf16[32,256], index: 2, kind: output, shape index: {}]  }
   0x1   :  { %v2547_v0 = vld [vmem:[%s3870_s1 + $0x4] ss:$8 sps:$4 sm:$0xff]   ;;  %v2551_v2 = vld [vmem:[%s3870_s1] ss:$8 sps:$4 sm:$0xff]   ;;  %v2553_v4 = vld [vmem:[%s3870_s1 + $0x14] ss:$8 sps:$4 sm:$0xff]  }
   0x2   :  { %v2549_v1 = vld [vmem:[%s3870_s1 + $0x404] ss:$8 sps:$4 sm:$0xff]   ;;  %1739 = vmatprep.subr.bf16.mxu1 %v2547_v0  ;;  %v2552_v3 = vld [vmem:[%s3870_s1 + $0x400] ss:$8 sps:$4 sm:$0xff]   ;;  %v2555_v5 = vld [vmem:[%s3870_s1 + $0x414] ss:$8 sps:$4 sm:$0xff]  }
   0x3   :  { %1951 = vmatprep.subr.bf16.mxu0 %v2549_v1  ;;  %1740 = vmatpush1.bf16.msra.mxu1 %v2551_v2  ;;  %v2557_v6 = vld [vmem:[%s3870_s1 + $0x10] ss:$8 sps:$4 sm:$0xff]   ;;  %v2559_v8 = vld [vmem:[%s3870_s1 + $0x24] ss:$8 sps:$4 sm:$0xff]   ;;  %v2563_v10 = vld [vmem:[%s3870_s1 + $0x20] ss:$8 sps:$4 sm:$0xff]  }
   0x4   :  { %1952 = vmatpush1.bf16.msra.mxu0 %v2552_v3  ;;  %1741 = vmatprep.subr.bf16.mxu1 %v2553_v4  ;;  %v2558_v7 = vld [vmem:[%s3870_s1 + $0x410] ss:$8 sps:$4 sm:$0xff]   ;;  %v2561_v9 = vld [vmem:[%s3870_s1 + $0x424] ss:$8 sps:$4 sm:$0xff]   ;;  %v2564_v11 = vld [vmem:[%s3870_s1 + $0x420] ss:$8 sps:$4 sm:$0xff]  }
   0x5   :  { %1953 = vmatprep.subr.bf16.mxu0 %v2555_v5  ;;  %v2565_v12 = vld [vmem:[%s3870_s1 + $0x34] ss:$8 sps:$4 sm:$0xff]   ;;  %v2569_v14 = vld [vmem:[%s3870_s1 + $0x30] ss:$8 sps:$4 sm:$0xff]   ;;  %v2571_v16 = vld [vmem:[%s3870_s1 + $0x44] ss:$8 sps:$4 sm:$0xff]  }
   0x6   :  { %v2567_v13 = vld [vmem:[%s3870_s1 + $0x434] ss:$8 sps:$4 sm:$0xff]   ;;  %v2570_v15 = vld [vmem:[%s3870_s1 + $0x430] ss:$8 sps:$4 sm:$0xff]   ;;  %v2573_v17 = vld [vmem:[%s3870_s1 + $0x444] ss:$8 sps:$4 sm:$0xff]  }
   0x7   :  { %1742 = vmatpush1.bf16.msra.mxu1 %v2557_v6  ;;  %v2575_v18 = vld [vmem:[%s3870_s1 + $0x40] ss:$8 sps:$4 sm:$0xff]   ;;  %v2577_v20 = vld [vmem:[%s3870_s1 + $0x54] ss:$8 sps:$4 sm:$0xff]   ;;  %v2581_v22 = vld [vmem:[%s3870_s1 + $0x50] ss:$8 sps:$4 sm:$0xff]  }
   0x8   :  { %1954 = vmatpush1.bf16.msra.mxu0 %v2558_v7  ;;  %1743 = vmatprep.subr.bf16.mxu1 %v2559_v8  ;;  %v2576_v19 = vld [vmem:[%s3870_s1 + $0x440] ss:$8 sps:$4 sm:$0xff]   ;;  %v2579_v21 = vld [vmem:[%s3870_s1 + $0x454] ss:$8 sps:$4 sm:$0xff]   ;;  %v2582_v23 = vld [vmem:[%s3870_s1 + $0x450] ss:$8 sps:$4 sm:$0xff]  }
   0x9   :  { %1955 = vmatprep.subr.bf16.mxu0 %v2561_v9  ;;  %v2583_v24 = vld [vmem:[%s3870_s1 + $0x64] ss:$8 sps:$4 sm:$0xff]   ;;  %v2587_v26 = vld [vmem:[%s3870_s1 + $0x60] ss:$8 sps:$4 sm:$0xff]   ;;  %v2589_v28 = vld [vmem:[%s3870_s1 + $0x74] ss:$8 sps:$4 sm:$0xff]  }
   0xa   :  { %v2585_v25 = vld [vmem:[%s3870_s1 + $0x464] ss:$8 sps:$4 sm:$0xff]   ;;  %v2588_v27 = vld [vmem:[%s3870_s1 + $0x460] ss:$8 sps:$4 sm:$0xff]   ;;  %v2591_v29 = vld [vmem:[%s3870_s1 + $0x474] ss:$8 sps:$4 sm:$0xff]  }
   0xb   :  { %1744 = vmatpush1.bf16.msra.mxu1 %v2563_v10  ;;  %v2593_v30 = vld [vmem:[%s3870_s1 + $0x70] ss:$8 sps:$4 sm:$0xff]   ;;  %v2595_v32 = vld [vmem:[%s3870_s1 + $0x84] ss:$8 sps:$4 sm:$0xff]   ;;  %v2599_v34 = vld [vmem:[%s3870_s1 + $0x80] ss:$8 sps:$4 sm:$0xff]  }
   0xc   :  { %1956 = vmatpush1.bf16.msra.mxu0 %v2564_v11  ;;  %1745 = vmatprep.subr.bf16.mxu1 %v2565_v12  ;;  %v2594_v31 = vld [vmem:[%s3870_s1 + $0x470] ss:$8 sps:$4 sm:$0xff]   ;;  %v2597_v33 = vld [vmem:[%s3870_s1 + $0x484] ss:$8 sps:$4 sm:$0xff]   ;;  %v2600_v35 = vld [vmem:[%s3870_s1 + $0x480] ss:$8 sps:$4 sm:$0xff]  }
   0xd   :  { %1957 = vmatprep.subr.bf16.mxu0 %v2567_v13  ;;  %v2601_v36 = vld [vmem:[%s3870_s1 + $0x94] ss:$8 sps:$4 sm:$0xff]   ;;  %v2605_v38 = vld [vmem:[%s3870_s1 + $0x90] ss:$8 sps:$4 sm:$0xff]   ;;  %v2607_v40 = vld [vmem:[%s3870_s1 + $0xa4] ss:$8 sps:$4 sm:$0xff]  }
   0xe   :  { %v2603_v37 = vld [vmem:[%s3870_s1 + $0x494] ss:$8 sps:$4 sm:$0xff]   ;;  %v2606_v39 = vld [vmem:[%s3870_s1 + $0x490] ss:$8 sps:$4 sm:$0xff]   ;;  %v2609_v41 = vld [vmem:[%s3870_s1 + $0x4a4] ss:$8 sps:$4 sm:$0xff]  }
   0xf   :  { %1746 = vmatpush1.bf16.msra.mxu1 %v2569_v14  ;;  %v2611_v42 = vld [vmem:[%s3870_s1 + $0xa0] ss:$8 sps:$4 sm:$0xff]   ;;  %v2613_v44 = vld [vmem:[%s3870_s1 + $0xb4] ss:$8 sps:$4 sm:$0xff]   ;;  %v2617_v46 = vld [vmem:[%s3870_s1 + $0xb0] ss:$8 sps:$4 sm:$0xff]  }
  0x10   :  { %1958 = vmatpush1.bf16.msra.mxu0 %v2570_v15  ;;  %1747 = vmatprep.subr.bf16.mxu1 %v2571_v16  ;;  %v2612_v43 = vld [vmem:[%s3870_s1 + $0x4a0] ss:$8 sps:$4 sm:$0xff]   ;;  %v2615_v45 = vld [vmem:[%s3870_s1 + $0x4b4] ss:$8 sps:$4 sm:$0xff]   ;;  %v2618_v47 = vld [vmem:[%s3870_s1 + $0x4b0] ss:$8 sps:$4 sm:$0xff]  }
  0x11   :  { %1959 = vmatprep.subr.bf16.mxu0 %v2573_v17  ;;  %v11_v48 = vld [vmem:[%s3871_s0] sm:$0xff]  ;;  %v2625_v58 = vld [vmem:[%s3870_s1 + $0xd4] ss:$8 sps:$4 sm:$0xff]   ;;  %v2629_v60 = vld [vmem:[%s3870_s1 + $0xd0] ss:$8 sps:$4 sm:$0xff]  }
  0x12   :  { %v19_v49 = vld [vmem:[%s3871_s0 + $0x40] sm:$0xff]  ;;  %v2627_v59 = vld [vmem:[%s3870_s1 + $0x4d4] ss:$8 sps:$4 sm:$0xff]   ;;  %v2630_v61 = vld [vmem:[%s3870_s1 + $0x4d0] ss:$8 sps:$4 sm:$0xff]  }
  0x13   :  { %1748 = vmatpush1.bf16.msra.mxu1 %v2575_v18  ;;  %v2619_v50 = vld [vmem:[%s3870_s1 + $0xc4] ss:$8 sps:$4 sm:$0xff]   ;;  %v2196_v52 = vcombine.high %v11_v48, %v19_v49  ;;  %v2623_v56 = vld [vmem:[%s3870_s1 + $0xc0] ss:$8 sps:$4 sm:$0xff]   ;;  %v2637_v2 = vld [vmem:[%s3870_s1 + $0xf4] ss:$8 sps:$4 sm:$0xff]   ;;  %v2195_v8 = vcombine.low %v11_v48, %v19_v49 }
  0x14   :  { %1960 = vmatpush1.bf16.msra.mxu0 %v2576_v19  ;;  %1749 = vmatprep.subr.bf16.mxu1 %v2577_v20  ;;  %v2621_v51 = vld [vmem:[%s3870_s1 + $0x4c4] ss:$8 sps:$4 sm:$0xff]   ;;  %v2624_v57 = vld [vmem:[%s3870_s1 + $0x4c0] ss:$8 sps:$4 sm:$0xff]   ;;  %v2639_v3 = vld [vmem:[%s3870_s1 + $0x4f4] ss:$8 sps:$4 sm:$0xff]  }
  0x15   :  { %1961 = vmatprep.subr.bf16.mxu0 %v2579_v21  ;;  %v15_v53 = vld [vmem:[%s3871_s0 + $0x20] sm:$0xff]  ;;  %1771 = vmatprep.mubr.bf16.mxu1 %v2196_v52  ;;  %v2641_v4 = vld [vmem:[%s3870_s1 + $0xf0] ss:$8 sps:$4 sm:$0xff]   ;;  %v2651_v12 = vld [vmem:[%s3870_s1 + $0x114] ss:$8 sps:$4 sm:$0xff]  }
  0x16   :  { %v23_v54 = vld [vmem:[%s3871_s0 + $0x60] sm:$0xff]  ;;  %v2642_v5 = vld [vmem:[%s3870_s1 + $0x4f0] ss:$8 sps:$4 sm:$0xff]   ;;  %v2654_v13 = vld [vmem:[%s3870_s1 + $0x514] ss:$8 sps:$4 sm:$0xff]  }
  0x17   :  { %1750 = vmatpush1.bf16.msra.mxu1 %v2581_v22  ;;  %v2204_v55 = vcombine.high %v15_v53, %v23_v54  ;;  %v2631_v62 = vld [vmem:[%s3870_s1 + $0xe4] ss:$8 sps:$4 sm:$0xff]   ;;  %v2635_v0 = vld [vmem:[%s3870_s1 + $0xe0] ss:$8 sps:$4 sm:$0xff]   ;;  %v2203_v10 = vcombine.low %v15_v53, %v23_v54  ;;  %v2649_v14 = vld [vmem:[%s3870_s1 + $0x110] ss:$8 sps:$4 sm:$0xff]  }
  0x18   :  { %1962 = vmatpush1.bf16.msra.mxu0 %v2582_v23  ;;  %1751 = vmatprep.subr.bf16.mxu1 %v2583_v24  ;;  %v2633_v63 = vld [vmem:[%s3870_s1 + $0x4e4] ss:$8 sps:$4 sm:$0xff]   ;;  %v2636_v1 = vld [vmem:[%s3870_s1 + $0x4e0] ss:$8 sps:$4 sm:$0xff]   ;;  %v2652_v15 = vld [vmem:[%s3870_s1 + $0x510] ss:$8 sps:$4 sm:$0xff]  }
  0x19   :  { %1963 = vmatprep.subr.bf16.mxu0 %v2585_v25  ;;  %1983 = vmatprep.mubr.bf16.mxu0 %v2204_v55  ;;  %v2645_v6 = vld [vmem:[%s3870_s1 + $0x104] ss:$8 sps:$4 sm:$0xff]   ;;  %v2643_v9 = vld [vmem:[%s3870_s1 + $0x100] ss:$8 sps:$4 sm:$0xff]   ;;  %v2663_v20 = vld [vmem:[%s3870_s1 + $0x134] ss:$8 sps:$4 sm:$0xff]  }
  0x1a   :  { %v2648_v7 = vld [vmem:[%s3870_s1 + $0x504] ss:$8 sps:$4 sm:$0xff]   ;;  %v2646_v11 = vld [vmem:[%s3870_s1 + $0x500] ss:$8 sps:$4 sm:$0xff]   ;;  %v2666_v21 = vld [vmem:[%s3870_s1 + $0x534] ss:$8 sps:$4 sm:$0xff]  }
  0x1b   :  { %1752 = vmatpush1.bf16.msra.mxu1 %v2587_v26  ;;  %v2657_v16 = vld [vmem:[%s3870_s1 + $0x124] ss:$8 sps:$4 sm:$0xff]   ;;  %v2655_v18 = vld [vmem:[%s3870_s1 + $0x120] ss:$8 sps:$4 sm:$0xff]   ;;  %v2661_v22 = vld [vmem:[%s3870_s1 + $0x130] ss:$8 sps:$4 sm:$0xff]  }
  0x1c   :  { %1964 = vmatpush1.bf16.msra.mxu0 %v2588_v27  ;;  %1753 = vmatprep.subr.bf16.mxu1 %v2589_v28  ;;  %v2660_v17 = vld [vmem:[%s3870_s1 + $0x524] ss:$8 sps:$4 sm:$0xff]   ;;  %v2658_v19 = vld [vmem:[%s3870_s1 + $0x520] ss:$8 sps:$4 sm:$0xff]   ;;  %v2664_v23 = vld [vmem:[%s3870_s1 + $0x530] ss:$8 sps:$4 sm:$0xff]  }
  0x1d   :  { %1965 = vmatprep.subr.bf16.mxu0 %v2591_v29  ;;  %v2669_v24 = vld [vmem:[%s3870_s1 + $0x144] ss:$8 sps:$4 sm:$0xff]   ;;  %v2667_v26 = vld [vmem:[%s3870_s1 + $0x140] ss:$8 sps:$4 sm:$0xff]   ;;  %v2675_v28 = vld [vmem:[%s3870_s1 + $0x154] ss:$8 sps:$4 sm:$0xff]  }
  0x1e   :  { %v2672_v25 = vld [vmem:[%s3870_s1 + $0x544] ss:$8 sps:$4 sm:$0xff]   ;;  %v2670_v27 = vld [vmem:[%s3870_s1 + $0x540] ss:$8 sps:$4 sm:$0xff]   ;;  %v2678_v29 = vld [vmem:[%s3870_s1 + $0x554] ss:$8 sps:$4 sm:$0xff]  }
  0x1f   :  { %1754 = vmatpush1.bf16.msra.mxu1 %v2593_v30  ;;  %v27_v30 = vld [vmem:[%s3871_s0 + $0x80] sm:$0xff]  ;;  %v3267_v49 = vld [vmem:[%s3871_s0 + $0x28] sm:$0xff]  ;;  %v2688_v52 = vld [vmem:[%s3870_s1 + $0x570] ss:$8 sps:$4 sm:$0xff]  }
  0x20   :  { %1966 = vmatpush1.bf16.msra.mxu0 %v2594_v31  ;;  %1755 = vmatprep.subr.bf16.mxu1 %v2595_v32  ;;  %v35_v31 = vld [vmem:[%s3871_s0 + $0xc0] sm:$0xff]  ;;  %v2673_v32 = vld [vmem:[%s3870_s1 + $0x150] ss:$8 sps:$4 sm:$0xff]  }
  0x21   :  { %1967 = vmatprep.subr.bf16.mxu0 %v2597_v33  ;;  %v2212_v33 = vcombine.high %v27_v30, %v35_v31  ;;  %v2693_v54 = vld [vmem:[%s3870_s1 + $0x184] ss:$8 sps:$4 sm:$0xff]  }
  0x22   :  { %v2696_v55 = vld [vmem:[%s3870_s1 + $0x584] ss:$8 sps:$4 sm:$0xff]  }
  0x23   :  { %1756 = vmatpush1.bf16.msra.mxu1 %v2599_v34  ;;  %v2676_v34 = vld [vmem:[%s3870_s1 + $0x550] ss:$8 sps:$4 sm:$0xff]  }
  0x24   :  { %1968 = vmatpush1.bf16.msra.mxu0 %v2600_v35  ;;  %1757 = vmatprep.subr.bf16.mxu1 %v2601_v36  ;;  %v31_v35 = vld [vmem:[%s3871_s0 + $0xa0] sm:$0xff] }
  0x25   :  { %1969 = vmatprep.subr.bf16.mxu0 %v2603_v37  ;;  %v39_v36 = vld [vmem:[%s3871_s0 + $0xe0] sm:$0xff]  ;;  %v2211_v37 = vcombine.low %v27_v30, %v35_v31  ;;  %v2747_v30 = vld [vmem:[%s3870_s1 + $0x214] ss:$8 sps:$4 sm:$0xff]  }
  0x26   :  { %v2750_v31 = vld [vmem:[%s3870_s1 + $0x614] ss:$8 sps:$4 sm:$0xff]  }
  0x27   :  { %1758 = vmatpush1.bf16.msra.mxu1 %v2605_v38  ;;  %v2681_v38 = vld [vmem:[%s3870_s1 + $0x164] ss:$8 sps:$4 sm:$0xff]  }
  0x28   :  { %1970 = vmatpush1.bf16.msra.mxu0 %v2606_v39  ;;  %1759 = vmatprep.subr.bf16.mxu1 %v2607_v40  ;;  %v2220_v39 = vcombine.high %v31_v35, %v39_v36  ;;  %v2219_v40 = vcombine.low %v31_v35, %v39_v36  ;;  %v2745_v36 = vld [vmem:[%s3870_s1 + $0x210] ss:$8 sps:$4 sm:$0xff]  }
  0x29   :  { %1971 = vmatprep.subr.bf16.mxu0 %v2609_v41  ;;  %v2684_v41 = vld [vmem:[%s3870_s1 + $0x564] ss:$8 sps:$4 sm:$0xff]  }
  0x2b   :  { %1760 = vmatpush1.bf16.msra.mxu1 %v2611_v42  ;;  %v2679_v42 = vld [vmem:[%s3870_s1 + $0x160] ss:$8 sps:$4 sm:$0xff]  }
  0x2c   :  { %1972 = vmatpush1.bf16.msra.mxu0 %v2612_v43  ;;  %1761 = vmatprep.subr.bf16.mxu1 %v2613_v44  ;;  %v2682_v43 = vld [vmem:[%s3870_s1 + $0x560] ss:$8 sps:$4 sm:$0xff]  }
  0x2d   :  { %1973 = vmatprep.subr.bf16.mxu0 %v2615_v45  ;;  %v3249_v44 = vld [vmem:[%s3871_s0 + $0x8] sm:$0xff] }
  0x2e   :  { %v3254_v45 = vld [vmem:[%s3871_s0 + $0x48] sm:$0xff] }
  0x2f   :  { %1762 = vmatpush1.bf16.msra.mxu1 %v2617_v46  ;;  %v2687_v46 = vld [vmem:[%s3870_s1 + $0x174] ss:$8 sps:$4 sm:$0xff]   ;;  %v2198_v48 = vcombine.high %v3249_v44, %v3254_v45 }
  0x30   :  { %1974 = vmatpush1.bf16.msra.mxu0 %v2618_v47  ;;  %1763 = vmatprep.subr.bf16.mxu1 %v2619_v50  ;;  %v2690_v47 = vld [vmem:[%s3870_s1 + $0x574] ss:$8 sps:$4 sm:$0xff]   ;;  %v3272_v50 = vld [vmem:[%s3871_s0 + $0x68] sm:$0xff] }
  0x31   :  { %1975 = vmatprep.subr.bf16.mxu0 %v2621_v51  ;;  %v2685_v51 = vld [vmem:[%s3870_s1 + $0x170] ss:$8 sps:$4 sm:$0xff]   ;;  %v2206_v53 = vcombine.high %v3267_v49, %v3272_v50 }
  0x33   :  { %1764 = vmatpush1.bf16.msra.mxu1 %v2623_v56  ;;  %v2691_v56 = vld [vmem:[%s3870_s1 + $0x180] ss:$8 sps:$4 sm:$0xff]  }
  0x34   :  { %1976 = vmatpush1.bf16.msra.mxu0 %v2624_v57  ;;  %1765 = vmatprep.subr.bf16.mxu1 %v2625_v58  ;;  %v2694_v57 = vld [vmem:[%s3870_s1 + $0x580] ss:$8 sps:$4 sm:$0xff]   ;;  %v2699_v58 = vld [vmem:[%s3870_s1 + $0x194] ss:$8 sps:$4 sm:$0xff]  }
  0x35   :  { %1977 = vmatprep.subr.bf16.mxu0 %v2627_v59  ;;  %v2702_v59 = vld [vmem:[%s3870_s1 + $0x594] ss:$8 sps:$4 sm:$0xff]  }
  0x37   :  { %1766 = vmatpush1.bf16.msra.mxu1 %v2629_v60  ;;  %v2697_v60 = vld [vmem:[%s3870_s1 + $0x190] ss:$8 sps:$4 sm:$0xff]  }
  0x38   :  { %1978 = vmatpush1.bf16.msra.mxu0 %v2630_v61  ;;  %1767 = vmatprep.subr.bf16.mxu1 %v2631_v62  ;;  %v2700_v61 = vld [vmem:[%s3870_s1 + $0x590] ss:$8 sps:$4 sm:$0xff]   ;;  %v2705_v62 = vld [vmem:[%s3870_s1 + $0x1a4] ss:$8 sps:$4 sm:$0xff]  }
  0x39   :  { %1979 = vmatprep.subr.bf16.mxu0 %v2633_v63  ;;  %v2708_v63 = vld [vmem:[%s3870_s1 + $0x5a4] ss:$8 sps:$4 sm:$0xff]  }
  0x3b   :  { %1768 = vmatpush1.bf16.msra.mxu1 %v2635_v0  ;;  %v2703_v0 = vld [vmem:[%s3870_s1 + $0x1a0] ss:$8 sps:$4 sm:$0xff]  }
  0x3c   :  { %1980 = vmatpush1.bf16.msra.mxu0 %v2636_v1  ;;  %1769 = vmatprep.subr.bf16.mxu1 %v2637_v2  ;;  %v2706_v1 = vld [vmem:[%s3870_s1 + $0x5a0] ss:$8 sps:$4 sm:$0xff]   ;;  %v2711_v2 = vld [vmem:[%s3870_s1 + $0x1b4] ss:$8 sps:$4 sm:$0xff]  }
  0x3d   :  { %1981 = vmatprep.subr.bf16.mxu0 %v2639_v3  ;;  %v2714_v3 = vld [vmem:[%s3870_s1 + $0x5b4] ss:$8 sps:$4 sm:$0xff]  }
  0x3f   :  { %1770 = vmatpush1.bf16.msra.mxu1 %v2641_v4  ;;  %v2709_v4 = vld [vmem:[%s3870_s1 + $0x1b0] ss:$8 sps:$4 sm:$0xff]  }
  0x40   :  { %1982 = vmatpush1.bf16.msra.mxu0 %v2642_v5  ;;  %1792 = vmatprep.subr.bf16.mxu1 %v2645_v6  ;;  %v2712_v5 = vld [vmem:[%s3870_s1 + $0x5b0] ss:$8 sps:$4 sm:$0xff]   ;;  %v2717_v6 = vld [vmem:[%s3870_s1 + $0x1c4] ss:$8 sps:$4 sm:$0xff]  }
  0x41   :  { %2004 = vmatprep.subr.bf16.mxu0 %v2648_v7  ;;  %v2720_v7 = vld [vmem:[%s3870_s1 + $0x5c4] ss:$8 sps:$4 sm:$0xff]  }
  0x42   :  { %1772 = vmatmul.mubr.bf16.vlgmr.msra.gmra.mrb[0].mxu1 %v2195_v8  ;;  %v2715_v8 = vld [vmem:[%s3870_s1 + $0x1c0] ss:$8 sps:$4 sm:$0xff]  }
  0x43   :  { %1984 = vmatmul.mubr.bf16.vlgmr.msra.gmra.mrb[0].mxu0 %v2203_v10  ;;  %1793 = vmatpush1.bf16.msra.mxu1 %v2643_v9  ;;  %v2718_v9 = vld [vmem:[%s3870_s1 + $0x5c0] ss:$8 sps:$4 sm:$0xff]   ;;  %v2723_v10 = vld [vmem:[%s3870_s1 + $0x1d4] ss:$8 sps:$4 sm:$0xff]  }
  0x44   :  { %2005 = vmatpush1.bf16.msra.mxu0 %v2646_v11  ;;  %1794 = vmatprep.subr.bf16.mxu1 %v2651_v12  ;;  %v2726_v11 = vld [vmem:[%s3870_s1 + $0x5d4] ss:$8 sps:$4 sm:$0xff]   ;;  %v2721_v12 = vld [vmem:[%s3870_s1 + $0x1d0] ss:$8 sps:$4 sm:$0xff]  }
  0x45   :  { %2006 = vmatprep.subr.bf16.mxu0 %v2654_v13  ;;  %1781 = vmatprep.mubr.bf16.mxu1 %v2212_v33  ;;  %v2724_v13 = vld [vmem:[%s3870_s1 + $0x5d0] ss:$8 sps:$4 sm:$0xff]   ;;  %v40_v33 = vld [vmem:[%s3871_s0 + $0xe8] sm:$0xff] }
  0x46   :  { %1993 = vmatprep.mubr.bf16.mxu0 %v2220_v39  ;;  %v2756_v39 = vld [vmem:[%s3870_s1 + $0x624] ss:$8 sps:$4 sm:$0xff]  }
  0x47   :  { %1795 = vmatpush1.bf16.msra.mxu1 %v2649_v14  ;;  %v2729_v14 = vld [vmem:[%s3870_s1 + $0x1e4] ss:$8 sps:$4 sm:$0xff]  }
  0x48   :  { %2007 = vmatpush1.bf16.msra.mxu0 %v2652_v15  ;;  %1796 = vmatprep.subr.bf16.mxu1 %v2657_v16  ;;  %v2732_v15 = vld [vmem:[%s3870_s1 + $0x5e4] ss:$8 sps:$4 sm:$0xff]   ;;  %v2727_v16 = vld [vmem:[%s3870_s1 + $0x1e0] ss:$8 sps:$4 sm:$0xff]  }
  0x49   :  { %2008 = vmatprep.subr.bf16.mxu0 %v2660_v17  ;;  %v2730_v17 = vld [vmem:[%s3870_s1 + $0x5e0] ss:$8 sps:$4 sm:$0xff]  }
  0x4a   :  { %1782 = vmatmul.mubr.bf16.gmra.mrb[4].mxu1 %v2211_v37  ;;  %v2748_v37 = vld [vmem:[%s3870_s1 + $0x610] ss:$8 sps:$4 sm:$0xff]  }
  0x4b   :  { %1797 = vmatpush1.bf16.msra.mxu1 %v2655_v18  ;;  %1994 = vmatmul.mubr.bf16.gmra.mrb[4].mxu0 %v2219_v40  ;;  %v2735_v18 = vld [vmem:[%s3870_s1 + $0x1f4] ss:$8 sps:$4 sm:$0xff]   ;;  %v2751_v40 = vld [vmem:[%s3870_s1 + $0x220] ss:$8 sps:$4 sm:$0xff]  }
  0x4c   :  { %2009 = vmatpush1.bf16.msra.mxu0 %v2658_v19  ;;  %1798 = vmatprep.subr.bf16.mxu1 %v2663_v20  ;;  %v2738_v19 = vld [vmem:[%s3870_s1 + $0x5f4] ss:$8 sps:$4 sm:$0xff]   ;;  %v2733_v20 = vld [vmem:[%s3870_s1 + $0x1f0] ss:$8 sps:$4 sm:$0xff]  }
  0x4d   :  { %2010 = vmatprep.subr.bf16.mxu0 %v2666_v21  ;;  %1824 = vmatprep.mubr.bf16.mxu1 %v2198_v48  ;;  %v2736_v21 = vld [vmem:[%s3870_s1 + $0x5f0] ss:$8 sps:$4 sm:$0xff]   ;;  %v2759_v48 = vld [vmem:[%s3870_s1 + $0x234] ss:$8 sps:$4 sm:$0xff]  }
  0x4e   :  { %2036 = vmatprep.mubr.bf16.mxu0 %v2206_v53  ;;  %v2760_v53 = vld [vmem:[%s3870_s1 + $0x630] ss:$8 sps:$4 sm:$0xff]  }
  0x4f   :  { %1799 = vmatpush1.bf16.msra.mxu1 %v2661_v22  ;;  %v2741_v22 = vld [vmem:[%s3870_s1 + $0x204] ss:$8 sps:$4 sm:$0xff]  }
  0x50   :  { %2011 = vmatpush1.bf16.msra.mxu0 %v2664_v23  ;;  %1800 = vmatprep.subr.bf16.mxu1 %v2669_v24  ;;  %v2744_v23 = vld [vmem:[%s3870_s1 + $0x604] ss:$8 sps:$4 sm:$0xff]   ;;  %v2739_v24 = vld [vmem:[%s3870_s1 + $0x200] ss:$8 sps:$4 sm:$0xff]  }
  0x51   :  { %2012 = vmatprep.subr.bf16.mxu0 %v2672_v25  ;;  %v2742_v25 = vld [vmem:[%s3870_s1 + $0x600] ss:$8 sps:$4 sm:$0xff]  }
  0x53   :  { %1801 = vmatpush1.bf16.msra.mxu1 %v2667_v26  ;;  %v28_v26 = vld [vmem:[%s3871_s0 + $0x88] sm:$0xff] }
  0x54   :  { %2013 = vmatpush1.bf16.msra.mxu0 %v2670_v27  ;;  %1802 = vmatprep.subr.bf16.mxu1 %v2675_v28  ;;  %v2197_v27 = vcombine.low %v3249_v44, %v3254_v45  ;;  %v2205_v28 = vcombine.low %v3267_v49, %v3272_v50  ;;  %v3438_v45 = vld [vmem:[%s3871_s0 + $0x50] sm:$0xff] }
  0x55   :  { %2014 = vmatprep.subr.bf16.mxu0 %v2678_v29  ;;  %v36_v29 = vld [vmem:[%s3871_s0 + $0xc8] sm:$0xff]  ;;  %v2762_v49 = vld [vmem:[%s3870_s1 + $0x634] ss:$8 sps:$4 sm:$0xff]  }
  0x57   :  { %1803 = vmatpush1.bf16.msra.mxu1 %v2673_v32  ;;  %v32_v32 = vld [vmem:[%s3871_s0 + $0xa8] sm:$0xff] }
  0x58   :  { %2015 = vmatpush1.bf16.msra.mxu0 %v2676_v34  ;;  %1804 = vmatprep.subr.bf16.mxu1 %v2681_v38  ;;  %v2214_v34 = vcombine.high %v28_v26, %v36_v29  ;;  %v2222_v35 = vcombine.high %v32_v32, %v40_v33  ;;  %v2753_v38 = vld [vmem:[%s3870_s1 + $0x224] ss:$8 sps:$4 sm:$0xff]   ;;  %v2221_v44 = vcombine.low %v32_v32, %v40_v33  ;;  %v2823_v32 = vld [vmem:[%s3870_s1 + $0x2e0] ss:$8 sps:$4 sm:$0xff]  }
  0x59   :  { %2016 = vmatprep.subr.bf16.mxu0 %v2684_v41  ;;  %v2754_v41 = vld [vmem:[%s3870_s1 + $0x620] ss:$8 sps:$4 sm:$0xff]  }
  0x5a   :  { %v2826_v33 = vld [vmem:[%s3870_s1 + $0x6e0] ss:$8 sps:$4 sm:$0xff]  }
  0x5b   :  { %1805 = vmatpush1.bf16.msra.mxu1 %v2679_v42  ;;  %v3433_v42 = vld [vmem:[%s3871_s0 + $0x10] sm:$0xff] }
  0x5c   :  { %2017 = vmatpush1.bf16.msra.mxu0 %v2682_v43  ;;  %1806 = vmatprep.subr.bf16.mxu1 %v2687_v46  ;;  %v2213_v43 = vcombine.low %v28_v26, %v36_v29  ;;  %v3443_v46 = vld [vmem:[%s3871_s0 + $0x30] sm:$0xff]  ;;  %v2200_v50 = vcombine.high %v3433_v42, %v3438_v45 }
  0x5d   :  { %2018 = vmatprep.subr.bf16.mxu0 %v2690_v47  ;;  %v3448_v47 = vld [vmem:[%s3871_s0 + $0x70] sm:$0xff] }
  0x5e   :  { %v2819_v26 = vld [vmem:[%s3870_s1 + $0x2d4] ss:$8 sps:$4 sm:$0xff]   ;;  %v2820_v29 = vld [vmem:[%s3870_s1 + $0x6d0] ss:$8 sps:$4 sm:$0xff]  }
  0x5f   :  { %1807 = vmatpush1.bf16.msra.mxu1 %v2685_v51  ;;  %v2208_v51 = vcombine.high %v3443_v46, %v3448_v47 }
  0x60   :  { %2019 = vmatpush1.bf16.msra.mxu0 %v2688_v52  ;;  %1808 = vmatprep.subr.bf16.mxu1 %v2693_v54  ;;  %v2757_v52 = vld [vmem:[%s3870_s1 + $0x230] ss:$8 sps:$4 sm:$0xff]   ;;  %v2765_v54 = vld [vmem:[%s3870_s1 + $0x244] ss:$8 sps:$4 sm:$0xff]  }
  0x61   :  { %2020 = vmatprep.subr.bf16.mxu0 %v2696_v55  ;;  %v2768_v55 = vld [vmem:[%s3870_s1 + $0x644] ss:$8 sps:$4 sm:$0xff]  }
  0x63   :  { %1809 = vmatpush1.bf16.msra.mxu1 %v2691_v56  ;;  %v2763_v56 = vld [vmem:[%s3870_s1 + $0x240] ss:$8 sps:$4 sm:$0xff]  }
  0x64   :  { %2021 = vmatpush1.bf16.msra.mxu0 %v2694_v57  ;;  %1810 = vmatprep.subr.bf16.mxu1 %v2699_v58  ;;  %v2766_v57 = vld [vmem:[%s3870_s1 + $0x640] ss:$8 sps:$4 sm:$0xff]   ;;  %v2771_v58 = vld [vmem:[%s3870_s1 + $0x254] ss:$8 sps:$4 sm:$0xff]  }
  0x65   :  { %2022 = vmatprep.subr.bf16.mxu0 %v2702_v59  ;;  %v2774_v59 = vld [vmem:[%s3870_s1 + $0x654] ss:$8 sps:$4 sm:$0xff]  }
  0x67   :  { %1811 = vmatpush1.bf16.msra.mxu1 %v2697_v60  ;;  %v2769_v60 = vld [vmem:[%s3870_s1 + $0x250] ss:$8 sps:$4 sm:$0xff]  }
  0x68   :  { %2023 = vmatpush1.bf16.msra.mxu0 %v2700_v61  ;;  %1812 = vmatprep.subr.bf16.mxu1 %v2705_v62  ;;  %v2772_v61 = vld [vmem:[%s3870_s1 + $0x650] ss:$8 sps:$4 sm:$0xff]   ;;  %v2777_v62 = vld [vmem:[%s3870_s1 + $0x264] ss:$8 sps:$4 sm:$0xff]  }
  0x69   :  { %2024 = vmatprep.subr.bf16.mxu0 %v2708_v63  ;;  %v2780_v63 = vld [vmem:[%s3870_s1 + $0x664] ss:$8 sps:$4 sm:$0xff]  }
  0x6b   :  { %1813 = vmatpush1.bf16.msra.mxu1 %v2703_v0  ;;  %v2775_v0 = vld [vmem:[%s3870_s1 + $0x260] ss:$8 sps:$4 sm:$0xff]  }
  0x6c   :  { %2025 = vmatpush1.bf16.msra.mxu0 %v2706_v1  ;;  %1814 = vmatprep.subr.bf16.mxu1 %v2711_v2  ;;  %v2778_v1 = vld [vmem:[%s3870_s1 + $0x660] ss:$8 sps:$4 sm:$0xff]   ;;  %v2783_v2 = vld [vmem:[%s3870_s1 + $0x274] ss:$8 sps:$4 sm:$0xff]  }
  0x6d   :  { %2026 = vmatprep.subr.bf16.mxu0 %v2714_v3  ;;  %v2786_v3 = vld [vmem:[%s3870_s1 + $0x674] ss:$8 sps:$4 sm:$0xff]  }
  0x6f   :  { %1815 = vmatpush1.bf16.msra.mxu1 %v2709_v4  ;;  %v2781_v4 = vld [vmem:[%s3870_s1 + $0x270] ss:$8 sps:$4 sm:$0xff]  }
  0x70   :  { %2027 = vmatpush1.bf16.msra.mxu0 %v2712_v5  ;;  %1816 = vmatprep.subr.bf16.mxu1 %v2717_v6  ;;  %v2784_v5 = vld [vmem:[%s3870_s1 + $0x670] ss:$8 sps:$4 sm:$0xff]   ;;  %v2789_v6 = vld [vmem:[%s3870_s1 + $0x284] ss:$8 sps:$4 sm:$0xff]  }
  0x71   :  { %2028 = vmatprep.subr.bf16.mxu0 %v2720_v7  ;;  %v2792_v7 = vld [vmem:[%s3870_s1 + $0x684] ss:$8 sps:$4 sm:$0xff]  }
  0x73   :  { %1817 = vmatpush1.bf16.msra.mxu1 %v2715_v8  ;;  %v2787_v8 = vld [vmem:[%s3870_s1 + $0x280] ss:$8 sps:$4 sm:$0xff]  }
  0x74   :  { %2029 = vmatpush1.bf16.msra.mxu0 %v2718_v9  ;;  %1818 = vmatprep.subr.bf16.mxu1 %v2723_v10  ;;  %v2790_v9 = vld [vmem:[%s3870_s1 + $0x680] ss:$8 sps:$4 sm:$0xff]   ;;  %v2795_v10 = vld [vmem:[%s3870_s1 + $0x294] ss:$8 sps:$4 sm:$0xff]  }
  0x75   :  { %2030 = vmatprep.subr.bf16.mxu0 %v2726_v11  ;;  %v2798_v11 = vld [vmem:[%s3870_s1 + $0x694] ss:$8 sps:$4 sm:$0xff]  }
  0x77   :  { %1819 = vmatpush1.bf16.msra.mxu1 %v2721_v12  ;;  %v2793_v12 = vld [vmem:[%s3870_s1 + $0x290] ss:$8 sps:$4 sm:$0xff]  }
  0x78   :  { %2031 = vmatpush1.bf16.msra.mxu0 %v2724_v13  ;;  %1820 = vmatprep.subr.bf16.mxu1 %v2729_v14  ;;  %v2796_v13 = vld [vmem:[%s3870_s1 + $0x690] ss:$8 sps:$4 sm:$0xff]   ;;  %v2801_v14 = vld [vmem:[%s3870_s1 + $0x2a4] ss:$8 sps:$4 sm:$0xff]  }
  0x79   :  { %2032 = vmatprep.subr.bf16.mxu0 %v2732_v15  ;;  %v2804_v15 = vld [vmem:[%s3870_s1 + $0x6a4] ss:$8 sps:$4 sm:$0xff]  }
  0x7b   :  { %1821 = vmatpush1.bf16.msra.mxu1 %v2727_v16  ;;  %v2799_v16 = vld [vmem:[%s3870_s1 + $0x2a0] ss:$8 sps:$4 sm:$0xff]  }
  0x7c   :  { %2033 = vmatpush1.bf16.msra.mxu0 %v2730_v17  ;;  %1822 = vmatprep.subr.bf16.mxu1 %v2735_v18  ;;  %v2802_v17 = vld [vmem:[%s3870_s1 + $0x6a0] ss:$8 sps:$4 sm:$0xff]   ;;  %v2807_v18 = vld [vmem:[%s3870_s1 + $0x2b4] ss:$8 sps:$4 sm:$0xff]  }
  0x7d   :  { %2034 = vmatprep.subr.bf16.mxu0 %v2738_v19  ;;  %v2810_v19 = vld [vmem:[%s3870_s1 + $0x6b4] ss:$8 sps:$4 sm:$0xff]  }
  0x7f   :  { %1823 = vmatpush1.bf16.msra.mxu1 %v2733_v20  ;;  %v2805_v20 = vld [vmem:[%s3870_s1 + $0x2b0] ss:$8 sps:$4 sm:$0xff]  }
  0x80   :  { %2035 = vmatpush1.bf16.msra.mxu0 %v2736_v21  ;;  %1845 = vmatprep.subr.bf16.mxu1 %v2741_v22  ;;  %v2808_v21 = vld [vmem:[%s3870_s1 + $0x6b0] ss:$8 sps:$4 sm:$0xff]   ;;  %v2813_v22 = vld [vmem:[%s3870_s1 + $0x2c4] ss:$8 sps:$4 sm:$0xff]  }
  0x81   :  { %2057 = vmatprep.subr.bf16.mxu0 %v2744_v23  ;;  %v2816_v23 = vld [vmem:[%s3870_s1 + $0x6c4] ss:$8 sps:$4 sm:$0xff]  }
  0x82   :  { %1825 = vmatmul.mubr.bf16.vlgmr.msra.gmra.mrb[0].mxu1 %v2197_v27  ;;  %v2822_v27 = vld [vmem:[%s3870_s1 + $0x6d4] ss:$8 sps:$4 sm:$0xff]  }
  0x83   :  { %2037 = vmatmul.mubr.bf16.vlgmr.msra.gmra.mrb[0].mxu0 %v2205_v28  ;;  %1846 = vmatpush1.bf16.msra.mxu1 %v2739_v24  ;;  %v2811_v24 = vld [vmem:[%s3870_s1 + $0x2c0] ss:$8 sps:$4 sm:$0xff]   ;;  %v2817_v28 = vld [vmem:[%s3870_s1 + $0x2d0] ss:$8 sps:$4 sm:$0xff]  }
  0x84   :  { %2058 = vmatpush1.bf16.msra.mxu0 %v2742_v25  ;;  %1847 = vmatprep.subr.bf16.mxu1 %v2747_v30  ;;  %v2814_v25 = vld [vmem:[%s3870_s1 + $0x6c0] ss:$8 sps:$4 sm:$0xff]   ;;  %v2825_v30 = vld [vmem:[%s3870_s1 + $0x2e4] ss:$8 sps:$4 sm:$0xff]  }
  0x85   :  { %2059 = vmatprep.subr.bf16.mxu0 %v2750_v31  ;;  %1834 = vmatprep.mubr.bf16.mxu1 %v2214_v34  ;;  %v2828_v31 = vld [vmem:[%s3870_s1 + $0x6e4] ss:$8 sps:$4 sm:$0xff]   ;;  %v2831_v34 = vld [vmem:[%s3870_s1 + $0x2f4] ss:$8 sps:$4 sm:$0xff]  }
  0x86   :  { %2046 = vmatprep.mubr.bf16.mxu0 %v2222_v35  ;;  %v2834_v35 = vld [vmem:[%s3870_s1 + $0x6f4] ss:$8 sps:$4 sm:$0xff]  }
  0x87   :  { %1848 = vmatpush1.bf16.msra.mxu1 %v2745_v36  ;;  %v2829_v36 = vld [vmem:[%s3870_s1 + $0x2f0] ss:$8 sps:$4 sm:$0xff]  }
  0x88   :  { %2060 = vmatpush1.bf16.msra.mxu0 %v2748_v37  ;;  %1849 = vmatprep.subr.bf16.mxu1 %v2753_v38  ;;  %v2832_v37 = vld [vmem:[%s3870_s1 + $0x6f0] ss:$8 sps:$4 sm:$0xff]   ;;  %v2837_v38 = vld [vmem:[%s3870_s1 + $0x304] ss:$8 sps:$4 sm:$0xff]  }
  0x89   :  { %2061 = vmatprep.subr.bf16.mxu0 %v2756_v39  ;;  %v2840_v39 = vld [vmem:[%s3870_s1 + $0x704] ss:$8 sps:$4 sm:$0xff]  }
  0x8a   :  { %1835 = vmatmul.mubr.bf16.gmra.mrb[4].mxu1 %v2213_v43  ;;  %v2207_v43 = vcombine.low %v3443_v46, %v3448_v47  ;;  %v2843_v46 = vld [vmem:[%s3870_s1 + $0x314] ss:$8 sps:$4 sm:$0xff]  }
  0x8b   :  { %2047 = vmatmul.mubr.bf16.gmra.mrb[4].mxu0 %v2221_v44  ;;  %1850 = vmatpush1.bf16.msra.mxu1 %v2751_v40  ;;  %v29_v40 = vld [vmem:[%s3871_s0 + $0x90] sm:$0xff] }
  0x8c   :  { %2062 = vmatpush1.bf16.msra.mxu0 %v2754_v41  ;;  %1851 = vmatprep.subr.bf16.mxu1 %v2759_v48  ;;  %v2199_v41 = vcombine.low %v3433_v42, %v3438_v45  ;;  %v37_v44 = vld [vmem:[%s3871_s0 + $0xd0] sm:$0xff]  ;;  %v2835_v42 = vld [vmem:[%s3870_s1 + $0x300] ss:$8 sps:$4 sm:$0xff]  }
  0x8d   :  { %2063 = vmatprep.subr.bf16.mxu0 %v2762_v49  ;;  %1877 = vmatprep.mubr.bf16.mxu1 %v2200_v50  ;;  %v33_v48 = vld [vmem:[%s3871_s0 + $0xb0] sm:$0xff]  ;;  %v2838_v45 = vld [vmem:[%s3870_s1 + $0x700] ss:$8 sps:$4 sm:$0xff]   ;;  %v2216_v50 = vcombine.high %v29_v40, %v37_v44 }
  0x8e   :  { %2089 = vmatprep.mubr.bf16.mxu0 %v2208_v51  ;;  %v41_v49 = vld [vmem:[%s3871_s0 + $0xf0] sm:$0xff] }
  0x8f   :  { %1852 = vmatpush1.bf16.msra.mxu1 %v2757_v52  ;;  %v2846_v47 = vld [vmem:[%s3870_s1 + $0x714] ss:$8 sps:$4 sm:$0xff]   ;;  %v2224_v51 = vcombine.high %v33_v48, %v41_v49  ;;  %v2841_v52 = vld [vmem:[%s3870_s1 + $0x310] ss:$8 sps:$4 sm:$0xff]  }
  0x90   :  { %2064 = vmatpush1.bf16.msra.mxu0 %v2760_v53  ;;  %1853 = vmatprep.subr.bf16.mxu1 %v2765_v54  ;;  %v2844_v53 = vld [vmem:[%s3870_s1 + $0x710] ss:$8 sps:$4 sm:$0xff]   ;;  %v2849_v54 = vld [vmem:[%s3870_s1 + $0x324] ss:$8 sps:$4 sm:$0xff]  }
  0x91   :  { %2065 = vmatprep.subr.bf16.mxu0 %v2768_v55  ;;  %v2852_v55 = vld [vmem:[%s3870_s1 + $0x724] ss:$8 sps:$4 sm:$0xff]  }
  0x93   :  { %1854 = vmatpush1.bf16.msra.mxu1 %v2763_v56  ;;  %v3659_v56 = vld [vmem:[%s3871_s0 + $0x18] sm:$0xff] }
  0x94   :  { %2066 = vmatpush1.bf16.msra.mxu0 %v2766_v57  ;;  %1855 = vmatprep.subr.bf16.mxu1 %v2771_v58  ;;  %v2215_v57 = vcombine.low %v29_v40, %v37_v44  ;;  %v2223_v58 = vcombine.low %v33_v48, %v41_v49  ;;  %v2907_v40 = vld [vmem:[%s3870_s1 + $0x3c0] ss:$8 sps:$4 sm:$0xff]   ;;  %v2918_v44 = vld [vmem:[%s3870_s1 + $0x7d4] ss:$8 sps:$4 sm:$0xff]   ;;  %v2913_v48 = vld [vmem:[%s3870_s1 + $0x3d0] ss:$8 sps:$4 sm:$0xff]  }
  0x95   :  { %2067 = vmatprep.subr.bf16.mxu0 %v2774_v59  ;;  %v3664_v59 = vld [vmem:[%s3871_s0 + $0x58] sm:$0xff] }
  0x96   :  { %v2916_v49 = vld [vmem:[%s3870_s1 + $0x7d0] ss:$8 sps:$4 sm:$0xff]  }
  0x97   :  { %1856 = vmatpush1.bf16.msra.mxu1 %v2769_v60  ;;  %v3669_v60 = vld [vmem:[%s3871_s0 + $0x38] sm:$0xff] }
  0x98   :  { %2068 = vmatpush1.bf16.msra.mxu0 %v2772_v61  ;;  %1857 = vmatprep.subr.bf16.mxu1 %v2777_v62  ;;  %v3674_v61 = vld [vmem:[%s3871_s0 + $0x78] sm:$0xff]  ;;  %v2847_v62 = vld [vmem:[%s3870_s1 + $0x320] ss:$8 sps:$4 sm:$0xff]  }
  0x99   :  { %2069 = vmatprep.subr.bf16.mxu0 %v2780_v63  ;;  %v2850_v63 = vld [vmem:[%s3870_s1 + $0x720] ss:$8 sps:$4 sm:$0xff]  }
  0x9b   :  { %1858 = vmatpush1.bf16.msra.mxu1 %v2775_v0  ;;  %v2855_v0 = vld [vmem:[%s3870_s1 + $0x334] ss:$8 sps:$4 sm:$0xff]  }
  0x9c   :  { %2070 = vmatpush1.bf16.msra.mxu0 %v2778_v1  ;;  %1859 = vmatprep.subr.bf16.mxu1 %v2783_v2  ;;  %v2858_v1 = vld [vmem:[%s3870_s1 + $0x734] ss:$8 sps:$4 sm:$0xff]   ;;  %v2202_v2 = vcombine.high %v3659_v56, %v3664_v59 }
  0x9d   :  { %2071 = vmatprep.subr.bf16.mxu0 %v2786_v3  ;;  %v2210_v3 = vcombine.high %v3669_v60, %v3674_v61 }
  0x9f   :  { %1860 = vmatpush1.bf16.msra.mxu1 %v2781_v4  ;;  %v2853_v4 = vld [vmem:[%s3870_s1 + $0x330] ss:$8 sps:$4 sm:$0xff]  }
  0xa0   :  { %2072 = vmatpush1.bf16.msra.mxu0 %v2784_v5  ;;  %1861 = vmatprep.subr.bf16.mxu1 %v2789_v6  ;;  %v2856_v5 = vld [vmem:[%s3870_s1 + $0x730] ss:$8 sps:$4 sm:$0xff]   ;;  %v2861_v6 = vld [vmem:[%s3870_s1 + $0x344] ss:$8 sps:$4 sm:$0xff]  }
  0xa1   :  { %2073 = vmatprep.subr.bf16.mxu0 %v2792_v7  ;;  %v2864_v7 = vld [vmem:[%s3870_s1 + $0x744] ss:$8 sps:$4 sm:$0xff]  }
  0xa3   :  { %1862 = vmatpush1.bf16.msra.mxu1 %v2787_v8  ;;  %v2859_v8 = vld [vmem:[%s3870_s1 + $0x340] ss:$8 sps:$4 sm:$0xff]  }
  0xa4   :  { %2074 = vmatpush1.bf16.msra.mxu0 %v2790_v9  ;;  %1863 = vmatprep.subr.bf16.mxu1 %v2795_v10  ;;  %v2862_v9 = vld [vmem:[%s3870_s1 + $0x740] ss:$8 sps:$4 sm:$0xff]   ;;  %v2867_v10 = vld [vmem:[%s3870_s1 + $0x354] ss:$8 sps:$4 sm:$0xff]  }
  0xa5   :  { %2075 = vmatprep.subr.bf16.mxu0 %v2798_v11  ;;  %v2870_v11 = vld [vmem:[%s3870_s1 + $0x754] ss:$8 sps:$4 sm:$0xff]  }
  0xa7   :  { %1864 = vmatpush1.bf16.msra.mxu1 %v2793_v12  ;;  %v2865_v12 = vld [vmem:[%s3870_s1 + $0x350] ss:$8 sps:$4 sm:$0xff]  }
  0xa8   :  { %2076 = vmatpush1.bf16.msra.mxu0 %v2796_v13  ;;  %1865 = vmatprep.subr.bf16.mxu1 %v2801_v14  ;;  %v2868_v13 = vld [vmem:[%s3870_s1 + $0x750] ss:$8 sps:$4 sm:$0xff]   ;;  %v2873_v14 = vld [vmem:[%s3870_s1 + $0x364] ss:$8 sps:$4 sm:$0xff]  }
  0xa9   :  { %2077 = vmatprep.subr.bf16.mxu0 %v2804_v15  ;;  %v2876_v15 = vld [vmem:[%s3870_s1 + $0x764] ss:$8 sps:$4 sm:$0xff]  }
  0xab   :  { %1866 = vmatpush1.bf16.msra.mxu1 %v2799_v16  ;;  %v2871_v16 = vld [vmem:[%s3870_s1 + $0x360] ss:$8 sps:$4 sm:$0xff]  }
  0xac   :  { %2078 = vmatpush1.bf16.msra.mxu0 %v2802_v17  ;;  %1867 = vmatprep.subr.bf16.mxu1 %v2807_v18  ;;  %v2874_v17 = vld [vmem:[%s3870_s1 + $0x760] ss:$8 sps:$4 sm:$0xff]   ;;  %v2879_v18 = vld [vmem:[%s3870_s1 + $0x374] ss:$8 sps:$4 sm:$0xff]  }
  0xad   :  { %2079 = vmatprep.subr.bf16.mxu0 %v2810_v19  ;;  %v2882_v19 = vld [vmem:[%s3870_s1 + $0x774] ss:$8 sps:$4 sm:$0xff]  }
  0xaf   :  { %1868 = vmatpush1.bf16.msra.mxu1 %v2805_v20  ;;  %v2877_v20 = vld [vmem:[%s3870_s1 + $0x370] ss:$8 sps:$4 sm:$0xff]  }
  0xb0   :  { %2080 = vmatpush1.bf16.msra.mxu0 %v2808_v21  ;;  %1869 = vmatprep.subr.bf16.mxu1 %v2813_v22  ;;  %v2880_v21 = vld [vmem:[%s3870_s1 + $0x770] ss:$8 sps:$4 sm:$0xff]   ;;  %v2885_v22 = vld [vmem:[%s3870_s1 + $0x384] ss:$8 sps:$4 sm:$0xff]  }
  0xb1   :  { %2081 = vmatprep.subr.bf16.mxu0 %v2816_v23  ;;  %v2888_v23 = vld [vmem:[%s3870_s1 + $0x784] ss:$8 sps:$4 sm:$0xff]  }
  0xb3   :  { %1870 = vmatpush1.bf16.msra.mxu1 %v2811_v24  ;;  %v2883_v24 = vld [vmem:[%s3870_s1 + $0x380] ss:$8 sps:$4 sm:$0xff]  }
  0xb4   :  { %2082 = vmatpush1.bf16.msra.mxu0 %v2814_v25  ;;  %1871 = vmatprep.subr.bf16.mxu1 %v2819_v26  ;;  %v2886_v25 = vld [vmem:[%s3870_s1 + $0x780] ss:$8 sps:$4 sm:$0xff]   ;;  %v2891_v26 = vld [vmem:[%s3870_s1 + $0x394] ss:$8 sps:$4 sm:$0xff]  }
  0xb5   :  { %2083 = vmatprep.subr.bf16.mxu0 %v2822_v27  ;;  %v2894_v27 = vld [vmem:[%s3870_s1 + $0x794] ss:$8 sps:$4 sm:$0xff]  }
  0xb7   :  { %1872 = vmatpush1.bf16.msra.mxu1 %v2817_v28  ;;  %v2889_v28 = vld [vmem:[%s3870_s1 + $0x390] ss:$8 sps:$4 sm:$0xff]  }
  0xb8   :  { %2084 = vmatpush1.bf16.msra.mxu0 %v2820_v29  ;;  %1873 = vmatprep.subr.bf16.mxu1 %v2825_v30  ;;  %v2892_v29 = vld [vmem:[%s3870_s1 + $0x790] ss:$8 sps:$4 sm:$0xff]   ;;  %v2897_v30 = vld [vmem:[%s3870_s1 + $0x3a4] ss:$8 sps:$4 sm:$0xff]  }
  0xb9   :  { %2085 = vmatprep.subr.bf16.mxu0 %v2828_v31  ;;  %v2900_v31 = vld [vmem:[%s3870_s1 + $0x7a4] ss:$8 sps:$4 sm:$0xff]  }
  0xbb   :  { %1874 = vmatpush1.bf16.msra.mxu1 %v2823_v32  ;;  %v2895_v32 = vld [vmem:[%s3870_s1 + $0x3a0] ss:$8 sps:$4 sm:$0xff]  }
  0xbc   :  { %2086 = vmatpush1.bf16.msra.mxu0 %v2826_v33  ;;  %1875 = vmatprep.subr.bf16.mxu1 %v2831_v34  ;;  %v2898_v33 = vld [vmem:[%s3870_s1 + $0x7a0] ss:$8 sps:$4 sm:$0xff]   ;;  %v2903_v34 = vld [vmem:[%s3870_s1 + $0x3b4] ss:$8 sps:$4 sm:$0xff]  }
  0xbd   :  { %2087 = vmatprep.subr.bf16.mxu0 %v2834_v35  ;;  %v2906_v35 = vld [vmem:[%s3870_s1 + $0x7b4] ss:$8 sps:$4 sm:$0xff]  }
  0xbf   :  { %1876 = vmatpush1.bf16.msra.mxu1 %v2829_v36  ;;  %v2901_v36 = vld [vmem:[%s3870_s1 + $0x3b0] ss:$8 sps:$4 sm:$0xff]  }
  0xc0   :  { %2088 = vmatpush1.bf16.msra.mxu0 %v2832_v37  ;;  %1898 = vmatprep.subr.bf16.mxu1 %v2837_v38  ;;  %v2904_v37 = vld [vmem:[%s3870_s1 + $0x7b0] ss:$8 sps:$4 sm:$0xff]   ;;  %v2909_v38 = vld [vmem:[%s3870_s1 + $0x3c4] ss:$8 sps:$4 sm:$0xff]  }
  0xc1   :  { %2110 = vmatprep.subr.bf16.mxu0 %v2840_v39  ;;  %v2912_v39 = vld [vmem:[%s3870_s1 + $0x7c4] ss:$8 sps:$4 sm:$0xff]  }
  0xc2   :  { %1878 = vmatmul.mubr.bf16.vlgmr.msra.gmra.mrb[0].mxu1 %v2199_v41  ;;  %v2910_v41 = vld [vmem:[%s3870_s1 + $0x7c0] ss:$8 sps:$4 sm:$0xff]  }
  0xc3   :  { %2090 = vmatmul.mubr.bf16.vlgmr.msra.gmra.mrb[0].mxu0 %v2207_v43  ;;  %1899 = vmatpush1.bf16.msra.mxu1 %v2835_v42  ;;  %v2915_v43 = vld [vmem:[%s3870_s1 + $0x3d4] ss:$8 sps:$4 sm:$0xff]   ;;  %v2921_v42 = vld [vmem:[%s3870_s1 + $0x3e4] ss:$8 sps:$4 sm:$0xff]  }
  0xc4   :  { %2111 = vmatpush1.bf16.msra.mxu0 %v2838_v45  ;;  %1900 = vmatprep.subr.bf16.mxu1 %v2843_v46  ;;  %v2924_v45 = vld [vmem:[%s3870_s1 + $0x7e4] ss:$8 sps:$4 sm:$0xff]   ;;  %v2919_v46 = vld [vmem:[%s3870_s1 + $0x3e0] ss:$8 sps:$4 sm:$0xff]  }
  0xc5   :  { %2112 = vmatprep.subr.bf16.mxu0 %v2846_v47  ;;  %1887 = vmatprep.mubr.bf16.mxu1 %v2216_v50  ;;  %v2922_v47 = vld [vmem:[%s3870_s1 + $0x7e0] ss:$8 sps:$4 sm:$0xff]   ;;  %v2927_v50 = vld [vmem:[%s3870_s1 + $0x3f4] ss:$8 sps:$4 sm:$0xff]  }
  0xc6   :  { %2099 = vmatprep.mubr.bf16.mxu0 %v2224_v51  ;;  %v2930_v51 = vld [vmem:[%s3870_s1 + $0x7f4] ss:$8 sps:$4 sm:$0xff]  }
  0xc7   :  { %1901 = vmatpush1.bf16.msra.mxu1 %v2841_v52  ;;  %v2925_v52 = vld [vmem:[%s3870_s1 + $0x3f0] ss:$8 sps:$4 sm:$0xff]  }
  0xc8   :  { %2113 = vmatpush1.bf16.msra.mxu0 %v2844_v53  ;;  %1902 = vmatprep.subr.bf16.mxu1 %v2849_v54  ;;  %v2928_v53 = vld [vmem:[%s3870_s1 + $0x7f0] ss:$8 sps:$4 sm:$0xff]  }
  0xc9   :  { %2114 = vmatprep.subr.bf16.mxu0 %v2852_v55  ;;  %v30_v54 = vld [vmem:[%s3871_s0 + $0x98] sm:$0xff] }
  0xca   :  { %1888 = vmatmul.mubr.bf16.gmra.mrb[4].mxu1 %v2215_v57  ;;  %v38_v55 = vld [vmem:[%s3871_s0 + $0xd8] sm:$0xff] }
  0xcb   :  { %2100 = vmatmul.mubr.bf16.gmra.mrb[4].mxu0 %v2223_v58  ;;  %1903 = vmatpush1.bf16.msra.mxu1 %v2847_v62  ;;  %v34_v57 = vld [vmem:[%s3871_s0 + $0xb8] sm:$0xff]  ;;  %v2201_v62 = vcombine.low %v3659_v56, %v3664_v59 }
  0xcc   :  { %2115 = vmatpush1.bf16.msra.mxu0 %v2850_v63  ;;  %1904 = vmatprep.subr.bf16.mxu1 %v2855_v0  ;;  %v42_v58 = vld [vmem:[%s3871_s0 + $0xf8] sm:$0xff]  ;;  %v2209_v63 = vcombine.low %v3669_v60, %v3674_v61  ;;  %v2218_v0 = vcombine.high %v30_v54, %v38_v55 }
  0xcd   :  { %2116 = vmatprep.subr.bf16.mxu0 %v2858_v1  ;;  %1930 = vmatprep.mubr.bf16.mxu1 %v2202_v2  ;;  %v2226_v1 = vcombine.high %v34_v57, %v42_v58  ;;  %v2217_v2 = vcombine.low %v30_v54, %v38_v55 }
  0xce   :  { %2142 = vmatprep.mubr.bf16.mxu0 %v2210_v3  ;;  %v2225_v3 = vcombine.low %v34_v57, %v42_v58 }
  0xcf   :  { %1905 = vmatpush1.bf16.msra.mxu1 %v2853_v4 }
  0xd0   :  { %2117 = vmatpush1.bf16.msra.mxu0 %v2856_v5  ;;  %1906 = vmatprep.subr.bf16.mxu1 %v2861_v6 }
  0xd1   :  { %2118 = vmatprep.subr.bf16.mxu0 %v2864_v7 }
  0xd3   :  { %1907 = vmatpush1.bf16.msra.mxu1 %v2859_v8 }
  0xd4   :  { %2119 = vmatpush1.bf16.msra.mxu0 %v2862_v9  ;;  %1908 = vmatprep.subr.bf16.mxu1 %v2867_v10 }
  0xd5   :  { %2120 = vmatprep.subr.bf16.mxu0 %v2870_v11 }
  0xd7   :  { %1909 = vmatpush1.bf16.msra.mxu1 %v2865_v12 }
  0xd8   :  { %2121 = vmatpush1.bf16.msra.mxu0 %v2868_v13  ;;  %1910 = vmatprep.subr.bf16.mxu1 %v2873_v14 }
  0xd9   :  { %2122 = vmatprep.subr.bf16.mxu0 %v2876_v15 }
  0xdb   :  { %1911 = vmatpush1.bf16.msra.mxu1 %v2871_v16 }
  0xdc   :  { %2123 = vmatpush1.bf16.msra.mxu0 %v2874_v17  ;;  %1912 = vmatprep.subr.bf16.mxu1 %v2879_v18 }
  0xdd   :  { %2124 = vmatprep.subr.bf16.mxu0 %v2882_v19 }
  0xdf   :  { %1913 = vmatpush1.bf16.msra.mxu1 %v2877_v20 }
  0xe0   :  { %2125 = vmatpush1.bf16.msra.mxu0 %v2880_v21  ;;  %1914 = vmatprep.subr.bf16.mxu1 %v2885_v22 }
  0xe1   :  { %2126 = vmatprep.subr.bf16.mxu0 %v2888_v23 }
  0xe3   :  { %1915 = vmatpush1.bf16.msra.mxu1 %v2883_v24 }
  0xe4   :  { %2127 = vmatpush1.bf16.msra.mxu0 %v2886_v25  ;;  %1916 = vmatprep.subr.bf16.mxu1 %v2891_v26 }
  0xe5   :  { %2128 = vmatprep.subr.bf16.mxu0 %v2894_v27 }
  0xe7   :  { %1917 = vmatpush1.bf16.msra.mxu1 %v2889_v28 }
  0xe8   :  { %2129 = vmatpush1.bf16.msra.mxu0 %v2892_v29  ;;  %1918 = vmatprep.subr.bf16.mxu1 %v2897_v30 }
  0xe9   :  { %2130 = vmatprep.subr.bf16.mxu0 %v2900_v31 }
  0xeb   :  { %1919 = vmatpush1.bf16.msra.mxu1 %v2895_v32 }
  0xec   :  { %2131 = vmatpush1.bf16.msra.mxu0 %v2898_v33  ;;  %1920 = vmatprep.subr.bf16.mxu1 %v2903_v34 }
  0xed   :  { %2132 = vmatprep.subr.bf16.mxu0 %v2906_v35 }
  0xef   :  { %1921 = vmatpush1.bf16.msra.mxu1 %v2901_v36 }
  0xf0   :  { %2133 = vmatpush1.bf16.msra.mxu0 %v2904_v37  ;;  %1922 = vmatprep.subr.bf16.mxu1 %v2909_v38 }
  0xf1   :  { %2134 = vmatprep.subr.bf16.mxu0 %v2912_v39 }
  0xf3   :  { %1923 = vmatpush1.bf16.msra.mxu1 %v2907_v40 }
  0xf4   :  { %2135 = vmatpush1.bf16.msra.mxu0 %v2910_v41  ;;  %1924 = vmatprep.subr.bf16.mxu1 %v2915_v43 }
  0xf5   :  { %2136 = vmatprep.subr.bf16.mxu0 %v2918_v44 }
  0xf7   :  { %1925 = vmatpush1.bf16.msra.mxu1 %v2913_v48 }
  0xf8   :  { %2137 = vmatpush1.bf16.msra.mxu0 %v2916_v49  ;;  %1926 = vmatprep.subr.bf16.mxu1 %v2921_v42 }
  0xf9   :  { %2138 = vmatprep.subr.bf16.mxu0 %v2924_v45 }
  0xfb   :  { %1927 = vmatpush1.bf16.msra.mxu1 %v2919_v46 }
  0xfc   :  { %2139 = vmatpush1.bf16.msra.mxu0 %v2922_v47  ;;  %1928 = vmatprep.subr.bf16.mxu1 %v2927_v50 }
  0xfd   :  { %2140 = vmatprep.subr.bf16.mxu0 %v2930_v51 }
  0xff   :  { %1929 = vmatpush1.bf16.msra.mxu1 %v2925_v52 }
 0x100   :  { %2141 = vmatpush1.bf16.msra.mxu0 %v2928_v53 }
 0x102   :  { %1931 = vmatmul.mubr.bf16.vlgmr.msra.gmra.mrb[0].mxu1 %v2201_v62 }
 0x103   :  { %2143 = vmatmul.mubr.bf16.vlgmr.msra.gmra.mrb[0].mxu0 %v2209_v63  ;;  %1940 = vmatprep.mubr.bf16.mxu1 %v2218_v0 }
 0x104   :  { %2152 = vmatprep.mubr.bf16.mxu0 %v2226_v1 }
 0x10a   :  { %1941 = vmatmul.mubr.bf16.gmra.mrb[4].mxu1 %v2217_v2 }
 0x10b   :  { %2153 = vmatmul.mubr.bf16.gmra.mrb[4].mxu0 %v2225_v3 }
 0x1d5   :  { %v1932_v4 = vpop.f32.mrb[0].mxu1 }
 0x1d6   :  { %v2144_v5 = vpop.f32.mrb[0].mxu0  ;;  %v1934_v7 = vpop.f32.mrb[1].mxu1 }
 0x1d7   :  { %v2491_v6 = vadd.f32 %v2144_v5, %v1932_v4  ;;  %v2146_v56 = vpop.f32.mrb[1].mxu0  ;;  %v1936_v8 = vpop.f32.mrb[2].mxu1 }
 0x1d8   :  { %v2492_v59 = vadd.f32 %v2146_v56, %v1934_v7  ;;  %v2148_v60 = vpop.f32.mrb[2].mxu0  ;;  %v1938_v9 = vpop.f32.mrb[3].mxu1 }
 0x1d9   :  { %v2493_v61 = vadd.f32 %v2148_v60, %v1936_v8  ;;  %v2150_v10 = vpop.f32.mrb[3].mxu0 }
 0x1da   :  { %v2487_v11 = vpack.c.bf16 %v2492_v59, %v2491_v6  ;;  %v2494_v12 = vadd.f32 %v2150_v10, %v1938_v9 }
 0x1dc   :  { %2187 = vst [vmem:[%s3872_s2] sm:$0xff] %v2487_v11  ;;  %v2488_v13 = vpack.c.bf16 %v2494_v12, %v2493_v61 }
 0x1dd   :  { %v1942_v14 = vpop.f32.mrb[4].mxu1 }
 0x1de   :  { %2188 = vst [vmem:[%s3872_s2 + $0x8] sm:$0xff] %v2488_v13  ;;  %v2154_v15 = vpop.f32.mrb[4].mxu0  ;;  %v1944_v17 = vpop.f32.mrb[5].mxu1 }
 0x1df   :  { %v2495_v16 = vadd.f32 %v2154_v15, %v1942_v14  ;;  %v2156_v18 = vpop.f32.mrb[5].mxu0  ;;  %v1946_v20 = vpop.f32.mrb[6].mxu1 }
 0x1e0   :  { %v2496_v19 = vadd.f32 %v2156_v18, %v1944_v17  ;;  %v2158_v21 = vpop.f32.mrb[6].mxu0  ;;  %v1948_v23 = vpop.f32.mrb[7].mxu1 }
 0x1e1   :  { %v2497_v22 = vadd.f32 %v2158_v21, %v1946_v20  ;;  %v2160_v24 = vpop.f32.mrb[7].mxu0 }
 0x1e2   :  { %v2489_v25 = vpack.c.bf16 %v2496_v19, %v2495_v16  ;;  %v2498_v26 = vadd.f32 %v2160_v24, %v1948_v23 }
 0x1e4   :  { %2189 = vst [vmem:[%s3872_s2 + $0x10] sm:$0xff] %v2489_v25  ;;  %v2490_v27 = vpack.c.bf16 %v2498_v26, %v2497_v22 }
 0x1e6   :  { %2190 = vst [vmem:[%s3872_s2 + $0x18] sm:$0xff] %v2490_v27 }

// kernel: generator_forward.32
= control target key start
LH: loop header
LB: loop body
LE: loop exit
PB: predicated region body
PF: predicated region fallthrough
CT: control target
= control target key end

     0   :  { %v14_v0 = vlaneseq  ;;  %v272_v2 = vmov 0.0   ;;  %s370_s1 = inlined_call_operand.vmem [shape: f32[1,256], index: 1, kind: output, shape index: {0}]   ;;  %s371_s2 = inlined_call_operand.vmem [shape: f32[1,256], index: 2, kind: output, shape index: {1}]   ;;  %s372_s0 = inlined_call_operand.vmem [shape: bf16[128,256], index: 0, kind: input, shape index: {}]  }
   0x1   :  { %v20_v3 = vld [vmem:[%s372_s0] sm:$0xff]  ;;  %v21_v4 = vld [vmem:[%s372_s0 + $0x8] sm:$0xff]  ;;  %v22_v5 = vld [vmem:[%s372_s0 + $0x10] sm:$0xff] }
   0x2   :  { %vm291_vm0 = vcmp.lt.s32.totalorder %v14_v0, 256  ;;  %v36_v6 = vunpack.c.l.bf16 %v20_v3  ;;  %v37_v7 = vunpack.c.h.bf16 %v20_v3  ;;  %v38_v8 = vunpack.c.l.bf16 %v21_v4  ;;  %v23_v10 = vld [vmem:[%s372_s0 + $0x18] sm:$0xff]  ;;  %v24_v15 = vld [vmem:[%s372_s0 + $0x20] sm:$0xff]  ;;  %v25_v20 = vld [vmem:[%s372_s0 + $0x28] sm:$0xff] }
   0x3   :  { %18 = vst.msk [vmem:[%s370_s1] sm:$0x3] %vm291_vm0, %v272_v2  ;;  %19 = vst.msk [vmem:[%s371_s2] sm:$0x3] %vm291_vm0, %v272_v2  ;;  %v39_v9 = vunpack.c.h.bf16 %v21_v4  ;;  %v40_v11 = vunpack.c.l.bf16 %v22_v5  ;;  %v41_v12 = vunpack.c.h.bf16 %v22_v5  ;;  %v42_v16 = vunpack.c.l.bf16 %v23_v10  ;;  %v26_v21 = vld [vmem:[%s372_s0 + $0x30] sm:$0xff]  ;;  %v27_v26 = vld [vmem:[%s372_s0 + $0x38] sm:$0xff] }
   0x4   :  { %v69_v13 = vadd.f32 %v38_v8, %v36_v6  ;;  %v43_v17 = vunpack.c.h.bf16 %v23_v10  ;;  %v44_v22 = vunpack.c.l.bf16 %v24_v15  ;;  %v45_v23 = vunpack.c.h.bf16 %v24_v15  ;;  %v28_v33 = vld [vmem:[%s372_s0 + $0x40] sm:$0xff]  ;;  %v29_v38 = vld [vmem:[%s372_s0 + $0x48] sm:$0xff]  ;;  %v30_v43 = vld [vmem:[%s372_s0 + $0x50] sm:$0xff] }
   0x5   :  { %v90_v14 = vadd.f32 %v39_v9, %v37_v7  ;;  %v46_v27 = vunpack.c.l.bf16 %v25_v20  ;;  %v47_v28 = vunpack.c.h.bf16 %v25_v20  ;;  %v48_v31 = vunpack.c.l.bf16 %v26_v21  ;;  %v31_v48 = vld [vmem:[%s372_s0 + $0x58] sm:$0xff]  ;;  %v32_v53 = vld [vmem:[%s372_s0 + $0x60] sm:$0xff]  ;;  %v33_v58 = vld [vmem:[%s372_s0 + $0x68] sm:$0xff] }
   0x6   :  { %v70_v18 = vadd.f32 %v69_v13, %v40_v11  ;;  %v49_v32 = vunpack.c.h.bf16 %v26_v21  ;;  %v50_v36 = vunpack.c.l.bf16 %v27_v26  ;;  %v51_v37 = vunpack.c.h.bf16 %v27_v26  ;;  %v34_v63 = vld [vmem:[%s372_s0 + $0x70] sm:$0xff]  ;;  %v35_v6 = vld [vmem:[%s372_s0 + $0x78] sm:$0xff] }
   0x7   :  { %v91_v19 = vadd.f32 %v90_v14, %v41_v12  ;;  %v52_v41 = vunpack.c.l.bf16 %v28_v33  ;;  %v53_v42 = vunpack.c.h.bf16 %v28_v33  ;;  %240 = vmul.bf16.f32.vacc0 %v20_v3, %v20_v3 }
   0x8   :  { %v71_v24 = vadd.f32 %v70_v18, %v42_v16  ;;  %241 = vmac.bf16.f32.vacc0 %v21_v4, %v21_v4  ;;  %v54_v46 = vunpack.c.l.bf16 %v29_v38  ;;  %v55_v47 = vunpack.c.h.bf16 %v29_v38 }
   0x9   :  { %v92_v25 = vadd.f32 %v91_v19, %v43_v17  ;;  %242 = vmac.bf16.f32.vacc0 %v22_v5, %v22_v5  ;;  %v56_v51 = vunpack.c.l.bf16 %v30_v43  ;;  %v57_v52 = vunpack.c.h.bf16 %v30_v43 }
   0xa   :  { %v72_v29 = vadd.f32 %v71_v24, %v44_v22  ;;  %243 = vmac.bf16.f32.vacc0 %v23_v10, %v23_v10  ;;  %v58_v56 = vunpack.c.l.bf16 %v31_v48  ;;  %v59_v57 = vunpack.c.h.bf16 %v31_v48 }
   0xb   :  { %v93_v30 = vadd.f32 %v92_v25, %v45_v23  ;;  %244 = vmac.bf16.f32.vacc0 %v24_v15, %v24_v15  ;;  %v60_v61 = vunpack.c.l.bf16 %v32_v53  ;;  %v61_v62 = vunpack.c.h.bf16 %v32_v53 }
   0xc   :  { %v73_v34 = vadd.f32 %v72_v29, %v46_v27  ;;  %245 = vmac.bf16.f32.vacc0 %v25_v20, %v25_v20  ;;  %v62_v4 = vunpack.c.l.bf16 %v33_v58  ;;  %v63_v5 = vunpack.c.h.bf16 %v33_v58 }
   0xd   :  { %v94_v35 = vadd.f32 %v93_v30, %v47_v28  ;;  %246 = vmac.bf16.f32.vacc0 %v26_v21, %v26_v21  ;;  %v64_v9 = vunpack.c.l.bf16 %v34_v63  ;;  %v65_v10 = vunpack.c.h.bf16 %v34_v63 }
   0xe   :  { %v74_v39 = vadd.f32 %v73_v34, %v48_v31  ;;  %247 = vmac.bf16.f32.vacc0 %v27_v26, %v27_v26  ;;  %v66_v13 = vunpack.c.l.bf16 %v35_v6  ;;  %v67_v14 = vunpack.c.h.bf16 %v35_v6 }
   0xf   :  { %v95_v40 = vadd.f32 %v94_v35, %v49_v32  ;;  %248 = vmac.bf16.f32.vacc0 %v28_v33, %v28_v33  ;;  %v273_v22 = vmov 1966171168   ;;  %v118_v28 = vshrl.u32 %v14_v0, 7 }
  0x10   :  { %v75_v44 = vadd.f32 %v74_v39, %v50_v36  ;;  %249 = vmac.bf16.f32.vacc0 %v29_v38, %v29_v38  ;;  %v115_v23 = vunpack.c.l.s4 %v273_v22 }
  0x11   :  { %v96_v45 = vadd.f32 %v95_v40, %v51_v37  ;;  %250 = vmac.bf16.f32.vacc0 %v30_v43, %v30_v43  ;;  %v274_v40 = vmov 1935823168  }
  0x12   :  { %v76_v49 = vadd.f32 %v75_v44, %v52_v41  ;;  %251 = vmac.bf16.f32.vacc0 %v31_v48, %v31_v48  ;;  %v116_v26 = vunpack.c.0.s8 %v115_v23  ;;  %v260_v41 = vunpack.c.l.s4 %v274_v40 }
  0x13   :  { %v97_v50 = vadd.f32 %v96_v45, %v53_v42  ;;  %252 = vmac.bf16.f32.vacc0 %v32_v53, %v32_v53 }
  0x14   :  { %v77_v54 = vadd.f32 %v76_v49, %v54_v46  ;;  %253 = vmac.bf16.f32.vacc0 %v33_v58, %v33_v58  ;;  %v119_v33 = vsub.s32 %v116_v26, %v118_v28  ;;  %v261_v42 = vunpack.c.0.s8 %v260_v41 }
  0x15   :  { %v98_v55 = vadd.f32 %v97_v50, %v55_v47  ;;  %254 = vmac.bf16.f32.vacc0 %v34_v63, %v34_v63 }
  0x16   :  { %v78_v59 = vadd.f32 %v77_v54, %v56_v51  ;;  %255 = vmac.bf16.f32.vacc0 %v35_v6, %v35_v6  ;;  %v264_v43 = vsub.s32 %v261_v42, %v118_v28  ;;  %v68_v51 = vld [vmem:[%s370_s1] sm:$0x3] }
  0x17   :  { %v99_v60 = vadd.f32 %v98_v55, %v57_v52 }
  0x18   :  { %v79_v2 = vadd.f32 %v78_v59, %v58_v56  ;;  %v256_v36 = vmovacc.add.low.vacc0 }
  0x19   :  { %v100_v3 = vadd.f32 %v99_v60, %v59_v57  ;;  %v257_v37 = vmovacc.add.high.vacc0 }
  0x1a   :  { %v80_v7 = vadd.f32 %v79_v2, %v60_v61  ;;  %v135_v2 = vld [vmem:[%s371_s2] sm:$0x3] }
  0x1b   :  { %v101_v8 = vadd.f32 %v100_v3, %v61_v62  ;;  %v258_v38 = vcombine.low %v256_v36, %v257_v37  ;;  %v259_v39 = vcombine.high %v256_v36, %v257_v37 }
  0x1c   :  { %v81_v11 = vadd.f32 %v80_v7, %v62_v4 }
  0x1d   :  { %v102_v12 = vadd.f32 %v101_v8, %v63_v5  ;;  %v265_v44 = vrot.slane %v258_v38, %v264_v43  ;;  %v271_v0 = vrot.slane %v259_v39, %v264_v43 }
  0x1e   :  { %v82_v15 = vadd.f32 %v81_v11, %v64_v9 }
  0x1f   :  { %v103_v16 = vadd.f32 %v102_v12, %v65_v10  ;;  %v183_v46 = vrot.slane %v265_v44, 4  ;;  %v204_v47 = vrot.slane %v271_v0, 4 }
  0x20   :  { %v83_v17 = vadd.f32 %v82_v15, %v66_v13 }
  0x21   :  { %v104_v18 = vadd.f32 %v103_v16, %v67_v14  ;;  %v184_v49 = vadd.f32 %v265_v44, %v183_v46  ;;  %v205_v50 = vadd.f32 %v271_v0, %v204_v47 }
  0x22   :  { %v84_v19 = vrot.slane %v83_v17, 4 }
  0x23   :  { %v105_v20 = vrot.slane %v104_v18, 4  ;;  %v185_v53 = vrot.slane %v184_v49, 2  ;;  %v206_v54 = vrot.slane %v205_v50, 2 }
  0x24   :  { %v85_v24 = vadd.f32 %v84_v19, %v83_v17 }
  0x25   :  { %v106_v21 = vadd.f32 %v105_v20, %v104_v18  ;;  %v186_v56 = vadd.f32 %v185_v53, %v184_v49  ;;  %v207_v57 = vadd.f32 %v206_v54, %v205_v50 }
  0x26   :  { %v86_v25 = vrot.slane %v85_v24, 2 }
  0x27   :  { %v107_v27 = vrot.slane %v106_v21, 2  ;;  %v187_v58 = vrot.slane %v186_v56, 1  ;;  %v208_v59 = vrot.slane %v207_v57, 1 }
  0x28   :  { %v87_v29 = vadd.f32 %v86_v25, %v85_v24 }
  0x29   :  { %v108_v30 = vadd.f32 %v107_v27, %v106_v21  ;;  %v188_v60 = vadd.f32 %v187_v58, %v186_v56  ;;  %v209_v61 = vadd.f32 %v208_v59, %v207_v57 }
  0x2a   :  { %v88_v31 = vrot.slane %v87_v29, 1 }
  0x2b   :  { %v109_v32 = vrot.slane %v108_v30, 1  ;;  %v212_v62 = vcombine.low %v188_v60, %v209_v61 }
  0x2c   :  { %v89_v34 = vadd.f32 %v88_v31, %v87_v29 }
  0x2d   :  { %v110_v35 = vadd.f32 %v109_v32, %v108_v30  ;;  %v219_v63 = vrot.slane %v212_v62, %v119_v33 }
  0x2f   :  { %v113_v45 = vcombine.low %v89_v34, %v110_v35  ;;  %v226_v3 = vrot.slane %v219_v63, %v119_v33 }
  0x31   :  { %v120_v48 = vrot.slane %v113_v45, %v119_v33  ;;  %v228_v4 = vadd.f32 %v226_v3, %v135_v2 }
  0x33   :  { %v127_v52 = vrot.slane %v120_v48, %v119_v33  ;;  %229 = vst.msk [vmem:[%s371_s2] sm:$0x3] %vm291_vm0, %v228_v4 }
  0x35   :  { %v129_v55 = vadd.f32 %v127_v52, %v68_v51 }
  0x37   :  { %134 = vst.msk [vmem:[%s370_s1] sm:$0x3] %vm291_vm0, %v129_v55 }

// kernel: generator_forward.33
= control target key start
LH: loop header
LB: loop body
LE: loop exit
PB: predicated region body
PF: predicated region fallthrough
CT: control target
= control target key end

     0   :  { %v83_v8 = vlaneseq  ;;  %s666_s1 = inlined_call_operand.vmem [shape: f32[1,256], index: 1, kind: input, shape index: {}]   ;;  %s667_s2 = inlined_call_operand.vmem [shape: f32[1,256], index: 2, kind: input, shape index: {}]   ;;  %s668_s0 = inlined_call_operand.vmem [shape: bf16[128,256], index: 0, kind: input, shape index: {}]   ;;  %s669_s3 = inlined_call_operand.vmem [shape: f32[1,256], index: 3, kind: input, shape index: {}]   ;;  %s670_s4 = inlined_call_operand.vmem [shape: f32[1,256], index: 4, kind: input, shape index: {}]   ;;  %s671_s5 = inlined_call_operand.vmem [shape: bf16[128,256], index: 5, kind: output, shape index: {}]  }
   0x1   :  { %v20_v0 = vld [vmem:[%s666_s1] sm:$0x3]  ;;  %v396_v11 = vld [vmem:[%s668_s0 + $0x8] sm:$0xff]  ;;  %v401_v12 = vld [vmem:[%s668_s0 + $0x10] sm:$0xff] }
   0x2   :  { %v22_v1 = vld [vmem:[%s667_s2] sm:$0x3]  ;;  %v21_v2 = vmul.f32 0.0078125, %v20_v0  ;;  %v391_v10 = vshrl.u32 %v83_v8, 7  ;;  %v406_v13 = vld [vmem:[%s668_s0 + $0x18] sm:$0xff]  ;;  %v418_v17 = vld [vmem:[%s668_s0 + $0x28] sm:$0xff]  ;;  %v52_v20 = vunpack.c.l.bf16 %v396_v11  ;;  %v53_v21 = vunpack.c.h.bf16 %v396_v11 }
   0x3   :  { %v23_v3 = vmul.f32 0.0078125, %v22_v1  ;;  %v389_v9 = vld [vmem:[%s668_s0] sm:$0xff]  ;;  %v427_v22 = vld [vmem:[%s668_s0 + $0x30] sm:$0xff]  ;;  %v432_v23 = vld [vmem:[%s668_s0 + $0x38] sm:$0xff]  ;;  %v54_v24 = vunpack.c.l.bf16 %v401_v12  ;;  %v55_v25 = vunpack.c.h.bf16 %v401_v12  ;;  %v56_v26 = vunpack.c.l.bf16 %v406_v13 }
   0x4   :  { %v24_v4 = vmul.f32 %v21_v2, %v21_v2  ;;  %v50_v14 = vunpack.c.l.bf16 %v389_v9  ;;  %v51_v15 = vunpack.c.h.bf16 %v389_v9  ;;  %v413_v16 = vld [vmem:[%s668_s0 + $0x20] sm:$0xff]  ;;  %v85_v18 = vsub.s32 0, %v391_v10  ;;  %v446_v29 = vld [vmem:[%s668_s0 + $0x48] sm:$0xff]  ;;  %v458_v35 = vld [vmem:[%s668_s0 + $0x50] sm:$0xff] }
   0x5   :  { %v89_v19 = vsub.s32 1, %v391_v10  ;;  %v57_v27 = vunpack.c.h.bf16 %v406_v13  ;;  %v441_v28 = vld [vmem:[%s668_s0 + $0x40] sm:$0xff]  ;;  %v58_v31 = vunpack.c.l.bf16 %v413_v16  ;;  %v59_v32 = vunpack.c.h.bf16 %v413_v16  ;;  %v463_v36 = vld [vmem:[%s668_s0 + $0x58] sm:$0xff]  ;;  %v477_v42 = vld [vmem:[%s668_s0 + $0x68] sm:$0xff] }
   0x6   :  { %v25_v5 = vsub.f32 %v23_v3, %v24_v4  ;;  %v27_v30 = vld [vmem:[%s669_s3] sm:$0x3]  ;;  %v60_v33 = vunpack.c.l.bf16 %v418_v17  ;;  %v61_v34 = vunpack.c.h.bf16 %v418_v17  ;;  %v62_v37 = vunpack.c.l.bf16 %v427_v22  ;;  %v489_v52 = vld [vmem:[%s668_s0 + $0x70] sm:$0xff]  ;;  %v494_v53 = vld [vmem:[%s668_s0 + $0x78] sm:$0xff] }
   0x7   :  { %v63_v38 = vunpack.c.h.bf16 %v427_v22  ;;  %v64_v39 = vunpack.c.l.bf16 %v432_v23  ;;  %v65_v40 = vunpack.c.h.bf16 %v432_v23  ;;  %v472_v41 = vld [vmem:[%s668_s0 + $0x60] sm:$0xff]  ;;  %v66_v44 = vunpack.c.l.bf16 %v441_v28 }
   0x8   :  { %v26_v6 = vmax.f32 %v25_v5, 0.0  ;;  %v67_v45 = vunpack.c.h.bf16 %v441_v28  ;;  %v68_v46 = vunpack.c.l.bf16 %v446_v29  ;;  %v69_v47 = vunpack.c.h.bf16 %v446_v29  ;;  %v31_v54 = vld [vmem:[%s670_s4] sm:$0x3] }
   0x9   :  { %v70_v49 = vunpack.c.l.bf16 %v458_v35  ;;  %v71_v50 = vunpack.c.h.bf16 %v458_v35  ;;  %v72_v51 = vunpack.c.l.bf16 %v463_v36  ;;  %v73_v55 = vunpack.c.h.bf16 %v463_v36 }
   0xa   :  { %v28_v7 = vadd.f32 1e-05, %v26_v6  ;;  %v74_v56 = vunpack.c.l.bf16 %v472_v41  ;;  %v75_v57 = vunpack.c.h.bf16 %v472_v41  ;;  %v76_v58 = vunpack.c.l.bf16 %v477_v42 }
   0xb   :  { %v77_v62 = vunpack.c.h.bf16 %v477_v42  ;;  %v78_v63 = vunpack.c.l.bf16 %v489_v52  ;;  %v79_v0 = vunpack.c.h.bf16 %v489_v52  ;;  %v80_v1 = vunpack.c.l.bf16 %v494_v53 }
   0xc   :  { %348 = vrsqrt.f32 %v28_v7  ;;  %v81_v3 = vunpack.c.h.bf16 %v494_v53 }
  0x16   :  { %v349_v43 = vpop.eup %348 }
  0x17   :  { %v30_v48 = vmul.f32 %v349_v43, %v27_v30 }
  0x19   :  { %v32_v59 = vmul.f32 %v30_v48, %v21_v2  ;;  %v503_v60 = vrot.slane %v30_v48, %v85_v18  ;;  %v505_v61 = vrot.slane %v30_v48, %v89_v19 }
  0x1b   :  { %v33_v4 = vsub.f32 %v31_v54, %v32_v59  ;;  %v93_v5 = vmul.f32 %v503_v60, %v50_v14  ;;  %v94_v6 = vmul.f32 %v505_v61, %v51_v15  ;;  %v95_v2 = vmul.f32 %v503_v60, %v52_v20 }
  0x1c   :  { %v96_v7 = vmul.f32 %v505_v61, %v53_v21  ;;  %v97_v8 = vmul.f32 %v503_v60, %v54_v24  ;;  %v98_v9 = vmul.f32 %v505_v61, %v55_v25  ;;  %v99_v10 = vmul.f32 %v503_v60, %v56_v26 }
  0x1d   :  { %v519_v11 = vrot.slane %v33_v4, %v85_v18  ;;  %v521_v12 = vrot.slane %v33_v4, %v89_v19  ;;  %v100_v13 = vmul.f32 %v505_v61, %v57_v27  ;;  %v101_v14 = vmul.f32 %v503_v60, %v58_v31 }
  0x1e   :  { %v102_v15 = vmul.f32 %v505_v61, %v59_v32  ;;  %v103_v16 = vmul.f32 %v503_v60, %v60_v33  ;;  %v104_v17 = vmul.f32 %v505_v61, %v61_v34  ;;  %v105_v20 = vmul.f32 %v503_v60, %v62_v37 }
  0x1f   :  { %v136_v21 = vadd.f32 %v519_v11, %v93_v5  ;;  %v137_v24 = vadd.f32 %v521_v12, %v94_v6  ;;  %v138_v18 = vadd.f32 %v519_v11, %v95_v2  ;;  %v139_v19 = vadd.f32 %v521_v12, %v96_v7 }
  0x20   :  { %v140_v25 = vadd.f32 %v519_v11, %v97_v8  ;;  %v141_v26 = vadd.f32 %v521_v12, %v98_v9  ;;  %v142_v27 = vadd.f32 %v519_v11, %v99_v10  ;;  %v143_v30 = vadd.f32 %v521_v12, %v100_v13 }
  0x21   :  { %v168_v31 = vmax.f32 %v136_v21, 0.0  ;;  %v169_v32 = vmax.f32 %v137_v24, 0.0  ;;  %v170_v33 = vmax.f32 %v138_v18, 0.0  ;;  %v171_v34 = vmax.f32 %v139_v19, 0.0 }
  0x22   :  { %v172_v37 = vmax.f32 %v140_v25, 0.0  ;;  %v173_v43 = vmax.f32 %v141_v26, 0.0  ;;  %v174_v48 = vmax.f32 %v142_v27, 0.0  ;;  %v175_v54 = vmax.f32 %v143_v30, 0.0 }
  0x23   :  { %v332_v59 = vpack.c.bf16 %v169_v32, %v168_v31  ;;  %v333_v4 = vpack.c.bf16 %v171_v34, %v170_v33  ;;  %v144_v5 = vadd.f32 %v519_v11, %v101_v14  ;;  %v145_v6 = vadd.f32 %v521_v12, %v102_v15 }
  0x24   :  { %v334_v2 = vpack.c.bf16 %v173_v43, %v172_v37  ;;  %v335_v7 = vpack.c.bf16 %v175_v54, %v174_v48  ;;  %v146_v8 = vadd.f32 %v519_v11, %v103_v16  ;;  %v147_v9 = vadd.f32 %v521_v12, %v104_v17 }
  0x25   :  { %296 = vst [vmem:[%s671_s5] sm:$0xff] %v332_v59  ;;  %297 = vst [vmem:[%s671_s5 + $0x8] sm:$0xff] %v333_v4  ;;  %v176_v10 = vmax.f32 %v144_v5, 0.0  ;;  %v177_v13 = vmax.f32 %v145_v6, 0.0  ;;  %v106_v14 = vmul.f32 %v505_v61, %v63_v38  ;;  %v148_v15 = vadd.f32 %v519_v11, %v105_v20 }
  0x26   :  { %298 = vst [vmem:[%s671_s5 + $0x10] sm:$0xff] %v334_v2  ;;  %299 = vst [vmem:[%s671_s5 + $0x18] sm:$0xff] %v335_v7  ;;  %v178_v16 = vmax.f32 %v146_v8, 0.0  ;;  %v179_v17 = vmax.f32 %v147_v9, 0.0  ;;  %v107_v21 = vmul.f32 %v503_v60, %v64_v39  ;;  %v108_v22 = vmul.f32 %v505_v61, %v65_v40 }
  0x27   :  { %v336_v38 = vpack.c.bf16 %v177_v13, %v176_v10  ;;  %v149_v20 = vadd.f32 %v521_v12, %v106_v14  ;;  %v180_v24 = vmax.f32 %v148_v15, 0.0  ;;  %v109_v18 = vmul.f32 %v503_v60, %v66_v44 }
  0x28   :  { %v337_v19 = vpack.c.bf16 %v179_v17, %v178_v16  ;;  %v150_v25 = vadd.f32 %v519_v11, %v107_v21  ;;  %v151_v26 = vadd.f32 %v521_v12, %v108_v22  ;;  %v110_v39 = vmul.f32 %v505_v61, %v67_v45 }
  0x29   :  { %300 = vst [vmem:[%s671_s5 + $0x20] sm:$0xff] %v336_v38  ;;  %v181_v23 = vmax.f32 %v149_v20, 0.0  ;;  %v152_v40 = vadd.f32 %v519_v11, %v109_v18  ;;  %v111_v44 = vmul.f32 %v503_v60, %v68_v46  ;;  %v112_v27 = vmul.f32 %v505_v61, %v69_v47 }
  0x2a   :  { %301 = vst [vmem:[%s671_s5 + $0x28] sm:$0xff] %v337_v19  ;;  %v182_v28 = vmax.f32 %v150_v25, 0.0  ;;  %v183_v45 = vmax.f32 %v151_v26, 0.0  ;;  %v153_v30 = vadd.f32 %v521_v12, %v110_v39  ;;  %v113_v31 = vmul.f32 %v503_v60, %v70_v49 }
  0x2b   :  { %v338_v32 = vpack.c.bf16 %v181_v23, %v180_v24  ;;  %v184_v33 = vmax.f32 %v152_v40, 0.0  ;;  %v154_v46 = vadd.f32 %v519_v11, %v111_v44  ;;  %v155_v29 = vadd.f32 %v521_v12, %v112_v27 }
  0x2c   :  { %v339_v34 = vpack.c.bf16 %v183_v45, %v182_v28  ;;  %v185_v47 = vmax.f32 %v153_v30, 0.0  ;;  %v114_v37 = vmul.f32 %v505_v61, %v71_v50  ;;  %v156_v43 = vadd.f32 %v519_v11, %v113_v31 }
  0x2d   :  { %302 = vst [vmem:[%s671_s5 + $0x30] sm:$0xff] %v338_v32  ;;  %v186_v48 = vmax.f32 %v154_v46, 0.0  ;;  %v187_v49 = vmax.f32 %v155_v29, 0.0  ;;  %v115_v54 = vmul.f32 %v503_v60, %v72_v51  ;;  %v116_v59 = vmul.f32 %v505_v61, %v73_v55 }
  0x2e   :  { %303 = vst [vmem:[%s671_s5 + $0x38] sm:$0xff] %v339_v34  ;;  %v340_v35 = vpack.c.bf16 %v185_v47, %v184_v33  ;;  %v157_v50 = vadd.f32 %v521_v12, %v114_v37  ;;  %v188_v4 = vmax.f32 %v156_v43, 0.0  ;;  %v117_v5 = vmul.f32 %v503_v60, %v74_v56 }
  0x2f   :  { %v341_v6 = vpack.c.bf16 %v187_v49, %v186_v48  ;;  %v158_v2 = vadd.f32 %v519_v11, %v115_v54  ;;  %v159_v51 = vadd.f32 %v521_v12, %v116_v59  ;;  %v118_v36 = vmul.f32 %v505_v61, %v75_v57 }
  0x30   :  { %304 = vst [vmem:[%s671_s5 + $0x40] sm:$0xff] %v340_v35  ;;  %v189_v55 = vmax.f32 %v157_v50, 0.0  ;;  %v160_v7 = vadd.f32 %v519_v11, %v117_v5  ;;  %v119_v56 = vmul.f32 %v503_v60, %v76_v58  ;;  %v120_v8 = vmul.f32 %v505_v61, %v77_v62 }
  0x31   :  { %305 = vst [vmem:[%s671_s5 + $0x48] sm:$0xff] %v341_v6  ;;  %v190_v41 = vmax.f32 %v158_v2, 0.0  ;;  %v191_v57 = vmax.f32 %v159_v51, 0.0  ;;  %v161_v9 = vadd.f32 %v521_v12, %v118_v36  ;;  %v121_v10 = vmul.f32 %v503_v60, %v78_v63 }
  0x32   :  { %v342_v13 = vpack.c.bf16 %v189_v55, %v188_v4  ;;  %v192_v14 = vmax.f32 %v160_v7, 0.0  ;;  %v162_v58 = vadd.f32 %v519_v11, %v119_v56  ;;  %v163_v42 = vadd.f32 %v521_v12, %v120_v8 }
  0x33   :  { %v343_v15 = vpack.c.bf16 %v191_v57, %v190_v41  ;;  %v193_v62 = vmax.f32 %v161_v9, 0.0  ;;  %v122_v16 = vmul.f32 %v505_v61, %v79_v0  ;;  %v164_v17 = vadd.f32 %v519_v11, %v121_v10 }
  0x34   :  { %306 = vst [vmem:[%s671_s5 + $0x50] sm:$0xff] %v342_v13  ;;  %v194_v21 = vmax.f32 %v162_v58, 0.0  ;;  %v195_v63 = vmax.f32 %v163_v42, 0.0  ;;  %v123_v22 = vmul.f32 %v503_v60, %v80_v1  ;;  %v124_v38 = vmul.f32 %v505_v61, %v81_v3 }
  0x35   :  { %307 = vst [vmem:[%s671_s5 + $0x58] sm:$0xff] %v343_v15  ;;  %v344_v52 = vpack.c.bf16 %v193_v62, %v192_v14  ;;  %v165_v0 = vadd.f32 %v521_v12, %v122_v16  ;;  %v196_v20 = vmax.f32 %v164_v17, 0.0 }
  0x36   :  { %v345_v24 = vpack.c.bf16 %v195_v63, %v194_v21  ;;  %v166_v18 = vadd.f32 %v519_v11, %v123_v22  ;;  %v167_v19 = vadd.f32 %v521_v12, %v124_v38 }
  0x37   :  { %308 = vst [vmem:[%s671_s5 + $0x60] sm:$0xff] %v344_v52  ;;  %v197_v53 = vmax.f32 %v165_v0, 0.0 }
  0x38   :  { %309 = vst [vmem:[%s671_s5 + $0x68] sm:$0xff] %v345_v24  ;;  %v198_v60 = vmax.f32 %v166_v18, 0.0  ;;  %v199_v61 = vmax.f32 %v167_v19, 0.0 }
  0x39   :  { %v346_v1 = vpack.c.bf16 %v197_v53, %v196_v20 }
  0x3a   :  { %v347_v3 = vpack.c.bf16 %v199_v61, %v198_v60 }
  0x3b   :  { %310 = vst [vmem:[%s671_s5 + $0x70] sm:$0xff] %v346_v1 }
  0x3c   :  { %311 = vst [vmem:[%s671_s5 + $0x78] sm:$0xff] %v347_v3 }

// kernel: generator_forward.34
= control target key start
LH: loop header
LB: loop body
LE: loop exit
PB: predicated region body
PF: predicated region fallthrough
CT: control target
= control target key end

     0   :  { %s2378_s1 = inlined_call_operand.vmem [shape: bf16[1024,128], index: 1, kind: input, shape index: {}]   ;;  %s2379_s0 = inlined_call_operand.vmem [shape: bf16[128,1024], index: 0, kind: input, shape index: {}]   ;;  %s2380_s2 = inlined_call_operand.vmem [shape: bf16[128,128], index: 2, kind: output, shape index: {}]  }
   0x1   :  { %v1843_v0 = vld [vmem:[%s2378_s1 + $0x40] sm:$0xff]   ;;  %v1847_v4 = vld [vmem:[%s2378_s1 + $0x48] sm:$0xff]   ;;  %v1851_v8 = vld [vmem:[%s2378_s1 + $0x50] sm:$0xff]  }
   0x2   :  { %v1844_v1 = vld [vmem:[%s2378_s1 + $0xc0] sm:$0xff]   ;;  %1587 = vmatprep.subr.bf16.mxu0 %v1843_v0  ;;  %v1848_v5 = vld [vmem:[%s2378_s1 + $0xc8] sm:$0xff]   ;;  %v1852_v9 = vld [vmem:[%s2378_s1 + $0xd0] sm:$0xff]  }
   0x3   :  { %v1845_v2 = vld [vmem:[%s2378_s1] sm:$0xff]   ;;  %1651 = vmatprep.subr.bf16.mxu1 %v1844_v1  ;;  %v1849_v6 = vld [vmem:[%s2378_s1 + $0x8] sm:$0xff]   ;;  %v1853_v10 = vld [vmem:[%s2378_s1 + $0x10] sm:$0xff]  }
   0x4   :  { %v1846_v3 = vld [vmem:[%s2378_s1 + $0x80] sm:$0xff]   ;;  %1588 = vmatpush3.bf16.msra.mxu0 %v1845_v2  ;;  %v1850_v7 = vld [vmem:[%s2378_s1 + $0x88] sm:$0xff]   ;;  %v1854_v11 = vld [vmem:[%s2378_s1 + $0x90] sm:$0xff]  }
   0x5   :  { %1652 = vmatpush3.bf16.msra.mxu1 %v1846_v3  ;;  %1589 = vmatprep.subr.bf16.mxu0 %v1847_v4  ;;  %v1855_v12 = vld [vmem:[%s2378_s1 + $0x58] sm:$0xff]   ;;  %v1859_v16 = vld [vmem:[%s2378_s1 + $0x60] sm:$0xff]   ;;  %v1863_v20 = vld [vmem:[%s2378_s1 + $0x68] sm:$0xff]  }
   0x6   :  { %1653 = vmatprep.subr.bf16.mxu1 %v1848_v5  ;;  %v1856_v13 = vld [vmem:[%s2378_s1 + $0xd8] sm:$0xff]   ;;  %v1860_v17 = vld [vmem:[%s2378_s1 + $0xe0] sm:$0xff]   ;;  %v1864_v21 = vld [vmem:[%s2378_s1 + $0xe8] sm:$0xff]  }
   0x7   :  { %v1857_v14 = vld [vmem:[%s2378_s1 + $0x18] sm:$0xff]   ;;  %v1861_v18 = vld [vmem:[%s2378_s1 + $0x20] sm:$0xff]   ;;  %v1865_v22 = vld [vmem:[%s2378_s1 + $0x28] sm:$0xff]  }
   0x8   :  { %1590 = vmatpush3.bf16.msra.mxu0 %v1849_v6  ;;  %v1858_v15 = vld [vmem:[%s2378_s1 + $0x98] sm:$0xff]   ;;  %v1862_v19 = vld [vmem:[%s2378_s1 + $0xa0] sm:$0xff]   ;;  %v1866_v23 = vld [vmem:[%s2378_s1 + $0xa8] sm:$0xff]  }
   0x9   :  { %1654 = vmatpush3.bf16.msra.mxu1 %v1850_v7  ;;  %1591 = vmatprep.subr.bf16.mxu0 %v1851_v8  ;;  %v1867_v24 = vld [vmem:[%s2378_s1 + $0x70] sm:$0xff]   ;;  %v1871_v28 = vld [vmem:[%s2378_s1 + $0x78] sm:$0xff]   ;;  %v12_v32 = vld [vmem:[%s2379_s0] sm:$0xff] }
   0xa   :  { %1655 = vmatprep.subr.bf16.mxu1 %v1852_v9  ;;  %v1868_v25 = vld [vmem:[%s2378_s1 + $0xf0] sm:$0xff]   ;;  %v1872_v29 = vld [vmem:[%s2378_s1 + $0xf8] sm:$0xff]   ;;  %v16_v33 = vld [vmem:[%s2379_s0 + $0x20] sm:$0xff] }
   0xb   :  { %v1869_v26 = vld [vmem:[%s2378_s1 + $0x30] sm:$0xff]   ;;  %v1873_v30 = vld [vmem:[%s2378_s1 + $0x38] sm:$0xff]   ;;  %v13_v34 = vld [vmem:[%s2379_s0 + $0x8] sm:$0xff]  ;;  %v1380_v35 = vcombine.low %v12_v32, %v16_v33  ;;  %v1381_v36 = vcombine.high %v12_v32, %v16_v33 }
   0xc   :  { %1592 = vmatpush3.bf16.msra.mxu0 %v1853_v10  ;;  %v1870_v27 = vld [vmem:[%s2378_s1 + $0xb0] sm:$0xff]   ;;  %v1874_v31 = vld [vmem:[%s2378_s1 + $0xb8] sm:$0xff]   ;;  %v17_v37 = vld [vmem:[%s2379_s0 + $0x28] sm:$0xff] }
   0xd   :  { %1656 = vmatpush3.bf16.msra.mxu1 %v1854_v11  ;;  %1593 = vmatprep.subr.bf16.mxu0 %v1855_v12  ;;  %v1382_v38 = vcombine.low %v13_v34, %v17_v37  ;;  %v1383_v39 = vcombine.high %v13_v34, %v17_v37  ;;  %v1875_v40 = vld [vmem:[%s2378_s1 + $0x140] sm:$0xff]   ;;  %v21_v47 = vld [vmem:[%s2379_s0 + $0x48] sm:$0xff]  ;;  %v1883_v62 = vld [vmem:[%s2378_s1 + $0x150] sm:$0xff]  }
   0xe   :  { %1657 = vmatprep.subr.bf16.mxu1 %v1856_v13  ;;  %940 = vmatprep.mubr.bf16.mxu0 %v1381_v36  ;;  %v1876_v41 = vld [vmem:[%s2378_s1 + $0x100] sm:$0xff]   ;;  %v25_v48 = vld [vmem:[%s2379_s0 + $0x68] sm:$0xff]  ;;  %v1884_v63 = vld [vmem:[%s2378_s1 + $0x110] sm:$0xff]  }
   0xf   :  { %1037 = vmatprep.mubr.bf16.mxu1 %v1383_v39  ;;  %v1877_v42 = vld [vmem:[%s2378_s1 + $0x1c0] sm:$0xff]   ;;  %v1391_v49 = vcombine.high %v21_v47, %v25_v48  ;;  %v1879_v50 = vld [vmem:[%s2378_s1 + $0x148] sm:$0xff]   ;;  %v1390_v53 = vcombine.low %v21_v47, %v25_v48  ;;  %v1885_v0 = vld [vmem:[%s2378_s1 + $0x1d0] sm:$0xff]  }
  0x10   :  { %1594 = vmatpush3.bf16.msra.mxu0 %v1857_v14  ;;  %v1878_v43 = vld [vmem:[%s2378_s1 + $0x180] sm:$0xff]   ;;  %v1880_v52 = vld [vmem:[%s2378_s1 + $0x108] sm:$0xff]   ;;  %v1886_v1 = vld [vmem:[%s2378_s1 + $0x190] sm:$0xff]  }
  0x11   :  { %1658 = vmatpush3.bf16.msra.mxu1 %v1858_v15  ;;  %1595 = vmatprep.subr.bf16.mxu0 %v1859_v16  ;;  %v20_v44 = vld [vmem:[%s2379_s0 + $0x40] sm:$0xff]  ;;  %v1881_v54 = vld [vmem:[%s2378_s1 + $0x1c8] sm:$0xff]   ;;  %v1887_v10 = vld [vmem:[%s2378_s1 + $0x158] sm:$0xff]  }
  0x12   :  { %1659 = vmatprep.subr.bf16.mxu1 %v1860_v17  ;;  %v24_v45 = vld [vmem:[%s2379_s0 + $0x60] sm:$0xff]  ;;  %v1882_v55 = vld [vmem:[%s2378_s1 + $0x188] sm:$0xff]   ;;  %v1888_v11 = vld [vmem:[%s2378_s1 + $0x118] sm:$0xff]  }
  0x13   :  { %v1389_v46 = vcombine.high %v20_v44, %v24_v45  ;;  %v1388_v51 = vcombine.low %v20_v44, %v24_v45  ;;  %v28_v56 = vld [vmem:[%s2379_s0 + $0x80] sm:$0xff]  ;;  %v29_v58 = vld [vmem:[%s2379_s0 + $0x88] sm:$0xff]  ;;  %v1889_v12 = vld [vmem:[%s2378_s1 + $0x1d8] sm:$0xff]  }
  0x14   :  { %1596 = vmatpush3.bf16.msra.mxu0 %v1861_v18  ;;  %v32_v57 = vld [vmem:[%s2379_s0 + $0xa0] sm:$0xff]  ;;  %v33_v59 = vld [vmem:[%s2379_s0 + $0xa8] sm:$0xff]  ;;  %v1890_v13 = vld [vmem:[%s2378_s1 + $0x198] sm:$0xff]  }
  0x15   :  { %1660 = vmatpush3.bf16.msra.mxu1 %v1862_v19  ;;  %1597 = vmatprep.subr.bf16.mxu0 %v1863_v20  ;;  %v1397_v60 = vcombine.high %v28_v56, %v32_v57  ;;  %v1399_v61 = vcombine.high %v29_v58, %v33_v59  ;;  %v1396_v2 = vcombine.low %v28_v56, %v32_v57  ;;  %v36_v3 = vld [vmem:[%s2379_s0 + $0xc0] sm:$0xff]  ;;  %v37_v5 = vld [vmem:[%s2379_s0 + $0xc8] sm:$0xff]  ;;  %v1900_v39 = vld [vmem:[%s2378_s1 + $0x130] sm:$0xff]  }
  0x16   :  { %1661 = vmatprep.subr.bf16.mxu1 %v1864_v21  ;;  %v40_v4 = vld [vmem:[%s2379_s0 + $0xe0] sm:$0xff]  ;;  %v1398_v6 = vcombine.low %v29_v58, %v33_v59  ;;  %v41_v8 = vld [vmem:[%s2379_s0 + $0xe8] sm:$0xff]  ;;  %v1904_v48 = vld [vmem:[%s2378_s1 + $0x138] sm:$0xff]  }
  0x17   :  { %v1405_v7 = vcombine.high %v36_v3, %v40_v4  ;;  %v1407_v9 = vcombine.high %v37_v5, %v41_v8  ;;  %v44_v14 = vld [vmem:[%s2379_s0 + $0x100] sm:$0xff]  ;;  %v45_v16 = vld [vmem:[%s2379_s0 + $0x108] sm:$0xff]  ;;  %v1404_v19 = vcombine.low %v36_v3, %v40_v4  ;;  %v1406_v21 = vcombine.low %v37_v5, %v41_v8  ;;  %v23_v8 = vld [vmem:[%s2379_s0 + $0x58] sm:$0xff] }
  0x18   :  { %1598 = vmatpush3.bf16.msra.mxu0 %v1865_v22  ;;  %v48_v15 = vld [vmem:[%s2379_s0 + $0x120] sm:$0xff]  ;;  %v49_v17 = vld [vmem:[%s2379_s0 + $0x128] sm:$0xff] }
  0x19   :  { %1662 = vmatpush3.bf16.msra.mxu1 %v1866_v23  ;;  %1599 = vmatprep.subr.bf16.mxu0 %v1867_v24  ;;  %v1891_v18 = vld [vmem:[%s2378_s1 + $0x160] sm:$0xff]   ;;  %v1413_v22 = vcombine.high %v44_v14, %v48_v15  ;;  %v1415_v24 = vcombine.high %v45_v16, %v49_v17  ;;  %v1897_v32 = vld [vmem:[%s2378_s1 + $0x1e8] sm:$0xff]   ;;  %v1412_v34 = vcombine.low %v44_v14, %v48_v15  ;;  %v30_v14 = vld [vmem:[%s2379_s0 + $0x90] sm:$0xff] }
  0x1a   :  { %1663 = vmatprep.subr.bf16.mxu1 %v1868_v25  ;;  %v1892_v20 = vld [vmem:[%s2378_s1 + $0x120] sm:$0xff]   ;;  %v1898_v33 = vld [vmem:[%s2378_s1 + $0x1a8] sm:$0xff]   ;;  %v34_v15 = vld [vmem:[%s2379_s0 + $0xb0] sm:$0xff] }
  0x1b   :  { %v1893_v23 = vld [vmem:[%s2378_s1 + $0x1e0] sm:$0xff]   ;;  %v61_v44 = vld [vmem:[%s2379_s0 + $0x188] sm:$0xff] }
  0x1c   :  { %1600 = vmatpush3.bf16.msra.mxu0 %v1869_v26  ;;  %v1894_v25 = vld [vmem:[%s2378_s1 + $0x1a0] sm:$0xff]   ;;  %v65_v45 = vld [vmem:[%s2379_s0 + $0x1a8] sm:$0xff] }
  0x1d   :  { %1664 = vmatpush3.bf16.msra.mxu1 %v1870_v27  ;;  %1601 = vmatprep.subr.bf16.mxu0 %v1871_v28  ;;  %v52_v26 = vld [vmem:[%s2379_s0 + $0x140] sm:$0xff]  ;;  %v1895_v28 = vld [vmem:[%s2378_s1 + $0x168] sm:$0xff]   ;;  %v1430_v59 = vcombine.low %v61_v44, %v65_v45 }
  0x1e   :  { %1665 = vmatprep.subr.bf16.mxu1 %v1872_v29  ;;  %v56_v27 = vld [vmem:[%s2379_s0 + $0x160] sm:$0xff]  ;;  %v53_v29 = vld [vmem:[%s2379_s0 + $0x148] sm:$0xff] }
  0x1f   :  { %v1421_v36 = vcombine.high %v52_v26, %v56_v27  ;;  %v1420_v47 = vcombine.low %v52_v26, %v56_v27  ;;  %v69_v56 = vld [vmem:[%s2379_s0 + $0x1c8] sm:$0xff]  ;;  %v1400_v26 = vcombine.low %v30_v14, %v34_v15 }
  0x20   :  { %1602 = vmatpush3.bf16.msra.mxu0 %v1873_v30  ;;  %v57_v30 = vld [vmem:[%s2379_s0 + $0x168] sm:$0xff] }
  0x21   :  { %1666 = vmatpush3.bf16.msra.mxu1 %v1874_v31  ;;  %1715 = vmatprep.subr.bf16.mxu0 %v1875_v40  ;;  %v1896_v31 = vld [vmem:[%s2378_s1 + $0x128] sm:$0xff]   ;;  %v1423_v37 = vcombine.high %v53_v29, %v57_v30  ;;  %v1901_v40 = vld [vmem:[%s2378_s1 + $0x1f0] sm:$0xff]  }
  0x22   :  { %1779 = vmatprep.subr.bf16.mxu1 %v1877_v42  ;;  %v64_v42 = vld [vmem:[%s2379_s0 + $0x1a0] sm:$0xff]  ;;  %v73_v57 = vld [vmem:[%s2379_s0 + $0x1e8] sm:$0xff] }
  0x23   :  { %941 = vmatmul.mubr.bf16.vlgmr.msra.gmra.mrb[0].mxu0 %v1380_v35  ;;  %v1414_v35 = vcombine.low %v45_v16, %v49_v17  ;;  %v1438_v3 = vcombine.low %v69_v56, %v73_v57  ;;  %v31_v16 = vld [vmem:[%s2379_s0 + $0x98] sm:$0xff] }
  0x24   :  { %1038 = vmatmul.mubr.bf16.vlgmr.msra.gmra.mrb[0].mxu1 %v1382_v38  ;;  %1716 = vmatpush3.bf16.msra.mxu0 %v1876_v41  ;;  %v1899_v38 = vld [vmem:[%s2378_s1 + $0x170] sm:$0xff]   ;;  %v60_v41 = vld [vmem:[%s2379_s0 + $0x180] sm:$0xff]  ;;  %v35_v17 = vld [vmem:[%s2379_s0 + $0xb8] sm:$0xff] }
  0x25   :  { %1780 = vmatpush3.bf16.msra.mxu1 %v1878_v43  ;;  %948 = vmatprep.mubr.bf16.mxu0 %v1389_v46  ;;  %v1902_v43 = vld [vmem:[%s2378_s1 + $0x1b0] sm:$0xff]   ;;  %v1903_v46 = vld [vmem:[%s2378_s1 + $0x178] sm:$0xff]   ;;  %v1428_v58 = vcombine.low %v60_v41, %v64_v42  ;;  %v1402_v27 = vcombine.low %v31_v16, %v35_v17 }
  0x26   :  { %1045 = vmatprep.mubr.bf16.mxu1 %v1391_v49  ;;  %1717 = vmatprep.subr.bf16.mxu0 %v1879_v50  ;;  %v1422_v49 = vcombine.low %v53_v29, %v57_v30  ;;  %v1429_v50 = vcombine.high %v60_v41, %v64_v42  ;;  %v46_v30 = vld [vmem:[%s2379_s0 + $0x110] sm:$0xff]  ;;  %v59_v41 = vld [vmem:[%s2379_s0 + $0x178] sm:$0xff] }
  0x27   :  { %1781 = vmatprep.subr.bf16.mxu1 %v1881_v54  ;;  %v68_v54 = vld [vmem:[%s2379_s0 + $0x1c0] sm:$0xff] }
  0x28   :  { %1718 = vmatpush3.bf16.msra.mxu0 %v1880_v52  ;;  %v1431_v52 = vcombine.high %v61_v44, %v65_v45 }
  0x29   :  { %1782 = vmatpush3.bf16.msra.mxu1 %v1882_v55  ;;  %1719 = vmatprep.subr.bf16.mxu0 %v1883_v62  ;;  %v72_v55 = vld [vmem:[%s2379_s0 + $0x1e0] sm:$0xff]  ;;  %v14_v62 = vld [vmem:[%s2379_s0 + $0x10] sm:$0xff] }
  0x2a   :  { %1783 = vmatprep.subr.bf16.mxu1 %v1885_v0  ;;  %v15_v0 = vld [vmem:[%s2379_s0 + $0x18] sm:$0xff] }
  0x2b   :  { %949 = vmatmul.mubr.bf16.gmra.mrb[4].mxu0 %v1388_v51  ;;  %v1905_v51 = vld [vmem:[%s2378_s1 + $0x1f8] sm:$0xff]  }
  0x2c   :  { %1046 = vmatmul.mubr.bf16.gmra.mrb[4].mxu1 %v1390_v53  ;;  %956 = vmatprep.mubr.bf16.mxu0 %v1397_v60  ;;  %v1906_v53 = vld [vmem:[%s2378_s1 + $0x1b8] sm:$0xff]   ;;  %v1437_v60 = vcombine.high %v68_v54, %v72_v55 }
  0x2d   :  { %1053 = vmatprep.mubr.bf16.mxu1 %v1399_v61  ;;  %1720 = vmatpush3.bf16.msra.mxu0 %v1884_v63  ;;  %v1439_v61 = vcombine.high %v69_v56, %v73_v57  ;;  %v18_v63 = vld [vmem:[%s2379_s0 + $0x30] sm:$0xff]  ;;  %v71_v56 = vld [vmem:[%s2379_s0 + $0x1d8] sm:$0xff] }
  0x2e   :  { %1784 = vmatpush3.bf16.msra.mxu1 %v1886_v1  ;;  %1721 = vmatprep.subr.bf16.mxu0 %v1887_v10  ;;  %v19_v1 = vld [vmem:[%s2379_s0 + $0x38] sm:$0xff]  ;;  %v1385_v4 = vcombine.high %v14_v62, %v18_v63  ;;  %v1384_v10 = vcombine.low %v14_v62, %v18_v63 }
  0x2f   :  { %1785 = vmatprep.subr.bf16.mxu1 %v1889_v12  ;;  %v1387_v5 = vcombine.high %v15_v0, %v19_v1  ;;  %v75_v57 = vld [vmem:[%s2379_s0 + $0x1f8] sm:$0xff] }
  0x30   :  { %v1442_v63 = vcombine.low %v71_v56, %v75_v57 }
  0x31   :  { %1722 = vmatpush3.bf16.msra.mxu0 %v1888_v11  ;;  %v1386_v11 = vcombine.low %v15_v0, %v19_v1 }
  0x32   :  { %1786 = vmatpush3.bf16.msra.mxu1 %v1890_v13  ;;  %1723 = vmatprep.subr.bf16.mxu0 %v1891_v18 }
  0x33   :  { %957 = vmatmul.mubr.bf16.gmra.mrb[8].mxu0 %v1396_v2  ;;  %1787 = vmatprep.subr.bf16.mxu1 %v1893_v23  ;;  %v1436_v2 = vcombine.low %v68_v54, %v72_v55  ;;  %v42_v23 = vld [vmem:[%s2379_s0 + $0xf0] sm:$0xff] }
  0x34   :  { %1054 = vmatmul.mubr.bf16.gmra.mrb[8].mxu1 %v1398_v6  ;;  %964 = vmatprep.mubr.bf16.mxu0 %v1405_v7  ;;  %v22_v6 = vld [vmem:[%s2379_s0 + $0x50] sm:$0xff] }
  0x35   :  { %1061 = vmatprep.mubr.bf16.mxu1 %v1407_v9  ;;  %1724 = vmatpush3.bf16.msra.mxu0 %v1892_v20  ;;  %v26_v7 = vld [vmem:[%s2379_s0 + $0x70] sm:$0xff]  ;;  %v27_v9 = vld [vmem:[%s2379_s0 + $0x78] sm:$0xff]  ;;  %v1401_v20 = vcombine.high %v30_v14, %v34_v15 }
  0x36   :  { %1788 = vmatpush3.bf16.msra.mxu1 %v1894_v25  ;;  %1725 = vmatprep.subr.bf16.mxu0 %v1895_v28  ;;  %v1393_v12 = vcombine.high %v22_v6, %v26_v7  ;;  %v1395_v13 = vcombine.high %v23_v8, %v27_v9  ;;  %v1392_v18 = vcombine.low %v22_v6, %v26_v7  ;;  %v43_v25 = vld [vmem:[%s2379_s0 + $0xf8] sm:$0xff]  ;;  %v70_v54 = vld [vmem:[%s2379_s0 + $0x1d0] sm:$0xff] }
  0x37   :  { %1789 = vmatprep.subr.bf16.mxu1 %v1897_v32  ;;  %v47_v32 = vld [vmem:[%s2379_s0 + $0x118] sm:$0xff]  ;;  %v74_v55 = vld [vmem:[%s2379_s0 + $0x1f0] sm:$0xff] }
  0x38   :  { %v1440_v62 = vcombine.low %v70_v54, %v74_v55 }
  0x39   :  { %1726 = vmatpush3.bf16.msra.mxu0 %v1896_v31  ;;  %v50_v31 = vld [vmem:[%s2379_s0 + $0x130] sm:$0xff] }
  0x3a   :  { %1790 = vmatpush3.bf16.msra.mxu1 %v1898_v33  ;;  %1727 = vmatprep.subr.bf16.mxu0 %v1899_v38  ;;  %v51_v33 = vld [vmem:[%s2379_s0 + $0x138] sm:$0xff]  ;;  %v54_v38 = vld [vmem:[%s2379_s0 + $0x150] sm:$0xff]  ;;  %v1416_v42 = vcombine.low %v46_v30, %v50_v31 }
  0x3b   :  { %965 = vmatmul.mubr.bf16.gmra.mrb[12].mxu0 %v1404_v19  ;;  %1791 = vmatprep.subr.bf16.mxu1 %v1901_v40  ;;  %v1394_v19 = vcombine.low %v23_v8, %v27_v9  ;;  %v55_v40 = vld [vmem:[%s2379_s0 + $0x158] sm:$0xff] }
  0x3c   :  { %1062 = vmatmul.mubr.bf16.gmra.mrb[12].mxu1 %v1406_v21  ;;  %972 = vmatprep.mubr.bf16.mxu0 %v1413_v22  ;;  %v1403_v21 = vcombine.high %v31_v16, %v35_v17  ;;  %v38_v22 = vld [vmem:[%s2379_s0 + $0xd0] sm:$0xff]  ;;  %v1427_v45 = vcombine.high %v55_v40, %v59_v41 }
  0x3d   :  { %1069 = vmatprep.mubr.bf16.mxu1 %v1415_v24  ;;  %1728 = vmatpush3.bf16.msra.mxu0 %v1900_v39  ;;  %v39_v24 = vld [vmem:[%s2379_s0 + $0xd8] sm:$0xff]  ;;  %v1409_v28 = vcombine.high %v38_v22, %v42_v23  ;;  %v58_v39 = vld [vmem:[%s2379_s0 + $0x170] sm:$0xff] }
  0x3e   :  { %1792 = vmatpush3.bf16.msra.mxu1 %v1902_v43  ;;  %1729 = vmatprep.subr.bf16.mxu0 %v1903_v46  ;;  %v1411_v29 = vcombine.high %v39_v24, %v43_v25  ;;  %v1418_v43 = vcombine.low %v47_v32, %v51_v33  ;;  %v1425_v44 = vcombine.high %v54_v38, %v58_v39  ;;  %v62_v46 = vld [vmem:[%s2379_s0 + $0x190] sm:$0xff] }
  0x3f   :  { %1793 = vmatprep.subr.bf16.mxu1 %v1905_v51  ;;  %v1426_v51 = vcombine.low %v55_v40, %v59_v41 }
  0x41   :  { %1730 = vmatpush3.bf16.msra.mxu0 %v1904_v48  ;;  %v63_v48 = vld [vmem:[%s2379_s0 + $0x198] sm:$0xff] }
  0x42   :  { %1794 = vmatpush3.bf16.msra.mxu1 %v1906_v53 }
  0x43   :  { %973 = vmatmul.mubr.bf16.gmra.mrb[16].mxu0 %v1412_v34  ;;  %v1408_v34 = vcombine.low %v38_v22, %v42_v23 }
  0x44   :  { %1070 = vmatmul.mubr.bf16.gmra.mrb[16].mxu1 %v1414_v35  ;;  %980 = vmatprep.mubr.bf16.mxu0 %v1421_v36  ;;  %v1410_v35 = vcombine.low %v39_v24, %v43_v25  ;;  %v1417_v36 = vcombine.high %v46_v30, %v50_v31 }
  0x45   :  { %1077 = vmatprep.mubr.bf16.mxu1 %v1423_v37  ;;  %v1419_v37 = vcombine.high %v47_v32, %v51_v33 }
  0x4b   :  { %981 = vmatmul.mubr.bf16.gmra.mrb[20].mxu0 %v1420_v47  ;;  %v66_v47 = vld [vmem:[%s2379_s0 + $0x1b0] sm:$0xff] }
  0x4c   :  { %1078 = vmatmul.mubr.bf16.gmra.mrb[20].mxu1 %v1422_v49  ;;  %988 = vmatprep.mubr.bf16.mxu0 %v1429_v50  ;;  %v67_v49 = vld [vmem:[%s2379_s0 + $0x1b8] sm:$0xff]  ;;  %v1424_v50 = vcombine.low %v54_v38, %v58_v39 }
  0x4d   :  { %1085 = vmatprep.mubr.bf16.mxu1 %v1431_v52  ;;  %v1433_v52 = vcombine.high %v62_v46, %v66_v47  ;;  %v1435_v53 = vcombine.high %v63_v48, %v67_v49 }
  0x53   :  { %989 = vmatmul.mubr.bf16.gmra.mrb[24].mxu0 %v1428_v58  ;;  %v1432_v58 = vcombine.low %v62_v46, %v66_v47 }
  0x54   :  { %1086 = vmatmul.mubr.bf16.gmra.mrb[24].mxu1 %v1430_v59  ;;  %996 = vmatprep.mubr.bf16.mxu0 %v1437_v60  ;;  %v1434_v59 = vcombine.low %v63_v48, %v67_v49  ;;  %v1441_v60 = vcombine.high %v70_v54, %v74_v55 }
  0x55   :  { %1093 = vmatprep.mubr.bf16.mxu1 %v1439_v61  ;;  %v1443_v61 = vcombine.high %v71_v56, %v75_v57 }
  0x5b   :  { %997 = vmatmul.mubr.bf16.gmra.mrb[28].mxu0 %v1436_v2 }
  0x5c   :  { %1094 = vmatmul.mubr.bf16.gmra.mrb[28].mxu1 %v1438_v3  ;;  %1134 = vmatprep.mubr.bf16.mxu0 %v1385_v4 }
  0x5d   :  { %1231 = vmatprep.mubr.bf16.mxu1 %v1387_v5 }
  0x63   :  { %1135 = vmatmul.mubr.bf16.vlgmr.msra.gmra.mrb[32].mxu0 %v1384_v10 }
  0x64   :  { %1232 = vmatmul.mubr.bf16.vlgmr.msra.gmra.mrb[32].mxu1 %v1386_v11  ;;  %1142 = vmatprep.mubr.bf16.mxu0 %v1393_v12 }
  0x65   :  { %1239 = vmatprep.mubr.bf16.mxu1 %v1395_v13 }
  0x6b   :  { %1143 = vmatmul.mubr.bf16.gmra.mrb[36].mxu0 %v1392_v18 }
  0x6c   :  { %1240 = vmatmul.mubr.bf16.gmra.mrb[36].mxu1 %v1394_v19  ;;  %1150 = vmatprep.mubr.bf16.mxu0 %v1401_v20 }
  0x6d   :  { %1247 = vmatprep.mubr.bf16.mxu1 %v1403_v21 }
  0x73   :  { %1151 = vmatmul.mubr.bf16.gmra.mrb[40].mxu0 %v1400_v26 }
  0x74   :  { %1248 = vmatmul.mubr.bf16.gmra.mrb[40].mxu1 %v1402_v27  ;;  %1158 = vmatprep.mubr.bf16.mxu0 %v1409_v28 }
  0x75   :  { %1255 = vmatprep.mubr.bf16.mxu1 %v1411_v29 }
  0x7b   :  { %1159 = vmatmul.mubr.bf16.gmra.mrb[44].mxu0 %v1408_v34 }
  0x7c   :  { %1256 = vmatmul.mubr.bf16.gmra.mrb[44].mxu1 %v1410_v35  ;;  %1166 = vmatprep.mubr.bf16.mxu0 %v1417_v36 }
  0x7d   :  { %1263 = vmatprep.mubr.bf16.mxu1 %v1419_v37 }
  0x83   :  { %1167 = vmatmul.mubr.bf16.gmra.mrb[48].mxu0 %v1416_v42 }
  0x84   :  { %1264 = vmatmul.mubr.bf16.gmra.mrb[48].mxu1 %v1418_v43  ;;  %1174 = vmatprep.mubr.bf16.mxu0 %v1425_v44 }
  0x85   :  { %1271 = vmatprep.mubr.bf16.mxu1 %v1427_v45 }
  0x8b   :  { %1175 = vmatmul.mubr.bf16.gmra.mrb[52].mxu0 %v1424_v50 }
  0x8c   :  { %1272 = vmatmul.mubr.bf16.gmra.mrb[52].mxu1 %v1426_v51  ;;  %1182 = vmatprep.mubr.bf16.mxu0 %v1433_v52 }
  0x8d   :  { %1279 = vmatprep.mubr.bf16.mxu1 %v1435_v53 }
  0x93   :  { %1183 = vmatmul.mubr.bf16.gmra.mrb[56].mxu0 %v1432_v58 }
  0x94   :  { %1280 = vmatmul.mubr.bf16.gmra.mrb[56].mxu1 %v1434_v59  ;;  %1190 = vmatprep.mubr.bf16.mxu0 %v1441_v60 }
  0x95   :  { %1287 = vmatprep.mubr.bf16.mxu1 %v1443_v61 }
  0x9b   :  { %1191 = vmatmul.mubr.bf16.gmra.mrb[60].mxu0 %v1440_v62 }
  0x9c   :  { %1288 = vmatmul.mubr.bf16.gmra.mrb[60].mxu1 %v1442_v63 }
  0xf6   :  { %v1603_v0 = vpop.f32.mrb[0].mxu0 }
  0xf7   :  { %v1667_v1 = vpop.f32.mrb[0].mxu1  ;;  %v1604_v2 = vpop.f32.mrb[1].mxu0 }
  0xf8   :  { %v1605_v3 = vadd.f32 %v1604_v2, %v1603_v0  ;;  %v1668_v4 = vpop.f32.mrb[1].mxu1  ;;  %v1606_v5 = vpop.f32.mrb[2].mxu0 }
  0xf9   :  { %v1669_v6 = vadd.f32 %v1668_v4, %v1667_v1  ;;  %v1670_v7 = vpop.f32.mrb[2].mxu1  ;;  %v1607_v8 = vpop.f32.mrb[3].mxu0 }
  0xfa   :  { %v1608_v9 = vadd.f32 %v1607_v8, %v1606_v5  ;;  %v1671_v10 = vpop.f32.mrb[3].mxu1 }
  0xfb   :  { %v2306_v11 = vadd.f32 %v1669_v6, %v1605_v3  ;;  %v1672_v12 = vadd.f32 %v1671_v10, %v1670_v7 }
  0xfd   :  { %v2308_v13 = vadd.f32 %v1672_v12, %v1608_v9 }
  0xfe   :  { %v1609_v14 = vpop.f32.mrb[4].mxu0 }
  0xff   :  { %v1673_v15 = vpop.f32.mrb[4].mxu1  ;;  %v1610_v16 = vpop.f32.mrb[5].mxu0 }
 0x100   :  { %v1611_v17 = vadd.f32 %v1610_v16, %v1609_v14  ;;  %v1674_v18 = vpop.f32.mrb[5].mxu1  ;;  %v1612_v19 = vpop.f32.mrb[6].mxu0 }
 0x101   :  { %v1675_v20 = vadd.f32 %v1674_v18, %v1673_v15  ;;  %v1676_v21 = vpop.f32.mrb[6].mxu1  ;;  %v1613_v22 = vpop.f32.mrb[7].mxu0 }
 0x102   :  { %v1614_v23 = vadd.f32 %v1613_v22, %v1612_v19  ;;  %v1677_v24 = vpop.f32.mrb[7].mxu1 }
 0x103   :  { %v2310_v25 = vadd.f32 %v1675_v20, %v1611_v17  ;;  %v1678_v26 = vadd.f32 %v1677_v24, %v1676_v21 }
 0x105   :  { %v2312_v27 = vadd.f32 %v1678_v26, %v1614_v23 }
 0x106   :  { %v1615_v28 = vpop.f32.mrb[8].mxu0 }
 0x107   :  { %v1679_v29 = vpop.f32.mrb[8].mxu1  ;;  %v1616_v30 = vpop.f32.mrb[9].mxu0 }
 0x108   :  { %v1617_v31 = vadd.f32 %v1616_v30, %v1615_v28  ;;  %v1680_v32 = vpop.f32.mrb[9].mxu1  ;;  %v1618_v33 = vpop.f32.mrb[10].mxu0 }
 0x109   :  { %v1681_v34 = vadd.f32 %v1680_v32, %v1679_v29  ;;  %v1682_v35 = vpop.f32.mrb[10].mxu1  ;;  %v1619_v36 = vpop.f32.mrb[11].mxu0 }
 0x10a   :  { %v1620_v37 = vadd.f32 %v1619_v36, %v1618_v33  ;;  %v1683_v38 = vpop.f32.mrb[11].mxu1 }
 0x10b   :  { %v2314_v39 = vadd.f32 %v1681_v34, %v1617_v31  ;;  %v1684_v40 = vadd.f32 %v1683_v38, %v1682_v35 }
 0x10d   :  { %v2316_v41 = vadd.f32 %v1684_v40, %v1620_v37 }
 0x10e   :  { %v1621_v42 = vpop.f32.mrb[12].mxu0 }
 0x10f   :  { %v1685_v43 = vpop.f32.mrb[12].mxu1  ;;  %v1622_v44 = vpop.f32.mrb[13].mxu0 }
 0x110   :  { %v1623_v45 = vadd.f32 %v1622_v44, %v1621_v42  ;;  %v1686_v46 = vpop.f32.mrb[13].mxu1  ;;  %v1624_v47 = vpop.f32.mrb[14].mxu0 }
 0x111   :  { %v1687_v48 = vadd.f32 %v1686_v46, %v1685_v43  ;;  %v1688_v49 = vpop.f32.mrb[14].mxu1  ;;  %v1625_v50 = vpop.f32.mrb[15].mxu0 }
 0x112   :  { %v1626_v51 = vadd.f32 %v1625_v50, %v1624_v47  ;;  %v1689_v52 = vpop.f32.mrb[15].mxu1 }
 0x113   :  { %v2318_v53 = vadd.f32 %v1687_v48, %v1623_v45  ;;  %v1690_v54 = vadd.f32 %v1689_v52, %v1688_v49 }
 0x115   :  { %v2320_v55 = vadd.f32 %v1690_v54, %v1626_v51 }
 0x116   :  { %v1627_v56 = vpop.f32.mrb[16].mxu0 }
 0x117   :  { %v1691_v57 = vpop.f32.mrb[16].mxu1  ;;  %v1628_v58 = vpop.f32.mrb[17].mxu0 }
 0x118   :  { %v1629_v59 = vadd.f32 %v1628_v58, %v1627_v56  ;;  %v1692_v60 = vpop.f32.mrb[17].mxu1  ;;  %v1630_v61 = vpop.f32.mrb[18].mxu0 }
 0x119   :  { %v1693_v62 = vadd.f32 %v1692_v60, %v1691_v57  ;;  %v1694_v63 = vpop.f32.mrb[18].mxu1  ;;  %v1631_v0 = vpop.f32.mrb[19].mxu0 }
 0x11a   :  { %v1632_v1 = vadd.f32 %v1631_v0, %v1630_v61  ;;  %v1695_v2 = vpop.f32.mrb[19].mxu1 }
 0x11b   :  { %v2322_v3 = vadd.f32 %v1693_v62, %v1629_v59  ;;  %v1696_v4 = vadd.f32 %v1695_v2, %v1694_v63 }
 0x11d   :  { %v2324_v5 = vadd.f32 %v1696_v4, %v1632_v1 }
 0x11e   :  { %v1633_v6 = vpop.f32.mrb[20].mxu0 }
 0x11f   :  { %v1697_v7 = vpop.f32.mrb[20].mxu1  ;;  %v1634_v8 = vpop.f32.mrb[21].mxu0 }
 0x120   :  { %v1635_v9 = vadd.f32 %v1634_v8, %v1633_v6  ;;  %v1698_v10 = vpop.f32.mrb[21].mxu1  ;;  %v1636_v12 = vpop.f32.mrb[22].mxu0 }
 0x121   :  { %v1699_v14 = vadd.f32 %v1698_v10, %v1697_v7  ;;  %v1700_v15 = vpop.f32.mrb[22].mxu1  ;;  %v1637_v16 = vpop.f32.mrb[23].mxu0 }
 0x122   :  { %v1638_v17 = vadd.f32 %v1637_v16, %v1636_v12  ;;  %v1701_v18 = vpop.f32.mrb[23].mxu1 }
 0x123   :  { %v2326_v19 = vadd.f32 %v1699_v14, %v1635_v9  ;;  %v1702_v20 = vadd.f32 %v1701_v18, %v1700_v15 }
 0x125   :  { %v2328_v21 = vadd.f32 %v1702_v20, %v1638_v17 }
 0x126   :  { %v1639_v22 = vpop.f32.mrb[24].mxu0 }
 0x127   :  { %v1703_v23 = vpop.f32.mrb[24].mxu1  ;;  %v1640_v24 = vpop.f32.mrb[25].mxu0 }
 0x128   :  { %v1641_v26 = vadd.f32 %v1640_v24, %v1639_v22  ;;  %v1704_v28 = vpop.f32.mrb[25].mxu1  ;;  %v1642_v29 = vpop.f32.mrb[26].mxu0 }
 0x129   :  { %v1705_v30 = vadd.f32 %v1704_v28, %v1703_v23  ;;  %v1706_v31 = vpop.f32.mrb[26].mxu1  ;;  %v1643_v32 = vpop.f32.mrb[27].mxu0 }
 0x12a   :  { %v1644_v33 = vadd.f32 %v1643_v32, %v1642_v29  ;;  %v1707_v34 = vpop.f32.mrb[27].mxu1 }
 0x12b   :  { %v2330_v35 = vadd.f32 %v1705_v30, %v1641_v26  ;;  %v1708_v36 = vadd.f32 %v1707_v34, %v1706_v31 }
 0x12d   :  { %v2332_v37 = vadd.f32 %v1708_v36, %v1644_v33 }
 0x12e   :  { %v1645_v38 = vpop.f32.mrb[28].mxu0 }
 0x12f   :  { %v1709_v40 = vpop.f32.mrb[28].mxu1  ;;  %v1646_v42 = vpop.f32.mrb[29].mxu0 }
 0x130   :  { %v1647_v43 = vadd.f32 %v1646_v42, %v1645_v38  ;;  %v1710_v44 = vpop.f32.mrb[29].mxu1  ;;  %v1648_v45 = vpop.f32.mrb[30].mxu0 }
 0x131   :  { %v1711_v46 = vadd.f32 %v1710_v44, %v1709_v40  ;;  %v1712_v47 = vpop.f32.mrb[30].mxu1  ;;  %v1649_v48 = vpop.f32.mrb[31].mxu0 }
 0x132   :  { %v1650_v49 = vadd.f32 %v1649_v48, %v1648_v45  ;;  %v1713_v50 = vpop.f32.mrb[31].mxu1 }
 0x133   :  { %v2334_v51 = vadd.f32 %v1711_v46, %v1647_v43  ;;  %v1714_v52 = vadd.f32 %v1713_v50, %v1712_v47 }
 0x135   :  { %v2336_v54 = vadd.f32 %v1714_v52, %v1650_v49 }
 0x136   :  { %v1731_v56 = vpop.f32.mrb[32].mxu0 }
 0x137   :  { %v1795_v57 = vpop.f32.mrb[32].mxu1  ;;  %v1732_v58 = vpop.f32.mrb[33].mxu0 }
 0x138   :  { %v1733_v59 = vadd.f32 %v1732_v58, %v1731_v56  ;;  %v1796_v60 = vpop.f32.mrb[33].mxu1  ;;  %v1734_v61 = vpop.f32.mrb[34].mxu0 }
 0x139   :  { %v1797_v62 = vadd.f32 %v1796_v60, %v1795_v57  ;;  %v1798_v63 = vpop.f32.mrb[34].mxu1  ;;  %v1735_v0 = vpop.f32.mrb[35].mxu0 }
 0x13a   :  { %v1137_v1 = vadd.f32 %v1733_v59, %v2306_v11  ;;  %v1736_v2 = vadd.f32 %v1735_v0, %v1734_v61  ;;  %v1799_v4 = vpop.f32.mrb[35].mxu1 }
 0x13b   :  { %v1800_v6 = vadd.f32 %v1799_v4, %v1798_v63 }
 0x13c   :  { %v1234_v7 = vadd.f32 %v1797_v62, %v1137_v1  ;;  %v1140_v8 = vadd.f32 %v1736_v2, %v2308_v13 }
 0x13e   :  { %v1237_v9 = vadd.f32 %v1800_v6, %v1140_v8  ;;  %v1737_v10 = vpop.f32.mrb[36].mxu0 }
 0x13f   :  { %v1801_v12 = vpop.f32.mrb[36].mxu1  ;;  %v1738_v14 = vpop.f32.mrb[37].mxu0 }
 0x140   :  { %v1543_v15 = vpack.c.bf16 %v1237_v9, %v1234_v7  ;;  %v1739_v16 = vadd.f32 %v1738_v14, %v1737_v10  ;;  %v1802_v17 = vpop.f32.mrb[37].mxu1  ;;  %v1740_v18 = vpop.f32.mrb[38].mxu0 }
 0x141   :  { %v1803_v20 = vadd.f32 %v1802_v17, %v1801_v12  ;;  %v1804_v22 = vpop.f32.mrb[38].mxu1  ;;  %v1741_v23 = vpop.f32.mrb[39].mxu0 }
 0x142   :  { %1544 = vst [vmem:[%s2380_s2] sm:$0xff] %v1543_v15   ;;  %v1145_v11 = vadd.f32 %v1739_v16, %v2310_v25  ;;  %v1742_v24 = vadd.f32 %v1741_v23, %v1740_v18  ;;  %v1805_v26 = vpop.f32.mrb[39].mxu1 }
 0x143   :  { %v1806_v13 = vadd.f32 %v1805_v26, %v1804_v22 }
 0x144   :  { %v1242_v28 = vadd.f32 %v1803_v20, %v1145_v11  ;;  %v1148_v29 = vadd.f32 %v1742_v24, %v2312_v27 }
 0x146   :  { %v1245_v30 = vadd.f32 %v1806_v13, %v1148_v29  ;;  %v1743_v31 = vpop.f32.mrb[40].mxu0 }
 0x147   :  { %v1807_v32 = vpop.f32.mrb[40].mxu1  ;;  %v1744_v33 = vpop.f32.mrb[41].mxu0 }
 0x148   :  { %v1548_v34 = vpack.c.bf16 %v1245_v30, %v1242_v28  ;;  %v1745_v36 = vadd.f32 %v1744_v33, %v1743_v31  ;;  %v1808_v38 = vpop.f32.mrb[41].mxu1  ;;  %v1746_v40 = vpop.f32.mrb[42].mxu0 }
 0x149   :  { %v1809_v42 = vadd.f32 %v1808_v38, %v1807_v32  ;;  %v1810_v43 = vpop.f32.mrb[42].mxu1  ;;  %v1747_v44 = vpop.f32.mrb[43].mxu0 }
 0x14a   :  { %1580 = vst [vmem:[%s2380_s2 + $0x8] sm:$0xff] %v1548_v34   ;;  %v1153_v25 = vadd.f32 %v1745_v36, %v2314_v39  ;;  %v1748_v45 = vadd.f32 %v1747_v44, %v1746_v40  ;;  %v1811_v46 = vpop.f32.mrb[43].mxu1 }
 0x14b   :  { %v1812_v27 = vadd.f32 %v1811_v46, %v1810_v43 }
 0x14c   :  { %v1250_v47 = vadd.f32 %v1809_v42, %v1153_v25  ;;  %v1156_v48 = vadd.f32 %v1748_v45, %v2316_v41 }
 0x14e   :  { %v1253_v49 = vadd.f32 %v1812_v27, %v1156_v48  ;;  %v1749_v50 = vpop.f32.mrb[44].mxu0 }
 0x14f   :  { %v1813_v52 = vpop.f32.mrb[44].mxu1  ;;  %v1750_v56 = vpop.f32.mrb[45].mxu0 }
 0x150   :  { %v1553_v57 = vpack.c.bf16 %v1253_v49, %v1250_v47  ;;  %v1751_v58 = vadd.f32 %v1750_v56, %v1749_v50  ;;  %v1814_v59 = vpop.f32.mrb[45].mxu1  ;;  %v1752_v60 = vpop.f32.mrb[46].mxu0 }
 0x151   :  { %v1815_v61 = vadd.f32 %v1814_v59, %v1813_v52  ;;  %v1816_v62 = vpop.f32.mrb[46].mxu1  ;;  %v1753_v63 = vpop.f32.mrb[47].mxu0 }
 0x152   :  { %1581 = vst [vmem:[%s2380_s2 + $0x10] sm:$0xff] %v1553_v57   ;;  %v1161_v39 = vadd.f32 %v1751_v58, %v2318_v53  ;;  %v1754_v0 = vadd.f32 %v1753_v63, %v1752_v60  ;;  %v1817_v1 = vpop.f32.mrb[47].mxu1 }
 0x153   :  { %v1818_v41 = vadd.f32 %v1817_v1, %v1816_v62 }
 0x154   :  { %v1258_v2 = vadd.f32 %v1815_v61, %v1161_v39  ;;  %v1164_v4 = vadd.f32 %v1754_v0, %v2320_v55 }
 0x156   :  { %v1261_v6 = vadd.f32 %v1818_v41, %v1164_v4  ;;  %v1755_v7 = vpop.f32.mrb[48].mxu0 }
 0x157   :  { %v1819_v8 = vpop.f32.mrb[48].mxu1  ;;  %v1756_v9 = vpop.f32.mrb[49].mxu0 }
 0x158   :  { %v1558_v10 = vpack.c.bf16 %v1261_v6, %v1258_v2  ;;  %v1757_v12 = vadd.f32 %v1756_v9, %v1755_v7  ;;  %v1820_v14 = vpop.f32.mrb[49].mxu1  ;;  %v1758_v15 = vpop.f32.mrb[50].mxu0 }
 0x159   :  { %v1821_v16 = vadd.f32 %v1820_v14, %v1819_v8  ;;  %v1822_v17 = vpop.f32.mrb[50].mxu1  ;;  %v1759_v18 = vpop.f32.mrb[51].mxu0 }
 0x15a   :  { %1582 = vst [vmem:[%s2380_s2 + $0x18] sm:$0xff] %v1558_v10   ;;  %v1169_v53 = vadd.f32 %v1757_v12, %v2322_v3  ;;  %v1760_v20 = vadd.f32 %v1759_v18, %v1758_v15  ;;  %v1823_v22 = vpop.f32.mrb[51].mxu1 }
 0x15b   :  { %v1824_v55 = vadd.f32 %v1823_v22, %v1822_v17 }
 0x15c   :  { %v1266_v23 = vadd.f32 %v1821_v16, %v1169_v53  ;;  %v1172_v11 = vadd.f32 %v1760_v20, %v2324_v5 }
 0x15e   :  { %v1269_v24 = vadd.f32 %v1824_v55, %v1172_v11  ;;  %v1761_v26 = vpop.f32.mrb[52].mxu0 }
 0x15f   :  { %v1825_v13 = vpop.f32.mrb[52].mxu1  ;;  %v1762_v28 = vpop.f32.mrb[53].mxu0 }
 0x160   :  { %v1563_v29 = vpack.c.bf16 %v1269_v24, %v1266_v23  ;;  %v1763_v30 = vadd.f32 %v1762_v28, %v1761_v26  ;;  %v1826_v31 = vpop.f32.mrb[53].mxu1  ;;  %v1764_v32 = vpop.f32.mrb[54].mxu0 }
 0x161   :  { %v1827_v33 = vadd.f32 %v1826_v31, %v1825_v13  ;;  %v1828_v34 = vpop.f32.mrb[54].mxu1  ;;  %v1765_v36 = vpop.f32.mrb[55].mxu0 }
 0x162   :  { %1583 = vst [vmem:[%s2380_s2 + $0x20] sm:$0xff] %v1563_v29   ;;  %v1177_v3 = vadd.f32 %v1763_v30, %v2326_v19  ;;  %v1766_v38 = vadd.f32 %v1765_v36, %v1764_v32  ;;  %v1829_v40 = vpop.f32.mrb[55].mxu1 }
 0x163   :  { %v1830_v5 = vadd.f32 %v1829_v40, %v1828_v34 }
 0x164   :  { %v1274_v42 = vadd.f32 %v1827_v33, %v1177_v3  ;;  %v1180_v43 = vadd.f32 %v1766_v38, %v2328_v21 }
 0x166   :  { %v1277_v44 = vadd.f32 %v1830_v5, %v1180_v43  ;;  %v1767_v25 = vpop.f32.mrb[56].mxu0 }
 0x167   :  { %v1831_v45 = vpop.f32.mrb[56].mxu1  ;;  %v1768_v46 = vpop.f32.mrb[57].mxu0 }
 0x168   :  { %v1568_v27 = vpack.c.bf16 %v1277_v44, %v1274_v42  ;;  %v1769_v47 = vadd.f32 %v1768_v46, %v1767_v25  ;;  %v1832_v48 = vpop.f32.mrb[57].mxu1  ;;  %v1770_v49 = vpop.f32.mrb[58].mxu0 }
 0x169   :  { %v1833_v50 = vadd.f32 %v1832_v48, %v1831_v45  ;;  %v1834_v52 = vpop.f32.mrb[58].mxu1  ;;  %v1771_v56 = vpop.f32.mrb[59].mxu0 }
 0x16a   :  { %1584 = vst [vmem:[%s2380_s2 + $0x28] sm:$0xff] %v1568_v27   ;;  %v1185_v19 = vadd.f32 %v1769_v47, %v2330_v35  ;;  %v1772_v57 = vadd.f32 %v1771_v56, %v1770_v49  ;;  %v1835_v58 = vpop.f32.mrb[59].mxu1 }
 0x16b   :  { %v1836_v21 = vadd.f32 %v1835_v58, %v1834_v52 }
 0x16c   :  { %v1282_v59 = vadd.f32 %v1833_v50, %v1185_v19  ;;  %v1188_v60 = vadd.f32 %v1772_v57, %v2332_v37 }
 0x16e   :  { %v1285_v61 = vadd.f32 %v1836_v21, %v1188_v60  ;;  %v1773_v62 = vpop.f32.mrb[60].mxu0 }
 0x16f   :  { %v1837_v63 = vpop.f32.mrb[60].mxu1  ;;  %v1774_v39 = vpop.f32.mrb[61].mxu0 }
 0x170   :  { %v1573_v0 = vpack.c.bf16 %v1285_v61, %v1282_v59  ;;  %v1775_v1 = vadd.f32 %v1774_v39, %v1773_v62  ;;  %v1838_v41 = vpop.f32.mrb[61].mxu1  ;;  %v1776_v2 = vpop.f32.mrb[62].mxu0 }
 0x171   :  { %v1839_v4 = vadd.f32 %v1838_v41, %v1837_v63  ;;  %v1840_v6 = vpop.f32.mrb[62].mxu1  ;;  %v1777_v7 = vpop.f32.mrb[63].mxu0 }
 0x172   :  { %1585 = vst [vmem:[%s2380_s2 + $0x30] sm:$0xff] %v1573_v0   ;;  %v1193_v35 = vadd.f32 %v1775_v1, %v2334_v51  ;;  %v1778_v8 = vadd.f32 %v1777_v7, %v1776_v2  ;;  %v1841_v9 = vpop.f32.mrb[63].mxu1 }
 0x173   :  { %v1842_v37 = vadd.f32 %v1841_v9, %v1840_v6 }
 0x174   :  { %v1290_v10 = vadd.f32 %v1839_v4, %v1193_v35  ;;  %v1196_v12 = vadd.f32 %v1778_v8, %v2336_v54 }
 0x176   :  { %v1293_v14 = vadd.f32 %v1842_v37, %v1196_v12 }
 0x178   :  { %v1578_v15 = vpack.c.bf16 %v1293_v14, %v1290_v10 }
 0x17a   :  { %1586 = vst [vmem:[%s2380_s2 + $0x38] sm:$0xff] %v1578_v15  }

// kernel: generator_forward.38
= control target key start
LH: loop header
LB: loop body
LE: loop exit
PB: predicated region body
PF: predicated region fallthrough
CT: control target
= control target key end

     0   :  { %v520_v0 = vmov 0.0   ;;  %s650_s1 = inlined_call_operand.vmem [shape: f32[1,128], index: 1, kind: output, shape index: {0}]   ;;  %s651_s2 = inlined_call_operand.vmem [shape: f32[1,128], index: 2, kind: output, shape index: {1}]   ;;  %s652_s0 = inlined_call_operand.vmem [shape: bf16[512,128], index: 0, kind: input, shape index: {}]  }
   0x1   :  { %14 = vst [vmem:[%s650_s1] sm:$0x1] %v520_v0  ;;  %15 = vst [vmem:[%s651_s2] sm:$0x1] %v520_v0  ;;  %v361_v1 = vld [vmem:[%s652_s0] sm:$0xff]   ;;  %v488_v2 = vld [vmem:[%s652_s0 + $0x8] sm:$0xff]  }
   0x2   :  { %v362_v3 = vunpack.c.l.bf16 %v361_v1  ;;  %v363_v4 = vunpack.c.h.bf16 %v361_v1  ;;  %v366_v5 = vunpack.c.l.bf16 %v488_v2  ;;  %v489_v7 = vld [vmem:[%s652_s0 + $0x10] sm:$0xff]   ;;  %v367_v8 = vunpack.c.h.bf16 %v488_v2  ;;  %v490_v12 = vld [vmem:[%s652_s0 + $0x18] sm:$0xff]   ;;  %v491_v17 = vld [vmem:[%s652_s0 + $0x20] sm:$0xff]  }
   0x3   :  { %v370_v10 = vunpack.c.l.bf16 %v489_v7  ;;  %v371_v13 = vunpack.c.h.bf16 %v489_v7  ;;  %v374_v15 = vunpack.c.l.bf16 %v490_v12  ;;  %v375_v18 = vunpack.c.h.bf16 %v490_v12  ;;  %v492_v22 = vld [vmem:[%s652_s0 + $0x28] sm:$0xff]   ;;  %v493_v30 = vld [vmem:[%s652_s0 + $0x30] sm:$0xff]   ;;  %v494_v39 = vld [vmem:[%s652_s0 + $0x38] sm:$0xff]  }
   0x4   :  { %v145_v6 = vadd.f32 %v363_v4, %v362_v3  ;;  %v378_v20 = vunpack.c.l.bf16 %v491_v17  ;;  %v379_v23 = vunpack.c.h.bf16 %v491_v17  ;;  %v217_v25 = vmul.f32 %v362_v3, %v362_v3  ;;  %v495_v48 = vld [vmem:[%s652_s0 + $0x40] sm:$0xff]   ;;  %v496_v57 = vld [vmem:[%s652_s0 + $0x48] sm:$0xff]   ;;  %v497_v2 = vld [vmem:[%s652_s0 + $0x50] sm:$0xff]  }
   0x5   :  { %v218_v26 = vmul.f32 %v363_v4, %v363_v4  ;;  %v382_v27 = vunpack.c.l.bf16 %v492_v22  ;;  %v219_v29 = vmul.f32 %v366_v5, %v366_v5  ;;  %v383_v31 = vunpack.c.h.bf16 %v492_v22 }
   0x6   :  { %v146_v9 = vadd.f32 %v366_v5, %v145_v6  ;;  %v220_v33 = vmul.f32 %v367_v8, %v367_v8  ;;  %v386_v35 = vunpack.c.l.bf16 %v493_v30  ;;  %v221_v37 = vmul.f32 %v370_v10, %v370_v10 }
   0x7   :  { %v281_v34 = vadd.f32 %v218_v26, %v217_v25  ;;  %v387_v40 = vunpack.c.h.bf16 %v493_v30  ;;  %v222_v42 = vmul.f32 %v371_v13, %v371_v13  ;;  %v390_v44 = vunpack.c.l.bf16 %v494_v39 }
   0x8   :  { %v147_v11 = vadd.f32 %v367_v8, %v146_v9  ;;  %v223_v46 = vmul.f32 %v374_v15, %v374_v15  ;;  %v391_v49 = vunpack.c.h.bf16 %v494_v39  ;;  %v224_v51 = vmul.f32 %v375_v18, %v375_v18 }
   0x9   :  { %v282_v38 = vadd.f32 %v281_v34, %v219_v29  ;;  %v394_v53 = vunpack.c.l.bf16 %v495_v48  ;;  %v225_v55 = vmul.f32 %v378_v20, %v378_v20  ;;  %v395_v58 = vunpack.c.h.bf16 %v495_v48  ;;  %v500_v29 = vld [vmem:[%s652_s0 + $0x68] sm:$0xff]  }
   0xa   :  { %v148_v14 = vadd.f32 %v370_v10, %v147_v11  ;;  %v226_v60 = vmul.f32 %v379_v23, %v379_v23  ;;  %v398_v62 = vunpack.c.l.bf16 %v496_v57  ;;  %v227_v0 = vmul.f32 %v382_v27, %v382_v27  ;;  %v498_v11 = vld [vmem:[%s652_s0 + $0x58] sm:$0xff]  }
   0xb   :  { %v283_v43 = vadd.f32 %v282_v38, %v220_v33  ;;  %v399_v3 = vunpack.c.h.bf16 %v496_v57  ;;  %v228_v5 = vmul.f32 %v383_v31, %v383_v31  ;;  %v402_v7 = vunpack.c.l.bf16 %v497_v2  ;;  %v501_v38 = vld [vmem:[%s652_s0 + $0x70] sm:$0xff]  }
   0xc   :  { %v149_v16 = vadd.f32 %v371_v13, %v148_v14  ;;  %v229_v9 = vmul.f32 %v386_v35, %v386_v35  ;;  %v403_v12 = vunpack.c.h.bf16 %v497_v2  ;;  %v230_v14 = vmul.f32 %v387_v40, %v387_v40 }
   0xd   :  { %v284_v47 = vadd.f32 %v283_v43, %v221_v37  ;;  %v414_v34 = vunpack.c.l.bf16 %v500_v29  ;;  %v415_v39 = vunpack.c.h.bf16 %v500_v29  ;;  %v418_v43 = vunpack.c.l.bf16 %v501_v38 }
   0xe   :  { %v150_v19 = vadd.f32 %v374_v15, %v149_v16  ;;  %v406_v16 = vunpack.c.l.bf16 %v498_v11  ;;  %v419_v48 = vunpack.c.h.bf16 %v501_v38 }
   0xf   :  { %v285_v52 = vadd.f32 %v284_v47, %v222_v42  ;;  %v502_v47 = vld [vmem:[%s652_s0 + $0x78] sm:$0xff]  }
  0x10   :  { %v151_v21 = vadd.f32 %v375_v18, %v150_v19  ;;  %v231_v18 = vmul.f32 %v390_v44, %v390_v44  ;;  %v423_v57 = vunpack.c.h.bf16 %v502_v47 }
  0x11   :  { %v286_v56 = vadd.f32 %v285_v52, %v223_v46  ;;  %v422_v52 = vunpack.c.l.bf16 %v502_v47 }
  0x12   :  { %v152_v24 = vadd.f32 %v378_v20, %v151_v21  ;;  %v499_v20 = vld [vmem:[%s652_s0 + $0x60] sm:$0xff]   ;;  %v407_v21 = vunpack.c.h.bf16 %v498_v11 }
  0x13   :  { %v287_v61 = vadd.f32 %v286_v56, %v224_v51  ;;  %v410_v25 = vunpack.c.l.bf16 %v499_v20  ;;  %v411_v30 = vunpack.c.h.bf16 %v499_v20  ;;  %v503_v56 = vld [vmem:[%s652_s0 + $0x80] sm:$0xff]  }
  0x14   :  { %v153_v28 = vadd.f32 %v379_v23, %v152_v24  ;;  %v232_v23 = vmul.f32 %v391_v49, %v391_v49  ;;  %v427_v2 = vunpack.c.h.bf16 %v503_v56 }
  0x15   :  { %v288_v1 = vadd.f32 %v287_v61, %v225_v55  ;;  %v426_v61 = vunpack.c.l.bf16 %v503_v56 }
  0x16   :  { %v154_v32 = vadd.f32 %v382_v27, %v153_v28  ;;  %v233_v27 = vmul.f32 %v394_v53, %v394_v53 }
  0x17   :  { %v289_v6 = vadd.f32 %v288_v1, %v226_v60  ;;  %v504_v1 = vld [vmem:[%s652_s0 + $0x88] sm:$0xff]  }
  0x18   :  { %v155_v36 = vadd.f32 %v383_v31, %v154_v32  ;;  %v234_v32 = vmul.f32 %v395_v58, %v395_v58  ;;  %v431_v11 = vunpack.c.h.bf16 %v504_v1 }
  0x19   :  { %v290_v10 = vadd.f32 %v289_v6, %v227_v0  ;;  %v430_v6 = vunpack.c.l.bf16 %v504_v1 }
  0x1a   :  { %v156_v41 = vadd.f32 %v386_v35, %v155_v36  ;;  %v235_v36 = vmul.f32 %v398_v62, %v398_v62 }
  0x1b   :  { %v291_v15 = vadd.f32 %v290_v10, %v228_v5  ;;  %v505_v10 = vld [vmem:[%s652_s0 + $0x90] sm:$0xff]  }
  0x1c   :  { %v157_v45 = vadd.f32 %v387_v40, %v156_v41  ;;  %v236_v41 = vmul.f32 %v399_v3, %v399_v3  ;;  %v435_v20 = vunpack.c.h.bf16 %v505_v10 }
  0x1d   :  { %v292_v19 = vadd.f32 %v291_v15, %v229_v9  ;;  %v434_v15 = vunpack.c.l.bf16 %v505_v10 }
  0x1e   :  { %v158_v50 = vadd.f32 %v390_v44, %v157_v45  ;;  %v237_v45 = vmul.f32 %v402_v7, %v402_v7 }
  0x1f   :  { %v293_v24 = vadd.f32 %v292_v19, %v230_v14  ;;  %v506_v19 = vld [vmem:[%s652_s0 + $0x98] sm:$0xff]  }
  0x20   :  { %v159_v54 = vadd.f32 %v391_v49, %v158_v50  ;;  %v238_v50 = vmul.f32 %v403_v12, %v403_v12  ;;  %v439_v29 = vunpack.c.h.bf16 %v506_v19 }
  0x21   :  { %v294_v28 = vadd.f32 %v293_v24, %v231_v18  ;;  %v438_v24 = vunpack.c.l.bf16 %v506_v19 }
  0x22   :  { %v160_v59 = vadd.f32 %v394_v53, %v159_v54  ;;  %v239_v54 = vmul.f32 %v406_v16, %v406_v16 }
  0x23   :  { %v295_v33 = vadd.f32 %v294_v28, %v232_v23  ;;  %v507_v28 = vld [vmem:[%s652_s0 + $0xa0] sm:$0xff]  }
  0x24   :  { %v161_v63 = vadd.f32 %v395_v58, %v160_v59  ;;  %v240_v59 = vmul.f32 %v407_v21, %v407_v21  ;;  %v443_v38 = vunpack.c.h.bf16 %v507_v28 }
  0x25   :  { %v296_v37 = vadd.f32 %v295_v33, %v233_v27  ;;  %v442_v33 = vunpack.c.l.bf16 %v507_v28 }
  0x26   :  { %v162_v4 = vadd.f32 %v398_v62, %v161_v63  ;;  %v241_v63 = vmul.f32 %v410_v25, %v410_v25 }
  0x27   :  { %v297_v42 = vadd.f32 %v296_v37, %v234_v32  ;;  %v508_v37 = vld [vmem:[%s652_s0 + $0xa8] sm:$0xff]  }
  0x28   :  { %v163_v8 = vadd.f32 %v399_v3, %v162_v4  ;;  %v242_v4 = vmul.f32 %v411_v30, %v411_v30  ;;  %v447_v47 = vunpack.c.h.bf16 %v508_v37 }
  0x29   :  { %v298_v46 = vadd.f32 %v297_v42, %v235_v36  ;;  %v446_v42 = vunpack.c.l.bf16 %v508_v37 }
  0x2a   :  { %v164_v13 = vadd.f32 %v402_v7, %v163_v8  ;;  %v243_v8 = vmul.f32 %v414_v34, %v414_v34 }
  0x2b   :  { %v299_v51 = vadd.f32 %v298_v46, %v236_v41  ;;  %v509_v46 = vld [vmem:[%s652_s0 + $0xb0] sm:$0xff]  }
  0x2c   :  { %v165_v17 = vadd.f32 %v403_v12, %v164_v13  ;;  %v244_v13 = vmul.f32 %v415_v39, %v415_v39  ;;  %v451_v56 = vunpack.c.h.bf16 %v509_v46 }
  0x2d   :  { %v300_v55 = vadd.f32 %v299_v51, %v237_v45  ;;  %v450_v51 = vunpack.c.l.bf16 %v509_v46 }
  0x2e   :  { %v166_v22 = vadd.f32 %v406_v16, %v165_v17  ;;  %v245_v17 = vmul.f32 %v418_v43, %v418_v43 }
  0x2f   :  { %v301_v60 = vadd.f32 %v300_v55, %v238_v50  ;;  %v510_v55 = vld [vmem:[%s652_s0 + $0xb8] sm:$0xff]  }
  0x30   :  { %v167_v26 = vadd.f32 %v407_v21, %v166_v22  ;;  %v246_v22 = vmul.f32 %v419_v48, %v419_v48  ;;  %v455_v1 = vunpack.c.h.bf16 %v510_v55 }
  0x31   :  { %v302_v0 = vadd.f32 %v301_v60, %v239_v54  ;;  %v454_v60 = vunpack.c.l.bf16 %v510_v55 }
  0x32   :  { %v168_v31 = vadd.f32 %v410_v25, %v167_v26  ;;  %v247_v26 = vmul.f32 %v422_v52, %v422_v52 }
  0x33   :  { %v303_v5 = vadd.f32 %v302_v0, %v240_v59  ;;  %v511_v0 = vld [vmem:[%s652_s0 + $0xc0] sm:$0xff]  }
  0x34   :  { %v169_v35 = vadd.f32 %v411_v30, %v168_v31  ;;  %v248_v31 = vmul.f32 %v423_v57, %v423_v57  ;;  %v459_v10 = vunpack.c.h.bf16 %v511_v0 }
  0x35   :  { %v304_v9 = vadd.f32 %v303_v5, %v241_v63  ;;  %v458_v5 = vunpack.c.l.bf16 %v511_v0 }
  0x36   :  { %v170_v40 = vadd.f32 %v414_v34, %v169_v35  ;;  %v249_v35 = vmul.f32 %v426_v61, %v426_v61 }
  0x37   :  { %v305_v14 = vadd.f32 %v304_v9, %v242_v4  ;;  %v512_v9 = vld [vmem:[%s652_s0 + $0xc8] sm:$0xff]  }
  0x38   :  { %v171_v44 = vadd.f32 %v415_v39, %v170_v40  ;;  %v250_v40 = vmul.f32 %v427_v2, %v427_v2  ;;  %v463_v19 = vunpack.c.h.bf16 %v512_v9 }
  0x39   :  { %v306_v18 = vadd.f32 %v305_v14, %v243_v8  ;;  %v462_v14 = vunpack.c.l.bf16 %v512_v9 }
  0x3a   :  { %v172_v49 = vadd.f32 %v418_v43, %v171_v44  ;;  %v251_v44 = vmul.f32 %v430_v6, %v430_v6 }
  0x3b   :  { %v307_v23 = vadd.f32 %v306_v18, %v244_v13  ;;  %v513_v18 = vld [vmem:[%s652_s0 + $0xd0] sm:$0xff]  }
  0x3c   :  { %v173_v53 = vadd.f32 %v419_v48, %v172_v49  ;;  %v252_v49 = vmul.f32 %v431_v11, %v431_v11  ;;  %v467_v28 = vunpack.c.h.bf16 %v513_v18 }
  0x3d   :  { %v308_v27 = vadd.f32 %v307_v23, %v245_v17  ;;  %v466_v23 = vunpack.c.l.bf16 %v513_v18 }
  0x3e   :  { %v174_v58 = vadd.f32 %v422_v52, %v173_v53  ;;  %v253_v53 = vmul.f32 %v434_v15, %v434_v15 }
  0x3f   :  { %v309_v32 = vadd.f32 %v308_v27, %v246_v22  ;;  %v514_v27 = vld [vmem:[%s652_s0 + $0xd8] sm:$0xff]  }
  0x40   :  { %v175_v62 = vadd.f32 %v423_v57, %v174_v58  ;;  %v254_v58 = vmul.f32 %v435_v20, %v435_v20  ;;  %v471_v37 = vunpack.c.h.bf16 %v514_v27 }
  0x41   :  { %v310_v36 = vadd.f32 %v309_v32, %v247_v26  ;;  %v470_v32 = vunpack.c.l.bf16 %v514_v27 }
  0x42   :  { %v176_v3 = vadd.f32 %v426_v61, %v175_v62  ;;  %v255_v62 = vmul.f32 %v438_v24, %v438_v24 }
  0x43   :  { %v311_v41 = vadd.f32 %v310_v36, %v248_v31  ;;  %v515_v36 = vld [vmem:[%s652_s0 + $0xe0] sm:$0xff]  }
  0x44   :  { %v177_v7 = vadd.f32 %v427_v2, %v176_v3  ;;  %v256_v3 = vmul.f32 %v439_v29, %v439_v29  ;;  %v475_v46 = vunpack.c.h.bf16 %v515_v36 }
  0x45   :  { %v312_v45 = vadd.f32 %v311_v41, %v249_v35  ;;  %v474_v41 = vunpack.c.l.bf16 %v515_v36 }
  0x46   :  { %v178_v12 = vadd.f32 %v430_v6, %v177_v7  ;;  %v257_v7 = vmul.f32 %v442_v33, %v442_v33 }
  0x47   :  { %v313_v50 = vadd.f32 %v312_v45, %v250_v40  ;;  %v516_v45 = vld [vmem:[%s652_s0 + $0xe8] sm:$0xff]  }
  0x48   :  { %v179_v16 = vadd.f32 %v431_v11, %v178_v12  ;;  %v258_v12 = vmul.f32 %v443_v38, %v443_v38  ;;  %v479_v55 = vunpack.c.h.bf16 %v516_v45 }
  0x49   :  { %v314_v54 = vadd.f32 %v313_v50, %v251_v44  ;;  %v478_v50 = vunpack.c.l.bf16 %v516_v45 }
  0x4a   :  { %v180_v21 = vadd.f32 %v434_v15, %v179_v16  ;;  %v259_v16 = vmul.f32 %v446_v42, %v446_v42 }
  0x4b   :  { %v315_v59 = vadd.f32 %v314_v54, %v252_v49  ;;  %v517_v54 = vld [vmem:[%s652_s0 + $0xf0] sm:$0xff]  }
  0x4c   :  { %v181_v25 = vadd.f32 %v435_v20, %v180_v21  ;;  %v260_v21 = vmul.f32 %v447_v47, %v447_v47  ;;  %v483_v0 = vunpack.c.h.bf16 %v517_v54 }
  0x4d   :  { %v316_v63 = vadd.f32 %v315_v59, %v253_v53  ;;  %v482_v59 = vunpack.c.l.bf16 %v517_v54 }
  0x4e   :  { %v182_v30 = vadd.f32 %v438_v24, %v181_v25  ;;  %v261_v25 = vmul.f32 %v450_v51, %v450_v51 }
  0x4f   :  { %v317_v4 = vadd.f32 %v316_v63, %v254_v58  ;;  %v518_v63 = vld [vmem:[%s652_s0 + $0xf8] sm:$0xff]  }
  0x50   :  { %v183_v34 = vadd.f32 %v439_v29, %v182_v30  ;;  %v262_v30 = vmul.f32 %v451_v56, %v451_v56 }
  0x51   :  { %v318_v8 = vadd.f32 %v317_v4, %v255_v62  ;;  %v486_v4 = vunpack.c.l.bf16 %v518_v63 }
  0x52   :  { %v184_v39 = vadd.f32 %v442_v33, %v183_v34  ;;  %v263_v34 = vmul.f32 %v454_v60, %v454_v60 }
  0x53   :  { %v319_v13 = vadd.f32 %v318_v8, %v256_v3  ;;  %v487_v8 = vunpack.c.h.bf16 %v518_v63 }
  0x54   :  { %v185_v43 = vadd.f32 %v443_v38, %v184_v39  ;;  %v264_v39 = vmul.f32 %v455_v1, %v455_v1 }
  0x55   :  { %v320_v17 = vadd.f32 %v319_v13, %v257_v7  ;;  %v273_v13 = vmul.f32 %v474_v41, %v474_v41 }
  0x56   :  { %v186_v48 = vadd.f32 %v446_v42, %v185_v43  ;;  %v265_v43 = vmul.f32 %v458_v5, %v458_v5 }
  0x57   :  { %v321_v22 = vadd.f32 %v320_v17, %v258_v12 }
  0x58   :  { %v187_v52 = vadd.f32 %v447_v47, %v186_v48  ;;  %v266_v48 = vmul.f32 %v459_v10, %v459_v10 }
  0x59   :  { %v322_v26 = vadd.f32 %v321_v22, %v259_v16  ;;  %v274_v16 = vmul.f32 %v475_v46, %v475_v46  ;;  %v276_v22 = vmul.f32 %v479_v55, %v479_v55 }
  0x5a   :  { %v188_v57 = vadd.f32 %v450_v51, %v187_v52  ;;  %v267_v52 = vmul.f32 %v462_v14, %v462_v14 }
  0x5b   :  { %v323_v31 = vadd.f32 %v322_v26, %v260_v21 }
  0x5c   :  { %v189_v61 = vadd.f32 %v451_v56, %v188_v57  ;;  %v268_v57 = vmul.f32 %v463_v19, %v463_v19 }
  0x5d   :  { %v324_v35 = vadd.f32 %v323_v31, %v261_v25  ;;  %v277_v25 = vmul.f32 %v482_v59, %v482_v59 }
  0x5e   :  { %v190_v2 = vadd.f32 %v454_v60, %v189_v61  ;;  %v269_v61 = vmul.f32 %v466_v23, %v466_v23 }
  0x5f   :  { %v325_v40 = vadd.f32 %v324_v35, %v262_v30  ;;  %v144_v30 = vld [vmem:[%s650_s1] sm:$0x1]  ;;  %v280_v35 = vmul.f32 %v487_v8, %v487_v8 }
  0x60   :  { %v191_v6 = vadd.f32 %v455_v1, %v190_v2  ;;  %v270_v2 = vmul.f32 %v467_v28, %v467_v28 }
  0x61   :  { %v326_v44 = vadd.f32 %v325_v40, %v263_v34 }
  0x62   :  { %v192_v11 = vadd.f32 %v458_v5, %v191_v6  ;;  %v271_v6 = vmul.f32 %v470_v32, %v470_v32 }
  0x63   :  { %v327_v49 = vadd.f32 %v326_v44, %v264_v39  ;;  %v216_v44 = vld [vmem:[%s651_s2] sm:$0x1] }
  0x64   :  { %v193_v15 = vadd.f32 %v459_v10, %v192_v11  ;;  %v272_v10 = vmul.f32 %v471_v37, %v471_v37 }
  0x65   :  { %v328_v53 = vadd.f32 %v327_v49, %v265_v43 }
  0x66   :  { %v194_v20 = vadd.f32 %v462_v14, %v193_v15 }
  0x67   :  { %v329_v58 = vadd.f32 %v328_v53, %v266_v48 }
  0x68   :  { %v195_v24 = vadd.f32 %v463_v19, %v194_v20  ;;  %v275_v19 = vmul.f32 %v478_v50, %v478_v50 }
  0x69   :  { %v330_v62 = vadd.f32 %v329_v58, %v267_v52 }
  0x6a   :  { %v196_v29 = vadd.f32 %v466_v23, %v195_v24 }
  0x6b   :  { %v331_v3 = vadd.f32 %v330_v62, %v268_v57 }
  0x6c   :  { %v197_v33 = vadd.f32 %v467_v28, %v196_v29  ;;  %v278_v28 = vmul.f32 %v483_v0, %v483_v0 }
  0x6d   :  { %v332_v7 = vadd.f32 %v331_v3, %v269_v61 }
  0x6e   :  { %v198_v38 = vadd.f32 %v470_v32, %v197_v33  ;;  %v279_v32 = vmul.f32 %v486_v4, %v486_v4 }
  0x6f   :  { %v333_v11 = vadd.f32 %v332_v7, %v270_v2 }
  0x70   :  { %v199_v42 = vadd.f32 %v471_v37, %v198_v38 }
  0x71   :  { %v334_v14 = vadd.f32 %v333_v11, %v271_v6 }
  0x72   :  { %v200_v47 = vadd.f32 %v474_v41, %v199_v42 }
  0x73   :  { %v335_v17 = vadd.f32 %v334_v14, %v272_v10 }
  0x74   :  { %v201_v51 = vadd.f32 %v475_v46, %v200_v47 }
  0x75   :  { %v336_v20 = vadd.f32 %v335_v17, %v273_v13 }
  0x76   :  { %v202_v56 = vadd.f32 %v478_v50, %v201_v51 }
  0x77   :  { %v337_v23 = vadd.f32 %v336_v20, %v274_v16 }
  0x78   :  { %v203_v60 = vadd.f32 %v479_v55, %v202_v56 }
  0x79   :  { %v338_v26 = vadd.f32 %v337_v23, %v275_v19 }
  0x7a   :  { %v204_v1 = vadd.f32 %v482_v59, %v203_v60 }
  0x7b   :  { %v339_v29 = vadd.f32 %v338_v26, %v276_v22 }
  0x7c   :  { %v205_v5 = vadd.f32 %v483_v0, %v204_v1 }
  0x7d   :  { %v340_v33 = vadd.f32 %v339_v29, %v277_v25 }
  0x7e   :  { %v206_v9 = vadd.f32 %v486_v4, %v205_v5 }
  0x7f   :  { %v341_v36 = vadd.f32 %v340_v33, %v278_v28 }
  0x80   :  { %v207_v12 = vadd.f32 %v487_v8, %v206_v9 }
  0x81   :  { %v342_v37 = vadd.f32 %v341_v36, %v279_v32 }
  0x82   :  { %v208_v15 = vrot.slane %v207_v12, 4 }
  0x83   :  { %v343_v38 = vadd.f32 %v342_v37, %v280_v35 }
  0x84   :  { %v209_v18 = vadd.f32 %v208_v15, %v207_v12 }
  0x85   :  { %v344_v39 = vrot.slane %v343_v38, 4 }
  0x86   :  { %v210_v21 = vrot.slane %v209_v18, 2 }
  0x87   :  { %v345_v40 = vadd.f32 %v344_v39, %v343_v38 }
  0x88   :  { %v211_v24 = vadd.f32 %v210_v21, %v209_v18 }
  0x89   :  { %v346_v41 = vrot.slane %v345_v40, 2 }
  0x8a   :  { %v212_v27 = vrot.slane %v211_v24, 1 }
  0x8b   :  { %v347_v42 = vadd.f32 %v346_v41, %v345_v40 }
  0x8c   :  { %v213_v31 = vadd.f32 %v212_v27, %v211_v24 }
  0x8d   :  { %v348_v43 = vrot.slane %v347_v42, 1 }
  0x8e   :  { %v214_v34 = vadd.f32 %v213_v31, %v144_v30 }
  0x8f   :  { %v349_v45 = vadd.f32 %v348_v43, %v347_v42 }
  0x90   :  { %215 = vst [vmem:[%s650_s1] sm:$0x1] %v214_v34 }
  0x91   :  { %v350_v46 = vadd.f32 %v349_v45, %v216_v44 }
  0x93   :  { %351 = vst [vmem:[%s651_s2] sm:$0x1] %v350_v46 }

// kernel: generator_forward.39
= control target key start
LH: loop header
LB: loop body
LE: loop exit
PB: predicated region body
PF: predicated region fallthrough
CT: control target
= control target key end

     0   :  { %v163_v4 = vlaneseq  ;;  %s1804_s1 = inlined_call_operand.vmem [shape: f32[1,128], index: 1, kind: input, shape index: {}]   ;;  %s1805_s2 = inlined_call_operand.vmem [shape: f32[1,128], index: 2, kind: input, shape index: {}]   ;;  %s1806_s0 = inlined_call_operand.vmem [shape: bf16[512,128], index: 0, kind: input, shape index: {}]   ;;  %s1807_s3 = inlined_call_operand.vmem [shape: f32[1,128], index: 3, kind: input, shape index: {}]   ;;  %s1808_s4 = inlined_call_operand.vmem [shape: f32[1,128], index: 4, kind: input, shape index: {}]   ;;  %s1809_s5 = inlined_call_operand.vmem [shape: bf16[512,128], index: 5, kind: output, shape index: {}]  }
   0x1   :  { %v20_v0 = vld [vmem:[%s1804_s1] sm:$0x1]  ;;  %v1220_v9 = vld [vmem:[%s1806_s0 + $0x8] sm:$0xff]   ;;  %v1225_v11 = vld [vmem:[%s1806_s0 + $0x10] sm:$0xff]  }
   0x2   :  { %v22_v1 = vld [vmem:[%s1805_s2] sm:$0x1]  ;;  %v1206_v2 = vmul.f32 0.001953125, %v20_v0  ;;  %v1215_v8 = vshrl.u32 %v163_v4, 7  ;;  %v1230_v12 = vld [vmem:[%s1806_s0 + $0x18] sm:$0xff]   ;;  %v1242_v16 = vld [vmem:[%s1806_s0 + $0x28] sm:$0xff]   ;;  %v824_v19 = vunpack.c.l.bf16 %v1220_v9  ;;  %v825_v20 = vunpack.c.h.bf16 %v1220_v9 }
   0x3   :  { %v23_v3 = vmul.f32 0.001953125, %v22_v1  ;;  %v1213_v7 = vld [vmem:[%s1806_s0] sm:$0xff]   ;;  %v1250_v21 = vld [vmem:[%s1806_s0 + $0x30] sm:$0xff]   ;;  %v1255_v22 = vld [vmem:[%s1806_s0 + $0x38] sm:$0xff]   ;;  %v828_v23 = vunpack.c.l.bf16 %v1225_v11  ;;  %v829_v24 = vunpack.c.h.bf16 %v1225_v11  ;;  %v832_v25 = vunpack.c.l.bf16 %v1230_v12 }
   0x4   :  { %v24_v5 = vmul.f32 %v1206_v2, %v1206_v2  ;;  %v820_v13 = vunpack.c.l.bf16 %v1213_v7  ;;  %v821_v14 = vunpack.c.h.bf16 %v1213_v7  ;;  %v1237_v15 = vld [vmem:[%s1806_s0 + $0x20] sm:$0xff]   ;;  %v165_v18 = vsub.s32 0, %v1215_v8  ;;  %v1269_v28 = vld [vmem:[%s1806_s0 + $0x48] sm:$0xff]   ;;  %v1277_v32 = vld [vmem:[%s1806_s0 + $0x50] sm:$0xff]  }
   0x5   :  { %v833_v26 = vunpack.c.h.bf16 %v1230_v12  ;;  %v1264_v27 = vld [vmem:[%s1806_s0 + $0x40] sm:$0xff]   ;;  %v836_v29 = vunpack.c.l.bf16 %v1237_v15  ;;  %v837_v30 = vunpack.c.h.bf16 %v1237_v15  ;;  %v840_v31 = vunpack.c.l.bf16 %v1242_v16  ;;  %v1282_v33 = vld [vmem:[%s1806_s0 + $0x58] sm:$0xff]   ;;  %v1296_v39 = vld [vmem:[%s1806_s0 + $0x68] sm:$0xff]  }
   0x6   :  { %v25_v6 = vsub.f32 %v23_v3, %v24_v5  ;;  %v841_v34 = vunpack.c.h.bf16 %v1242_v16  ;;  %v844_v35 = vunpack.c.l.bf16 %v1250_v21  ;;  %v845_v36 = vunpack.c.h.bf16 %v1250_v21  ;;  %v1291_v38 = vld [vmem:[%s1806_s0 + $0x60] sm:$0xff]   ;;  %v1305_v44 = vld [vmem:[%s1806_s0 + $0x70] sm:$0xff]   ;;  %v1310_v45 = vld [vmem:[%s1806_s0 + $0x78] sm:$0xff]  }
   0x7   :  { %v848_v37 = vunpack.c.l.bf16 %v1255_v22  ;;  %v849_v40 = vunpack.c.h.bf16 %v1255_v22  ;;  %v852_v41 = vunpack.c.l.bf16 %v1264_v27  ;;  %v1319_v50 = vld [vmem:[%s1806_s0 + $0x80] sm:$0xff]   ;;  %v1324_v51 = vld [vmem:[%s1806_s0 + $0x88] sm:$0xff]   ;;  %v1333_v56 = vld [vmem:[%s1806_s0 + $0x90] sm:$0xff]  }
   0x8   :  { %v26_v10 = vmax.f32 %v25_v6, 0.0  ;;  %v1338_v57 = vld [vmem:[%s1806_s0 + $0x98] sm:$0xff]   ;;  %v1347_v62 = vld [vmem:[%s1806_s0 + $0xa0] sm:$0xff]   ;;  %v1352_v63 = vld [vmem:[%s1806_s0 + $0xa8] sm:$0xff]  }
   0x9   :  { %v1361_v5 = vld [vmem:[%s1806_s0 + $0xb0] sm:$0xff]   ;;  %v1366_v6 = vld [vmem:[%s1806_s0 + $0xb8] sm:$0xff]   ;;  %v1375_v4 = vld [vmem:[%s1806_s0 + $0xc0] sm:$0xff]  }
   0xa   :  { %v28_v17 = vadd.f32 1e-05, %v26_v10  ;;  %v1380_v0 = vld [vmem:[%s1806_s0 + $0xc8] sm:$0xff]   ;;  %v27_v10 = vld [vmem:[%s1807_s3] sm:$0x1]  ;;  %v1392_v60 = vld [vmem:[%s1806_s0 + $0xd0] sm:$0xff]  }
   0xb   :  { %v1401_v1 = vld [vmem:[%s1806_s0 + $0xd8] sm:$0xff]   ;;  %v1406_v61 = vld [vmem:[%s1806_s0 + $0xe0] sm:$0xff]   ;;  %v1415_v54 = vld [vmem:[%s1806_s0 + $0xe8] sm:$0xff]  }
   0xc   :  { %1168 = vrsqrt.f32 %v28_v17  ;;  %v1423_v59 = vld [vmem:[%s1806_s0 + $0xf0] sm:$0xff]   ;;  %v1428_v55 = vld [vmem:[%s1806_s0 + $0xf8] sm:$0xff]   ;;  %v933_v52 = vunpack.c.h.bf16 %v1406_v61  ;;  %v936_v47 = vunpack.c.l.bf16 %v1415_v54 }
   0xd   :  { %v940_v43 = vunpack.c.l.bf16 %v1423_v59  ;;  %v944_v49 = vunpack.c.l.bf16 %v1428_v55 }
  0x16   :  { %v1169_v3 = vpop.eup %1168 }
  0x17   :  { %v30_v53 = vmul.f32 %v1169_v3, %v27_v10  ;;  %v31_v3 = vld [vmem:[%s1808_s4] sm:$0x1] }
  0x19   :  { %v32_v58 = vmul.f32 %v30_v53, %v1206_v2  ;;  %v1440_v17 = vrot.slane %v30_v53, %v165_v18 }
  0x1b   :  { %v33_v42 = vsub.f32 %v31_v3, %v32_v58  ;;  %v168_v2 = vmul.f32 %v820_v13, %v1440_v17  ;;  %v169_v53 = vmul.f32 %v821_v14, %v1440_v17  ;;  %v170_v46 = vmul.f32 %v824_v19, %v1440_v17 }
  0x1c   :  { %v171_v10 = vmul.f32 %v825_v20, %v1440_v17  ;;  %v172_v58 = vmul.f32 %v828_v23, %v1440_v17  ;;  %v173_v13 = vmul.f32 %v829_v24, %v1440_v17  ;;  %v174_v7 = vmul.f32 %v832_v25, %v1440_v17 }
  0x1d   :  { %v1471_v14 = vrot.slane %v33_v42, %v165_v18  ;;  %v175_v9 = vmul.f32 %v833_v26, %v1440_v17  ;;  %v176_v19 = vmul.f32 %v836_v29, %v1440_v17  ;;  %v177_v11 = vmul.f32 %v837_v30, %v1440_v17 }
  0x1e   :  { %v178_v20 = vmul.f32 %v840_v31, %v1440_v17  ;;  %v179_v8 = vmul.f32 %v841_v34, %v1440_v17  ;;  %v180_v12 = vmul.f32 %v844_v35, %v1440_v17  ;;  %v181_v18 = vmul.f32 %v845_v36, %v1440_v17 }
  0x1f   :  { %v238_v23 = vadd.f32 %v1471_v14, %v168_v2  ;;  %v239_v15 = vadd.f32 %v1471_v14, %v169_v53  ;;  %v240_v24 = vadd.f32 %v1471_v14, %v170_v46  ;;  %v241_v25 = vadd.f32 %v1471_v14, %v171_v10 }
  0x20   :  { %v242_v26 = vadd.f32 %v1471_v14, %v172_v58  ;;  %v243_v16 = vadd.f32 %v1471_v14, %v173_v13  ;;  %v244_v29 = vadd.f32 %v1471_v14, %v174_v7  ;;  %v245_v30 = vadd.f32 %v1471_v14, %v175_v9 }
  0x21   :  { %v302_v31 = vmax.f32 %v238_v23, 0.0  ;;  %v303_v34 = vmax.f32 %v239_v15, 0.0  ;;  %v304_v21 = vmax.f32 %v240_v24, 0.0  ;;  %v305_v35 = vmax.f32 %v241_v25, 0.0 }
  0x22   :  { %v306_v36 = vmax.f32 %v242_v26, 0.0  ;;  %v307_v42 = vmax.f32 %v243_v16, 0.0  ;;  %v308_v3 = vmax.f32 %v244_v29, 0.0  ;;  %v309_v2 = vmax.f32 %v245_v30, 0.0 }
  0x23   :  { %v949_v53 = vpack.c.bf16 %v303_v34, %v302_v31  ;;  %v954_v46 = vpack.c.bf16 %v305_v35, %v304_v21  ;;  %v246_v10 = vadd.f32 %v1471_v14, %v176_v19  ;;  %v247_v58 = vadd.f32 %v1471_v14, %v177_v11 }
  0x24   :  { %v959_v48 = vpack.c.bf16 %v307_v42, %v306_v36  ;;  %v964_v13 = vpack.c.bf16 %v309_v2, %v308_v3  ;;  %v248_v7 = vadd.f32 %v1471_v14, %v178_v20  ;;  %v249_v9 = vadd.f32 %v1471_v14, %v179_v8 }
  0x25   :  { %950 = vst [vmem:[%s1809_s5] sm:$0xff] %v949_v53   ;;  %1137 = vst [vmem:[%s1809_s5 + $0x8] sm:$0xff] %v954_v46   ;;  %v310_v23 = vmax.f32 %v246_v10, 0.0  ;;  %v311_v15 = vmax.f32 %v247_v58, 0.0  ;;  %v250_v19 = vadd.f32 %v1471_v14, %v180_v12  ;;  %v251_v11 = vadd.f32 %v1471_v14, %v181_v18 }
  0x26   :  { %1138 = vst [vmem:[%s1809_s5 + $0x10] sm:$0xff] %v959_v48   ;;  %1139 = vst [vmem:[%s1809_s5 + $0x18] sm:$0xff] %v964_v13   ;;  %v312_v20 = vmax.f32 %v248_v7, 0.0  ;;  %v313_v8 = vmax.f32 %v249_v9, 0.0  ;;  %v182_v24 = vmul.f32 %v848_v37, %v1440_v17  ;;  %v183_v12 = vmul.f32 %v849_v40, %v1440_v17 }
  0x27   :  { %v969_v25 = vpack.c.bf16 %v311_v15, %v310_v23  ;;  %v314_v18 = vmax.f32 %v250_v19, 0.0  ;;  %v315_v26 = vmax.f32 %v251_v11, 0.0  ;;  %v184_v48 = vmul.f32 %v852_v41, %v1440_v17 }
  0x28   :  { %v974_v16 = vpack.c.bf16 %v313_v8, %v312_v20  ;;  %v252_v29 = vadd.f32 %v1471_v14, %v182_v24  ;;  %v253_v30 = vadd.f32 %v1471_v14, %v183_v12  ;;  %v1810_v31 = vunpack.c.h.bf16 %v1264_v27 }
  0x29   :  { %1140 = vst [vmem:[%s1809_s5 + $0x20] sm:$0xff] %v969_v25   ;;  %v979_v22 = vpack.c.bf16 %v315_v26, %v314_v18  ;;  %v254_v40 = vadd.f32 %v1471_v14, %v184_v48  ;;  %v1811_v34 = vunpack.c.l.bf16 %v1269_v28  ;;  %v1812_v21 = vunpack.c.h.bf16 %v1269_v28 }
  0x2a   :  { %v185_v37 = vmul.f32 %v1810_v31, %v1440_v17  ;;  %1141 = vst [vmem:[%s1809_s5 + $0x28] sm:$0xff] %v974_v16   ;;  %v316_v27 = vmax.f32 %v252_v29, 0.0  ;;  %v317_v36 = vmax.f32 %v253_v30, 0.0  ;;  %v1813_v3 = vunpack.c.l.bf16 %v1277_v32 }
  0x2b   :  { %v186_v41 = vmul.f32 %v1811_v34, %v1440_v17  ;;  %v187_v35 = vmul.f32 %v1812_v21, %v1440_v17  ;;  %1142 = vst [vmem:[%s1809_s5 + $0x30] sm:$0xff] %v979_v22   ;;  %v318_v53 = vmax.f32 %v254_v40, 0.0  ;;  %v1814_v10 = vunpack.c.h.bf16 %v1277_v32 }
  0x2c   :  { %v255_v42 = vadd.f32 %v1471_v14, %v185_v37  ;;  %v188_v2 = vmul.f32 %v1813_v3, %v1440_v17  ;;  %v984_v13 = vpack.c.bf16 %v317_v36, %v316_v27  ;;  %v1815_v23 = vunpack.c.l.bf16 %v1282_v33 }
  0x2d   :  { %v256_v28 = vadd.f32 %v1471_v14, %v186_v41  ;;  %v257_v46 = vadd.f32 %v1471_v14, %v187_v35  ;;  %v189_v58 = vmul.f32 %v1814_v10, %v1440_v17  ;;  %v1816_v8 = vunpack.c.h.bf16 %v1282_v33 }
  0x2e   :  { %v319_v7 = vmax.f32 %v255_v42, 0.0  ;;  %v258_v9 = vadd.f32 %v1471_v14, %v188_v2  ;;  %v190_v15 = vmul.f32 %v1815_v23, %v1440_v17  ;;  %1143 = vst [vmem:[%s1809_s5 + $0x38] sm:$0xff] %v984_v13   ;;  %v1817_v18 = vunpack.c.l.bf16 %v1291_v38 }
  0x2f   :  { %v320_v19 = vmax.f32 %v256_v28, 0.0  ;;  %v321_v11 = vmax.f32 %v257_v46, 0.0  ;;  %v259_v20 = vadd.f32 %v1471_v14, %v189_v58  ;;  %v191_v24 = vmul.f32 %v1816_v8, %v1440_v17 }
  0x30   :  { %v989_v32 = vpack.c.bf16 %v319_v7, %v318_v53  ;;  %v322_v12 = vmax.f32 %v258_v9, 0.0  ;;  %v260_v25 = vadd.f32 %v1471_v14, %v190_v15  ;;  %v192_v26 = vmul.f32 %v1817_v18, %v1440_v17 }
  0x31   :  { %v994_v48 = vpack.c.bf16 %v321_v11, %v320_v19  ;;  %v323_v16 = vmax.f32 %v259_v20, 0.0  ;;  %v261_v29 = vadd.f32 %v1471_v14, %v191_v24  ;;  %v1818_v33 = vunpack.c.h.bf16 %v1291_v38 }
  0x32   :  { %1144 = vst [vmem:[%s1809_s5 + $0x40] sm:$0xff] %v989_v32   ;;  %v324_v31 = vmax.f32 %v260_v25, 0.0  ;;  %v262_v37 = vadd.f32 %v1471_v14, %v192_v26  ;;  %v1819_v22 = vunpack.c.l.bf16 %v1296_v39  ;;  %v1820_v34 = vunpack.c.h.bf16 %v1296_v39 }
  0x33   :  { %v193_v30 = vmul.f32 %v1818_v33, %v1440_v17  ;;  %1145 = vst [vmem:[%s1809_s5 + $0x48] sm:$0xff] %v994_v48   ;;  %v999_v38 = vpack.c.bf16 %v323_v16, %v322_v12  ;;  %v325_v21 = vmax.f32 %v261_v29, 0.0  ;;  %v1821_v27 = vunpack.c.l.bf16 %v1305_v44 }
  0x34   :  { %v194_v40 = vmul.f32 %v1819_v22, %v1440_v17  ;;  %v195_v41 = vmul.f32 %v1820_v34, %v1440_v17  ;;  %v326_v42 = vmax.f32 %v262_v37, 0.0  ;;  %v1822_v39 = vunpack.c.h.bf16 %v1305_v44 }
  0x35   :  { %v263_v35 = vadd.f32 %v1471_v14, %v193_v30  ;;  %v196_v36 = vmul.f32 %v1821_v27, %v1440_v17  ;;  %1146 = vst [vmem:[%s1809_s5 + $0x50] sm:$0xff] %v999_v38   ;;  %v1004_v28 = vpack.c.bf16 %v325_v21, %v324_v31  ;;  %v1823_v58 = vunpack.c.l.bf16 %v1310_v45 }
  0x36   :  { %v264_v3 = vadd.f32 %v1471_v14, %v194_v40  ;;  %v265_v2 = vadd.f32 %v1471_v14, %v195_v41  ;;  %v197_v53 = vmul.f32 %v1822_v39, %v1440_v17  ;;  %v1824_v44 = vunpack.c.h.bf16 %v1310_v45 }
  0x37   :  { %v327_v46 = vmax.f32 %v263_v35, 0.0  ;;  %v266_v10 = vadd.f32 %v1471_v14, %v196_v36  ;;  %v198_v13 = vmul.f32 %v1823_v58, %v1440_v17  ;;  %1147 = vst [vmem:[%s1809_s5 + $0x58] sm:$0xff] %v1004_v28   ;;  %v1825_v8 = vunpack.c.l.bf16 %v1319_v50 }
  0x38   :  { %v328_v7 = vmax.f32 %v264_v3, 0.0  ;;  %v329_v9 = vmax.f32 %v265_v2, 0.0  ;;  %v267_v23 = vadd.f32 %v1471_v14, %v197_v53  ;;  %v199_v15 = vmul.f32 %v1824_v44, %v1440_v17 }
  0x39   :  { %v1009_v19 = vpack.c.bf16 %v327_v46, %v326_v42  ;;  %v330_v11 = vmax.f32 %v266_v10, 0.0  ;;  %v268_v20 = vadd.f32 %v1471_v14, %v198_v13  ;;  %v200_v24 = vmul.f32 %v1825_v8, %v1440_v17 }
  0x3a   :  { %v1014_v32 = vpack.c.bf16 %v329_v9, %v328_v7  ;;  %v331_v12 = vmax.f32 %v267_v23, 0.0  ;;  %v269_v25 = vadd.f32 %v1471_v14, %v199_v15  ;;  %v1826_v45 = vunpack.c.h.bf16 %v1319_v50 }
  0x3b   :  { %1148 = vst [vmem:[%s1809_s5 + $0x60] sm:$0xff] %v1009_v19   ;;  %v332_v26 = vmax.f32 %v268_v20, 0.0  ;;  %v270_v48 = vadd.f32 %v1471_v14, %v200_v24  ;;  %v1827_v16 = vunpack.c.l.bf16 %v1324_v51  ;;  %v1828_v33 = vunpack.c.h.bf16 %v1324_v51 }
  0x3c   :  { %v201_v18 = vmul.f32 %v1826_v45, %v1440_v17  ;;  %1149 = vst [vmem:[%s1809_s5 + $0x68] sm:$0xff] %v1014_v32   ;;  %v1019_v50 = vpack.c.bf16 %v331_v12, %v330_v11  ;;  %v333_v31 = vmax.f32 %v269_v25, 0.0  ;;  %v1829_v22 = vunpack.c.l.bf16 %v1333_v56 }
  0x3d   :  { %v202_v29 = vmul.f32 %v1827_v16, %v1440_v17  ;;  %v203_v30 = vmul.f32 %v1828_v33, %v1440_v17  ;;  %v334_v34 = vmax.f32 %v270_v48, 0.0  ;;  %v1830_v51 = vunpack.c.h.bf16 %v1333_v56 }
  0x3e   :  { %v271_v37 = vadd.f32 %v1471_v14, %v201_v18  ;;  %v204_v40 = vmul.f32 %v1829_v22, %v1440_v17  ;;  %1150 = vst [vmem:[%s1809_s5 + $0x70] sm:$0xff] %v1019_v50   ;;  %v1024_v35 = vpack.c.bf16 %v333_v31, %v332_v26  ;;  %v1831_v42 = vunpack.c.l.bf16 %v1338_v57 }
  0x3f   :  { %v272_v41 = vadd.f32 %v1471_v14, %v202_v29  ;;  %v273_v38 = vadd.f32 %v1471_v14, %v203_v30  ;;  %v205_v21 = vmul.f32 %v1830_v51, %v1440_v17  ;;  %v1832_v56 = vunpack.c.h.bf16 %v1338_v57 }
  0x40   :  { %v335_v27 = vmax.f32 %v271_v37, 0.0  ;;  %v274_v36 = vadd.f32 %v1471_v14, %v204_v40  ;;  %v206_v3 = vmul.f32 %v1831_v42, %v1440_v17  ;;  %1151 = vst [vmem:[%s1809_s5 + $0x78] sm:$0xff] %v1024_v35   ;;  %v1833_v13 = vunpack.c.l.bf16 %v1347_v62 }
  0x41   :  { %v336_v2 = vmax.f32 %v272_v41, 0.0  ;;  %v337_v39 = vmax.f32 %v273_v38, 0.0  ;;  %v275_v53 = vadd.f32 %v1471_v14, %v205_v21  ;;  %v207_v28 = vmul.f32 %v1832_v56, %v1440_v17 }
  0x42   :  { %v1029_v46 = vpack.c.bf16 %v335_v27, %v334_v34  ;;  %v338_v10 = vmax.f32 %v274_v36, 0.0  ;;  %v276_v58 = vadd.f32 %v1471_v14, %v206_v3  ;;  %v208_v7 = vmul.f32 %v1833_v13, %v1440_v17 }
  0x43   :  { %v1034_v9 = vpack.c.bf16 %v337_v39, %v336_v2  ;;  %v339_v23 = vmax.f32 %v275_v53, 0.0  ;;  %v277_v44 = vadd.f32 %v1471_v14, %v207_v28  ;;  %v1834_v57 = vunpack.c.h.bf16 %v1347_v62 }
  0x44   :  { %1152 = vst [vmem:[%s1809_s5 + $0x80] sm:$0xff] %v1029_v46   ;;  %v340_v19 = vmax.f32 %v276_v58, 0.0  ;;  %v278_v11 = vadd.f32 %v1471_v14, %v208_v7  ;;  %v1835_v20 = vunpack.c.l.bf16 %v1352_v63  ;;  %v1836_v24 = vunpack.c.h.bf16 %v1352_v63 }
  0x45   :  { %v209_v15 = vmul.f32 %v1834_v57, %v1440_v17  ;;  %1153 = vst [vmem:[%s1809_s5 + $0x88] sm:$0xff] %v1034_v9   ;;  %v1039_v62 = vpack.c.bf16 %v339_v23, %v338_v10  ;;  %v341_v12 = vmax.f32 %v277_v44, 0.0  ;;  %v1837_v45 = vunpack.c.l.bf16 %v1361_v5 }
  0x46   :  { %v210_v8 = vmul.f32 %v1835_v20, %v1440_v17  ;;  %v211_v32 = vmul.f32 %v1836_v24, %v1440_v17  ;;  %v342_v26 = vmax.f32 %v278_v11, 0.0  ;;  %v1838_v63 = vunpack.c.h.bf16 %v1361_v5 }
  0x47   :  { %v279_v25 = vadd.f32 %v1471_v14, %v209_v15  ;;  %v212_v18 = vmul.f32 %v1837_v45, %v1440_v17  ;;  %1154 = vst [vmem:[%s1809_s5 + $0x90] sm:$0xff] %v1039_v62   ;;  %v1044_v33 = vpack.c.bf16 %v341_v12, %v340_v19  ;;  %v1839_v31 = vunpack.c.l.bf16 %v1366_v6 }
  0x48   :  { %v280_v48 = vadd.f32 %v1471_v14, %v210_v8  ;;  %v281_v16 = vadd.f32 %v1471_v14, %v211_v32  ;;  %v213_v29 = vmul.f32 %v1838_v63, %v1440_v17  ;;  %v1840_v5 = vunpack.c.h.bf16 %v1366_v6 }
  0x49   :  { %v343_v30 = vmax.f32 %v279_v25, 0.0  ;;  %v282_v50 = vadd.f32 %v1471_v14, %v212_v18  ;;  %v214_v37 = vmul.f32 %v1839_v31, %v1440_v17  ;;  %1155 = vst [vmem:[%s1809_s5 + $0x98] sm:$0xff] %v1044_v33   ;;  %v1841_v35 = vunpack.c.l.bf16 %v1375_v4 }
  0x4a   :  { %v344_v22 = vmax.f32 %v280_v48, 0.0  ;;  %v345_v40 = vmax.f32 %v281_v16, 0.0  ;;  %v283_v34 = vadd.f32 %v1471_v14, %v213_v29  ;;  %v215_v41 = vmul.f32 %v1840_v5, %v1440_v17 }
  0x4b   :  { %v1049_v38 = vpack.c.bf16 %v343_v30, %v342_v26  ;;  %v346_v51 = vmax.f32 %v282_v50, 0.0  ;;  %v284_v21 = vadd.f32 %v1471_v14, %v214_v37  ;;  %v216_v27 = vmul.f32 %v1841_v35, %v1440_v17 }
  0x4c   :  { %v1054_v36 = vpack.c.bf16 %v345_v40, %v344_v22  ;;  %v347_v42 = vmax.f32 %v283_v34, 0.0  ;;  %v285_v3 = vadd.f32 %v1471_v14, %v215_v41  ;;  %v1842_v6 = vunpack.c.h.bf16 %v1375_v4 }
  0x4d   :  { %1156 = vst [vmem:[%s1809_s5 + $0xa0] sm:$0xff] %v1049_v38   ;;  %v348_v39 = vmax.f32 %v284_v21, 0.0  ;;  %v286_v53 = vadd.f32 %v1471_v14, %v216_v27  ;;  %v1843_v56 = vunpack.c.l.bf16 %v1380_v0  ;;  %v1844_v46 = vunpack.c.h.bf16 %v1380_v0 }
  0x4e   :  { %v217_v2 = vmul.f32 %v1842_v6, %v1440_v17  ;;  %1157 = vst [vmem:[%s1809_s5 + $0xa8] sm:$0xff] %v1054_v36   ;;  %v1059_v4 = vpack.c.bf16 %v347_v42, %v346_v51  ;;  %v349_v58 = vmax.f32 %v285_v3, 0.0  ;;  %v1845_v7 = vunpack.c.l.bf16 %v1392_v60 }
  0x4f   :  { %v218_v28 = vmul.f32 %v1843_v56, %v1440_v17  ;;  %v219_v10 = vmul.f32 %v1844_v46, %v1440_v17  ;;  %v350_v23 = vmax.f32 %v286_v53, 0.0  ;;  %v1846_v0 = vunpack.c.h.bf16 %v1392_v60 }
  0x50   :  { %v287_v13 = vadd.f32 %v1471_v14, %v217_v2  ;;  %v220_v9 = vmul.f32 %v1845_v7, %v1440_v17  ;;  %1158 = vst [vmem:[%s1809_s5 + $0xb0] sm:$0xff] %v1059_v4   ;;  %v1064_v19 = vpack.c.bf16 %v349_v58, %v348_v39  ;;  %v1847_v8 = vunpack.c.l.bf16 %v1401_v1 }
  0x51   :  { %v288_v44 = vadd.f32 %v1471_v14, %v218_v28  ;;  %v289_v57 = vadd.f32 %v1471_v14, %v219_v10  ;;  %v221_v15 = vmul.f32 %v1846_v0, %v1440_v17  ;;  %v1848_v60 = vunpack.c.h.bf16 %v1401_v1 }
  0x52   :  { %v351_v11 = vmax.f32 %v287_v13, 0.0  ;;  %v290_v20 = vadd.f32 %v1471_v14, %v220_v9  ;;  %v222_v24 = vmul.f32 %v1847_v8, %v1440_v17  ;;  %1159 = vst [vmem:[%s1809_s5 + $0xb8] sm:$0xff] %v1064_v19   ;;  %v1849_v48 = vunpack.c.l.bf16 %v1406_v61 }
  0x53   :  { %v352_v32 = vmax.f32 %v288_v44, 0.0  ;;  %v353_v62 = vmax.f32 %v289_v57, 0.0  ;;  %v291_v12 = vadd.f32 %v1471_v14, %v221_v15  ;;  %v223_v25 = vmul.f32 %v1848_v60, %v1440_v17 }
  0x54   :  { %v1069_v45 = vpack.c.bf16 %v351_v11, %v350_v23  ;;  %v354_v18 = vmax.f32 %v290_v20, 0.0  ;;  %v292_v26 = vadd.f32 %v1471_v14, %v222_v24  ;;  %v224_v16 = vmul.f32 %v1849_v48, %v1440_v17 }
  0x55   :  { %v1074_v63 = vpack.c.bf16 %v353_v62, %v352_v32  ;;  %v355_v29 = vmax.f32 %v291_v12, 0.0  ;;  %v293_v33 = vadd.f32 %v1471_v14, %v223_v25  ;;  %v225_v1 = vmul.f32 %v933_v52, %v1440_v17 }
  0x56   :  { %1160 = vst [vmem:[%s1809_s5 + $0xc0] sm:$0xff] %v1069_v45   ;;  %v356_v30 = vmax.f32 %v292_v26, 0.0  ;;  %v294_v50 = vadd.f32 %v1471_v14, %v224_v16  ;;  %v226_v31 = vmul.f32 %v936_v47, %v1440_v17  ;;  %v1850_v37 = vunpack.c.h.bf16 %v1415_v54 }
  0x57   :  { %1161 = vst [vmem:[%s1809_s5 + $0xc8] sm:$0xff] %v1074_v63   ;;  %v1079_v52 = vpack.c.bf16 %v355_v29, %v354_v18  ;;  %v357_v61 = vmax.f32 %v293_v33, 0.0  ;;  %v295_v40 = vadd.f32 %v1471_v14, %v225_v1  ;;  %v228_v34 = vmul.f32 %v940_v43, %v1440_v17 }
  0x58   :  { %v227_v22 = vmul.f32 %v1850_v37, %v1440_v17  ;;  %v358_v5 = vmax.f32 %v294_v50, 0.0  ;;  %v296_v41 = vadd.f32 %v1471_v14, %v226_v31  ;;  %v1851_v54 = vunpack.c.h.bf16 %v1423_v59 }
  0x59   :  { %1162 = vst [vmem:[%s1809_s5 + $0xd0] sm:$0xff] %v1079_v52   ;;  %v1084_v51 = vpack.c.bf16 %v357_v61, %v356_v30  ;;  %v359_v21 = vmax.f32 %v295_v40, 0.0  ;;  %v298_v35 = vadd.f32 %v1471_v14, %v228_v34  ;;  %v230_v43 = vmul.f32 %v944_v49, %v1440_v17 }
  0x5a   :  { %v297_v47 = vadd.f32 %v1471_v14, %v227_v22  ;;  %v229_v38 = vmul.f32 %v1851_v54, %v1440_v17  ;;  %v360_v27 = vmax.f32 %v296_v41, 0.0  ;;  %v1852_v59 = vunpack.c.h.bf16 %v1428_v55 }
  0x5b   :  { %1163 = vst [vmem:[%s1809_s5 + $0xd8] sm:$0xff] %v1084_v51   ;;  %v1089_v6 = vpack.c.bf16 %v359_v21, %v358_v5  ;;  %v362_v2 = vmax.f32 %v298_v35, 0.0  ;;  %v300_v39 = vadd.f32 %v1471_v14, %v230_v43 }
  0x5c   :  { %v361_v36 = vmax.f32 %v297_v47, 0.0  ;;  %v299_v42 = vadd.f32 %v1471_v14, %v229_v38  ;;  %v231_v3 = vmul.f32 %v1852_v59, %v1440_v17 }
  0x5d   :  { %1164 = vst [vmem:[%s1809_s5 + $0xe0] sm:$0xff] %v1089_v6   ;;  %v364_v28 = vmax.f32 %v300_v39, 0.0 }
  0x5e   :  { %v1094_v53 = vpack.c.bf16 %v361_v36, %v360_v27  ;;  %v363_v56 = vmax.f32 %v299_v42, 0.0  ;;  %v301_v49 = vadd.f32 %v1471_v14, %v231_v3 }
  0x60   :  { %1165 = vst [vmem:[%s1809_s5 + $0xe8] sm:$0xff] %v1094_v53   ;;  %v1099_v55 = vpack.c.bf16 %v363_v56, %v362_v2  ;;  %v365_v17 = vmax.f32 %v301_v49, 0.0 }
  0x62   :  { %1166 = vst [vmem:[%s1809_s5 + $0xf0] sm:$0xff] %v1099_v55   ;;  %v1104_v46 = vpack.c.bf16 %v365_v17, %v364_v28 }
  0x64   :  { %1167 = vst [vmem:[%s1809_s5 + $0xf8] sm:$0xff] %v1104_v46  }

// kernel: generator_forward.40
= control target key start
LH: loop header
LB: loop body
LE: loop exit
PB: predicated region body
PF: predicated region fallthrough
CT: control target
= control target key end

     0   :  { %s1990_s9 = smov 0   ;;  %s1992_s10 = smov 0   ;;  %s2258_s0 = inlined_call_operand.vmem [shape: bf16[512,512], index: 0, kind: input, shape index: {}]   ;;  %s2259_s1 = inlined_call_operand.vmem [shape: bf16[512,64], index: 1, kind: input, shape index: {}]   ;;  %s2260_s2 = inlined_call_operand.vmem [shape: bf16[512,64], index: 2, kind: output, shape index: {}]  }
   0x1   :  { %s1994_s11 = smov 0  }
   0x2 LB: > { %s24_s12 = sadd.s32 1, %s1969_s10  ;;  %p1406_p0 = scmp.ge.s32.totalorder %s1973_s11, 1  ;;  %s1973_s11 = sphi %s1994_s11, %s12_s11   ;;  %s1969_s10 = sphi %s1992_s10, %s2262_s10   ;;  %s1965_s9 = sphi %s1990_s9, %s2261_s9  }
   0x3   : > { %p26_p1 = scmp.ge.s32.totalorder %s24_s12, 2  ;;  %p137_p2 = scmp.lt.s32.totalorder %s1973_s11, 3 }
   0x5   : > { %s2264_s12 = smov (%p26_p1, %s24_s12), 0  ;;  %p138_p3 = pnand %p1406_p0, %p137_p2 }
   0x6   : > { %v1823_v0 = vld [vmem:[%s2259_s1 + $0x40] sm:$0xff] (!%p138_p3)   ;;  %v1827_v4 = vld [vmem:[%s2259_s1 + $0x48] sm:$0xff] (!%p138_p3)   ;;  %v1831_v8 = vld [vmem:[%s2259_s1 + $0x50] sm:$0xff] (!%p138_p3)   ;;  %s1407_s21 = sshll.u32 (!%p138_p3), %s1965_s9, 5  ;;  %vm1278_vm0 = vcmask (!%p138_p3), 519168  }
   0x7   : > { %141 = sbr.rel (%p138_p3) target bundleno = 383 (0x17f), region = 28  ;;  %v1824_v1 = vld [vmem:[%s2259_s1 + $0xc0] sm:$0xff] (!%p138_p3)   ;;  %1575 = vmatprep.subr.bf16.mxu0 (!%p138_p3), %v1823_v0  ;;  %v1828_v5 = vld [vmem:[%s2259_s1 + $0xc8] sm:$0xff] (!%p138_p3)   ;;  %v1832_v9 = vld [vmem:[%s2259_s1 + $0xd0] sm:$0xff] (!%p138_p3)   ;;  %p168_p4 = scmp.lt.s32.totalorder (!%p138_p3), %s1407_s21, 63 }
   0x8   : > { %v1825_v2 = vld [vmem:[%s2259_s1] sm:$0xff] (!%p138_p3)   ;;  %1687 = vmatprep.subr.bf16.mxu1 (!%p138_p3), %v1824_v1  ;;  %v1829_v6 = vld [vmem:[%s2259_s1 + $0x8] sm:$0xff] (!%p138_p3)   ;;  %v1833_v10 = vld [vmem:[%s2259_s1 + $0x10] sm:$0xff] (!%p138_p3)  }
   0x9   : > { %v1826_v3 = vld [vmem:[%s2259_s1 + $0x80] sm:$0xff] (!%p138_p3)   ;;  %1576 = vmatpush3.bf16.msra.mxu0 (!%p138_p3), %v1825_v2  ;;  %v1830_v7 = vld [vmem:[%s2259_s1 + $0x88] sm:$0xff] (!%p138_p3)   ;;  %v1834_v11 = vld [vmem:[%s2259_s1 + $0x90] sm:$0xff] (!%p138_p3)  }
   0xa   : > { %1688 = vmatpush3.bf16.msra.mxu1 (!%p138_p3), %v1826_v3  ;;  %1577 = vmatprep.subr.bf16.mxu0 (!%p138_p3), %v1827_v4  ;;  %v1835_v12 = vld [vmem:[%s2259_s1 + $0x58] sm:$0xff] (!%p138_p3)   ;;  %v1839_v16 = vld [vmem:[%s2259_s1 + $0x60] sm:$0xff] (!%p138_p3)   ;;  %v1843_v20 = vld [vmem:[%s2259_s1 + $0x68] sm:$0xff] (!%p138_p3)  }
   0xb   : > { %1689 = vmatprep.subr.bf16.mxu1 (!%p138_p3), %v1828_v5  ;;  %v1836_v13 = vld [vmem:[%s2259_s1 + $0xd8] sm:$0xff] (!%p138_p3)   ;;  %v1840_v17 = vld [vmem:[%s2259_s1 + $0xe0] sm:$0xff] (!%p138_p3)   ;;  %v1844_v21 = vld [vmem:[%s2259_s1 + $0xe8] sm:$0xff] (!%p138_p3)  }
   0xc   : > { %v1837_v14 = vld [vmem:[%s2259_s1 + $0x18] sm:$0xff] (!%p138_p3)   ;;  %v1841_v18 = vld [vmem:[%s2259_s1 + $0x20] sm:$0xff] (!%p138_p3)   ;;  %v1845_v22 = vld [vmem:[%s2259_s1 + $0x28] sm:$0xff] (!%p138_p3)  }
   0xd   : > { %1578 = vmatpush3.bf16.msra.mxu0 (!%p138_p3), %v1829_v6  ;;  %v1838_v15 = vld [vmem:[%s2259_s1 + $0x98] sm:$0xff] (!%p138_p3)   ;;  %v1842_v19 = vld [vmem:[%s2259_s1 + $0xa0] sm:$0xff] (!%p138_p3)   ;;  %v1846_v23 = vld [vmem:[%s2259_s1 + $0xa8] sm:$0xff] (!%p138_p3)  }
   0xe   : > { %1690 = vmatpush3.bf16.msra.mxu1 %v1830_v7  ;;  %1579 = vmatprep.subr.bf16.mxu0 %v1831_v8  ;;  %s2266_s21 = smov (!%p168_p4, %s1407_s21), 63  ;;  %v1847_v24 = vld [vmem:[%s2259_s1 + $0x70] sm:$0xff]   ;;  %v1851_v28 = vld [vmem:[%s2259_s1 + $0x78] sm:$0xff]  }
   0xf   : > { %1691 = vmatprep.subr.bf16.mxu1 %v1832_v9  ;;  %v1848_v25 = vld [vmem:[%s2259_s1 + $0xf0] sm:$0xff]   ;;  %s1542_s19 = sshll.u32 %s2266_s21, 4  ;;  %v1852_v29 = vld [vmem:[%s2259_s1 + $0xf8] sm:$0xff]   ;;  %s1411_s5 = sshll.u32 %s2266_s21, 2 }
  0x10   : > { %v1849_v26 = vld [vmem:[%s2259_s1 + $0x30] sm:$0xff]   ;;  %s2107_s29 = scalar_lea.vmem %s2258_s0, %s1542_s19  ;;  %v1853_v30 = vld [vmem:[%s2259_s1 + $0x38] sm:$0xff]   ;;  %s2183_s8 = scalar_lea.vmem %s2260_s2, %s1411_s5 }
  0x11   : > { %1580 = vmatpush3.bf16.msra.mxu0 %v1833_v10  ;;  %v1850_v27 = vld [vmem:[%s2259_s1 + $0xb0] sm:$0xff]   ;;  %v1854_v31 = vld [vmem:[%s2259_s1 + $0xb8] sm:$0xff]  }
  0x12   : > { %1692 = vmatpush3.bf16.msra.mxu1 %v1834_v11  ;;  %1581 = vmatprep.subr.bf16.mxu0 %v1835_v12  ;;  %v1855_v32 = vld [vmem:[%s2107_s29] ss:$16 sps:$4 sm:$0xff]   ;;  %v1857_v33 = vld [vmem:[%s2107_s29 + $0x4] ss:$16 sps:$4 sm:$0xff]   ;;  %v1858_v34 = vld [vmem:[%s2107_s29 + $0x8] ss:$16 sps:$4 sm:$0xff]  }
  0x13   : > { %1693 = vmatprep.subr.bf16.mxu1 %v1836_v13  ;;  %v1860_v35 = vld [vmem:[%s2107_s29 + $0xc] ss:$16 sps:$4 sm:$0xff]   ;;  %860 = vmatprep.mubr.bf16.mxu0 %v1857_v33  ;;  %v1861_v36 = vld [vmem:[%s2107_s29 + $0x24] ss:$16 sps:$4 sm:$0xff]   ;;  %v1865_v38 = vld [vmem:[%s2107_s29 + $0x20] ss:$16 sps:$4 sm:$0xff]  }
  0x14   : > { %1021 = vmatprep.mubr.bf16.mxu1 %v1860_v35  ;;  %v1863_v37 = vld [vmem:[%s2107_s29 + $0x2c] ss:$16 sps:$4 sm:$0xff]   ;;  %v1866_v39 = vld [vmem:[%s2107_s29 + $0x28] ss:$16 sps:$4 sm:$0xff]   ;;  %v1867_v40 = vld [vmem:[%s2107_s29 + $0x44] ss:$16 sps:$4 sm:$0xff]  }
  0x15   : > { %1582 = vmatpush3.bf16.msra.mxu0 %v1837_v14  ;;  %v1869_v41 = vld [vmem:[%s2107_s29 + $0x4c] ss:$16 sps:$4 sm:$0xff]   ;;  %v1871_v42 = vld [vmem:[%s2107_s29 + $0x40] ss:$16 sps:$4 sm:$0xff]   ;;  %v1872_v43 = vld [vmem:[%s2107_s29 + $0x48] ss:$16 sps:$4 sm:$0xff]  }
  0x16   : > { %1694 = vmatpush3.bf16.msra.mxu1 %v1838_v15  ;;  %1583 = vmatprep.subr.bf16.mxu0 %v1839_v16  ;;  %v1873_v44 = vld [vmem:[%s2107_s29 + $0x64] ss:$16 sps:$4 sm:$0xff]   ;;  %v1875_v45 = vld [vmem:[%s2107_s29 + $0x6c] ss:$16 sps:$4 sm:$0xff]   ;;  %v1877_v46 = vld [vmem:[%s2107_s29 + $0x60] ss:$16 sps:$4 sm:$0xff]  }
  0x17   : > { %1695 = vmatprep.subr.bf16.mxu1 %v1840_v17  ;;  %v1878_v47 = vld [vmem:[%s2107_s29 + $0x68] ss:$16 sps:$4 sm:$0xff]   ;;  %v1879_v48 = vld [vmem:[%s2107_s29 + $0x84] ss:$16 sps:$4 sm:$0xff]   ;;  %v1881_v49 = vld [vmem:[%s2107_s29 + $0x8c] ss:$16 sps:$4 sm:$0xff]  }
  0x18   : > { %v1883_v50 = vld [vmem:[%s2107_s29 + $0x80] ss:$16 sps:$4 sm:$0xff]   ;;  %v1884_v51 = vld [vmem:[%s2107_s29 + $0x88] ss:$16 sps:$4 sm:$0xff]   ;;  %v1885_v52 = vld [vmem:[%s2107_s29 + $0xa4] ss:$16 sps:$4 sm:$0xff]  }
  0x19   : > { %1584 = vmatpush3.bf16.msra.mxu0 %v1841_v18  ;;  %v1887_v53 = vld [vmem:[%s2107_s29 + $0xac] ss:$16 sps:$4 sm:$0xff]   ;;  %v1889_v54 = vld [vmem:[%s2107_s29 + $0xa0] ss:$16 sps:$4 sm:$0xff]   ;;  %v1890_v55 = vld [vmem:[%s2107_s29 + $0xa8] ss:$16 sps:$4 sm:$0xff]  }
  0x1a   : > { %1696 = vmatpush3.bf16.msra.mxu1 %v1842_v19  ;;  %1585 = vmatprep.subr.bf16.mxu0 %v1843_v20  ;;  %v1891_v56 = vld [vmem:[%s2107_s29 + $0xc4] ss:$16 sps:$4 sm:$0xff]   ;;  %v1893_v57 = vld [vmem:[%s2107_s29 + $0xcc] ss:$16 sps:$4 sm:$0xff]   ;;  %v1895_v58 = vld [vmem:[%s2107_s29 + $0xc0] ss:$16 sps:$4 sm:$0xff]  }
  0x1b   : > { %1697 = vmatprep.subr.bf16.mxu1 %v1844_v21  ;;  %v1896_v59 = vld [vmem:[%s2107_s29 + $0xc8] ss:$16 sps:$4 sm:$0xff]   ;;  %v1897_v60 = vld [vmem:[%s2107_s29 + $0xe4] ss:$16 sps:$4 sm:$0xff]   ;;  %v1899_v61 = vld [vmem:[%s2107_s29 + $0xec] ss:$16 sps:$4 sm:$0xff]  }
  0x1c   : > { %v1901_v62 = vld [vmem:[%s2107_s29 + $0xe0] ss:$16 sps:$4 sm:$0xff]   ;;  %v1902_v63 = vld [vmem:[%s2107_s29 + $0xe8] ss:$16 sps:$4 sm:$0xff]   ;;  %v1903_v0 = vld [vmem:[%s2107_s29 + $0x104] ss:$16 sps:$4 sm:$0xff]  }
  0x1d   : > { %1586 = vmatpush3.bf16.msra.mxu0 %v1845_v22  ;;  %v1905_v1 = vld [vmem:[%s2107_s29 + $0x10c] ss:$16 sps:$4 sm:$0xff]   ;;  %v1907_v2 = vld [vmem:[%s2107_s29 + $0x100] ss:$16 sps:$4 sm:$0xff]   ;;  %v1908_v3 = vld [vmem:[%s2107_s29 + $0x108] ss:$16 sps:$4 sm:$0xff]  }
  0x1e   : > { %1698 = vmatpush3.bf16.msra.mxu1 %v1846_v23  ;;  %1587 = vmatprep.subr.bf16.mxu0 %v1847_v24  ;;  %v1909_v4 = vld [vmem:[%s2107_s29 + $0x124] ss:$16 sps:$4 sm:$0xff]   ;;  %v1911_v5 = vld [vmem:[%s2107_s29 + $0x12c] ss:$16 sps:$4 sm:$0xff]   ;;  %v1913_v6 = vld [vmem:[%s2107_s29 + $0x120] ss:$16 sps:$4 sm:$0xff]  }
  0x1f   : > { %1699 = vmatprep.subr.bf16.mxu1 %v1848_v25  ;;  %v1914_v7 = vld [vmem:[%s2107_s29 + $0x128] ss:$16 sps:$4 sm:$0xff]   ;;  %v1915_v8 = vld [vmem:[%s2107_s29 + $0x144] ss:$16 sps:$4 sm:$0xff]   ;;  %v1917_v9 = vld [vmem:[%s2107_s29 + $0x14c] ss:$16 sps:$4 sm:$0xff]  }
  0x20   : > { %v1919_v10 = vld [vmem:[%s2107_s29 + $0x140] ss:$16 sps:$4 sm:$0xff]   ;;  %v1920_v11 = vld [vmem:[%s2107_s29 + $0x148] ss:$16 sps:$4 sm:$0xff]   ;;  %v1921_v12 = vld [vmem:[%s2107_s29 + $0x164] ss:$16 sps:$4 sm:$0xff]  }
  0x21   : > { %1588 = vmatpush3.bf16.msra.mxu0 %v1849_v26  ;;  %v1923_v13 = vld [vmem:[%s2107_s29 + $0x16c] ss:$16 sps:$4 sm:$0xff]   ;;  %v1925_v14 = vld [vmem:[%s2107_s29 + $0x160] ss:$16 sps:$4 sm:$0xff]   ;;  %v1926_v15 = vld [vmem:[%s2107_s29 + $0x168] ss:$16 sps:$4 sm:$0xff]  }
  0x22   : > { %1700 = vmatpush3.bf16.msra.mxu1 %v1850_v27  ;;  %1589 = vmatprep.subr.bf16.mxu0 %v1851_v28  ;;  %v1927_v16 = vld [vmem:[%s2107_s29 + $0x184] ss:$16 sps:$4 sm:$0xff]   ;;  %v1929_v17 = vld [vmem:[%s2107_s29 + $0x18c] ss:$16 sps:$4 sm:$0xff]   ;;  %v1931_v18 = vld [vmem:[%s2107_s29 + $0x180] ss:$16 sps:$4 sm:$0xff]  }
  0x23   : > { %1701 = vmatprep.subr.bf16.mxu1 %v1852_v29  ;;  %v1932_v19 = vld [vmem:[%s2107_s29 + $0x188] ss:$16 sps:$4 sm:$0xff]   ;;  %v1933_v20 = vld [vmem:[%s2107_s29 + $0x1a4] ss:$16 sps:$4 sm:$0xff]   ;;  %v1935_v21 = vld [vmem:[%s2107_s29 + $0x1ac] ss:$16 sps:$4 sm:$0xff]  }
  0x24   : > { %v1937_v22 = vld [vmem:[%s2107_s29 + $0x1a0] ss:$16 sps:$4 sm:$0xff]   ;;  %v1938_v23 = vld [vmem:[%s2107_s29 + $0x1a8] ss:$16 sps:$4 sm:$0xff]   ;;  %v1939_v24 = vld [vmem:[%s2107_s29 + $0x1c4] ss:$16 sps:$4 sm:$0xff]  }
  0x25   : > { %1590 = vmatpush3.bf16.msra.mxu0 %v1853_v30  ;;  %v1941_v25 = vld [vmem:[%s2107_s29 + $0x1cc] ss:$16 sps:$4 sm:$0xff]   ;;  %v1943_v26 = vld [vmem:[%s2107_s29 + $0x1c0] ss:$16 sps:$4 sm:$0xff]   ;;  %v1944_v27 = vld [vmem:[%s2107_s29 + $0x1c8] ss:$16 sps:$4 sm:$0xff]  }
  0x26   : > { %1702 = vmatpush3.bf16.msra.mxu1 %v1854_v31  ;;  %v1945_v28 = vld [vmem:[%s2107_s29 + $0x1e4] ss:$16 sps:$4 sm:$0xff]   ;;  %v1947_v29 = vld [vmem:[%s2107_s29 + $0x1ec] ss:$16 sps:$4 sm:$0xff]   ;;  %v1949_v30 = vld [vmem:[%s2107_s29 + $0x1e0] ss:$16 sps:$4 sm:$0xff]  }
  0x27   : > { %v1950_v31 = vld [vmem:[%s2107_s29 + $0x1e8] ss:$16 sps:$4 sm:$0xff]  }
  0x28   : > { %861 = vmatmul.mubr.bf16.vlgmr.msra.gmra.mrb[0].mxu0 %v1855_v32 }
  0x29   : > { %1022 = vmatmul.mubr.bf16.vlgmr.msra.gmra.mrb[0].mxu1 %v1858_v34  ;;  %868 = vmatprep.mubr.bf16.mxu0 %v1861_v36 }
  0x2a   : > { %1029 = vmatprep.mubr.bf16.mxu1 %v1863_v37 }
  0x30   : > { %869 = vmatmul.mubr.bf16.gmra.mrb[4].mxu0 %v1865_v38 }
  0x31   : > { %1030 = vmatmul.mubr.bf16.gmra.mrb[4].mxu1 %v1866_v39  ;;  %876 = vmatprep.mubr.bf16.mxu0 %v1867_v40 }
  0x32   : > { %1037 = vmatprep.mubr.bf16.mxu1 %v1869_v41 }
  0x38   : > { %877 = vmatmul.mubr.bf16.gmra.mrb[8].mxu0 %v1871_v42 }
  0x39   : > { %1038 = vmatmul.mubr.bf16.gmra.mrb[8].mxu1 %v1872_v43  ;;  %884 = vmatprep.mubr.bf16.mxu0 %v1873_v44 }
  0x3a   : > { %1045 = vmatprep.mubr.bf16.mxu1 %v1875_v45 }
  0x40   : > { %885 = vmatmul.mubr.bf16.gmra.mrb[12].mxu0 %v1877_v46 }
  0x41   : > { %1046 = vmatmul.mubr.bf16.gmra.mrb[12].mxu1 %v1878_v47  ;;  %892 = vmatprep.mubr.bf16.mxu0 %v1879_v48 }
  0x42   : > { %1053 = vmatprep.mubr.bf16.mxu1 %v1881_v49 }
  0x48   : > { %893 = vmatmul.mubr.bf16.gmra.mrb[16].mxu0 %v1883_v50 }
  0x49   : > { %1054 = vmatmul.mubr.bf16.gmra.mrb[16].mxu1 %v1884_v51  ;;  %900 = vmatprep.mubr.bf16.mxu0 %v1885_v52 }
  0x4a   : > { %1061 = vmatprep.mubr.bf16.mxu1 %v1887_v53 }
  0x50   : > { %901 = vmatmul.mubr.bf16.gmra.mrb[20].mxu0 %v1889_v54 }
  0x51   : > { %1062 = vmatmul.mubr.bf16.gmra.mrb[20].mxu1 %v1890_v55  ;;  %908 = vmatprep.mubr.bf16.mxu0 %v1891_v56 }
  0x52   : > { %1069 = vmatprep.mubr.bf16.mxu1 %v1893_v57 }
  0x58   : > { %909 = vmatmul.mubr.bf16.gmra.mrb[24].mxu0 %v1895_v58 }
  0x59   : > { %1070 = vmatmul.mubr.bf16.gmra.mrb[24].mxu1 %v1896_v59  ;;  %916 = vmatprep.mubr.bf16.mxu0 %v1897_v60 }
  0x5a   : > { %1077 = vmatprep.mubr.bf16.mxu1 %v1899_v61 }
  0x60   : > { %917 = vmatmul.mubr.bf16.gmra.mrb[28].mxu0 %v1901_v62 }
  0x61   : > { %1078 = vmatmul.mubr.bf16.gmra.mrb[28].mxu1 %v1902_v63  ;;  %924 = vmatprep.mubr.bf16.mxu0 %v1903_v0 }
  0x62   : > { %1085 = vmatprep.mubr.bf16.mxu1 %v1905_v1 }
  0x68   : > { %925 = vmatmul.mubr.bf16.gmra.mrb[32].mxu0 %v1907_v2 }
  0x69   : > { %1086 = vmatmul.mubr.bf16.gmra.mrb[32].mxu1 %v1908_v3  ;;  %932 = vmatprep.mubr.bf16.mxu0 %v1909_v4 }
  0x6a   : > { %1093 = vmatprep.mubr.bf16.mxu1 %v1911_v5 }
  0x70   : > { %933 = vmatmul.mubr.bf16.gmra.mrb[36].mxu0 %v1913_v6 }
  0x71   : > { %1094 = vmatmul.mubr.bf16.gmra.mrb[36].mxu1 %v1914_v7  ;;  %940 = vmatprep.mubr.bf16.mxu0 %v1915_v8 }
  0x72   : > { %1101 = vmatprep.mubr.bf16.mxu1 %v1917_v9 }
  0x78   : > { %941 = vmatmul.mubr.bf16.gmra.mrb[40].mxu0 %v1919_v10 }
  0x79   : > { %1102 = vmatmul.mubr.bf16.gmra.mrb[40].mxu1 %v1920_v11  ;;  %948 = vmatprep.mubr.bf16.mxu0 %v1921_v12 }
  0x7a   : > { %1109 = vmatprep.mubr.bf16.mxu1 %v1923_v13 }
  0x80   : > { %949 = vmatmul.mubr.bf16.gmra.mrb[44].mxu0 %v1925_v14 }
  0x81   : > { %1110 = vmatmul.mubr.bf16.gmra.mrb[44].mxu1 %v1926_v15  ;;  %956 = vmatprep.mubr.bf16.mxu0 %v1927_v16 }
  0x82   : > { %1117 = vmatprep.mubr.bf16.mxu1 %v1929_v17 }
  0x88   : > { %957 = vmatmul.mubr.bf16.gmra.mrb[48].mxu0 %v1931_v18 }
  0x89   : > { %1118 = vmatmul.mubr.bf16.gmra.mrb[48].mxu1 %v1932_v19  ;;  %964 = vmatprep.mubr.bf16.mxu0 %v1933_v20 }
  0x8a   : > { %1125 = vmatprep.mubr.bf16.mxu1 %v1935_v21 }
  0x90   : > { %965 = vmatmul.mubr.bf16.gmra.mrb[52].mxu0 %v1937_v22 }
  0x91   : > { %1126 = vmatmul.mubr.bf16.gmra.mrb[52].mxu1 %v1938_v23  ;;  %972 = vmatprep.mubr.bf16.mxu0 %v1939_v24 }
  0x92   : > { %1133 = vmatprep.mubr.bf16.mxu1 %v1941_v25 }
  0x98   : > { %973 = vmatmul.mubr.bf16.gmra.mrb[56].mxu0 %v1943_v26 }
  0x99   : > { %1134 = vmatmul.mubr.bf16.gmra.mrb[56].mxu1 %v1944_v27  ;;  %980 = vmatprep.mubr.bf16.mxu0 %v1945_v28 }
  0x9a   : > { %1141 = vmatprep.mubr.bf16.mxu1 %v1947_v29 }
  0xa0   : > { %981 = vmatmul.mubr.bf16.gmra.mrb[60].mxu0 %v1949_v30 }
  0xa1   : > { %1142 = vmatmul.mubr.bf16.gmra.mrb[60].mxu1 %v1950_v31 }
  0xfb   : > { %v1591_v32 = vpop.f32.mrb[0].mxu0 }
  0xfc   : > { %v1703_v33 = vpop.f32.mrb[0].mxu1  ;;  %v1592_v34 = vpop.f32.mrb[1].mxu0 }
  0xfd   : > { %v1593_v35 = vadd.f32 %v1592_v34, %v1591_v32  ;;  %v1704_v36 = vpop.f32.mrb[1].mxu1  ;;  %v1594_v37 = vpop.f32.mrb[2].mxu0 }
  0xfe   : > { %v1705_v38 = vadd.f32 %v1704_v36, %v1703_v33  ;;  %v1706_v39 = vpop.f32.mrb[2].mxu1  ;;  %v1595_v40 = vpop.f32.mrb[3].mxu0 }
  0xff   : > { %v1596_v41 = vadd.f32 %v1595_v40, %v1594_v37  ;;  %v1707_v42 = vpop.f32.mrb[3].mxu1 }
 0x100   : > { %v1024_v43 = vadd.f32 %v1705_v38, %v1593_v35  ;;  %v1708_v44 = vadd.f32 %v1707_v42, %v1706_v39 }
 0x102   : > { %v1543_v45 = vpack.c.bf16 %v1024_v43, %v1024_v43  ;;  %v1027_v46 = vadd.f32 %v1708_v44, %v1596_v41 }
 0x103   : > { %v1597_v47 = vpop.f32.mrb[4].mxu0 }
 0x104   : > { %1279 = vst.msk [vmem:[%s2183_s8] sm:$0xf] %vm1278_vm0, %v1543_v45  ;;  %v1544_v48 = vpack.c.bf16 %v1027_v46, %v1027_v46  ;;  %v1709_v49 = vpop.f32.mrb[4].mxu1  ;;  %v1598_v50 = vpop.f32.mrb[5].mxu0 }
 0x105   : > { %v1599_v51 = vadd.f32 %v1598_v50, %v1597_v47  ;;  %v1710_v52 = vpop.f32.mrb[5].mxu1  ;;  %v1600_v53 = vpop.f32.mrb[6].mxu0 }
 0x106   : > { %1280 = vst.msk [vmem:[%s2183_s8 + $0x4] sm:$0xf] %vm1278_vm0, %v1544_v48  ;;  %v1711_v54 = vadd.f32 %v1710_v52, %v1709_v49  ;;  %v1712_v55 = vpop.f32.mrb[6].mxu1  ;;  %v1601_v56 = vpop.f32.mrb[7].mxu0 }
 0x107   : > { %v1602_v57 = vadd.f32 %v1601_v56, %v1600_v53  ;;  %v1713_v58 = vpop.f32.mrb[7].mxu1 }
 0x108   : > { %v1032_v59 = vadd.f32 %v1711_v54, %v1599_v51  ;;  %v1714_v60 = vadd.f32 %v1713_v58, %v1712_v55 }
 0x10a   : > { %v1545_v61 = vpack.c.bf16 %v1032_v59, %v1032_v59  ;;  %v1035_v62 = vadd.f32 %v1714_v60, %v1602_v57 }
 0x10b   : > { %v1603_v63 = vpop.f32.mrb[8].mxu0 }
 0x10c   : > { %1281 = vst.msk [vmem:[%s2183_s8 + $0x8] sm:$0xf] %vm1278_vm0, %v1545_v61  ;;  %v1546_v0 = vpack.c.bf16 %v1035_v62, %v1035_v62  ;;  %v1715_v1 = vpop.f32.mrb[8].mxu1  ;;  %v1604_v2 = vpop.f32.mrb[9].mxu0 }
 0x10d   : > { %v1605_v3 = vadd.f32 %v1604_v2, %v1603_v63  ;;  %v1716_v4 = vpop.f32.mrb[9].mxu1  ;;  %v1606_v5 = vpop.f32.mrb[10].mxu0 }
 0x10e   : > { %1282 = vst.msk [vmem:[%s2183_s8 + $0xc] sm:$0xf] %vm1278_vm0, %v1546_v0  ;;  %v1717_v6 = vadd.f32 %v1716_v4, %v1715_v1  ;;  %v1718_v7 = vpop.f32.mrb[10].mxu1  ;;  %v1607_v8 = vpop.f32.mrb[11].mxu0 }
 0x10f   : > { %v1608_v9 = vadd.f32 %v1607_v8, %v1606_v5  ;;  %v1719_v10 = vpop.f32.mrb[11].mxu1 }
 0x110   : > { %v1040_v11 = vadd.f32 %v1717_v6, %v1605_v3  ;;  %v1720_v12 = vadd.f32 %v1719_v10, %v1718_v7 }
 0x112   : > { %v1547_v13 = vpack.c.bf16 %v1040_v11, %v1040_v11  ;;  %v1043_v14 = vadd.f32 %v1720_v12, %v1608_v9 }
 0x113   : > { %v1609_v15 = vpop.f32.mrb[12].mxu0 }
 0x114   : > { %1283 = vst.msk [vmem:[%s2183_s8 + $0x10] sm:$0xf] %vm1278_vm0, %v1547_v13  ;;  %v1548_v16 = vpack.c.bf16 %v1043_v14, %v1043_v14  ;;  %v1721_v17 = vpop.f32.mrb[12].mxu1  ;;  %v1610_v18 = vpop.f32.mrb[13].mxu0 }
 0x115   : > { %v1611_v19 = vadd.f32 %v1610_v18, %v1609_v15  ;;  %v1722_v20 = vpop.f32.mrb[13].mxu1  ;;  %v1612_v21 = vpop.f32.mrb[14].mxu0 }
 0x116   : > { %1284 = vst.msk [vmem:[%s2183_s8 + $0x14] sm:$0xf] %vm1278_vm0, %v1548_v16  ;;  %v1723_v22 = vadd.f32 %v1722_v20, %v1721_v17  ;;  %v1724_v23 = vpop.f32.mrb[14].mxu1  ;;  %v1613_v24 = vpop.f32.mrb[15].mxu0 }
 0x117   : > { %v1614_v25 = vadd.f32 %v1613_v24, %v1612_v21  ;;  %v1725_v26 = vpop.f32.mrb[15].mxu1 }
 0x118   : > { %v1048_v27 = vadd.f32 %v1723_v22, %v1611_v19  ;;  %v1726_v28 = vadd.f32 %v1725_v26, %v1724_v23 }
 0x11a   : > { %v1549_v29 = vpack.c.bf16 %v1048_v27, %v1048_v27  ;;  %v1051_v30 = vadd.f32 %v1726_v28, %v1614_v25 }
 0x11b   : > { %v1615_v31 = vpop.f32.mrb[16].mxu0 }
 0x11c   : > { %1285 = vst.msk [vmem:[%s2183_s8 + $0x18] sm:$0xf] %vm1278_vm0, %v1549_v29  ;;  %v1550_v32 = vpack.c.bf16 %v1051_v30, %v1051_v30  ;;  %v1727_v33 = vpop.f32.mrb[16].mxu1  ;;  %v1616_v34 = vpop.f32.mrb[17].mxu0 }
 0x11d   : > { %v1617_v35 = vadd.f32 %v1616_v34, %v1615_v31  ;;  %v1728_v36 = vpop.f32.mrb[17].mxu1  ;;  %v1618_v37 = vpop.f32.mrb[18].mxu0 }
 0x11e   : > { %1286 = vst.msk [vmem:[%s2183_s8 + $0x1c] sm:$0xf] %vm1278_vm0, %v1550_v32  ;;  %v1729_v38 = vadd.f32 %v1728_v36, %v1727_v33  ;;  %v1730_v39 = vpop.f32.mrb[18].mxu1  ;;  %v1619_v40 = vpop.f32.mrb[19].mxu0 }
 0x11f   : > { %v1620_v41 = vadd.f32 %v1619_v40, %v1618_v37  ;;  %v1731_v42 = vpop.f32.mrb[19].mxu1 }
 0x120   : > { %v1056_v43 = vadd.f32 %v1729_v38, %v1617_v35  ;;  %v1732_v44 = vadd.f32 %v1731_v42, %v1730_v39 }
 0x122   : > { %v1551_v45 = vpack.c.bf16 %v1056_v43, %v1056_v43  ;;  %v1059_v46 = vadd.f32 %v1732_v44, %v1620_v41 }
 0x123   : > { %v1621_v47 = vpop.f32.mrb[20].mxu0 }
 0x124   : > { %1287 = vst.msk [vmem:[%s2183_s8 + $0x20] sm:$0xf] %vm1278_vm0, %v1551_v45  ;;  %v1552_v48 = vpack.c.bf16 %v1059_v46, %v1059_v46  ;;  %v1733_v49 = vpop.f32.mrb[20].mxu1  ;;  %v1622_v50 = vpop.f32.mrb[21].mxu0 }
 0x125   : > { %v1623_v51 = vadd.f32 %v1622_v50, %v1621_v47  ;;  %v1734_v52 = vpop.f32.mrb[21].mxu1  ;;  %v1624_v53 = vpop.f32.mrb[22].mxu0 }
 0x126   : > { %1288 = vst.msk [vmem:[%s2183_s8 + $0x24] sm:$0xf] %vm1278_vm0, %v1552_v48  ;;  %v1735_v54 = vadd.f32 %v1734_v52, %v1733_v49  ;;  %v1736_v55 = vpop.f32.mrb[22].mxu1  ;;  %v1625_v56 = vpop.f32.mrb[23].mxu0 }
 0x127   : > { %v1626_v57 = vadd.f32 %v1625_v56, %v1624_v53  ;;  %v1737_v58 = vpop.f32.mrb[23].mxu1 }
 0x128   : > { %v1064_v59 = vadd.f32 %v1735_v54, %v1623_v51  ;;  %v1738_v60 = vadd.f32 %v1737_v58, %v1736_v55 }
 0x12a   : > { %v1553_v61 = vpack.c.bf16 %v1064_v59, %v1064_v59  ;;  %v1067_v62 = vadd.f32 %v1738_v60, %v1626_v57 }
 0x12b   : > { %v1627_v63 = vpop.f32.mrb[24].mxu0 }
 0x12c   : > { %1289 = vst.msk [vmem:[%s2183_s8 + $0x28] sm:$0xf] %vm1278_vm0, %v1553_v61  ;;  %v1554_v0 = vpack.c.bf16 %v1067_v62, %v1067_v62  ;;  %v1739_v1 = vpop.f32.mrb[24].mxu1  ;;  %v1628_v2 = vpop.f32.mrb[25].mxu0 }
 0x12d   : > { %v1629_v3 = vadd.f32 %v1628_v2, %v1627_v63  ;;  %v1740_v4 = vpop.f32.mrb[25].mxu1  ;;  %v1630_v5 = vpop.f32.mrb[26].mxu0 }
 0x12e   : > { %1290 = vst.msk [vmem:[%s2183_s8 + $0x2c] sm:$0xf] %vm1278_vm0, %v1554_v0  ;;  %v1741_v6 = vadd.f32 %v1740_v4, %v1739_v1  ;;  %v1742_v7 = vpop.f32.mrb[26].mxu1  ;;  %v1631_v8 = vpop.f32.mrb[27].mxu0 }
 0x12f   : > { %v1632_v9 = vadd.f32 %v1631_v8, %v1630_v5  ;;  %v1743_v10 = vpop.f32.mrb[27].mxu1 }
 0x130   : > { %v1072_v11 = vadd.f32 %v1741_v6, %v1629_v3  ;;  %v1744_v12 = vadd.f32 %v1743_v10, %v1742_v7 }
 0x132   : > { %v1555_v13 = vpack.c.bf16 %v1072_v11, %v1072_v11  ;;  %v1075_v14 = vadd.f32 %v1744_v12, %v1632_v9 }
 0x133   : > { %v1633_v15 = vpop.f32.mrb[28].mxu0 }
 0x134   : > { %1291 = vst.msk [vmem:[%s2183_s8 + $0x30] sm:$0xf] %vm1278_vm0, %v1555_v13  ;;  %v1556_v16 = vpack.c.bf16 %v1075_v14, %v1075_v14  ;;  %v1745_v17 = vpop.f32.mrb[28].mxu1  ;;  %v1634_v18 = vpop.f32.mrb[29].mxu0 }
 0x135   : > { %v1635_v19 = vadd.f32 %v1634_v18, %v1633_v15  ;;  %v1746_v20 = vpop.f32.mrb[29].mxu1  ;;  %v1636_v21 = vpop.f32.mrb[30].mxu0 }
 0x136   : > { %1292 = vst.msk [vmem:[%s2183_s8 + $0x34] sm:$0xf] %vm1278_vm0, %v1556_v16  ;;  %v1747_v22 = vadd.f32 %v1746_v20, %v1745_v17  ;;  %v1748_v23 = vpop.f32.mrb[30].mxu1  ;;  %v1637_v24 = vpop.f32.mrb[31].mxu0 }
 0x137   : > { %v1638_v25 = vadd.f32 %v1637_v24, %v1636_v21  ;;  %v1749_v26 = vpop.f32.mrb[31].mxu1 }
 0x138   : > { %v1080_v27 = vadd.f32 %v1747_v22, %v1635_v19  ;;  %v1750_v28 = vadd.f32 %v1749_v26, %v1748_v23 }
 0x13a   : > { %v1557_v29 = vpack.c.bf16 %v1080_v27, %v1080_v27  ;;  %v1083_v30 = vadd.f32 %v1750_v28, %v1638_v25 }
 0x13b   : > { %v1639_v31 = vpop.f32.mrb[32].mxu0 }
 0x13c   : > { %1293 = vst.msk [vmem:[%s2183_s8 + $0x38] sm:$0xf] %vm1278_vm0, %v1557_v29  ;;  %v1558_v32 = vpack.c.bf16 %v1083_v30, %v1083_v30  ;;  %v1751_v33 = vpop.f32.mrb[32].mxu1  ;;  %v1640_v34 = vpop.f32.mrb[33].mxu0 }
 0x13d   : > { %v1641_v35 = vadd.f32 %v1640_v34, %v1639_v31  ;;  %v1752_v36 = vpop.f32.mrb[33].mxu1  ;;  %v1642_v37 = vpop.f32.mrb[34].mxu0 }
 0x13e   : > { %1294 = vst.msk [vmem:[%s2183_s8 + $0x3c] sm:$0xf] %vm1278_vm0, %v1558_v32  ;;  %v1753_v38 = vadd.f32 %v1752_v36, %v1751_v33  ;;  %v1754_v39 = vpop.f32.mrb[34].mxu1  ;;  %v1643_v40 = vpop.f32.mrb[35].mxu0 }
 0x13f   : > { %v1644_v41 = vadd.f32 %v1643_v40, %v1642_v37  ;;  %v1755_v42 = vpop.f32.mrb[35].mxu1 }
 0x140   : > { %v1088_v43 = vadd.f32 %v1753_v38, %v1641_v35  ;;  %v1756_v44 = vadd.f32 %v1755_v42, %v1754_v39 }
 0x142   : > { %v1559_v45 = vpack.c.bf16 %v1088_v43, %v1088_v43  ;;  %v1091_v46 = vadd.f32 %v1756_v44, %v1644_v41 }
 0x143   : > { %v1645_v47 = vpop.f32.mrb[36].mxu0 }
 0x144   : > { %1295 = vst.msk [vmem:[%s2183_s8 + $0x40] sm:$0xf] %vm1278_vm0, %v1559_v45  ;;  %v1560_v48 = vpack.c.bf16 %v1091_v46, %v1091_v46  ;;  %v1757_v49 = vpop.f32.mrb[36].mxu1  ;;  %v1646_v50 = vpop.f32.mrb[37].mxu0 }
 0x145   : > { %v1647_v51 = vadd.f32 %v1646_v50, %v1645_v47  ;;  %v1758_v52 = vpop.f32.mrb[37].mxu1  ;;  %v1648_v53 = vpop.f32.mrb[38].mxu0 }
 0x146   : > { %1296 = vst.msk [vmem:[%s2183_s8 + $0x44] sm:$0xf] %vm1278_vm0, %v1560_v48  ;;  %v1759_v54 = vadd.f32 %v1758_v52, %v1757_v49  ;;  %v1760_v55 = vpop.f32.mrb[38].mxu1  ;;  %v1649_v56 = vpop.f32.mrb[39].mxu0 }
 0x147   : > { %v1650_v57 = vadd.f32 %v1649_v56, %v1648_v53  ;;  %v1761_v58 = vpop.f32.mrb[39].mxu1 }
 0x148   : > { %v1096_v59 = vadd.f32 %v1759_v54, %v1647_v51  ;;  %v1762_v60 = vadd.f32 %v1761_v58, %v1760_v55 }
 0x14a   : > { %v1561_v61 = vpack.c.bf16 %v1096_v59, %v1096_v59  ;;  %v1099_v62 = vadd.f32 %v1762_v60, %v1650_v57 }
 0x14b   : > { %v1651_v63 = vpop.f32.mrb[40].mxu0 }
 0x14c   : > { %1297 = vst.msk [vmem:[%s2183_s8 + $0x48] sm:$0xf] %vm1278_vm0, %v1561_v61  ;;  %v1562_v0 = vpack.c.bf16 %v1099_v62, %v1099_v62  ;;  %v1763_v1 = vpop.f32.mrb[40].mxu1  ;;  %v1652_v2 = vpop.f32.mrb[41].mxu0 }
 0x14d   : > { %v1653_v3 = vadd.f32 %v1652_v2, %v1651_v63  ;;  %v1764_v4 = vpop.f32.mrb[41].mxu1  ;;  %v1654_v5 = vpop.f32.mrb[42].mxu0 }
 0x14e   : > { %1298 = vst.msk [vmem:[%s2183_s8 + $0x4c] sm:$0xf] %vm1278_vm0, %v1562_v0  ;;  %v1765_v6 = vadd.f32 %v1764_v4, %v1763_v1  ;;  %v1766_v7 = vpop.f32.mrb[42].mxu1  ;;  %v1655_v8 = vpop.f32.mrb[43].mxu0 }
 0x14f   : > { %v1656_v9 = vadd.f32 %v1655_v8, %v1654_v5  ;;  %v1767_v10 = vpop.f32.mrb[43].mxu1 }
 0x150   : > { %v1104_v11 = vadd.f32 %v1765_v6, %v1653_v3  ;;  %v1768_v12 = vadd.f32 %v1767_v10, %v1766_v7 }
 0x152   : > { %v1563_v13 = vpack.c.bf16 %v1104_v11, %v1104_v11  ;;  %v1107_v14 = vadd.f32 %v1768_v12, %v1656_v9 }
 0x153   : > { %v1657_v15 = vpop.f32.mrb[44].mxu0 }
 0x154   : > { %1299 = vst.msk [vmem:[%s2183_s8 + $0x50] sm:$0xf] %vm1278_vm0, %v1563_v13  ;;  %v1564_v16 = vpack.c.bf16 %v1107_v14, %v1107_v14  ;;  %v1769_v17 = vpop.f32.mrb[44].mxu1  ;;  %v1658_v18 = vpop.f32.mrb[45].mxu0 }
 0x155   : > { %v1659_v19 = vadd.f32 %v1658_v18, %v1657_v15  ;;  %v1770_v20 = vpop.f32.mrb[45].mxu1  ;;  %v1660_v21 = vpop.f32.mrb[46].mxu0 }
 0x156   : > { %1300 = vst.msk [vmem:[%s2183_s8 + $0x54] sm:$0xf] %vm1278_vm0, %v1564_v16  ;;  %v1771_v22 = vadd.f32 %v1770_v20, %v1769_v17  ;;  %v1772_v23 = vpop.f32.mrb[46].mxu1  ;;  %v1661_v24 = vpop.f32.mrb[47].mxu0 }
 0x157   : > { %v1662_v25 = vadd.f32 %v1661_v24, %v1660_v21  ;;  %v1773_v26 = vpop.f32.mrb[47].mxu1 }
 0x158   : > { %v1112_v27 = vadd.f32 %v1771_v22, %v1659_v19  ;;  %v1774_v28 = vadd.f32 %v1773_v26, %v1772_v23 }
 0x15a   : > { %v1565_v29 = vpack.c.bf16 %v1112_v27, %v1112_v27  ;;  %v1115_v30 = vadd.f32 %v1774_v28, %v1662_v25 }
 0x15b   : > { %v1663_v31 = vpop.f32.mrb[48].mxu0 }
 0x15c   : > { %1301 = vst.msk [vmem:[%s2183_s8 + $0x58] sm:$0xf] %vm1278_vm0, %v1565_v29  ;;  %v1566_v32 = vpack.c.bf16 %v1115_v30, %v1115_v30  ;;  %v1775_v33 = vpop.f32.mrb[48].mxu1  ;;  %v1664_v34 = vpop.f32.mrb[49].mxu0 }
 0x15d   : > { %v1665_v35 = vadd.f32 %v1664_v34, %v1663_v31  ;;  %v1776_v36 = vpop.f32.mrb[49].mxu1  ;;  %v1666_v37 = vpop.f32.mrb[50].mxu0 }
 0x15e   : > { %1302 = vst.msk [vmem:[%s2183_s8 + $0x5c] sm:$0xf] %vm1278_vm0, %v1566_v32  ;;  %v1777_v38 = vadd.f32 %v1776_v36, %v1775_v33  ;;  %v1778_v39 = vpop.f32.mrb[50].mxu1  ;;  %v1667_v40 = vpop.f32.mrb[51].mxu0 }
 0x15f   : > { %v1668_v41 = vadd.f32 %v1667_v40, %v1666_v37  ;;  %v1779_v42 = vpop.f32.mrb[51].mxu1 }
 0x160   : > { %v1120_v43 = vadd.f32 %v1777_v38, %v1665_v35  ;;  %v1780_v44 = vadd.f32 %v1779_v42, %v1778_v39 }
 0x162   : > { %v1567_v45 = vpack.c.bf16 %v1120_v43, %v1120_v43  ;;  %v1123_v46 = vadd.f32 %v1780_v44, %v1668_v41 }
 0x163   : > { %v1669_v47 = vpop.f32.mrb[52].mxu0 }
 0x164   : > { %1303 = vst.msk [vmem:[%s2183_s8 + $0x60] sm:$0xf] %vm1278_vm0, %v1567_v45  ;;  %v1568_v48 = vpack.c.bf16 %v1123_v46, %v1123_v46  ;;  %v1781_v49 = vpop.f32.mrb[52].mxu1  ;;  %v1670_v50 = vpop.f32.mrb[53].mxu0 }
 0x165   : > { %v1671_v51 = vadd.f32 %v1670_v50, %v1669_v47  ;;  %v1782_v52 = vpop.f32.mrb[53].mxu1  ;;  %v1672_v53 = vpop.f32.mrb[54].mxu0 }
 0x166   : > { %1304 = vst.msk [vmem:[%s2183_s8 + $0x64] sm:$0xf] %vm1278_vm0, %v1568_v48  ;;  %v1783_v54 = vadd.f32 %v1782_v52, %v1781_v49  ;;  %v1784_v55 = vpop.f32.mrb[54].mxu1  ;;  %v1673_v56 = vpop.f32.mrb[55].mxu0 }
 0x167   : > { %v1674_v57 = vadd.f32 %v1673_v56, %v1672_v53  ;;  %v1785_v58 = vpop.f32.mrb[55].mxu1 }
 0x168   : > { %v1128_v59 = vadd.f32 %v1783_v54, %v1671_v51  ;;  %v1786_v60 = vadd.f32 %v1785_v58, %v1784_v55 }
 0x16a   : > { %v1569_v61 = vpack.c.bf16 %v1128_v59, %v1128_v59  ;;  %v1131_v62 = vadd.f32 %v1786_v60, %v1674_v57 }
 0x16b   : > { %v1675_v63 = vpop.f32.mrb[56].mxu0 }
 0x16c   : > { %1305 = vst.msk [vmem:[%s2183_s8 + $0x68] sm:$0xf] %vm1278_vm0, %v1569_v61  ;;  %v1570_v0 = vpack.c.bf16 %v1131_v62, %v1131_v62  ;;  %v1787_v1 = vpop.f32.mrb[56].mxu1  ;;  %v1676_v2 = vpop.f32.mrb[57].mxu0 }
 0x16d   : > { %v1677_v3 = vadd.f32 %v1676_v2, %v1675_v63  ;;  %v1788_v4 = vpop.f32.mrb[57].mxu1  ;;  %v1678_v5 = vpop.f32.mrb[58].mxu0 }
 0x16e   : > { %1306 = vst.msk [vmem:[%s2183_s8 + $0x6c] sm:$0xf] %vm1278_vm0, %v1570_v0  ;;  %v1789_v6 = vadd.f32 %v1788_v4, %v1787_v1  ;;  %v1790_v7 = vpop.f32.mrb[58].mxu1  ;;  %v1679_v8 = vpop.f32.mrb[59].mxu0 }
 0x16f   : > { %v1680_v9 = vadd.f32 %v1679_v8, %v1678_v5  ;;  %v1791_v10 = vpop.f32.mrb[59].mxu1 }
 0x170   : > { %v1136_v11 = vadd.f32 %v1789_v6, %v1677_v3  ;;  %v1792_v12 = vadd.f32 %v1791_v10, %v1790_v7 }
 0x172   : > { %v1571_v13 = vpack.c.bf16 %v1136_v11, %v1136_v11  ;;  %v1139_v14 = vadd.f32 %v1792_v12, %v1680_v9 }
 0x173   : > { %v1681_v15 = vpop.f32.mrb[60].mxu0 }
 0x174   : > { %1307 = vst.msk [vmem:[%s2183_s8 + $0x70] sm:$0xf] %vm1278_vm0, %v1571_v13  ;;  %v1572_v16 = vpack.c.bf16 %v1139_v14, %v1139_v14  ;;  %v1793_v17 = vpop.f32.mrb[60].mxu1  ;;  %v1682_v18 = vpop.f32.mrb[61].mxu0 }
 0x175   : > { %v1683_v19 = vadd.f32 %v1682_v18, %v1681_v15  ;;  %v1794_v20 = vpop.f32.mrb[61].mxu1  ;;  %v1684_v21 = vpop.f32.mrb[62].mxu0 }
 0x176   : > { %1308 = vst.msk [vmem:[%s2183_s8 + $0x74] sm:$0xf] %vm1278_vm0, %v1572_v16  ;;  %v1795_v22 = vadd.f32 %v1794_v20, %v1793_v17  ;;  %v1796_v23 = vpop.f32.mrb[62].mxu1  ;;  %v1685_v24 = vpop.f32.mrb[63].mxu0 }
 0x177   : > { %v1686_v25 = vadd.f32 %v1685_v24, %v1684_v21  ;;  %v1797_v26 = vpop.f32.mrb[63].mxu1 }
 0x178   : > { %v1144_v27 = vadd.f32 %v1795_v22, %v1683_v19  ;;  %v1798_v28 = vadd.f32 %v1797_v26, %v1796_v23 }
 0x17a   : > { %v1573_v29 = vpack.c.bf16 %v1144_v27, %v1144_v27  ;;  %v1147_v30 = vadd.f32 %v1798_v28, %v1686_v25 }
 0x17c   : > { %1309 = vst.msk [vmem:[%s2183_s8 + $0x78] sm:$0xf] %vm1278_vm0, %v1573_v29  ;;  %v1574_v31 = vpack.c.bf16 %v1147_v30, %v1147_v30 }
 0x17e   : > { %1310 = vst.msk [vmem:[%s2183_s8 + $0x7c] sm:$0xf] %vm1278_vm0, %v1574_v31 }
 0x17f PF: > { %s12_s11 = sadd.s32 1, %s1973_s11   ;;  %s2261_s9 = smov %s1969_s10 }
 0x180   : > { %p9_p5 = scmp.ge.s32.totalorder %s12_s11, 4   ;;  %s2262_s10 = smov %s2264_s12 }
 0x182   :  { %11 = sbr.rel (!%p9_p5) target bundleno = 2 (0x2), region = 61 }

// kernel: generator_forward.44
= control target key start
LH: loop header
LB: loop body
LE: loop exit
PB: predicated region body
PF: predicated region fallthrough
CT: control target
= control target key end

     0   :  { %s1445_s9 = smov 0   ;;  %s2441_s0 = inlined_call_operand.vmem [shape: bf16[2048,64], index: 0, kind: input, shape index: {}]   ;;  %s2442_s1 = inlined_call_operand.vmem [shape: f32[1,64], index: 1, kind: output, shape index: {0}]   ;;  %s2443_s2 = inlined_call_operand.vmem [shape: f32[1,64], index: 2, kind: output, shape index: {1}]  }
   0x1 LB: > { %s1084_s10 = sadd.s32 4294967295, %s1427_s9   ;;  %p1087_p0 = scmp.ge.s32.totalorder %s1427_s9, 1  ;;  %s1427_s9 = sphi %s1445_s9, %s13_s9  }
   0x2   : > { %p106_p1 = scmp.lt.s32.totalorder %s1427_s9, 3 }
   0x4   : > { %p107_p2 = pnand %p1087_p0, %p106_p1 }
   0x5   : > { %s1088_s11 = sshll.u32 (!%p107_p2), %s1084_s10, 7  ;;  %p1090_p4 = scmp.ne.s32.totalorder (!%p107_p2), %s1084_s10, 0 }
   0x6   : > { %110 = sbr.rel (%p107_p2) target bundleno = 331 (0x14b), region = 24  ;;  %p124_p3 = scmp.lt.s32.totalorder (!%p107_p2), %s1088_s11, 255 }
   0xd   : > { %s2445_s11 = smov (!%p124_p3, %s1088_s11), 255  ;;  %132 = sbr.rel (%p1090_p4) target bundleno = 20 (0x14), region = 28 }
   0xe   : > { %s1089_s12 = sshll.u32 %s2445_s11, 2  ;;  %vm133_vm0 = vcmask (!%p1090_p4), 516096   ;;  %v1429_v0 = vmov (!%p1090_p4), 0.0  }
   0xf   : > { %s1456_s15 = scalar_lea.vmem %s2441_s0, %s1089_s12  ;;  %134 = vst.msk [vmem:[%s2442_s1] sm:$0x1] (!%p1090_p4), %vm133_vm0, %v1429_v0  ;;  %135 = vst.msk [vmem:[%s2443_s2] sm:$0x1] (!%p1090_p4), %vm133_vm0, %v1429_v0 }
  0x14 PF: > { %v1094_v1 = vld [vmem:[%s1456_s15] sm:$0xff]   ;;  %v1349_v2 = vld [vmem:[%s1456_s15 + $0x8] sm:$0xff]   ;;  %vm393_vm1 = vcmask 523264   ;;  %v1350_v6 = vld [vmem:[%s1456_s15 + $0x10] sm:$0xff]   ;;  %vm656_vm2 = vcmask 516096  }
  0x15   : > { %v1466_v3 = vunpack.c.l.bf16 %v1094_v1  ;;  %v1468_v4 = vunpack.c.h.bf16 %v1094_v1  ;;  %v1470_v5 = vunpack.c.l.bf16 %v1349_v2  ;;  %v1473_v7 = vunpack.c.h.bf16 %v1349_v2  ;;  %v1351_v14 = vld [vmem:[%s1456_s15 + $0x18] sm:$0xff]   ;;  %v1352_v21 = vld [vmem:[%s1456_s15 + $0x20] sm:$0xff]   ;;  %v1353_v28 = vld [vmem:[%s1456_s15 + $0x28] sm:$0xff]  }
  0x16   : > { %v1481_v12 = vunpack.c.l.bf16 %v1350_v6  ;;  %v1486_v16 = vunpack.c.h.bf16 %v1350_v6  ;;  %v1490_v19 = vunpack.c.l.bf16 %v1351_v14  ;;  %v1495_v23 = vunpack.c.h.bf16 %v1351_v14  ;;  %v1354_v35 = vld [vmem:[%s1456_s15 + $0x30] sm:$0xff]   ;;  %v1355_v42 = vld [vmem:[%s1456_s15 + $0x38] sm:$0xff]   ;;  %v1356_v49 = vld [vmem:[%s1456_s15 + $0x40] sm:$0xff]  }
  0x17   : > { %v394_v8 = vsel %vm393_vm1, %v1466_v3, 0.0  ;;  %v395_v9 = vsel %vm393_vm1, %v1468_v4, 0.0  ;;  %v397_v10 = vsel %vm393_vm1, %v1470_v5, 0.0  ;;  %v399_v13 = vsel %vm393_vm1, %v1473_v7, 0.0  ;;  %v1357_v56 = vld [vmem:[%s1456_s15 + $0x48] sm:$0xff]   ;;  %v1358_v63 = vld [vmem:[%s1456_s15 + $0x50] sm:$0xff]  }
  0x18   : > { %v396_v11 = vadd.f32 %v395_v9, %v394_v8  ;;  %v401_v17 = vsel %vm393_vm1, %v1481_v12, 0.0  ;;  %v403_v20 = vsel %vm393_vm1, %v1486_v16, 0.0  ;;  %v405_v24 = vsel %vm393_vm1, %v1490_v19, 0.0 }
  0x19   : > { %v1499_v26 = vunpack.c.l.bf16 %v1352_v21  ;;  %v407_v27 = vsel %vm393_vm1, %v1495_v23, 0.0  ;;  %v1504_v30 = vunpack.c.h.bf16 %v1352_v21  ;;  %v1508_v33 = vunpack.c.l.bf16 %v1353_v28 }
  0x1a   : > { %v398_v15 = vadd.f32 %v397_v10, %v396_v11  ;;  %v1513_v37 = vunpack.c.h.bf16 %v1353_v28  ;;  %v1517_v40 = vunpack.c.l.bf16 %v1354_v35  ;;  %v1522_v44 = vunpack.c.h.bf16 %v1354_v35  ;;  %v1359_v10 = vld [vmem:[%s1456_s15 + $0x58] sm:$0xff]   ;;  %v1361_v28 = vld [vmem:[%s1456_s15 + $0x68] sm:$0xff]  }
  0x1b   : > { %v409_v31 = vsel %vm393_vm1, %v1499_v26, 0.0  ;;  %v411_v34 = vsel %vm393_vm1, %v1504_v30, 0.0  ;;  %v413_v38 = vsel %vm393_vm1, %v1508_v33, 0.0  ;;  %v1526_v47 = vunpack.c.l.bf16 %v1355_v42 }
  0x1c   : > { %v400_v18 = vadd.f32 %v399_v13, %v398_v15  ;;  %v415_v41 = vsel %vm393_vm1, %v1513_v37, 0.0  ;;  %v417_v45 = vsel %vm393_vm1, %v1517_v40, 0.0  ;;  %v419_v48 = vsel %vm393_vm1, %v1522_v44, 0.0 }
  0x1d   : > { %v1531_v51 = vunpack.c.h.bf16 %v1355_v42  ;;  %v421_v52 = vsel %vm393_vm1, %v1526_v47, 0.0  ;;  %v1535_v54 = vunpack.c.l.bf16 %v1356_v49  ;;  %v1540_v58 = vunpack.c.h.bf16 %v1356_v49 }
  0x1e   : > { %v402_v22 = vadd.f32 %v401_v17, %v400_v18  ;;  %v1544_v61 = vunpack.c.l.bf16 %v1357_v56  ;;  %v1549_v1 = vunpack.c.h.bf16 %v1357_v56  ;;  %v1553_v8 = vunpack.c.l.bf16 %v1358_v63 }
  0x1f   : > { %v423_v55 = vsel %vm393_vm1, %v1531_v51, 0.0  ;;  %v425_v59 = vsel %vm393_vm1, %v1535_v54, 0.0  ;;  %v427_v62 = vsel %vm393_vm1, %v1540_v58, 0.0  ;;  %v1558_v13 = vunpack.c.h.bf16 %v1358_v63 }
  0x20   : > { %v404_v25 = vadd.f32 %v403_v20, %v402_v22  ;;  %v429_v2 = vsel %vm393_vm1, %v1544_v61, 0.0  ;;  %v431_v9 = vsel %vm393_vm1, %v1549_v1, 0.0  ;;  %v433_v14 = vsel %vm393_vm1, %v1553_v8, 0.0  ;;  %v1360_v20 = vld [vmem:[%s1456_s15 + $0x60] sm:$0xff]  }
  0x21   : > { %v1562_v17 = vunpack.c.l.bf16 %v1359_v10  ;;  %v435_v18 = vsel %vm393_vm1, %v1558_v13, 0.0  ;;  %v1567_v22 = vunpack.c.h.bf16 %v1359_v10  ;;  %v659_v35 = vmul.f32 %v1466_v3, %v1466_v3 }
  0x22   : > { %v406_v29 = vadd.f32 %v405_v24, %v404_v25  ;;  %v664_v56 = vmul.f32 %v1486_v16, %v1486_v16 }
  0x23   : > { %v437_v24 = vsel %vm393_vm1, %v1562_v17, 0.0 }
  0x24   : > { %v408_v32 = vadd.f32 %v407_v27, %v406_v29  ;;  %v1571_v27 = vunpack.c.l.bf16 %v1360_v20  ;;  %v439_v29 = vsel %vm393_vm1, %v1567_v22, 0.0 }
  0x26   : > { %v410_v36 = vadd.f32 %v409_v31, %v408_v32  ;;  %v1576_v31 = vunpack.c.h.bf16 %v1360_v20 }
  0x28   : > { %v412_v39 = vadd.f32 %v411_v34, %v410_v36  ;;  %v441_v34 = vsel %vm393_vm1, %v1571_v27, 0.0  ;;  %v660_v36 = vmul.f32 %v1468_v4, %v1468_v4  ;;  %v443_v42 = vsel %vm393_vm1, %v1576_v31, 0.0 }
  0x2a   : > { %v414_v43 = vadd.f32 %v413_v38, %v412_v39  ;;  %v661_v38 = vmul.f32 %v1470_v5, %v1470_v5  ;;  %v1586_v39 = vunpack.c.l.bf16 %v1361_v28  ;;  %v663_v5 = vmul.f32 %v1481_v12, %v1481_v12  ;;  %v1363_v12 = vld [vmem:[%s1456_s15 + $0x78] sm:$0xff]  }
  0x2b   : > { %v788_v49 = vsel %vm393_vm1, %v660_v36, 0.0  ;;  %v1617_v10 = vunpack.c.l.bf16 %v1363_v12  ;;  %v1365_v36 = vld [vmem:[%s1456_s15 + $0x88] sm:$0xff]  }
  0x2c   : > { %v416_v46 = vadd.f32 %v415_v41, %v414_v43  ;;  %v662_v43 = vmul.f32 %v1473_v7, %v1473_v7  ;;  %v445_v4 = vsel %vm393_vm1, %v1586_v39, 0.0 }
  0x2e   : > { %v418_v50 = vadd.f32 %v417_v45, %v416_v46  ;;  %v1592_v45 = vunpack.c.h.bf16 %v1361_v28  ;;  %v1362_v46 = vld [vmem:[%s1456_s15 + $0x70] sm:$0xff]  }
  0x30   : > { %v420_v53 = vadd.f32 %v419_v48, %v418_v50  ;;  %v787_v48 = vsel %vm393_vm1, %v659_v35, 0.0  ;;  %v790_v50 = vsel %vm393_vm1, %v661_v38, 0.0  ;;  %v447_v7 = vsel %vm393_vm1, %v1592_v45, 0.0 }
  0x32   : > { %v422_v57 = vadd.f32 %v421_v52, %v420_v53  ;;  %v789_v53 = vadd.f32 %v788_v49, %v787_v48  ;;  %v670_v48 = vmul.f32 %v1513_v37, %v1513_v37 }
  0x34   : > { %v424_v60 = vadd.f32 %v423_v55, %v422_v57  ;;  %v1602_v55 = vunpack.c.l.bf16 %v1362_v46  ;;  %v792_v57 = vsel %vm393_vm1, %v662_v43, 0.0  ;;  %v669_v43 = vmul.f32 %v1508_v33, %v1508_v33 }
  0x36   : > { %v426_v0 = vadd.f32 %v425_v59, %v424_v60  ;;  %v791_v60 = vadd.f32 %v790_v50, %v789_v53  ;;  %v449_v63 = vsel %vm393_vm1, %v1602_v55, 0.0  ;;  %v1366_v50 = vld [vmem:[%s1456_s15 + $0x90] sm:$0xff]  }
  0x38   : > { %v428_v6 = vadd.f32 %v427_v62, %v426_v0  ;;  %v1610_v62 = vunpack.c.h.bf16 %v1362_v46  ;;  %v665_v0 = vmul.f32 %v1490_v19, %v1490_v19  ;;  %v453_v19 = vsel %vm393_vm1, %v1617_v10, 0.0 }
  0x3a   : > { %v430_v11 = vadd.f32 %v429_v2, %v428_v6  ;;  %v794_v2 = vsel %vm393_vm1, %v663_v5, 0.0  ;;  %v451_v16 = vsel %vm393_vm1, %v1610_v62, 0.0  ;;  %v1647_v5 = vunpack.c.l.bf16 %v1365_v36 }
  0x3c   : > { %v432_v15 = vadd.f32 %v431_v9, %v430_v11  ;;  %v793_v9 = vadd.f32 %v792_v57, %v791_v60  ;;  %v666_v11 = vmul.f32 %v1495_v23, %v1495_v23  ;;  %v461_v33 = vsel %vm393_vm1, %v1647_v5, 0.0 }
  0x3d   : > { %v806_v57 = vsel %vm393_vm1, %v669_v43, 0.0  ;;  %v1662_v60 = vunpack.c.l.bf16 %v1366_v50 }
  0x3e   : > { %v434_v21 = vadd.f32 %v433_v14, %v432_v15  ;;  %v796_v14 = vsel %vm393_vm1, %v664_v56, 0.0  ;;  %v1364_v15 = vld [vmem:[%s1456_s15 + $0x80] sm:$0xff]   ;;  %v795_v20 = vadd.f32 %v794_v2, %v793_v9  ;;  %v800_v35 = vsel %vm393_vm1, %v666_v11, 0.0  ;;  %v1367_v2 = vld [vmem:[%s1456_s15 + $0x98] sm:$0xff]  }
  0x3f   : > { %v671_v56 = vmul.f32 %v1517_v40, %v1517_v40  ;;  %v465_v40 = vsel %vm393_vm1, %v1662_v60, 0.0  ;;  %v673_v11 = vmul.f32 %v1526_v47, %v1526_v47 }
  0x40   : > { %v436_v25 = vadd.f32 %v435_v18, %v434_v21  ;;  %v1625_v21 = vunpack.c.h.bf16 %v1363_v12 }
  0x42   : > { %v438_v32 = vadd.f32 %v437_v24, %v436_v25  ;;  %v667_v24 = vmul.f32 %v1499_v26, %v1499_v26  ;;  %v798_v25 = vsel %vm393_vm1, %v665_v0, 0.0  ;;  %v455_v23 = vsel %vm393_vm1, %v1625_v21, 0.0 }
  0x43   : > { %v808_v0 = vsel %vm393_vm1, %v670_v48, 0.0  ;;  %v677_v48 = vmul.f32 %v1544_v61, %v1544_v61 }
  0x44   : > { %v440_v41 = vadd.f32 %v439_v29, %v438_v32  ;;  %v797_v29 = vadd.f32 %v796_v14, %v795_v20  ;;  %v1632_v32 = vunpack.c.l.bf16 %v1364_v15  ;;  %v802_v46 = vsel %vm393_vm1, %v667_v24, 0.0 }
  0x45   : > { %v810_v14 = vsel %vm393_vm1, %v671_v56, 0.0  ;;  %v1677_v20 = vunpack.c.l.bf16 %v1367_v2 }
  0x46   : > { %v442_v3 = vadd.f32 %v441_v34, %v440_v41  ;;  %v668_v34 = vmul.f32 %v1504_v30, %v1504_v30  ;;  %v799_v41 = vadd.f32 %v798_v25, %v797_v29  ;;  %v457_v26 = vsel %vm393_vm1, %v1632_v32, 0.0  ;;  %v1368_v25 = vld [vmem:[%s1456_s15 + $0xa0] sm:$0xff]  }
  0x47   : > { %v469_v47 = vsel %vm393_vm1, %v1677_v20, 0.0 }
  0x48   : > { %v444_v52 = vadd.f32 %v443_v42, %v442_v3  ;;  %v1640_v42 = vunpack.c.h.bf16 %v1364_v15  ;;  %v804_v49 = vsel %vm393_vm1, %v668_v34, 0.0  ;;  %v675_v34 = vmul.f32 %v1535_v54, %v1535_v54 }
  0x4a   : > { %v446_v59 = vadd.f32 %v445_v4, %v444_v52  ;;  %v801_v4 = vadd.f32 %v800_v35, %v799_v41  ;;  %v459_v30 = vsel %vm393_vm1, %v1640_v42, 0.0  ;;  %v814_v35 = vsel %vm393_vm1, %v673_v11, 0.0 }
  0x4b   : > { %v1692_v41 = vunpack.c.l.bf16 %v1368_v25 }
  0x4c   : > { %v448_v6 = vadd.f32 %v447_v7, %v446_v59  ;;  %v803_v53 = vadd.f32 %v802_v46, %v801_v4  ;;  %v1655_v7 = vunpack.c.h.bf16 %v1365_v36  ;;  %v1369_v46 = vld [vmem:[%s1456_s15 + $0xa8] sm:$0xff]  }
  0x4d   : > { %v473_v54 = vsel %vm393_vm1, %v1692_v41, 0.0 }
  0x4e   : > { %v450_v18 = vadd.f32 %v449_v63, %v448_v6  ;;  %v805_v59 = vadd.f32 %v804_v49, %v803_v53  ;;  %v463_v37 = vsel %vm393_vm1, %v1655_v7, 0.0  ;;  %v672_v63 = vmul.f32 %v1522_v44, %v1522_v44 }
  0x4f   : > { %v818_v49 = vsel %vm393_vm1, %v675_v34, 0.0  ;;  %v1707_v53 = vunpack.c.l.bf16 %v1369_v46 }
  0x50   : > { %v452_v28 = vadd.f32 %v451_v16, %v450_v18  ;;  %v807_v9 = vadd.f32 %v806_v57, %v805_v59  ;;  %v1670_v16 = vunpack.c.h.bf16 %v1366_v50  ;;  %v812_v24 = vsel %vm393_vm1, %v672_v63, 0.0  ;;  %v1370_v57 = vld [vmem:[%s1456_s15 + $0xb0] sm:$0xff]  }
  0x51   : > { %v477_v61 = vsel %vm393_vm1, %v1707_v53, 0.0  ;;  %v679_v63 = vmul.f32 %v1553_v8, %v1553_v8 }
  0x52   : > { %v454_v38 = vadd.f32 %v453_v19, %v452_v28  ;;  %v809_v18 = vadd.f32 %v808_v0, %v807_v9  ;;  %v467_v44 = vsel %vm393_vm1, %v1670_v16, 0.0  ;;  %v674_v19 = vmul.f32 %v1531_v51, %v1531_v51 }
  0x53   : > { %v822_v0 = vsel %vm393_vm1, %v677_v48, 0.0  ;;  %v1722_v9 = vunpack.c.l.bf16 %v1370_v57 }
  0x54   : > { %v456_v3 = vadd.f32 %v455_v23, %v454_v38  ;;  %v811_v29 = vadd.f32 %v810_v14, %v809_v18  ;;  %v1685_v23 = vunpack.c.h.bf16 %v1367_v2  ;;  %v816_v43 = vsel %vm393_vm1, %v674_v19, 0.0  ;;  %v1371_v14 = vld [vmem:[%s1456_s15 + $0xb8] sm:$0xff]  }
  0x55   : > { %v481_v8 = vsel %vm393_vm1, %v1722_v9, 0.0  ;;  %v681_v19 = vmul.f32 %v1562_v17, %v1562_v17 }
  0x56   : > { %v458_v52 = vadd.f32 %v457_v26, %v456_v3  ;;  %v813_v38 = vadd.f32 %v812_v24, %v811_v29  ;;  %v471_v51 = vsel %vm393_vm1, %v1685_v23, 0.0  ;;  %v676_v26 = vmul.f32 %v1540_v58, %v1540_v58 }
  0x57   : > { %v826_v24 = vsel %vm393_vm1, %v679_v63, 0.0  ;;  %v1737_v29 = vunpack.c.l.bf16 %v1371_v14 }
  0x58   : > { %v460_v12 = vadd.f32 %v459_v30, %v458_v52  ;;  %v815_v4 = vadd.f32 %v814_v35, %v813_v38  ;;  %v1700_v30 = vunpack.c.h.bf16 %v1368_v25  ;;  %v820_v56 = vsel %vm393_vm1, %v676_v26, 0.0  ;;  %v1372_v35 = vld [vmem:[%s1456_s15 + $0xc0] sm:$0xff]  }
  0x59   : > { %v485_v17 = vsel %vm393_vm1, %v1737_v29, 0.0  ;;  %v683_v26 = vmul.f32 %v1571_v27, %v1571_v27 }
  0x5a   : > { %v462_v6 = vadd.f32 %v461_v33, %v460_v12  ;;  %v817_v52 = vadd.f32 %v816_v43, %v815_v4  ;;  %v475_v58 = vsel %vm393_vm1, %v1700_v30, 0.0  ;;  %v678_v33 = vmul.f32 %v1549_v1, %v1549_v1 }
  0x5b   : > { %v830_v43 = vsel %vm393_vm1, %v681_v19, 0.0  ;;  %v1752_v4 = vunpack.c.l.bf16 %v1372_v35 }
  0x5c   : > { %v464_v15 = vadd.f32 %v463_v37, %v462_v6  ;;  %v819_v59 = vadd.f32 %v818_v49, %v817_v52  ;;  %v1715_v37 = vunpack.c.h.bf16 %v1369_v46  ;;  %v824_v11 = vsel %vm393_vm1, %v678_v33, 0.0  ;;  %v1373_v49 = vld [vmem:[%s1456_s15 + $0xc8] sm:$0xff]  }
  0x5d   : > { %v489_v27 = vsel %vm393_vm1, %v1752_v4, 0.0  ;;  %v685_v33 = vmul.f32 %v1586_v39, %v1586_v39 }
  0x5e   : > { %v466_v28 = vadd.f32 %v465_v40, %v464_v15  ;;  %v821_v6 = vadd.f32 %v820_v56, %v819_v59  ;;  %v479_v1 = vsel %vm393_vm1, %v1715_v37, 0.0  ;;  %v680_v40 = vmul.f32 %v1558_v13, %v1558_v13 }
  0x5f   : > { %v834_v56 = vsel %vm393_vm1, %v683_v26, 0.0  ;;  %v1767_v59 = vunpack.c.l.bf16 %v1373_v49 }
  0x60   : > { %v468_v36 = vadd.f32 %v467_v44, %v466_v28  ;;  %v823_v18 = vadd.f32 %v822_v0, %v821_v6  ;;  %v1730_v44 = vunpack.c.h.bf16 %v1370_v57  ;;  %v828_v34 = vsel %vm393_vm1, %v680_v40, 0.0  ;;  %v1374_v0 = vld [vmem:[%s1456_s15 + $0xd0] sm:$0xff]  }
  0x61   : > { %v493_v39 = vsel %vm393_vm1, %v1767_v59, 0.0  ;;  %v687_v40 = vmul.f32 %v1602_v55, %v1602_v55 }
  0x62   : > { %v470_v3 = vadd.f32 %v469_v47, %v468_v36  ;;  %v825_v28 = vadd.f32 %v824_v11, %v823_v18  ;;  %v483_v13 = vsel %vm393_vm1, %v1730_v44, 0.0  ;;  %v682_v47 = vmul.f32 %v1567_v22, %v1567_v22 }
  0x63   : > { %v838_v11 = vsel %vm393_vm1, %v685_v33, 0.0  ;;  %v1782_v18 = vunpack.c.l.bf16 %v1374_v0 }
  0x64   : > { %v472_v50 = vadd.f32 %v471_v51, %v470_v3  ;;  %v827_v38 = vadd.f32 %v826_v24, %v825_v28  ;;  %v1745_v51 = vunpack.c.h.bf16 %v1371_v14  ;;  %v832_v48 = vsel %vm393_vm1, %v682_v47, 0.0  ;;  %v1375_v24 = vld [vmem:[%s1456_s15 + $0xd8] sm:$0xff]  }
  0x65   : > { %v497_v55 = vsel %vm393_vm1, %v1782_v18, 0.0  ;;  %v689_v47 = vmul.f32 %v1617_v10, %v1617_v10 }
  0x66   : > { %v474_v12 = vadd.f32 %v473_v54, %v472_v50  ;;  %v829_v3 = vadd.f32 %v828_v34, %v827_v38  ;;  %v487_v22 = vsel %vm393_vm1, %v1745_v51, 0.0  ;;  %v684_v54 = vmul.f32 %v1576_v31, %v1576_v31 }
  0x67   : > { %v842_v34 = vsel %vm393_vm1, %v687_v40, 0.0  ;;  %v1797_v38 = vunpack.c.l.bf16 %v1375_v24 }
  0x68   : > { %v476_v2 = vadd.f32 %v475_v58, %v474_v12  ;;  %v831_v52 = vadd.f32 %v830_v43, %v829_v3  ;;  %v1760_v58 = vunpack.c.h.bf16 %v1372_v35  ;;  %v836_v63 = vsel %vm393_vm1, %v684_v54, 0.0  ;;  %v1376_v43 = vld [vmem:[%s1456_s15 + $0xe0] sm:$0xff]  }
  0x69   : > { %v501_v10 = vsel %vm393_vm1, %v1797_v38, 0.0  ;;  %v691_v54 = vmul.f32 %v1632_v32, %v1632_v32 }
  0x6a   : > { %v478_v15 = vadd.f32 %v477_v61, %v476_v2  ;;  %v833_v12 = vadd.f32 %v832_v48, %v831_v52  ;;  %v491_v31 = vsel %vm393_vm1, %v1760_v58, 0.0  ;;  %v686_v61 = vmul.f32 %v1592_v45, %v1592_v45 }
  0x6b   : > { %v846_v48 = vsel %vm393_vm1, %v689_v47, 0.0  ;;  %v1812_v52 = vunpack.c.l.bf16 %v1376_v43 }
  0x6c   : > { %v480_v25 = vadd.f32 %v479_v1, %v478_v15  ;;  %v835_v6 = vadd.f32 %v834_v56, %v833_v12  ;;  %v1775_v1 = vunpack.c.h.bf16 %v1373_v49  ;;  %v840_v19 = vsel %vm393_vm1, %v686_v61, 0.0  ;;  %v1377_v56 = vld [vmem:[%s1456_s15 + $0xe8] sm:$0xff]  }
  0x6d   : > { %v505_v32 = vsel %vm393_vm1, %v1812_v52, 0.0  ;;  %v693_v61 = vmul.f32 %v1647_v5, %v1647_v5 }
  0x6e   : > { %v482_v36 = vadd.f32 %v481_v8, %v480_v25  ;;  %v837_v15 = vadd.f32 %v836_v63, %v835_v6  ;;  %v495_v45 = vsel %vm393_vm1, %v1775_v1, 0.0  ;;  %v688_v8 = vmul.f32 %v1610_v62, %v1610_v62 }
  0x6f   : > { %v850_v63 = vsel %vm393_vm1, %v691_v54, 0.0  ;;  %v1827_v6 = vunpack.c.l.bf16 %v1377_v56 }
  0x70   : > { %v484_v46 = vadd.f32 %v483_v13, %v482_v36  ;;  %v839_v28 = vadd.f32 %v838_v11, %v837_v15  ;;  %v1790_v13 = vunpack.c.h.bf16 %v1374_v0  ;;  %v844_v26 = vsel %vm393_vm1, %v688_v8, 0.0  ;;  %v1378_v11 = vld [vmem:[%s1456_s15 + $0xf0] sm:$0xff]  }
  0x71   : > { %v509_v5 = vsel %vm393_vm1, %v1827_v6, 0.0  ;;  %v695_v8 = vmul.f32 %v1662_v60, %v1662_v60 }
  0x72   : > { %v486_v50 = vadd.f32 %v485_v17, %v484_v46  ;;  %v841_v36 = vadd.f32 %v840_v19, %v839_v28  ;;  %v499_v62 = vsel %vm393_vm1, %v1790_v13, 0.0  ;;  %v690_v17 = vmul.f32 %v1625_v21, %v1625_v21 }
  0x73   : > { %v854_v19 = vsel %vm393_vm1, %v693_v61, 0.0  ;;  %v1842_v28 = vunpack.c.l.bf16 %v1378_v11 }
  0x74   : > { %v488_v57 = vadd.f32 %v487_v22, %v486_v50  ;;  %v843_v3 = vadd.f32 %v842_v34, %v841_v36  ;;  %v1805_v22 = vunpack.c.h.bf16 %v1375_v24  ;;  %v848_v33 = vsel %vm393_vm1, %v690_v17, 0.0  ;;  %v1379_v34 = vld [vmem:[%s1456_s15 + $0xf8] sm:$0xff]  }
  0x75   : > { %v513_v60 = vsel %vm393_vm1, %v1842_v28, 0.0  ;;  %v697_v17 = vmul.f32 %v1677_v20, %v1677_v20 }
  0x76   : > { %v490_v2 = vadd.f32 %v489_v27, %v488_v57  ;;  %v845_v50 = vadd.f32 %v844_v26, %v843_v3  ;;  %v503_v21 = vsel %vm393_vm1, %v1805_v22, 0.0  ;;  %v692_v27 = vmul.f32 %v1640_v42, %v1640_v42 }
  0x77   : > { %v858_v26 = vsel %vm393_vm1, %v695_v8, 0.0  ;;  %v1857_v3 = vunpack.c.l.bf16 %v1379_v34 }
  0x78   : > { %v492_v14 = vadd.f32 %v491_v31, %v490_v2  ;;  %v847_v12 = vadd.f32 %v846_v48, %v845_v50  ;;  %v1820_v31 = vunpack.c.h.bf16 %v1376_v43  ;;  %v852_v40 = vsel %vm393_vm1, %v692_v27, 0.0  ;;  %v1380_v48 = vld [vmem:[%s1456_s15 + $0x100] sm:$0xff]  }
  0x79   : > { %v517_v20 = vsel %vm393_vm1, %v1857_v3, 0.0  ;;  %v699_v27 = vmul.f32 %v1692_v41, %v1692_v41 }
  0x7a   : > { %v494_v25 = vadd.f32 %v493_v39, %v492_v14  ;;  %v849_v2 = vadd.f32 %v848_v33, %v847_v12  ;;  %v507_v42 = vsel %vm393_vm1, %v1820_v31, 0.0  ;;  %v694_v39 = vmul.f32 %v1655_v7, %v1655_v7 }
  0x7b   : > { %v862_v33 = vsel %vm393_vm1, %v697_v17, 0.0  ;;  %v1872_v12 = vunpack.c.l.bf16 %v1380_v48 }
  0x7c   : > { %v496_v35 = vadd.f32 %v495_v45, %v494_v25  ;;  %v851_v15 = vadd.f32 %v850_v63, %v849_v2  ;;  %v1835_v45 = vunpack.c.h.bf16 %v1377_v56  ;;  %v856_v47 = vsel %vm393_vm1, %v694_v39, 0.0  ;;  %v1381_v63 = vld [vmem:[%s1456_s15 + $0x108] sm:$0xff]  }
  0x7d   : > { %v521_v41 = vsel %vm393_vm1, %v1872_v12, 0.0  ;;  %v701_v39 = vmul.f32 %v1707_v53, %v1707_v53 }
  0x7e   : > { %v498_v46 = vadd.f32 %v497_v55, %v496_v35  ;;  %v853_v25 = vadd.f32 %v852_v40, %v851_v15  ;;  %v511_v7 = vsel %vm393_vm1, %v1835_v45, 0.0  ;;  %v696_v55 = vmul.f32 %v1670_v16, %v1670_v16 }
  0x7f   : > { %v866_v40 = vsel %vm393_vm1, %v699_v27, 0.0  ;;  %v1887_v15 = vunpack.c.l.bf16 %v1381_v63  ;;  %v1384_v27 = vld [vmem:[%s1456_s15 + $0x120] sm:$0xff]  }
  0x80   : > { %v500_v49 = vadd.f32 %v499_v62, %v498_v46  ;;  %v855_v36 = vadd.f32 %v854_v19, %v853_v25  ;;  %v1850_v62 = vunpack.c.h.bf16 %v1378_v11  ;;  %v860_v54 = vsel %vm393_vm1, %v696_v55, 0.0  ;;  %v1382_v19 = vld [vmem:[%s1456_s15 + $0x110] sm:$0xff]  }
  0x81   : > { %v525_v53 = vsel %vm393_vm1, %v1887_v15, 0.0  ;;  %v703_v55 = vmul.f32 %v1722_v9, %v1722_v9 }
  0x82   : > { %v502_v57 = vadd.f32 %v501_v10, %v500_v49  ;;  %v857_v46 = vadd.f32 %v856_v47, %v855_v36  ;;  %v515_v16 = vsel %vm393_vm1, %v1850_v62, 0.0  ;;  %v698_v10 = vmul.f32 %v1685_v23, %v1685_v23 }
  0x83   : > { %v870_v47 = vsel %vm393_vm1, %v701_v39, 0.0  ;;  %v1902_v36 = vunpack.c.l.bf16 %v1382_v19 }
  0x84   : > { %v504_v0 = vadd.f32 %v503_v21, %v502_v57  ;;  %v859_v50 = vadd.f32 %v858_v26, %v857_v46  ;;  %v1865_v21 = vunpack.c.h.bf16 %v1379_v34  ;;  %v864_v61 = vsel %vm393_vm1, %v698_v10, 0.0  ;;  %v1383_v26 = vld [vmem:[%s1456_s15 + $0x118] sm:$0xff]  }
  0x85   : > { %v529_v9 = vsel %vm393_vm1, %v1902_v36, 0.0  ;;  %v705_v10 = vmul.f32 %v1737_v29, %v1737_v29 }
  0x86   : > { %v506_v14 = vadd.f32 %v505_v32, %v504_v0  ;;  %v861_v57 = vadd.f32 %v860_v54, %v859_v50  ;;  %v519_v23 = vsel %vm393_vm1, %v1865_v21, 0.0  ;;  %v700_v32 = vmul.f32 %v1700_v30, %v1700_v30 }
  0x87   : > { %v874_v54 = vsel %vm393_vm1, %v703_v55, 0.0  ;;  %v1917_v50 = vunpack.c.l.bf16 %v1383_v26 }
  0x88   : > { %v508_v24 = vadd.f32 %v507_v42, %v506_v14  ;;  %v863_v2 = vadd.f32 %v862_v33, %v861_v57  ;;  %v1880_v42 = vunpack.c.h.bf16 %v1380_v48  ;;  %v868_v8 = vsel %vm393_vm1, %v700_v32, 0.0 }
  0x89   : > { %v533_v29 = vsel %vm393_vm1, %v1917_v50, 0.0  ;;  %v878_v32 = vsel %vm393_vm1, %v705_v10, 0.0 }
  0x8a   : > { %v510_v35 = vadd.f32 %v509_v5, %v508_v24  ;;  %v865_v14 = vadd.f32 %v864_v61, %v863_v2  ;;  %v523_v30 = vsel %vm393_vm1, %v1880_v42, 0.0  ;;  %v702_v5 = vmul.f32 %v1715_v37, %v1715_v37 }
  0x8b   : > { %v1932_v2 = vunpack.c.l.bf16 %v1384_v27 }
  0x8c   : > { %v512_v43 = vadd.f32 %v511_v7, %v510_v35  ;;  %v867_v25 = vadd.f32 %v866_v40, %v865_v14  ;;  %v1895_v7 = vunpack.c.h.bf16 %v1381_v63  ;;  %v872_v17 = vsel %vm393_vm1, %v702_v5, 0.0 }
  0x8d   : > { %v707_v63 = vmul.f32 %v1752_v4, %v1752_v4  ;;  %v708_v40 = vmul.f32 %v1760_v58, %v1760_v58  ;;  %v537_v4 = vsel %vm393_vm1, %v1932_v2, 0.0 }
  0x8e   : > { %v514_v49 = vadd.f32 %v513_v60, %v512_v43  ;;  %v869_v35 = vadd.f32 %v868_v8, %v867_v25  ;;  %v527_v37 = vsel %vm393_vm1, %v1895_v7, 0.0  ;;  %v704_v60 = vmul.f32 %v1730_v44, %v1730_v44 }
  0x8f   : > { %v709_v8 = vmul.f32 %v1767_v59, %v1767_v59 }
  0x90   : > { %v516_v56 = vadd.f32 %v515_v16, %v514_v49  ;;  %v871_v46 = vadd.f32 %v870_v47, %v869_v35  ;;  %v1910_v16 = vunpack.c.h.bf16 %v1382_v19  ;;  %v882_v19 = vsel %vm393_vm1, %v707_v63, 0.0 }
  0x91   : > { %v710_v47 = vmul.f32 %v1775_v1, %v1775_v1 }
  0x92   : > { %v518_v0 = vadd.f32 %v517_v20, %v516_v56  ;;  %v873_v49 = vadd.f32 %v872_v17, %v871_v46  ;;  %v531_v44 = vsel %vm393_vm1, %v1910_v16, 0.0  ;;  %v876_v20 = vsel %vm393_vm1, %v704_v60, 0.0 }
  0x93   : > { %v706_v56 = vmul.f32 %v1745_v51, %v1745_v51  ;;  %v1385_v51 = vld [vmem:[%s1456_s15 + $0x128] sm:$0xff]   ;;  %v711_v17 = vmul.f32 %v1782_v18, %v1782_v18 }
  0x94   : > { %v520_v11 = vadd.f32 %v519_v23, %v518_v0  ;;  %v875_v57 = vadd.f32 %v874_v54, %v873_v49  ;;  %v1925_v23 = vunpack.c.h.bf16 %v1383_v26  ;;  %v1955_v35 = vunpack.c.h.bf16 %v1385_v51 }
  0x95   : > { %v880_v14 = vsel %vm393_vm1, %v706_v56, 0.0  ;;  %v886_v26 = vsel %vm393_vm1, %v709_v8, 0.0  ;;  %v712_v54 = vmul.f32 %v1790_v13, %v1790_v13  ;;  %v716_v8 = vmul.f32 %v1820_v31, %v1820_v31 }
  0x96   : > { %v522_v24 = vadd.f32 %v521_v41, %v520_v11  ;;  %v877_v0 = vadd.f32 %v876_v20, %v875_v57  ;;  %v535_v41 = vsel %vm393_vm1, %v1925_v23, 0.0  ;;  %v543_v1 = vsel %vm393_vm1, %v1955_v35, 0.0 }
  0x97   : > { %v892_v63 = vsel %vm393_vm1, %v712_v54, 0.0 }
  0x98   : > { %v524_v34 = vadd.f32 %v523_v30, %v522_v24  ;;  %v879_v11 = vadd.f32 %v878_v32, %v877_v0  ;;  %v1940_v30 = vunpack.c.h.bf16 %v1384_v27  ;;  %v1947_v24 = vunpack.c.l.bf16 %v1385_v51 }
  0x99   : > { %v713_v27 = vmul.f32 %v1797_v38, %v1797_v38 }
  0x9a   : > { %v526_v43 = vadd.f32 %v525_v53, %v524_v34  ;;  %v539_v58 = vsel %vm393_vm1, %v1940_v30, 0.0  ;;  %v881_v25 = vadd.f32 %v880_v14, %v879_v11  ;;  %v1386_v53 = vld [vmem:[%s1456_s15 + $0x130] sm:$0xff]   ;;  %v884_v34 = vsel %vm393_vm1, %v708_v40, 0.0 }
  0x9b   : > { %v541_v59 = vsel %vm393_vm1, %v1947_v24, 0.0  ;;  %v1970_v49 = vunpack.c.h.bf16 %v1386_v53  ;;  %v894_v40 = vsel %vm393_vm1, %v713_v27, 0.0  ;;  %v720_v27 = vmul.f32 %v1850_v62, %v1850_v62 }
  0x9c   : > { %v528_v48 = vadd.f32 %v527_v37, %v526_v43  ;;  %v883_v37 = vadd.f32 %v882_v19, %v881_v25  ;;  %v1962_v43 = vunpack.c.l.bf16 %v1386_v53 }
  0x9d   : > { %v547_v13 = vsel %vm393_vm1, %v1970_v49, 0.0 }
  0x9e   : > { %v530_v33 = vadd.f32 %v529_v9, %v528_v48  ;;  %v885_v46 = vadd.f32 %v884_v34, %v883_v37  ;;  %v1387_v9 = vld [vmem:[%s1456_s15 + $0x138] sm:$0xff]   ;;  %v888_v48 = vsel %vm393_vm1, %v710_v47, 0.0  ;;  %v545_v18 = vsel %vm393_vm1, %v1962_v43, 0.0  ;;  %v1390_v37 = vld [vmem:[%s1456_s15 + $0x150] sm:$0xff]  }
  0x9f   : > { %v1977_v56 = vunpack.c.l.bf16 %v1387_v9  ;;  %v1985_v0 = vunpack.c.h.bf16 %v1387_v9 }
  0xa0   : > { %v532_v61 = vadd.f32 %v531_v44, %v530_v33  ;;  %v887_v44 = vadd.f32 %v886_v26, %v885_v46  ;;  %v890_v33 = vsel %vm393_vm1, %v711_v17, 0.0  ;;  %v718_v17 = vmul.f32 %v1835_v45, %v1835_v45 }
  0xa1   : > { %v549_v38 = vsel %vm393_vm1, %v1977_v56, 0.0  ;;  %v900_v26 = vsel %vm393_vm1, %v716_v8, 0.0 }
  0xa2   : > { %v534_v39 = vadd.f32 %v533_v29, %v532_v61  ;;  %v889_v57 = vadd.f32 %v888_v48, %v887_v44  ;;  %v1388_v29 = vld [vmem:[%s1456_s15 + $0x140] sm:$0xff]   ;;  %v714_v61 = vmul.f32 %v1805_v22, %v1805_v22  ;;  %v551_v22 = vsel %vm393_vm1, %v1985_v0, 0.0  ;;  %v1391_v44 = vld [vmem:[%s1456_s15 + $0x158] sm:$0xff]  }
  0xa3   : > { %v1992_v11 = vunpack.c.l.bf16 %v1388_v29  ;;  %v2022_v48 = vunpack.c.l.bf16 %v1390_v37 }
  0xa4   : > { %v536_v5 = vadd.f32 %v535_v41, %v534_v39  ;;  %v891_v41 = vadd.f32 %v890_v33, %v889_v57  ;;  %v715_v39 = vmul.f32 %v1812_v52, %v1812_v52  ;;  %v896_v19 = vsel %vm393_vm1, %v714_v61, 0.0 }
  0xa5   : > { %v553_v52 = vsel %vm393_vm1, %v1992_v11, 0.0  ;;  %v904_v33 = vsel %vm393_vm1, %v718_v17, 0.0 }
  0xa6   : > { %v538_v55 = vadd.f32 %v537_v4, %v536_v5  ;;  %v893_v14 = vadd.f32 %v892_v63, %v891_v41  ;;  %v1389_v4 = vld [vmem:[%s1456_s15 + $0x148] sm:$0xff]   ;;  %v898_v47 = vsel %vm393_vm1, %v715_v39, 0.0  ;;  %v2037_v63 = vunpack.c.l.bf16 %v1391_v44  ;;  %v1392_v41 = vld [vmem:[%s1456_s15 + $0x160] sm:$0xff]  }
  0xa7   : > { %v2007_v34 = vunpack.c.l.bf16 %v1389_v4  ;;  %v722_v39 = vmul.f32 %v1865_v21, %v1865_v21 }
  0xa8   : > { %v540_v60 = vadd.f32 %v539_v58, %v538_v55  ;;  %v2000_v58 = vunpack.c.h.bf16 %v1388_v29  ;;  %v895_v25 = vadd.f32 %v894_v40, %v893_v14  ;;  %v717_v55 = vmul.f32 %v1827_v6, %v1827_v6 }
  0xa9   : > { %v557_v6 = vsel %vm393_vm1, %v2007_v34, 0.0  ;;  %v908_v40 = vsel %vm393_vm1, %v720_v27, 0.0 }
  0xaa   : > { %v542_v10 = vadd.f32 %v541_v59, %v540_v60  ;;  %v555_v31 = vsel %vm393_vm1, %v2000_v58, 0.0  ;;  %v897_v59 = vadd.f32 %v896_v19, %v895_v25  ;;  %v902_v54 = vsel %vm393_vm1, %v717_v55, 0.0  ;;  %v1393_v25 = vld [vmem:[%s1456_s15 + $0x168] sm:$0xff]  }
  0xab   : > { %v2052_v19 = vunpack.c.l.bf16 %v1392_v41  ;;  %v724_v55 = vmul.f32 %v1880_v42, %v1880_v42 }
  0xac   : > { %v544_v20 = vadd.f32 %v543_v1, %v542_v10  ;;  %v2015_v1 = vunpack.c.h.bf16 %v1389_v4  ;;  %v899_v46 = vadd.f32 %v898_v47, %v897_v59  ;;  %v719_v10 = vmul.f32 %v1842_v28, %v1842_v28 }
  0xad   : > { %v561_v28 = vsel %vm393_vm1, %v2022_v48, 0.0  ;;  %v912_v47 = vsel %vm393_vm1, %v722_v39, 0.0 }
  0xae   : > { %v546_v32 = vadd.f32 %v545_v18, %v544_v20  ;;  %v559_v45 = vsel %vm393_vm1, %v2015_v1, 0.0  ;;  %v901_v18 = vadd.f32 %v900_v26, %v899_v46  ;;  %v906_v61 = vsel %vm393_vm1, %v719_v10, 0.0  ;;  %v1394_v46 = vld [vmem:[%s1456_s15 + $0x170] sm:$0xff]  }
  0xaf   : > { %v2067_v26 = vunpack.c.l.bf16 %v1393_v25  ;;  %v726_v10 = vmul.f32 %v1895_v7, %v1895_v7 }
  0xb0   : > { %v548_v51 = vadd.f32 %v547_v13, %v546_v32  ;;  %v2030_v13 = vunpack.c.h.bf16 %v1390_v37  ;;  %v903_v57 = vadd.f32 %v902_v54, %v901_v18  ;;  %v721_v32 = vmul.f32 %v1857_v3, %v1857_v3 }
  0xb1   : > { %v565_v3 = vsel %vm393_vm1, %v2037_v63, 0.0  ;;  %v916_v54 = vsel %vm393_vm1, %v724_v55, 0.0 }
  0xb2   : > { %v550_v5 = vadd.f32 %v549_v38, %v548_v51  ;;  %v563_v62 = vsel %vm393_vm1, %v2030_v13, 0.0  ;;  %v905_v38 = vadd.f32 %v904_v33, %v903_v57  ;;  %v910_v8 = vsel %vm393_vm1, %v721_v32, 0.0  ;;  %v1395_v57 = vld [vmem:[%s1456_s15 + $0x178] sm:$0xff]  }
  0xb3   : > { %v2082_v33 = vunpack.c.l.bf16 %v1394_v46  ;;  %v728_v32 = vmul.f32 %v1910_v16, %v1910_v16 }
  0xb4   : > { %v552_v53 = vadd.f32 %v551_v22, %v550_v5  ;;  %v2045_v22 = vunpack.c.h.bf16 %v1391_v44  ;;  %v907_v14 = vadd.f32 %v906_v61, %v905_v38  ;;  %v723_v5 = vmul.f32 %v1872_v12, %v1872_v12 }
  0xb5   : > { %v569_v12 = vsel %vm393_vm1, %v2052_v19, 0.0  ;;  %v920_v61 = vsel %vm393_vm1, %v726_v10, 0.0 }
  0xb6   : > { %v554_v60 = vadd.f32 %v553_v52, %v552_v53  ;;  %v567_v21 = vsel %vm393_vm1, %v2045_v22, 0.0  ;;  %v909_v52 = vadd.f32 %v908_v40, %v907_v14  ;;  %v914_v17 = vsel %vm393_vm1, %v723_v5, 0.0  ;;  %v1396_v14 = vld [vmem:[%s1456_s15 + $0x180] sm:$0xff]  }
  0xb7   : > { %v2097_v40 = vunpack.c.l.bf16 %v1395_v57  ;;  %v730_v5 = vmul.f32 %v1925_v23, %v1925_v23 }
  0xb8   : > { %v556_v9 = vadd.f32 %v555_v31, %v554_v60  ;;  %v2060_v31 = vunpack.c.h.bf16 %v1392_v41  ;;  %v911_v59 = vadd.f32 %v910_v8, %v909_v52  ;;  %v725_v60 = vmul.f32 %v1887_v15, %v1887_v15 }
  0xb9   : > { %v573_v15 = vsel %vm393_vm1, %v2067_v26, 0.0  ;;  %v924_v8 = vsel %vm393_vm1, %v728_v32, 0.0 }
  0xba   : > { %v558_v20 = vadd.f32 %v557_v6, %v556_v9  ;;  %v571_v42 = vsel %vm393_vm1, %v2060_v31, 0.0  ;;  %v913_v6 = vadd.f32 %v912_v47, %v911_v59  ;;  %v918_v27 = vsel %vm393_vm1, %v725_v60, 0.0  ;;  %v1397_v59 = vld [vmem:[%s1456_s15 + $0x188] sm:$0xff]  }
  0xbb   : > { %v2112_v47 = vunpack.c.l.bf16 %v1396_v14  ;;  %v732_v60 = vmul.f32 %v1940_v30, %v1940_v30 }
  0xbc   : > { %v560_v29 = vadd.f32 %v559_v45, %v558_v20  ;;  %v2075_v45 = vunpack.c.h.bf16 %v1393_v25  ;;  %v915_v18 = vadd.f32 %v914_v17, %v913_v6  ;;  %v727_v20 = vmul.f32 %v1902_v36, %v1902_v36 }
  0xbd   : > { %v577_v36 = vsel %vm393_vm1, %v2082_v33, 0.0  ;;  %v928_v17 = vsel %vm393_vm1, %v730_v5, 0.0 }
  0xbe   : > { %v562_v51 = vadd.f32 %v561_v28, %v560_v29  ;;  %v575_v7 = vsel %vm393_vm1, %v2075_v45, 0.0  ;;  %v917_v28 = vadd.f32 %v916_v54, %v915_v18  ;;  %v922_v39 = vsel %vm393_vm1, %v727_v20, 0.0  ;;  %v1398_v18 = vld [vmem:[%s1456_s15 + $0x190] sm:$0xff]  }
  0xbf   : > { %v2127_v54 = vunpack.c.l.bf16 %v1397_v59  ;;  %v734_v20 = vmul.f32 %v1955_v35, %v1955_v35 }
  0xc0   : > { %v564_v4 = vadd.f32 %v563_v62, %v562_v51  ;;  %v2090_v62 = vunpack.c.h.bf16 %v1394_v46  ;;  %v919_v38 = vadd.f32 %v918_v27, %v917_v28  ;;  %v729_v51 = vmul.f32 %v1917_v50, %v1917_v50 }
  0xc1   : > { %v581_v50 = vsel %vm393_vm1, %v2097_v40, 0.0  ;;  %v932_v27 = vsel %vm393_vm1, %v732_v60, 0.0 }
  0xc2   : > { %v566_v53 = vadd.f32 %v565_v3, %v564_v4  ;;  %v579_v16 = vsel %vm393_vm1, %v2090_v62, 0.0  ;;  %v921_v3 = vadd.f32 %v920_v61, %v919_v38  ;;  %v926_v55 = vsel %vm393_vm1, %v729_v51, 0.0  ;;  %v1399_v38 = vld [vmem:[%s1456_s15 + $0x198] sm:$0xff]  }
  0xc3   : > { %v2142_v61 = vunpack.c.l.bf16 %v1398_v18  ;;  %v736_v51 = vmul.f32 %v1970_v49, %v1970_v49 }
  0xc4   : > { %v568_v37 = vadd.f32 %v567_v21, %v566_v53  ;;  %v2105_v21 = vunpack.c.h.bf16 %v1395_v57  ;;  %v923_v52 = vadd.f32 %v922_v39, %v921_v3  ;;  %v731_v53 = vmul.f32 %v1932_v2, %v1932_v2 }
  0xc5   : > { %v585_v2 = vsel %vm393_vm1, %v2112_v47, 0.0  ;;  %v936_v39 = vsel %vm393_vm1, %v734_v20, 0.0 }
  0xc6   : > { %v570_v9 = vadd.f32 %v569_v12, %v568_v37  ;;  %v583_v23 = vsel %vm393_vm1, %v2105_v21, 0.0  ;;  %v925_v12 = vadd.f32 %v924_v8, %v923_v52  ;;  %v930_v10 = vsel %vm393_vm1, %v731_v53, 0.0  ;;  %v1400_v52 = vld [vmem:[%s1456_s15 + $0x1a0] sm:$0xff]  }
  0xc7   : > { %v2157_v8 = vunpack.c.l.bf16 %v1399_v38  ;;  %v738_v53 = vmul.f32 %v1985_v0, %v1985_v0 }
  0xc8   : > { %v572_v44 = vadd.f32 %v571_v42, %v570_v9  ;;  %v2120_v42 = vunpack.c.h.bf16 %v1396_v14  ;;  %v927_v6 = vadd.f32 %v926_v55, %v925_v12  ;;  %v733_v9 = vmul.f32 %v1947_v24, %v1947_v24 }
  0xc9   : > { %v589_v24 = vsel %vm393_vm1, %v2127_v54, 0.0  ;;  %v940_v55 = vsel %vm393_vm1, %v736_v51, 0.0 }
  0xca   : > { %v574_v29 = vadd.f32 %v573_v15, %v572_v44  ;;  %v587_v30 = vsel %vm393_vm1, %v2120_v42, 0.0  ;;  %v929_v15 = vadd.f32 %v928_v17, %v927_v6  ;;  %v934_v32 = vsel %vm393_vm1, %v733_v9, 0.0  ;;  %v1401_v6 = vld [vmem:[%s1456_s15 + $0x1a8] sm:$0xff]  }
  0xcb   : > { %v2172_v17 = vunpack.c.l.bf16 %v1400_v52  ;;  %v740_v9 = vmul.f32 %v2000_v58, %v2000_v58 }
  0xcc   : > { %v576_v41 = vadd.f32 %v575_v7, %v574_v29  ;;  %v2135_v7 = vunpack.c.h.bf16 %v1397_v59  ;;  %v931_v28 = vadd.f32 %v930_v10, %v929_v15  ;;  %v735_v29 = vmul.f32 %v1962_v43, %v1962_v43 }
  0xcd   : > { %v593_v43 = vsel %vm393_vm1, %v2142_v61, 0.0  ;;  %v944_v10 = vsel %vm393_vm1, %v738_v53, 0.0 }
  0xce   : > { %v578_v4 = vadd.f32 %v577_v36, %v576_v41  ;;  %v591_v35 = vsel %vm393_vm1, %v2135_v7, 0.0  ;;  %v933_v36 = vadd.f32 %v932_v27, %v931_v28  ;;  %v938_v5 = vsel %vm393_vm1, %v735_v29, 0.0  ;;  %v1402_v28 = vld [vmem:[%s1456_s15 + $0x1b0] sm:$0xff]  }
  0xcf   : > { %v2187_v27 = vunpack.c.l.bf16 %v1401_v6  ;;  %v742_v29 = vmul.f32 %v2015_v1, %v2015_v1 }
  0xd0   : > { %v580_v25 = vadd.f32 %v579_v16, %v578_v4  ;;  %v2150_v16 = vunpack.c.h.bf16 %v1398_v18  ;;  %v935_v3 = vadd.f32 %v934_v32, %v933_v36  ;;  %v737_v4 = vmul.f32 %v1977_v56, %v1977_v56 }
  0xd1   : > { %v597_v56 = vsel %vm393_vm1, %v2157_v8, 0.0  ;;  %v948_v32 = vsel %vm393_vm1, %v740_v9, 0.0 }
  0xd2   : > { %v582_v37 = vadd.f32 %v581_v50, %v580_v25  ;;  %v595_v49 = vsel %vm393_vm1, %v2150_v16, 0.0  ;;  %v937_v50 = vadd.f32 %v936_v39, %v935_v3  ;;  %v942_v60 = vsel %vm393_vm1, %v737_v4, 0.0  ;;  %v1403_v3 = vld [vmem:[%s1456_s15 + $0x1b8] sm:$0xff]  }
  0xd3   : > { %v2202_v39 = vunpack.c.l.bf16 %v1402_v28  ;;  %v744_v4 = vmul.f32 %v2030_v13, %v2030_v13 }
  0xd4   : > { %v584_v46 = vadd.f32 %v583_v23, %v582_v37  ;;  %v2165_v23 = vunpack.c.h.bf16 %v1399_v38  ;;  %v939_v12 = vadd.f32 %v938_v5, %v937_v50  ;;  %v739_v37 = vmul.f32 %v1992_v11, %v1992_v11 }
  0xd5   : > { %v601_v11 = vsel %vm393_vm1, %v2172_v17, 0.0  ;;  %v952_v5 = vsel %vm393_vm1, %v742_v29, 0.0 }
  0xd6   : > { %v586_v44 = vadd.f32 %v585_v2, %v584_v46  ;;  %v599_v0 = vsel %vm393_vm1, %v2165_v23, 0.0  ;;  %v941_v2 = vadd.f32 %v940_v55, %v939_v12  ;;  %v946_v20 = vsel %vm393_vm1, %v739_v37, 0.0  ;;  %v1404_v12 = vld [vmem:[%s1456_s15 + $0x1c0] sm:$0xff]  }
  0xd7   : > { %v2217_v55 = vunpack.c.l.bf16 %v1403_v3  ;;  %v746_v37 = vmul.f32 %v2045_v22, %v2045_v22 }
  0xd8   : > { %v588_v57 = vadd.f32 %v587_v30, %v586_v44  ;;  %v2180_v30 = vunpack.c.h.bf16 %v1400_v52  ;;  %v943_v15 = vadd.f32 %v942_v60, %v941_v2  ;;  %v741_v44 = vmul.f32 %v2007_v34, %v2007_v34 }
  0xd9   : > { %v605_v34 = vsel %vm393_vm1, %v2187_v27, 0.0  ;;  %v956_v60 = vsel %vm393_vm1, %v744_v4, 0.0 }
  0xda   : > { %v590_v41 = vadd.f32 %v589_v24, %v588_v57  ;;  %v603_v58 = vsel %vm393_vm1, %v2180_v30, 0.0  ;;  %v945_v24 = vadd.f32 %v944_v10, %v943_v15  ;;  %v950_v51 = vsel %vm393_vm1, %v741_v44, 0.0  ;;  %v1405_v15 = vld [vmem:[%s1456_s15 + $0x1c8] sm:$0xff]  }
  0xdb   : > { %v2232_v10 = vunpack.c.l.bf16 %v1404_v12  ;;  %v748_v44 = vmul.f32 %v2060_v31, %v2060_v31 }
  0xdc   : > { %v592_v14 = vadd.f32 %v591_v35, %v590_v41  ;;  %v2195_v35 = vunpack.c.h.bf16 %v1401_v6  ;;  %v947_v36 = vadd.f32 %v946_v20, %v945_v24  ;;  %v743_v41 = vmul.f32 %v2022_v48, %v2022_v48 }
  0xdd   : > { %v609_v48 = vsel %vm393_vm1, %v2202_v39, 0.0  ;;  %v960_v20 = vsel %vm393_vm1, %v746_v37, 0.0 }
  0xde   : > { %v594_v25 = vadd.f32 %v593_v43, %v592_v14  ;;  %v607_v1 = vsel %vm393_vm1, %v2195_v35, 0.0  ;;  %v949_v43 = vadd.f32 %v948_v32, %v947_v36  ;;  %v954_v53 = vsel %vm393_vm1, %v743_v41, 0.0  ;;  %v1406_v36 = vld [vmem:[%s1456_s15 + $0x1d0] sm:$0xff]  }
  0xdf   : > { %v2247_v32 = vunpack.c.l.bf16 %v1405_v15  ;;  %v750_v41 = vmul.f32 %v2075_v45, %v2075_v45 }
  0xe0   : > { %v596_v59 = vadd.f32 %v595_v49, %v594_v25  ;;  %v2210_v49 = vunpack.c.h.bf16 %v1402_v28  ;;  %v951_v50 = vadd.f32 %v950_v51, %v949_v43  ;;  %v745_v25 = vmul.f32 %v2037_v63, %v2037_v63 }
  0xe1   : > { %v613_v63 = vsel %vm393_vm1, %v2217_v55, 0.0  ;;  %v964_v51 = vsel %vm393_vm1, %v748_v44, 0.0 }
  0xe2   : > { %v598_v46 = vadd.f32 %v597_v56, %v596_v59  ;;  %v611_v13 = vsel %vm393_vm1, %v2210_v49, 0.0  ;;  %v953_v56 = vadd.f32 %v952_v5, %v951_v50  ;;  %v958_v9 = vsel %vm393_vm1, %v745_v25, 0.0  ;;  %v1407_v50 = vld [vmem:[%s1456_s15 + $0x1d8] sm:$0xff]  }
  0xe3   : > { %v2262_v5 = vunpack.c.l.bf16 %v1406_v36  ;;  %v752_v25 = vmul.f32 %v2090_v62, %v2090_v62 }
  0xe4   : > { %v600_v18 = vadd.f32 %v599_v0, %v598_v46  ;;  %v2225_v0 = vunpack.c.h.bf16 %v1403_v3  ;;  %v955_v2 = vadd.f32 %v954_v53, %v953_v56  ;;  %v747_v46 = vmul.f32 %v2052_v19, %v2052_v19 }
  0xe5   : > { %v617_v19 = vsel %vm393_vm1, %v2232_v10, 0.0  ;;  %v968_v53 = vsel %vm393_vm1, %v750_v41, 0.0 }
  0xe6   : > { %v602_v57 = vadd.f32 %v601_v11, %v600_v18  ;;  %v615_v22 = vsel %vm393_vm1, %v2225_v0, 0.0  ;;  %v957_v11 = vadd.f32 %v956_v60, %v955_v2  ;;  %v962_v29 = vsel %vm393_vm1, %v747_v46, 0.0  ;;  %v1408_v2 = vld [vmem:[%s1456_s15 + $0x1e0] sm:$0xff]  }
  0xe7   : > { %v2277_v60 = vunpack.c.l.bf16 %v1407_v50  ;;  %v754_v46 = vmul.f32 %v2105_v21, %v2105_v21 }
  0xe8   : > { %v604_v38 = vadd.f32 %v603_v58, %v602_v57  ;;  %v2240_v58 = vunpack.c.h.bf16 %v1404_v12  ;;  %v959_v24 = vadd.f32 %v958_v9, %v957_v11  ;;  %v749_v57 = vmul.f32 %v2067_v26, %v2067_v26 }
  0xe9   : > { %v621_v26 = vsel %vm393_vm1, %v2247_v32, 0.0  ;;  %v972_v9 = vsel %vm393_vm1, %v752_v25, 0.0 }
  0xea   : > { %v606_v14 = vadd.f32 %v605_v34, %v604_v38  ;;  %v619_v31 = vsel %vm393_vm1, %v2240_v58, 0.0  ;;  %v961_v34 = vadd.f32 %v960_v20, %v959_v24  ;;  %v966_v4 = vsel %vm393_vm1, %v749_v57, 0.0  ;;  %v1409_v24 = vld [vmem:[%s1456_s15 + $0x1e8] sm:$0xff]  }
  0xeb   : > { %v2292_v20 = vunpack.c.l.bf16 %v1408_v2  ;;  %v756_v57 = vmul.f32 %v2120_v42, %v2120_v42 }
  0xec   : > { %v608_v52 = vadd.f32 %v607_v1, %v606_v14  ;;  %v2255_v1 = vunpack.c.h.bf16 %v1405_v15  ;;  %v963_v43 = vadd.f32 %v962_v29, %v961_v34  ;;  %v751_v14 = vmul.f32 %v2082_v33, %v2082_v33 }
  0xed   : > { %v625_v33 = vsel %vm393_vm1, %v2262_v5, 0.0  ;;  %v976_v29 = vsel %vm393_vm1, %v754_v46, 0.0 }
  0xee   : > { %v610_v59 = vadd.f32 %v609_v48, %v608_v52  ;;  %v623_v45 = vsel %vm393_vm1, %v2255_v1, 0.0  ;;  %v965_v48 = vadd.f32 %v964_v51, %v963_v43  ;;  %v970_v37 = vsel %vm393_vm1, %v751_v14, 0.0  ;;  %v1410_v43 = vld [vmem:[%s1456_s15 + $0x1f0] sm:$0xff]  }
  0xef   : > { %v2307_v51 = vunpack.c.l.bf16 %v1409_v24  ;;  %v758_v14 = vmul.f32 %v2135_v7, %v2135_v7 }
  0xf0   : > { %v612_v6 = vadd.f32 %v611_v13, %v610_v59  ;;  %v2270_v13 = vunpack.c.h.bf16 %v1406_v36  ;;  %v967_v56 = vadd.f32 %v966_v4, %v965_v48  ;;  %v753_v59 = vmul.f32 %v2097_v40, %v2097_v40 }
  0xf1   : > { %v629_v40 = vsel %vm393_vm1, %v2277_v60, 0.0  ;;  %v980_v4 = vsel %vm393_vm1, %v756_v57, 0.0 }
  0xf2   : > { %v614_v18 = vadd.f32 %v613_v63, %v612_v6  ;;  %v627_v62 = vsel %vm393_vm1, %v2270_v13, 0.0  ;;  %v969_v63 = vadd.f32 %v968_v53, %v967_v56  ;;  %v974_v44 = vsel %vm393_vm1, %v753_v59, 0.0  ;;  %v1411_v56 = vld [vmem:[%s1456_s15 + $0x1f8] sm:$0xff]  }
  0xf3   : > { %v2322_v53 = vunpack.c.l.bf16 %v1410_v43  ;;  %v760_v59 = vmul.f32 %v2150_v16, %v2150_v16 }
  0xf4   : > { %v616_v28 = vadd.f32 %v615_v22, %v614_v18  ;;  %v2285_v22 = vunpack.c.h.bf16 %v1407_v50  ;;  %v971_v11 = vadd.f32 %v970_v37, %v969_v63  ;;  %v755_v18 = vmul.f32 %v2112_v47, %v2112_v47 }
  0xf5   : > { %v633_v47 = vsel %vm393_vm1, %v2292_v20, 0.0  ;;  %v984_v37 = vsel %vm393_vm1, %v758_v14, 0.0 }
  0xf6   : > { %v618_v38 = vadd.f32 %v617_v19, %v616_v28  ;;  %v631_v21 = vsel %vm393_vm1, %v2285_v22, 0.0  ;;  %v973_v19 = vadd.f32 %v972_v9, %v971_v11  ;;  %v978_v41 = vsel %vm393_vm1, %v755_v18, 0.0 }
  0xf7   : > { %v2337_v9 = vunpack.c.l.bf16 %v1411_v56  ;;  %v988_v18 = vsel %vm393_vm1, %v760_v59, 0.0 }
  0xf8   : > { %v620_v3 = vadd.f32 %v619_v31, %v618_v38  ;;  %v2300_v31 = vunpack.c.h.bf16 %v1408_v2  ;;  %v975_v34 = vadd.f32 %v974_v44, %v973_v19  ;;  %v757_v38 = vmul.f32 %v2127_v54, %v2127_v54 }
  0xf9   : > { %v637_v54 = vsel %vm393_vm1, %v2307_v51, 0.0  ;;  %v2344_v44 = vunpack.c.h.bf16 %v1411_v56 }
  0xfa   : > { %v622_v52 = vadd.f32 %v621_v26, %v620_v3  ;;  %v635_v42 = vsel %vm393_vm1, %v2300_v31, 0.0  ;;  %v977_v26 = vadd.f32 %v976_v29, %v975_v34  ;;  %v982_v25 = vsel %vm393_vm1, %v757_v38, 0.0 }
  0xfb   : > { %v647_v57 = vsel %vm393_vm1, %v2344_v44, 0.0 }
  0xfc   : > { %v624_v12 = vadd.f32 %v623_v45, %v622_v52  ;;  %v2315_v45 = vunpack.c.h.bf16 %v1409_v24  ;;  %v979_v48 = vadd.f32 %v978_v41, %v977_v26  ;;  %v759_v52 = vmul.f32 %v2142_v61, %v2142_v61 }
  0xfd   : > { %v641_v61 = vsel %vm393_vm1, %v2322_v53, 0.0  ;;  %v763_v24 = vmul.f32 %v2172_v17, %v2172_v17  ;;  %v765_v41 = vmul.f32 %v2187_v27, %v2187_v27  ;;  %v768_v27 = vmul.f32 %v2210_v49, %v2210_v49  ;;  %v392_v49 = vld [vmem:[%s2442_s1] sm:$0x1] }
  0xfe   : > { %v626_v6 = vadd.f32 %v625_v33, %v624_v12  ;;  %v639_v33 = vsel %vm393_vm1, %v2315_v45, 0.0  ;;  %v981_v7 = vadd.f32 %v980_v4, %v979_v48  ;;  %v986_v46 = vsel %vm393_vm1, %v759_v52, 0.0 }
  0xff   : > { %v1004_v59 = vsel %vm393_vm1, %v768_v27, 0.0 }
 0x100   : > { %v628_v15 = vadd.f32 %v627_v62, %v626_v6  ;;  %v2330_v62 = vunpack.c.h.bf16 %v1410_v43  ;;  %v983_v63 = vadd.f32 %v982_v25, %v981_v7  ;;  %v761_v6 = vmul.f32 %v2157_v8, %v2157_v8 }
 0x101   : > { %v766_v43 = vmul.f32 %v2195_v35, %v2195_v35  ;;  %v769_v35 = vmul.f32 %v2217_v55, %v2217_v55 }
 0x102   : > { %v630_v28 = vadd.f32 %v629_v40, %v628_v15  ;;  %v643_v40 = vsel %vm393_vm1, %v2330_v62, 0.0  ;;  %v985_v16 = vadd.f32 %v984_v37, %v983_v63  ;;  %v762_v15 = vmul.f32 %v2165_v23, %v2165_v23 }
 0x103   : > { %v764_v23 = vmul.f32 %v2180_v30, %v2180_v30  ;;  %v767_v30 = vmul.f32 %v2202_v39, %v2202_v39  ;;  %v1000_v52 = vsel %vm393_vm1, %v766_v43, 0.0  ;;  %v770_v39 = vmul.f32 %v2225_v0, %v2225_v0 }
 0x104   : > { %v632_v36 = vadd.f32 %v631_v21, %v630_v28  ;;  %v645_v21 = vsel %vm393_vm1, %v2337_v9, 0.0  ;;  %v987_v8 = vadd.f32 %v986_v46, %v985_v16  ;;  %v990_v28 = vsel %vm393_vm1, %v761_v6, 0.0 }
 0x105   : > { %v992_v34 = vsel %vm393_vm1, %v762_v15, 0.0  ;;  %v1002_v7 = vsel %vm393_vm1, %v767_v30, 0.0  ;;  %v771_v63 = vmul.f32 %v2232_v10, %v2232_v10  ;;  %v1006_v55 = vsel %vm393_vm1, %v769_v35, 0.0 }
 0x106   : > { %v634_v3 = vadd.f32 %v633_v47, %v632_v36  ;;  %v989_v29 = vadd.f32 %v988_v18, %v987_v8  ;;  %v772_v46 = vmul.f32 %v2240_v58, %v2240_v58  ;;  %v1008_v0 = vsel %vm393_vm1, %v770_v39, 0.0 }
 0x107   : > { %v773_v16 = vmul.f32 %v2247_v32, %v2247_v32  ;;  %v1010_v10 = vsel %vm393_vm1, %v771_v63, 0.0  ;;  %v774_v15 = vmul.f32 %v2255_v1, %v2255_v1 }
 0x108   : > { %v636_v50 = vadd.f32 %v635_v42, %v634_v3  ;;  %v991_v36 = vadd.f32 %v990_v28, %v989_v29  ;;  %v994_v42 = vsel %vm393_vm1, %v763_v24, 0.0  ;;  %v996_v3 = vsel %vm393_vm1, %v764_v23, 0.0 }
 0x109   : > { %v1012_v18 = vsel %vm393_vm1, %v772_v46, 0.0  ;;  %v1014_v8 = vsel %vm393_vm1, %v773_v16, 0.0  ;;  %v776_v24 = vmul.f32 %v2270_v13, %v2270_v13  ;;  %v1016_v32 = vsel %vm393_vm1, %v774_v15, 0.0 }
 0x10a   : > { %v638_v12 = vadd.f32 %v637_v54, %v636_v50  ;;  %v993_v17 = vadd.f32 %v992_v34, %v991_v36  ;;  %v998_v54 = vsel %vm393_vm1, %v765_v41, 0.0  ;;  %v779_v34 = vmul.f32 %v2292_v20, %v2292_v20 }
 0x10c   : > { %v640_v2 = vadd.f32 %v639_v33, %v638_v12  ;;  %v995_v14 = vadd.f32 %v994_v42, %v993_v17  ;;  %v781_v42 = vmul.f32 %v2307_v51, %v2307_v51 }
 0x10e   : > { %v642_v11 = vadd.f32 %v641_v61, %v640_v2  ;;  %v997_v48 = vadd.f32 %v996_v3, %v995_v14  ;;  %v783_v3 = vmul.f32 %v2322_v53, %v2322_v53 }
 0x110   : > { %v644_v19 = vadd.f32 %v643_v40, %v642_v11  ;;  %v999_v25 = vadd.f32 %v998_v54, %v997_v48  ;;  %v785_v54 = vmul.f32 %v2337_v9, %v2337_v9 }
 0x112   : > { %v646_v47 = vadd.f32 %v645_v21, %v644_v19  ;;  %v1001_v56 = vadd.f32 %v1000_v52, %v999_v25  ;;  %v775_v21 = vmul.f32 %v2262_v5, %v2262_v5  ;;  %v1020_v5 = vsel %vm393_vm1, %v776_v24, 0.0 }
 0x113   : > { %v1038_v52 = vsel %vm393_vm1, %v785_v54, 0.0 }
 0x114   : > { %v648_v38 = vadd.f32 %v647_v57, %v646_v47  ;;  %v1003_v37 = vadd.f32 %v1002_v7, %v1001_v56  ;;  %v777_v57 = vmul.f32 %v2277_v60, %v2277_v60  ;;  %v1018_v1 = vsel %vm393_vm1, %v775_v21, 0.0 }
 0x115   : > { %v778_v47 = vmul.f32 %v2285_v22, %v2285_v22  ;;  %v1026_v22 = vsel %vm393_vm1, %v779_v34, 0.0 }
 0x116   : > { %v649_v26 = vrot.slane %v648_v38, 4  ;;  %v1005_v2 = vadd.f32 %v1004_v59, %v1003_v37  ;;  %v1022_v13 = vsel %vm393_vm1, %v777_v57, 0.0  ;;  %v658_v59 = vld [vmem:[%s2443_s2] sm:$0x1] }
 0x117   : > { %v1024_v60 = vsel %vm393_vm1, %v778_v47, 0.0 }
 0x118   : > { %v650_v4 = vadd.f32 %v649_v26, %v648_v38  ;;  %v1007_v40 = vadd.f32 %v1006_v55, %v1005_v2  ;;  %v780_v38 = vmul.f32 %v2300_v31, %v2300_v31  ;;  %v782_v26 = vmul.f32 %v2315_v45, %v2315_v45 }
 0x119   : > { %v1030_v31 = vsel %vm393_vm1, %v781_v42, 0.0  ;;  %v1034_v45 = vsel %vm393_vm1, %v783_v3, 0.0 }
 0x11a   : > { %v651_v50 = vrot.slane %v650_v4, 2  ;;  %v1009_v11 = vadd.f32 %v1008_v0, %v1007_v40  ;;  %v1028_v20 = vsel %vm393_vm1, %v780_v38, 0.0  ;;  %v1032_v51 = vsel %vm393_vm1, %v782_v26, 0.0 }
 0x11c   : > { %v652_v33 = vadd.f32 %v651_v50, %v650_v4  ;;  %v1011_v58 = vadd.f32 %v1010_v10, %v1009_v11  ;;  %v784_v4 = vmul.f32 %v2330_v62, %v2330_v62  ;;  %v786_v50 = vmul.f32 %v2344_v44, %v2344_v44 }
 0x11e   : > { %v653_v12 = vrot.slane %v652_v33, 1  ;;  %v1013_v19 = vadd.f32 %v1012_v18, %v1011_v58  ;;  %v1036_v53 = vsel %vm393_vm1, %v784_v4, 0.0  ;;  %v1040_v62 = vsel %vm393_vm1, %v786_v50, 0.0 }
 0x120   : > { %v654_v61 = vadd.f32 %v653_v12, %v652_v33  ;;  %v1015_v28 = vadd.f32 %v1014_v8, %v1013_v19 }
 0x122   : > { %v655_v6 = vadd.f32 %v654_v61, %v392_v49  ;;  %v1017_v29 = vadd.f32 %v1016_v32, %v1015_v28 }
 0x124   : > { %657 = vst.msk [vmem:[%s2442_s1] sm:$0x1] %vm656_vm2, %v655_v6  ;;  %v1019_v23 = vadd.f32 %v1018_v1, %v1017_v29 }
 0x126   : > { %v1021_v36 = vadd.f32 %v1020_v5, %v1019_v23 }
 0x128   : > { %v1023_v41 = vadd.f32 %v1022_v13, %v1021_v36 }
 0x12a   : > { %v1025_v17 = vadd.f32 %v1024_v60, %v1023_v41 }
 0x12c   : > { %v1027_v43 = vadd.f32 %v1026_v22, %v1025_v17 }
 0x12e   : > { %v1029_v14 = vadd.f32 %v1028_v20, %v1027_v43 }
 0x130   : > { %v1031_v30 = vadd.f32 %v1030_v31, %v1029_v14 }
 0x132   : > { %v1033_v48 = vadd.f32 %v1032_v51, %v1031_v30 }
 0x134   : > { %v1035_v27 = vadd.f32 %v1034_v45, %v1033_v48 }
 0x136   : > { %v1037_v25 = vadd.f32 %v1036_v53, %v1035_v27 }
 0x138   : > { %v1039_v33 = vadd.f32 %v1038_v52, %v1037_v25 }
 0x13a   : > { %v1041_v35 = vadd.f32 %v1040_v62, %v1039_v33 }
 0x13c   : > { %v1042_v7 = vrot.slane %v1041_v35, 4 }
 0x13e   : > { %v1043_v56 = vadd.f32 %v1042_v7, %v1041_v35 }
 0x140   : > { %v1044_v12 = vrot.slane %v1043_v56, 2 }
 0x142   : > { %v1045_v9 = vadd.f32 %v1044_v12, %v1043_v56 }
 0x144   : > { %v1046_v39 = vrot.slane %v1045_v9, 1 }
 0x146   : > { %v1047_v44 = vadd.f32 %v1046_v39, %v1045_v9 }
 0x148   : > { %v1048_v49 = vadd.f32 %v1047_v44, %v658_v59 }
 0x14a   : > { %1049 = vst.msk [vmem:[%s2443_s2] sm:$0x1] %vm656_vm2, %v1048_v49 }
 0x14b PF: > { %s13_s9 = sadd.s32 1, %s1427_s9  }
 0x14c   : > { %p10_p5 = scmp.ge.s32.totalorder %s13_s9, 4  }
 0x14e   :  { %12 = sbr.rel (!%p10_p5) target bundleno = 1 (0x1), region = 62 }

// kernel: generator_forward.45
= control target key start
LH: loop header
LB: loop body
LE: loop exit
PB: predicated region body
PF: predicated region fallthrough
CT: control target
= control target key end

     0   :  { %s2225_s18 = smov 0   ;;  %s3127_s0 = inlined_call_operand.vmem [shape: bf16[2048,64], index: 0, kind: input, shape index: {}]   ;;  %s3128_s1 = inlined_call_operand.vmem [shape: f32[1,64], index: 1, kind: input, shape index: {}]   ;;  %s3129_s2 = inlined_call_operand.vmem [shape: f32[1,64], index: 2, kind: input, shape index: {}]   ;;  %s3130_s3 = inlined_call_operand.vmem [shape: f32[1,64], index: 3, kind: input, shape index: {}]   ;;  %s3131_s4 = inlined_call_operand.vmem [shape: f32[1,64], index: 4, kind: input, shape index: {}]   ;;  %s3132_s5 = inlined_call_operand.vmem [shape: bf16[2048,64], index: 5, kind: output, shape index: {}]  }
   0x1 LB: > { %s1591_s19 = sadd.s32 4294967295, %s2193_s18   ;;  %p1595_p0 = scmp.ge.s32.totalorder %s2193_s18, 1  ;;  %s2193_s18 = sphi %s2225_s18, %s15_s18  }
   0x2   : > { %p188_p1 = scmp.lt.s32.totalorder %s2193_s18, 3 }
   0x4   : > { %p189_p2 = pnand %p1595_p0, %p188_p1 }
   0x5   : > { %s1596_s20 = sshll.u32 (!%p189_p2), %s1591_s19, 7  ;;  %v228_v0 = vld [vmem:[%s3128_s1] sm:$0x1] (!%p189_p2)  ;;  %v499_v2 = vlaneseq (!%p189_p2)  ;;  %vm1406_vm0 = vcmask (!%p189_p2), 519168  }
   0x6   : > { %192 = sbr.rel (%p189_p2) target bundleno = 191 (0xbf), region = 40  ;;  %v230_v1 = vld [vmem:[%s3129_s2] sm:$0x1] (!%p189_p2)  ;;  %p217_p3 = scmp.lt.s32.totalorder (!%p189_p2), %s1596_s20, 255  ;;  %v2239_v3 = vmul.f32 (!%p189_p2), 0.00048828125, %v228_v0 }
   0x7   : > { %v231_v4 = vmul.f32 (!%p189_p2), 0.00048828125, %v230_v1  ;;  %v2245_v6 = vshrl.u32 (!%p189_p2), %v499_v2, 7  ;;  %v239_v50 = vld [vmem:[%s3131_s4] sm:$0x1] (!%p189_p2) }
   0x8   : > { %v232_v5 = vmul.f32 (!%p189_p2), %v2239_v3, %v2239_v3 }
   0x9   : > { %v501_v10 = vsub.s32 (!%p189_p2), 0, %v2245_v6 }
   0xa   : > { %v233_v7 = vsub.f32 (!%p189_p2), %v231_v4, %v232_v5 }
   0xc   : > { %v234_v8 = vmax.f32 (!%p189_p2), %v233_v7, 0.0 }
   0xd   : > { %s3181_s20 = smov (!%p217_p3, %s1596_s20), 255 }
   0xe   : > { %s1597_s25 = sshll.u32 %s3181_s20, 2  ;;  %v236_v20 = vadd.f32 1e-05, %v234_v8 }
   0xf   : > { %s2253_s28 = scalar_lea.vmem %s3127_s0, %s1597_s25  ;;  %s2495_s10 = scalar_lea.vmem %s3132_s5, %s1597_s25 }
  0x10   : > { %v2256_v9 = vld [vmem:[%s2253_s28] sm:$0xff]   ;;  %v2260_v11 = vld [vmem:[%s2253_s28 + $0x8] sm:$0xff]   ;;  %v2263_v12 = vld [vmem:[%s2253_s28 + $0x10] sm:$0xff]   ;;  %2185 = vrsqrt.f32 %v236_v20 }
  0x11   : > { %v1860_v13 = vunpack.c.l.bf16 %v2256_v9  ;;  %v1861_v14 = vunpack.c.h.bf16 %v2256_v9  ;;  %v1864_v15 = vunpack.c.l.bf16 %v2260_v11  ;;  %v1865_v16 = vunpack.c.h.bf16 %v2260_v11  ;;  %v2270_v17 = vld [vmem:[%s2253_s28 + $0x18] sm:$0xff]   ;;  %v2273_v18 = vld [vmem:[%s2253_s28 + $0x20] sm:$0xff]   ;;  %v2276_v19 = vld [vmem:[%s2253_s28 + $0x28] sm:$0xff]  }
  0x12   : > { %v1868_v21 = vunpack.c.l.bf16 %v2263_v12  ;;  %v1869_v22 = vunpack.c.h.bf16 %v2263_v12  ;;  %v1872_v23 = vunpack.c.l.bf16 %v2270_v17  ;;  %v2282_v24 = vld [vmem:[%s2253_s28 + $0x30] sm:$0xff]   ;;  %v2285_v25 = vld [vmem:[%s2253_s28 + $0x38] sm:$0xff]   ;;  %v2288_v26 = vld [vmem:[%s2253_s28 + $0x40] sm:$0xff]   ;;  %v1873_v27 = vunpack.c.h.bf16 %v2270_v17 }
  0x13   : > { %v1876_v28 = vunpack.c.l.bf16 %v2273_v18  ;;  %v1877_v29 = vunpack.c.h.bf16 %v2273_v18  ;;  %v1880_v30 = vunpack.c.l.bf16 %v2276_v19  ;;  %v2295_v31 = vld [vmem:[%s2253_s28 + $0x48] sm:$0xff]   ;;  %v2298_v32 = vld [vmem:[%s2253_s28 + $0x50] sm:$0xff]   ;;  %v1881_v33 = vunpack.c.h.bf16 %v2276_v19  ;;  %v2304_v36 = vld [vmem:[%s2253_s28 + $0x58] sm:$0xff]  }
  0x14   : > { %v1884_v34 = vunpack.c.l.bf16 %v2282_v24  ;;  %v1885_v35 = vunpack.c.h.bf16 %v2282_v24  ;;  %v2307_v37 = vld [vmem:[%s2253_s28 + $0x60] sm:$0xff]   ;;  %v1888_v38 = vunpack.c.l.bf16 %v2285_v25  ;;  %v1889_v39 = vunpack.c.h.bf16 %v2285_v25  ;;  %v2314_v42 = vld [vmem:[%s2253_s28 + $0x68] sm:$0xff]   ;;  %v2317_v43 = vld [vmem:[%s2253_s28 + $0x70] sm:$0xff]  }
  0x15   : > { %v2324_v48 = vld [vmem:[%s2253_s28 + $0x78] sm:$0xff]   ;;  %v2327_v49 = vld [vmem:[%s2253_s28 + $0x80] sm:$0xff]   ;;  %v2334_v54 = vld [vmem:[%s2253_s28 + $0x88] sm:$0xff]  }
  0x16   : > { %v2337_v55 = vld [vmem:[%s2253_s28 + $0x90] sm:$0xff]   ;;  %v2344_v60 = vld [vmem:[%s2253_s28 + $0x98] sm:$0xff]   ;;  %v2347_v61 = vld [vmem:[%s2253_s28 + $0xa0] sm:$0xff]  }
  0x17   : > { %v2354_v2 = vld [vmem:[%s2253_s28 + $0xa8] sm:$0xff]   ;;  %v2357_v4 = vld [vmem:[%s2253_s28 + $0xb0] sm:$0xff]   ;;  %v2364_v63 = vld [vmem:[%s2253_s28 + $0xb8] sm:$0xff]  }
  0x18   : > { %v2367_v62 = vld [vmem:[%s2253_s28 + $0xc0] sm:$0xff]   ;;  %v2374_v5 = vld [vmem:[%s2253_s28 + $0xc8] sm:$0xff]   ;;  %v2377_v8 = vld [vmem:[%s2253_s28 + $0xd0] sm:$0xff]  }
  0x19   : > { %v235_v20 = vld [vmem:[%s3130_s3] sm:$0x1]  ;;  %v2387_v57 = vld [vmem:[%s2253_s28 + $0xd8] sm:$0xff]   ;;  %v2397_v1 = vld [vmem:[%s2253_s28 + $0xe8] sm:$0xff]  }
  0x1a   : > { %v2390_v7 = vld [vmem:[%s2253_s28 + $0xe0] sm:$0xff]   ;;  %v2400_v51 = vld [vmem:[%s2253_s28 + $0xf0] sm:$0xff]   ;;  %v2186_v0 = vpop.eup %2185  ;;  %v2407_v46 = vld [vmem:[%s2253_s28 + $0xf8] sm:$0xff]  }
  0x1b   : > { %v238_v53 = vmul.f32 %v2186_v0, %v235_v20  ;;  %v2413_v44 = vld [vmem:[%s2253_s28 + $0x100] sm:$0xff]   ;;  %v2416_v41 = vld [vmem:[%s2253_s28 + $0x108] sm:$0xff]   ;;  %v1981_v52 = vunpack.c.h.bf16 %v2400_v51  ;;  %v1985_v40 = vunpack.c.h.bf16 %v2407_v46 }
  0x1c   : > { %v1989_v56 = vunpack.c.h.bf16 %v2413_v44  ;;  %v1992_v0 = vunpack.c.l.bf16 %v2416_v41 }
  0x1d   : > { %v240_v58 = vmul.f32 %v238_v53, %v2239_v3  ;;  %v2428_v45 = vrot.slane %v238_v53, %v501_v10 }
  0x1f   : > { %v241_v20 = vsub.f32 %v239_v50, %v240_v58  ;;  %v504_v3 = vmul.f32 %v1860_v13, %v2428_v45  ;;  %v505_v53 = vmul.f32 %v1861_v14, %v2428_v45  ;;  %v506_v59 = vmul.f32 %v1864_v15, %v2428_v45 }
  0x20   : > { %v507_v47 = vmul.f32 %v1865_v16, %v2428_v45  ;;  %v508_v50 = vmul.f32 %v1868_v21, %v2428_v45  ;;  %v509_v13 = vmul.f32 %v1869_v22, %v2428_v45  ;;  %v510_v9 = vmul.f32 %v1872_v23, %v2428_v45 }
  0x21   : > { %v2459_v14 = vrot.slane %v241_v20, %v501_v10  ;;  %v511_v11 = vmul.f32 %v1873_v27, %v2428_v45  ;;  %v512_v15 = vmul.f32 %v1876_v28, %v2428_v45  ;;  %v513_v12 = vmul.f32 %v1877_v29, %v2428_v45 }
  0x22   : > { %v514_v16 = vmul.f32 %v1880_v30, %v2428_v45  ;;  %v515_v6 = vmul.f32 %v1881_v33, %v2428_v45  ;;  %v516_v10 = vmul.f32 %v1884_v34, %v2428_v45  ;;  %v517_v17 = vmul.f32 %v1885_v35, %v2428_v45 }
  0x23   : > { %v638_v18 = vadd.f32 %v2459_v14, %v504_v3  ;;  %v639_v21 = vadd.f32 %v2459_v14, %v505_v53  ;;  %v640_v22 = vadd.f32 %v2459_v14, %v506_v59  ;;  %v641_v23 = vadd.f32 %v2459_v14, %v507_v47 }
  0x24   : > { %v642_v19 = vadd.f32 %v2459_v14, %v508_v50  ;;  %v643_v27 = vadd.f32 %v2459_v14, %v509_v13  ;;  %v644_v28 = vadd.f32 %v2459_v14, %v510_v9  ;;  %v645_v29 = vadd.f32 %v2459_v14, %v511_v11 }
  0x25   : > { %v766_v30 = vmax.f32 %v638_v18, 0.0  ;;  %v767_v33 = vmax.f32 %v639_v21, 0.0  ;;  %v768_v24 = vmax.f32 %v640_v22, 0.0  ;;  %v769_v34 = vmax.f32 %v641_v23, 0.0 }
  0x26   : > { %v770_v35 = vmax.f32 %v642_v19, 0.0  ;;  %v771_v47 = vmax.f32 %v643_v27, 0.0  ;;  %v772_v58 = vmax.f32 %v644_v28, 0.0  ;;  %v773_v59 = vmax.f32 %v645_v29, 0.0 }
  0x27   : > { %v1730_v20 = vpack.c.bf16 %v766_v30, %v766_v30  ;;  %v1731_v3 = vpack.c.bf16 %v767_v33, %v767_v33  ;;  %v1732_v53 = vpack.c.bf16 %v768_v24, %v768_v24  ;;  %v1733_v50 = vpack.c.bf16 %v769_v34, %v769_v34 }
  0x28   : > { %v1734_v13 = vpack.c.bf16 %v770_v35, %v770_v35  ;;  %v1735_v9 = vpack.c.bf16 %v771_v47, %v771_v47  ;;  %v1736_v11 = vpack.c.bf16 %v772_v58, %v772_v58  ;;  %v1737_v18 = vpack.c.bf16 %v773_v59, %v773_v59 }
  0x29   : > { %1407 = vst.msk [vmem:[%s2495_s10] sm:$0xf] %vm1406_vm0, %v1730_v20  ;;  %1408 = vst.msk [vmem:[%s2495_s10 + $0x4] sm:$0xf] %vm1406_vm0, %v1731_v3  ;;  %v646_v21 = vadd.f32 %v2459_v14, %v512_v15  ;;  %v647_v22 = vadd.f32 %v2459_v14, %v513_v12  ;;  %v648_v23 = vadd.f32 %v2459_v14, %v514_v16  ;;  %v3133_v20 = vunpack.c.l.bf16 %v2288_v26 }
  0x2a   : > { %1409 = vst.msk [vmem:[%s2495_s10 + $0x8] sm:$0xf] %vm1406_vm0, %v1732_v53  ;;  %1410 = vst.msk [vmem:[%s2495_s10 + $0xc] sm:$0xf] %vm1406_vm0, %v1733_v50  ;;  %v649_v19 = vadd.f32 %v2459_v14, %v515_v6  ;;  %v650_v27 = vadd.f32 %v2459_v14, %v516_v10  ;;  %v651_v28 = vadd.f32 %v2459_v14, %v517_v17  ;;  %v3134_v53 = vunpack.c.h.bf16 %v2288_v26 }
  0x2b   : > { %1411 = vst.msk [vmem:[%s2495_s10 + $0x10] sm:$0xf] %vm1406_vm0, %v1734_v13  ;;  %1412 = vst.msk [vmem:[%s2495_s10 + $0x14] sm:$0xf] %vm1406_vm0, %v1735_v9  ;;  %v518_v15 = vmul.f32 %v1888_v38, %v2428_v45  ;;  %v519_v12 = vmul.f32 %v1889_v39, %v2428_v45  ;;  %v774_v16 = vmax.f32 %v646_v21, 0.0  ;;  %v775_v6 = vmax.f32 %v647_v22, 0.0 }
  0x2c   : > { %1413 = vst.msk [vmem:[%s2495_s10 + $0x18] sm:$0xf] %vm1406_vm0, %v1736_v11  ;;  %1414 = vst.msk [vmem:[%s2495_s10 + $0x1c] sm:$0xf] %vm1406_vm0, %v1737_v18  ;;  %v776_v29 = vmax.f32 %v648_v23, 0.0  ;;  %v777_v30 = vmax.f32 %v649_v19, 0.0  ;;  %v520_v3 = vmul.f32 %v3133_v20, %v2428_v45  ;;  %v521_v50 = vmul.f32 %v3134_v53, %v2428_v45 }
  0x2d   : > { %v778_v33 = vmax.f32 %v650_v27, 0.0  ;;  %v779_v10 = vmax.f32 %v651_v28, 0.0  ;;  %v652_v17 = vadd.f32 %v2459_v14, %v518_v15  ;;  %v653_v24 = vadd.f32 %v2459_v14, %v519_v12 }
  0x2e   : > { %v1738_v34 = vpack.c.bf16 %v774_v16, %v774_v16  ;;  %v1739_v38 = vpack.c.bf16 %v775_v6, %v775_v6  ;;  %v1740_v25 = vpack.c.bf16 %v776_v29, %v776_v29  ;;  %v1741_v39 = vpack.c.bf16 %v777_v30, %v777_v30 }
  0x2f   : > { %v1742_v35 = vpack.c.bf16 %v778_v33, %v778_v33  ;;  %v1743_v47 = vpack.c.bf16 %v779_v10, %v779_v10  ;;  %v780_v58 = vmax.f32 %v652_v17, 0.0  ;;  %v781_v59 = vmax.f32 %v653_v24, 0.0 }
  0x30   : > { %1415 = vst.msk [vmem:[%s2495_s10 + $0x20] sm:$0xf] %vm1406_vm0, %v1738_v34  ;;  %1416 = vst.msk [vmem:[%s2495_s10 + $0x24] sm:$0xf] %vm1406_vm0, %v1739_v38  ;;  %v3135_v13 = vunpack.c.l.bf16 %v2295_v31  ;;  %v3136_v11 = vunpack.c.h.bf16 %v2295_v31  ;;  %v3137_v23 = vunpack.c.l.bf16 %v2298_v32  ;;  %v3138_v26 = vunpack.c.h.bf16 %v2298_v32 }
  0x31   : > { %1417 = vst.msk [vmem:[%s2495_s10 + $0x28] sm:$0xf] %vm1406_vm0, %v1740_v25  ;;  %1418 = vst.msk [vmem:[%s2495_s10 + $0x2c] sm:$0xf] %vm1406_vm0, %v1741_v39  ;;  %v1744_v21 = vpack.c.bf16 %v780_v58, %v780_v58  ;;  %v1745_v22 = vpack.c.bf16 %v781_v59, %v781_v59  ;;  %v654_v28 = vadd.f32 %v2459_v14, %v520_v3  ;;  %v3139_v32 = vunpack.c.l.bf16 %v2304_v36 }
  0x32   : > { %v522_v9 = vmul.f32 %v3135_v13, %v2428_v45  ;;  %v523_v18 = vmul.f32 %v3136_v11, %v2428_v45  ;;  %1419 = vst.msk [vmem:[%s2495_s10 + $0x30] sm:$0xf] %vm1406_vm0, %v1742_v35  ;;  %1420 = vst.msk [vmem:[%s2495_s10 + $0x34] sm:$0xf] %vm1406_vm0, %v1743_v47  ;;  %v524_v19 = vmul.f32 %v3137_v23, %v2428_v45  ;;  %v3140_v30 = vunpack.c.h.bf16 %v2304_v36 }
  0x33   : > { %v525_v27 = vmul.f32 %v3138_v26, %v2428_v45  ;;  %v655_v15 = vadd.f32 %v2459_v14, %v521_v50  ;;  %1421 = vst.msk [vmem:[%s2495_s10 + $0x38] sm:$0xf] %vm1406_vm0, %v1744_v21  ;;  %1422 = vst.msk [vmem:[%s2495_s10 + $0x3c] sm:$0xf] %vm1406_vm0, %v1745_v22  ;;  %v526_v29 = vmul.f32 %v3139_v32, %v2428_v45  ;;  %v782_v10 = vmax.f32 %v654_v28, 0.0 }
  0x34   : > { %v656_v31 = vadd.f32 %v2459_v14, %v522_v9  ;;  %v657_v12 = vadd.f32 %v2459_v14, %v523_v18  ;;  %v658_v16 = vadd.f32 %v2459_v14, %v524_v19  ;;  %v527_v33 = vmul.f32 %v3140_v30, %v2428_v45 }
  0x35   : > { %v659_v6 = vadd.f32 %v2459_v14, %v525_v27  ;;  %v783_v17 = vmax.f32 %v655_v15, 0.0  ;;  %v660_v39 = vadd.f32 %v2459_v14, %v526_v29  ;;  %v1746_v47 = vpack.c.bf16 %v782_v10, %v782_v10 }
  0x36   : > { %v784_v24 = vmax.f32 %v656_v31, 0.0  ;;  %v785_v34 = vmax.f32 %v657_v12, 0.0  ;;  %v786_v38 = vmax.f32 %v658_v16, 0.0  ;;  %v661_v35 = vadd.f32 %v2459_v14, %v527_v33 }
  0x37   : > { %v787_v25 = vmax.f32 %v659_v6, 0.0  ;;  %v1747_v58 = vpack.c.bf16 %v783_v17, %v783_v17  ;;  %v788_v53 = vmax.f32 %v660_v39, 0.0  ;;  %1423 = vst.msk [vmem:[%s2495_s10 + $0x40] sm:$0xf] %vm1406_vm0, %v1746_v47  ;;  %v3141_v13 = vunpack.c.l.bf16 %v2307_v37 }
  0x38   : > { %v1748_v36 = vpack.c.bf16 %v784_v24, %v784_v24  ;;  %v1749_v59 = vpack.c.bf16 %v785_v34, %v785_v34  ;;  %v1750_v20 = vpack.c.bf16 %v786_v38, %v786_v38  ;;  %v789_v50 = vmax.f32 %v661_v35, 0.0 }
  0x39   : > { %v1751_v3 = vpack.c.bf16 %v787_v25, %v787_v25  ;;  %1424 = vst.msk [vmem:[%s2495_s10 + $0x44] sm:$0xf] %vm1406_vm0, %v1747_v58  ;;  %v528_v9 = vmul.f32 %v3141_v13, %v2428_v45  ;;  %v3142_v11 = vunpack.c.h.bf16 %v2307_v37  ;;  %v3143_v21 = vunpack.c.l.bf16 %v2314_v42 }
  0x3a   : > { %1425 = vst.msk [vmem:[%s2495_s10 + $0x48] sm:$0xf] %vm1406_vm0, %v1748_v36  ;;  %1426 = vst.msk [vmem:[%s2495_s10 + $0x4c] sm:$0xf] %vm1406_vm0, %v1749_v59  ;;  %v3144_v23 = vunpack.c.h.bf16 %v2314_v42  ;;  %v1752_v26 = vpack.c.bf16 %v788_v53, %v788_v53  ;;  %v1753_v27 = vpack.c.bf16 %v789_v50, %v789_v50  ;;  %v3145_v28 = vunpack.c.l.bf16 %v2317_v43 }
  0x3b   : > { %v529_v18 = vmul.f32 %v3142_v11, %v2428_v45  ;;  %v530_v22 = vmul.f32 %v3143_v21, %v2428_v45  ;;  %1427 = vst.msk [vmem:[%s2495_s10 + $0x50] sm:$0xf] %vm1406_vm0, %v1750_v20  ;;  %1428 = vst.msk [vmem:[%s2495_s10 + $0x54] sm:$0xf] %vm1406_vm0, %v1751_v3  ;;  %v3146_v37 = vunpack.c.h.bf16 %v2317_v43  ;;  %v662_v12 = vadd.f32 %v2459_v14, %v528_v9 }
  0x3c   : > { %v531_v19 = vmul.f32 %v3144_v23, %v2428_v45  ;;  %v532_v15 = vmul.f32 %v3145_v28, %v2428_v45  ;;  %1429 = vst.msk [vmem:[%s2495_s10 + $0x58] sm:$0xf] %vm1406_vm0, %v1752_v26  ;;  %1430 = vst.msk [vmem:[%s2495_s10 + $0x5c] sm:$0xf] %vm1406_vm0, %v1753_v27  ;;  %v3147_v43 = vunpack.c.l.bf16 %v2324_v48  ;;  %v3148_v33 = vunpack.c.h.bf16 %v2324_v48 }
  0x3d   : > { %v533_v31 = vmul.f32 %v3146_v37, %v2428_v45  ;;  %v663_v16 = vadd.f32 %v2459_v14, %v529_v18  ;;  %v664_v42 = vadd.f32 %v2459_v14, %v530_v22  ;;  %v790_v17 = vmax.f32 %v662_v12, 0.0 }
  0x3e   : > { %v665_v6 = vadd.f32 %v2459_v14, %v531_v19  ;;  %v666_v32 = vadd.f32 %v2459_v14, %v532_v15  ;;  %v534_v30 = vmul.f32 %v3147_v43, %v2428_v45  ;;  %v535_v10 = vmul.f32 %v3148_v33, %v2428_v45 }
  0x3f   : > { %v667_v29 = vadd.f32 %v2459_v14, %v533_v31  ;;  %v791_v24 = vmax.f32 %v663_v16, 0.0  ;;  %v792_v34 = vmax.f32 %v664_v42, 0.0  ;;  %v1754_v58 = vpack.c.bf16 %v790_v17, %v790_v17 }
  0x40   : > { %v793_v38 = vmax.f32 %v665_v6, 0.0  ;;  %v794_v25 = vmax.f32 %v666_v32, 0.0  ;;  %v668_v35 = vadd.f32 %v2459_v14, %v534_v30  ;;  %v669_v47 = vadd.f32 %v2459_v14, %v535_v10 }
  0x41   : > { %v795_v39 = vmax.f32 %v667_v29, 0.0  ;;  %v1755_v36 = vpack.c.bf16 %v791_v24, %v791_v24  ;;  %v1756_v48 = vpack.c.bf16 %v792_v34, %v792_v34  ;;  %1431 = vst.msk [vmem:[%s2495_s10 + $0x60] sm:$0xf] %vm1406_vm0, %v1754_v58  ;;  %v3149_v13 = vunpack.c.l.bf16 %v2327_v49 }
  0x42   : > { %v1757_v59 = vpack.c.bf16 %v793_v38, %v793_v38  ;;  %v1758_v20 = vpack.c.bf16 %v794_v25, %v794_v25  ;;  %v796_v53 = vmax.f32 %v668_v35, 0.0  ;;  %v797_v50 = vmax.f32 %v669_v47, 0.0 }
  0x43   : > { %v1759_v3 = vpack.c.bf16 %v795_v39, %v795_v39  ;;  %1432 = vst.msk [vmem:[%s2495_s10 + $0x64] sm:$0xf] %vm1406_vm0, %v1755_v36  ;;  %1433 = vst.msk [vmem:[%s2495_s10 + $0x68] sm:$0xf] %vm1406_vm0, %v1756_v48  ;;  %v536_v9 = vmul.f32 %v3149_v13, %v2428_v45  ;;  %v3150_v11 = vunpack.c.h.bf16 %v2327_v49  ;;  %v3151_v21 = vunpack.c.l.bf16 %v2334_v54 }
  0x44   : > { %1434 = vst.msk [vmem:[%s2495_s10 + $0x6c] sm:$0xf] %vm1406_vm0, %v1757_v59  ;;  %v3152_v23 = vunpack.c.h.bf16 %v2334_v54  ;;  %1435 = vst.msk [vmem:[%s2495_s10 + $0x70] sm:$0xf] %vm1406_vm0, %v1758_v20  ;;  %v1760_v26 = vpack.c.bf16 %v796_v53, %v796_v53  ;;  %v1761_v27 = vpack.c.bf16 %v797_v50, %v797_v50  ;;  %v3153_v28 = vunpack.c.l.bf16 %v2337_v55 }
  0x45   : > { %v537_v18 = vmul.f32 %v3150_v11, %v2428_v45  ;;  %v538_v22 = vmul.f32 %v3151_v21, %v2428_v45  ;;  %1436 = vst.msk [vmem:[%s2495_s10 + $0x74] sm:$0xf] %vm1406_vm0, %v1759_v3  ;;  %v3154_v49 = vunpack.c.h.bf16 %v2337_v55  ;;  %v670_v31 = vadd.f32 %v2459_v14, %v536_v9 }
  0x46   : > { %v539_v19 = vmul.f32 %v3152_v23, %v2428_v45  ;;  %v540_v15 = vmul.f32 %v3153_v28, %v2428_v45  ;;  %1437 = vst.msk [vmem:[%s2495_s10 + $0x78] sm:$0xf] %vm1406_vm0, %v1760_v26  ;;  %1438 = vst.msk [vmem:[%s2495_s10 + $0x7c] sm:$0xf] %vm1406_vm0, %v1761_v27  ;;  %v3155_v55 = vunpack.c.l.bf16 %v2344_v60  ;;  %v3156_v29 = vunpack.c.h.bf16 %v2344_v60 }
  0x47   : > { %v541_v37 = vmul.f32 %v3154_v49, %v2428_v45  ;;  %v671_v12 = vadd.f32 %v2459_v14, %v537_v18  ;;  %v672_v54 = vadd.f32 %v2459_v14, %v538_v22  ;;  %v798_v30 = vmax.f32 %v670_v31, 0.0 }
  0x48   : > { %v673_v16 = vadd.f32 %v2459_v14, %v539_v19  ;;  %v674_v42 = vadd.f32 %v2459_v14, %v540_v15  ;;  %v542_v32 = vmul.f32 %v3155_v55, %v2428_v45  ;;  %v543_v43 = vmul.f32 %v3156_v29, %v2428_v45 }
  0x49   : > { %v675_v6 = vadd.f32 %v2459_v14, %v541_v37  ;;  %v799_v33 = vmax.f32 %v671_v12, 0.0  ;;  %v800_v10 = vmax.f32 %v672_v54, 0.0  ;;  %v1762_v39 = vpack.c.bf16 %v798_v30, %v798_v30 }
  0x4a   : > { %v801_v17 = vmax.f32 %v673_v16, 0.0  ;;  %v802_v24 = vmax.f32 %v674_v42, 0.0  ;;  %v676_v38 = vadd.f32 %v2459_v14, %v542_v32  ;;  %v677_v25 = vadd.f32 %v2459_v14, %v543_v43 }
  0x4b   : > { %v803_v34 = vmax.f32 %v675_v6, 0.0  ;;  %v1763_v35 = vpack.c.bf16 %v799_v33, %v799_v33  ;;  %v1764_v60 = vpack.c.bf16 %v800_v10, %v800_v10  ;;  %1439 = vst.msk [vmem:[%s2495_s10 + $0x80] sm:$0xf] %vm1406_vm0, %v1762_v39  ;;  %v3157_v20 = vunpack.c.l.bf16 %v2347_v61 }
  0x4c   : > { %v1765_v47 = vpack.c.bf16 %v801_v17, %v801_v17  ;;  %v1766_v58 = vpack.c.bf16 %v802_v24, %v802_v24  ;;  %v804_v48 = vmax.f32 %v676_v38, 0.0  ;;  %v805_v59 = vmax.f32 %v677_v25, 0.0 }
  0x4d   : > { %v1767_v36 = vpack.c.bf16 %v803_v34, %v803_v34  ;;  %1440 = vst.msk [vmem:[%s2495_s10 + $0x84] sm:$0xf] %vm1406_vm0, %v1763_v35  ;;  %1441 = vst.msk [vmem:[%s2495_s10 + $0x88] sm:$0xf] %vm1406_vm0, %v1764_v60  ;;  %v544_v3 = vmul.f32 %v3157_v20, %v2428_v45  ;;  %v3158_v53 = vunpack.c.h.bf16 %v2347_v61  ;;  %v3159_v13 = vunpack.c.l.bf16 %v2354_v2 }
  0x4e   : > { %1442 = vst.msk [vmem:[%s2495_s10 + $0x8c] sm:$0xf] %vm1406_vm0, %v1765_v47  ;;  %v3160_v11 = vunpack.c.h.bf16 %v2354_v2  ;;  %1443 = vst.msk [vmem:[%s2495_s10 + $0x90] sm:$0xf] %vm1406_vm0, %v1766_v58  ;;  %v1768_v21 = vpack.c.bf16 %v804_v48, %v804_v48  ;;  %v1769_v22 = vpack.c.bf16 %v805_v59, %v805_v59  ;;  %v3161_v23 = vunpack.c.l.bf16 %v2357_v4 }
  0x4f   : > { %v545_v50 = vmul.f32 %v3158_v53, %v2428_v45  ;;  %v546_v9 = vmul.f32 %v3159_v13, %v2428_v45  ;;  %1444 = vst.msk [vmem:[%s2495_s10 + $0x94] sm:$0xf] %vm1406_vm0, %v1767_v36  ;;  %v3162_v61 = vunpack.c.h.bf16 %v2357_v4  ;;  %v678_v27 = vadd.f32 %v2459_v14, %v544_v3 }
  0x50   : > { %v547_v18 = vmul.f32 %v3160_v11, %v2428_v45  ;;  %v548_v19 = vmul.f32 %v3161_v23, %v2428_v45  ;;  %1445 = vst.msk [vmem:[%s2495_s10 + $0x98] sm:$0xf] %vm1406_vm0, %v1768_v21  ;;  %1446 = vst.msk [vmem:[%s2495_s10 + $0x9c] sm:$0xf] %vm1406_vm0, %v1769_v22  ;;  %v3163_v4 = vunpack.c.l.bf16 %v2364_v63  ;;  %v3164_v12 = vunpack.c.h.bf16 %v2364_v63 }
  0x51   : > { %v549_v26 = vmul.f32 %v3162_v61, %v2428_v45  ;;  %v679_v28 = vadd.f32 %v2459_v14, %v545_v50  ;;  %v680_v2 = vadd.f32 %v2459_v14, %v546_v9  ;;  %v806_v16 = vmax.f32 %v678_v27, 0.0 }
  0x52   : > { %v681_v15 = vadd.f32 %v2459_v14, %v547_v18  ;;  %v682_v49 = vadd.f32 %v2459_v14, %v548_v19  ;;  %v550_v31 = vmul.f32 %v3163_v4, %v2428_v45  ;;  %v551_v54 = vmul.f32 %v3164_v12, %v2428_v45 }
  0x53   : > { %v683_v37 = vadd.f32 %v2459_v14, %v549_v26  ;;  %v807_v42 = vmax.f32 %v679_v28, 0.0  ;;  %v808_v6 = vmax.f32 %v680_v2, 0.0  ;;  %v1770_v33 = vpack.c.bf16 %v806_v16, %v806_v16 }
  0x54   : > { %v809_v55 = vmax.f32 %v681_v15, 0.0  ;;  %v810_v32 = vmax.f32 %v682_v49, 0.0  ;;  %v684_v43 = vadd.f32 %v2459_v14, %v550_v31  ;;  %v685_v30 = vadd.f32 %v2459_v14, %v551_v54 }
  0x55   : > { %v811_v29 = vmax.f32 %v683_v37, 0.0  ;;  %v1771_v10 = vpack.c.bf16 %v807_v42, %v807_v42  ;;  %v1772_v63 = vpack.c.bf16 %v808_v6, %v808_v6  ;;  %1447 = vst.msk [vmem:[%s2495_s10 + $0xa0] sm:$0xf] %vm1406_vm0, %v1770_v33  ;;  %v3165_v39 = vunpack.c.l.bf16 %v2367_v62 }
  0x56   : > { %v1773_v17 = vpack.c.bf16 %v809_v55, %v809_v55  ;;  %v1774_v24 = vpack.c.bf16 %v810_v32, %v810_v32  ;;  %v812_v38 = vmax.f32 %v684_v43, 0.0  ;;  %v813_v25 = vmax.f32 %v685_v30, 0.0 }
  0x57   : > { %v1775_v34 = vpack.c.bf16 %v811_v29, %v811_v29  ;;  %1448 = vst.msk [vmem:[%s2495_s10 + $0xa4] sm:$0xf] %vm1406_vm0, %v1771_v10  ;;  %1449 = vst.msk [vmem:[%s2495_s10 + $0xa8] sm:$0xf] %vm1406_vm0, %v1772_v63  ;;  %v552_v35 = vmul.f32 %v3165_v39, %v2428_v45  ;;  %v3166_v60 = vunpack.c.h.bf16 %v2367_v62  ;;  %v3167_v58 = vunpack.c.l.bf16 %v2374_v5 }
  0x58   : > { %1450 = vst.msk [vmem:[%s2495_s10 + $0xac] sm:$0xf] %vm1406_vm0, %v1773_v17  ;;  %v3168_v48 = vunpack.c.h.bf16 %v2374_v5  ;;  %1451 = vst.msk [vmem:[%s2495_s10 + $0xb0] sm:$0xf] %vm1406_vm0, %v1774_v24  ;;  %v1776_v20 = vpack.c.bf16 %v812_v38, %v812_v38  ;;  %v1777_v3 = vpack.c.bf16 %v813_v25, %v813_v25  ;;  %v3169_v53 = vunpack.c.l.bf16 %v2377_v8 }
  0x59   : > { %v553_v47 = vmul.f32 %v3166_v60, %v2428_v45  ;;  %v554_v36 = vmul.f32 %v3167_v58, %v2428_v45  ;;  %1452 = vst.msk [vmem:[%s2495_s10 + $0xb4] sm:$0xf] %vm1406_vm0, %v1775_v34  ;;  %v3170_v62 = vunpack.c.h.bf16 %v2377_v8  ;;  %v686_v9 = vadd.f32 %v2459_v14, %v552_v35 }
  0x5a   : > { %v555_v59 = vmul.f32 %v3168_v48, %v2428_v45  ;;  %v556_v50 = vmul.f32 %v3169_v53, %v2428_v45  ;;  %1453 = vst.msk [vmem:[%s2495_s10 + $0xb8] sm:$0xf] %vm1406_vm0, %v1776_v20  ;;  %1454 = vst.msk [vmem:[%s2495_s10 + $0xbc] sm:$0xf] %vm1406_vm0, %v1777_v3  ;;  %v3171_v8 = vunpack.c.l.bf16 %v2387_v57  ;;  %v3172_v19 = vunpack.c.h.bf16 %v2387_v57 }
  0x5b   : > { %v557_v13 = vmul.f32 %v3170_v62, %v2428_v45  ;;  %v687_v11 = vadd.f32 %v2459_v14, %v553_v47  ;;  %v688_v5 = vadd.f32 %v2459_v14, %v554_v36  ;;  %v814_v26 = vmax.f32 %v686_v9, 0.0 }
  0x5c   : > { %v689_v18 = vadd.f32 %v2459_v14, %v555_v59  ;;  %v690_v21 = vadd.f32 %v2459_v14, %v556_v50  ;;  %v558_v23 = vmul.f32 %v3171_v8, %v2428_v45  ;;  %v559_v61 = vmul.f32 %v3172_v19, %v2428_v45 }
  0x5d   : > { %v691_v22 = vadd.f32 %v2459_v14, %v557_v13  ;;  %v815_v27 = vmax.f32 %v687_v11, 0.0  ;;  %v816_v28 = vmax.f32 %v688_v5, 0.0  ;;  %v1778_v31 = vpack.c.bf16 %v814_v26, %v814_v26 }
  0x5e   : > { %v817_v2 = vmax.f32 %v689_v18, 0.0  ;;  %v818_v15 = vmax.f32 %v690_v21, 0.0  ;;  %v692_v37 = vadd.f32 %v2459_v14, %v558_v23  ;;  %v693_v4 = vadd.f32 %v2459_v14, %v559_v61 }
  0x5f   : > { %v819_v49 = vmax.f32 %v691_v22, 0.0  ;;  %v1779_v12 = vpack.c.bf16 %v815_v27, %v815_v27  ;;  %v1780_v57 = vpack.c.bf16 %v816_v28, %v816_v28  ;;  %1455 = vst.msk [vmem:[%s2495_s10 + $0xc0] sm:$0xf] %vm1406_vm0, %v1778_v31  ;;  %v3173_v32 = vunpack.c.l.bf16 %v2390_v7  ;;  %v2148_v28 = vld [vmem:[%s2253_s28 + $0x118] sm:$0xff]  }
  0x60   : > { %v1781_v54 = vpack.c.bf16 %v817_v2, %v817_v2  ;;  %v1782_v16 = vpack.c.bf16 %v818_v15, %v818_v15  ;;  %v820_v6 = vmax.f32 %v692_v37, 0.0  ;;  %v821_v55 = vmax.f32 %v693_v4, 0.0 }
  0x61   : > { %v1783_v42 = vpack.c.bf16 %v819_v49, %v819_v49  ;;  %1456 = vst.msk [vmem:[%s2495_s10 + $0xc4] sm:$0xf] %vm1406_vm0, %v1779_v12  ;;  %1457 = vst.msk [vmem:[%s2495_s10 + $0xc8] sm:$0xf] %vm1406_vm0, %v1780_v57  ;;  %v560_v29 = vmul.f32 %v3173_v32, %v2428_v45  ;;  %v3174_v43 = vunpack.c.h.bf16 %v2390_v7  ;;  %v3175_v33 = vunpack.c.l.bf16 %v2397_v1 }
  0x62   : > { %1458 = vst.msk [vmem:[%s2495_s10 + $0xcc] sm:$0xf] %vm1406_vm0, %v1781_v54  ;;  %v3176_v63 = vunpack.c.h.bf16 %v2397_v1  ;;  %1459 = vst.msk [vmem:[%s2495_s10 + $0xd0] sm:$0xf] %vm1406_vm0, %v1782_v16  ;;  %v1784_v24 = vpack.c.bf16 %v820_v6, %v820_v6  ;;  %v1785_v34 = vpack.c.bf16 %v821_v55, %v821_v55  ;;  %v3177_v38 = vunpack.c.l.bf16 %v2400_v51 }
  0x63   : > { %v561_v30 = vmul.f32 %v3174_v43, %v2428_v45  ;;  %v562_v10 = vmul.f32 %v3175_v33, %v2428_v45  ;;  %1460 = vst.msk [vmem:[%s2495_s10 + $0xd4] sm:$0xf] %vm1406_vm0, %v1783_v42  ;;  %v565_v7 = vmul.f32 %v1981_v52, %v2428_v45  ;;  %v694_v39 = vadd.f32 %v2459_v14, %v560_v29  ;;  %v2150_v33 = vld [vmem:[%s2253_s28 + $0x128] sm:$0xff]  }
  0x64   : > { %v563_v17 = vmul.f32 %v3176_v63, %v2428_v45  ;;  %v564_v25 = vmul.f32 %v3177_v38, %v2428_v45  ;;  %1461 = vst.msk [vmem:[%s2495_s10 + $0xd8] sm:$0xf] %vm1406_vm0, %v1784_v24  ;;  %1462 = vst.msk [vmem:[%s2495_s10 + $0xdc] sm:$0xf] %vm1406_vm0, %v1785_v34  ;;  %v3178_v51 = vunpack.c.l.bf16 %v2407_v46  ;;  %v567_v36 = vmul.f32 %v1985_v40, %v2428_v45  ;;  %v2147_v46 = vld [vmem:[%s2253_s28 + $0x110] sm:$0xff]  }
  0x65   : > { %v695_v35 = vadd.f32 %v2459_v14, %v561_v30  ;;  %v696_v1 = vadd.f32 %v2459_v14, %v562_v10  ;;  %v699_v58 = vadd.f32 %v2459_v14, %v565_v7  ;;  %v822_v48 = vmax.f32 %v694_v39, 0.0  ;;  %v2149_v30 = vld [vmem:[%s2253_s28 + $0x120] sm:$0xff]  }
  0x66   : > { %v697_v60 = vadd.f32 %v2459_v14, %v563_v17  ;;  %v698_v47 = vadd.f32 %v2459_v14, %v564_v25  ;;  %v566_v52 = vmul.f32 %v3178_v51, %v2428_v45  ;;  %v701_v13 = vadd.f32 %v2459_v14, %v567_v36 }
  0x67   : > { %v823_v59 = vmax.f32 %v695_v35, 0.0  ;;  %v824_v20 = vmax.f32 %v696_v1, 0.0  ;;  %v827_v50 = vmax.f32 %v699_v58, 0.0  ;;  %v1786_v9 = vpack.c.bf16 %v822_v48, %v822_v48 }
  0x68   : > { %v825_v3 = vmax.f32 %v697_v60, 0.0  ;;  %v826_v53 = vmax.f32 %v698_v47, 0.0  ;;  %v700_v62 = vadd.f32 %v2459_v14, %v566_v52  ;;  %v829_v8 = vmax.f32 %v701_v13, 0.0  ;;  %v2151_v47 = vld [vmem:[%s2253_s28 + $0x130] sm:$0xff]  }
  0x69   : > { %v1787_v11 = vpack.c.bf16 %v823_v59, %v823_v59  ;;  %v1788_v5 = vpack.c.bf16 %v824_v20, %v824_v20  ;;  %v1791_v21 = vpack.c.bf16 %v827_v50, %v827_v50  ;;  %1463 = vst.msk [vmem:[%s2495_s10 + $0xe0] sm:$0xf] %vm1406_vm0, %v1786_v9  ;;  %v3179_v23 = vunpack.c.l.bf16 %v2413_v44 }
  0x6a   : > { %v1789_v40 = vpack.c.bf16 %v825_v3, %v825_v3  ;;  %v1790_v18 = vpack.c.bf16 %v826_v53, %v826_v53  ;;  %v828_v22 = vmax.f32 %v700_v62, 0.0  ;;  %v569_v61 = vmul.f32 %v1989_v56, %v2428_v45  ;;  %v2152_v53 = vld [vmem:[%s2253_s28 + $0x138] sm:$0xff]  }
  0x6b   : > { %1464 = vst.msk [vmem:[%s2495_s10 + $0xe4] sm:$0xf] %vm1406_vm0, %v1787_v11  ;;  %1465 = vst.msk [vmem:[%s2495_s10 + $0xe8] sm:$0xf] %vm1406_vm0, %v1788_v5  ;;  %v568_v19 = vmul.f32 %v3179_v23, %v2428_v45  ;;  %v570_v26 = vmul.f32 %v1992_v0, %v2428_v45  ;;  %v1993_v27 = vunpack.c.h.bf16 %v2416_v41  ;;  %v1793_v15 = vpack.c.bf16 %v829_v8, %v829_v8 }
  0x6c   : > { %1466 = vst.msk [vmem:[%s2495_s10 + $0xec] sm:$0xf] %vm1406_vm0, %v1789_v40  ;;  %1467 = vst.msk [vmem:[%s2495_s10 + $0xf0] sm:$0xf] %vm1406_vm0, %v1790_v18  ;;  %v1792_v2 = vpack.c.bf16 %v828_v22, %v828_v22  ;;  %v1996_v49 = vunpack.c.l.bf16 %v2147_v46  ;;  %v1997_v37 = vunpack.c.h.bf16 %v2147_v46  ;;  %v703_v44 = vadd.f32 %v2459_v14, %v569_v61 }
  0x6d   : > { %1468 = vst.msk [vmem:[%s2495_s10 + $0xf4] sm:$0xf] %vm1406_vm0, %v1791_v21  ;;  %v702_v4 = vadd.f32 %v2459_v14, %v568_v19  ;;  %v704_v56 = vadd.f32 %v2459_v14, %v570_v26  ;;  %v571_v0 = vmul.f32 %v1993_v27, %v2428_v45  ;;  %1470 = vst.msk [vmem:[%s2495_s10 + $0xfc] sm:$0xf] %vm1406_vm0, %v1793_v15  ;;  %v2000_v12 = vunpack.c.l.bf16 %v2148_v28 }
  0x6e   : > { %1469 = vst.msk [vmem:[%s2495_s10 + $0xf8] sm:$0xf] %vm1406_vm0, %v1792_v2  ;;  %v572_v41 = vmul.f32 %v1996_v49, %v2428_v45  ;;  %v573_v31 = vmul.f32 %v1997_v37, %v2428_v45  ;;  %v2001_v57 = vunpack.c.h.bf16 %v2148_v28  ;;  %v831_v16 = vmax.f32 %v703_v44, 0.0  ;;  %v2153_v49 = vld [vmem:[%s2253_s28 + $0x140] sm:$0xff]   ;;  %v2154_v37 = vld [vmem:[%s2253_s28 + $0x148] sm:$0xff]  }
  0x6f   : > { %v830_v54 = vmax.f32 %v702_v4, 0.0  ;;  %v832_v42 = vmax.f32 %v704_v56, 0.0  ;;  %v705_v6 = vadd.f32 %v2459_v14, %v571_v0  ;;  %v574_v29 = vmul.f32 %v2000_v12, %v2428_v45 }
  0x70   : > { %v706_v55 = vadd.f32 %v2459_v14, %v572_v41  ;;  %v707_v32 = vadd.f32 %v2459_v14, %v573_v31  ;;  %v575_v43 = vmul.f32 %v2001_v57, %v2428_v45  ;;  %v1795_v63 = vpack.c.bf16 %v831_v16, %v831_v16 }
  0x71   : > { %v1794_v10 = vpack.c.bf16 %v830_v54, %v830_v54  ;;  %v1796_v17 = vpack.c.bf16 %v832_v42, %v832_v42  ;;  %v833_v24 = vmax.f32 %v705_v6, 0.0  ;;  %v708_v25 = vadd.f32 %v2459_v14, %v574_v29 }
  0x72   : > { %v834_v34 = vmax.f32 %v706_v55, 0.0  ;;  %v835_v38 = vmax.f32 %v707_v32, 0.0  ;;  %v709_v7 = vadd.f32 %v2459_v14, %v575_v43  ;;  %1472 = vst.msk [vmem:[%s2495_s10 + $0x104] sm:$0xf] %vm1406_vm0, %v1795_v63  ;;  %v2004_v35 = vunpack.c.l.bf16 %v2149_v30  ;;  %v2155_v55 = vld [vmem:[%s2253_s28 + $0x150] sm:$0xff]  }
  0x73   : > { %1471 = vst.msk [vmem:[%s2495_s10 + $0x100] sm:$0xf] %vm1406_vm0, %v1794_v10  ;;  %1473 = vst.msk [vmem:[%s2495_s10 + $0x108] sm:$0xf] %vm1406_vm0, %v1796_v17  ;;  %v1797_v39 = vpack.c.bf16 %v833_v24, %v833_v24  ;;  %v2005_v1 = vunpack.c.h.bf16 %v2149_v30  ;;  %v2008_v60 = vunpack.c.l.bf16 %v2150_v33  ;;  %v836_v52 = vmax.f32 %v708_v25, 0.0  ;;  %v2156_v24 = vld [vmem:[%s2253_s28 + $0x158] sm:$0xff]  }
  0x74   : > { %v1798_v58 = vpack.c.bf16 %v834_v34, %v834_v34  ;;  %v1799_v51 = vpack.c.bf16 %v835_v38, %v835_v38  ;;  %v837_v36 = vmax.f32 %v709_v7, 0.0  ;;  %v576_v48 = vmul.f32 %v2004_v35, %v2428_v45 }
  0x75   : > { %1474 = vst.msk [vmem:[%s2495_s10 + $0x10c] sm:$0xf] %vm1406_vm0, %v1797_v39  ;;  %v577_v59 = vmul.f32 %v2005_v1, %v2428_v45  ;;  %v578_v20 = vmul.f32 %v2008_v60, %v2428_v45  ;;  %v2009_v3 = vunpack.c.h.bf16 %v2150_v33  ;;  %v1800_v50 = vpack.c.bf16 %v836_v52, %v836_v52 }
  0x76   : > { %1475 = vst.msk [vmem:[%s2495_s10 + $0x110] sm:$0xf] %vm1406_vm0, %v1798_v58  ;;  %1476 = vst.msk [vmem:[%s2495_s10 + $0x114] sm:$0xf] %vm1406_vm0, %v1799_v51  ;;  %v1801_v62 = vpack.c.bf16 %v837_v36, %v837_v36  ;;  %v2012_v13 = vunpack.c.l.bf16 %v2151_v47  ;;  %v2013_v9 = vunpack.c.h.bf16 %v2151_v47  ;;  %v710_v11 = vadd.f32 %v2459_v14, %v576_v48 }
  0x77   : > { %v711_v5 = vadd.f32 %v2459_v14, %v577_v59  ;;  %v712_v40 = vadd.f32 %v2459_v14, %v578_v20  ;;  %v579_v46 = vmul.f32 %v2009_v3, %v2428_v45  ;;  %1477 = vst.msk [vmem:[%s2495_s10 + $0x118] sm:$0xf] %vm1406_vm0, %v1800_v50  ;;  %v2016_v22 = vunpack.c.l.bf16 %v2152_v53 }
  0x78   : > { %1478 = vst.msk [vmem:[%s2495_s10 + $0x11c] sm:$0xf] %vm1406_vm0, %v1801_v62  ;;  %v580_v18 = vmul.f32 %v2012_v13, %v2428_v45  ;;  %v581_v21 = vmul.f32 %v2013_v9, %v2428_v45  ;;  %v2017_v8 = vunpack.c.h.bf16 %v2152_v53  ;;  %v838_v23 = vmax.f32 %v710_v11, 0.0  ;;  %v2157_v13 = vld [vmem:[%s2253_s28 + $0x160] sm:$0xff]   ;;  %v2158_v9 = vld [vmem:[%s2253_s28 + $0x168] sm:$0xff]  }
  0x79   : > { %v839_v19 = vmax.f32 %v711_v5, 0.0  ;;  %v840_v61 = vmax.f32 %v712_v40, 0.0  ;;  %v713_v26 = vadd.f32 %v2459_v14, %v579_v46  ;;  %v582_v2 = vmul.f32 %v2016_v22, %v2428_v45 }
  0x7a   : > { %v714_v27 = vadd.f32 %v2459_v14, %v580_v18  ;;  %v715_v28 = vadd.f32 %v2459_v14, %v581_v21  ;;  %v583_v15 = vmul.f32 %v2017_v8, %v2428_v45  ;;  %v1802_v4 = vpack.c.bf16 %v838_v23, %v838_v23 }
  0x7b   : > { %v1803_v44 = vpack.c.bf16 %v839_v19, %v839_v19  ;;  %v1804_v56 = vpack.c.bf16 %v840_v61, %v840_v61  ;;  %v841_v0 = vmax.f32 %v713_v26, 0.0  ;;  %v716_v12 = vadd.f32 %v2459_v14, %v582_v2 }
  0x7c   : > { %v842_v41 = vmax.f32 %v714_v27, 0.0  ;;  %v843_v31 = vmax.f32 %v715_v28, 0.0  ;;  %v717_v57 = vadd.f32 %v2459_v14, %v583_v15  ;;  %1479 = vst.msk [vmem:[%s2495_s10 + $0x120] sm:$0xf] %vm1406_vm0, %v1802_v4  ;;  %v2020_v16 = vunpack.c.l.bf16 %v2153_v49  ;;  %v2159_v27 = vld [vmem:[%s2253_s28 + $0x170] sm:$0xff]  }
  0x7d   : > { %1480 = vst.msk [vmem:[%s2495_s10 + $0x124] sm:$0xf] %vm1406_vm0, %v1803_v44  ;;  %1481 = vst.msk [vmem:[%s2495_s10 + $0x128] sm:$0xf] %vm1406_vm0, %v1804_v56  ;;  %v1805_v54 = vpack.c.bf16 %v841_v0, %v841_v0  ;;  %v2021_v42 = vunpack.c.h.bf16 %v2153_v49  ;;  %v2024_v6 = vunpack.c.l.bf16 %v2154_v37  ;;  %v844_v43 = vmax.f32 %v716_v12, 0.0  ;;  %v2160_v0 = vld [vmem:[%s2253_s28 + $0x178] sm:$0xff]  }
  0x7e   : > { %v1806_v32 = vpack.c.bf16 %v842_v41, %v842_v41  ;;  %v1807_v29 = vpack.c.bf16 %v843_v31, %v843_v31  ;;  %v845_v30 = vmax.f32 %v717_v57, 0.0  ;;  %v584_v33 = vmul.f32 %v2020_v16, %v2428_v45 }
  0x7f   : > { %1482 = vst.msk [vmem:[%s2495_s10 + $0x12c] sm:$0xf] %vm1406_vm0, %v1805_v54  ;;  %v585_v10 = vmul.f32 %v2021_v42, %v2428_v45  ;;  %v586_v63 = vmul.f32 %v2024_v6, %v2428_v45  ;;  %v2025_v17 = vunpack.c.h.bf16 %v2154_v37  ;;  %v1808_v34 = vpack.c.bf16 %v844_v43, %v844_v43 }
  0x80   : > { %1483 = vst.msk [vmem:[%s2495_s10 + $0x130] sm:$0xf] %vm1406_vm0, %v1806_v32  ;;  %1484 = vst.msk [vmem:[%s2495_s10 + $0x134] sm:$0xf] %vm1406_vm0, %v1807_v29  ;;  %v1809_v38 = vpack.c.bf16 %v845_v30, %v845_v30  ;;  %v2028_v25 = vunpack.c.l.bf16 %v2155_v55  ;;  %v2029_v7 = vunpack.c.h.bf16 %v2155_v55  ;;  %v718_v39 = vadd.f32 %v2459_v14, %v584_v33 }
  0x81   : > { %v719_v35 = vadd.f32 %v2459_v14, %v585_v10  ;;  %v720_v1 = vadd.f32 %v2459_v14, %v586_v63  ;;  %v587_v60 = vmul.f32 %v2025_v17, %v2428_v45  ;;  %1485 = vst.msk [vmem:[%s2495_s10 + $0x138] sm:$0xf] %vm1406_vm0, %v1808_v34  ;;  %v2032_v51 = vunpack.c.l.bf16 %v2156_v24 }
  0x82   : > { %1486 = vst.msk [vmem:[%s2495_s10 + $0x13c] sm:$0xf] %vm1406_vm0, %v1809_v38  ;;  %v588_v47 = vmul.f32 %v2028_v25, %v2428_v45  ;;  %v589_v58 = vmul.f32 %v2029_v7, %v2428_v45  ;;  %v2033_v52 = vunpack.c.h.bf16 %v2156_v24  ;;  %v846_v36 = vmax.f32 %v718_v39, 0.0  ;;  %v2161_v25 = vld [vmem:[%s2253_s28 + $0x180] sm:$0xff]   ;;  %v2162_v7 = vld [vmem:[%s2253_s28 + $0x188] sm:$0xff]  }
  0x83   : > { %v847_v48 = vmax.f32 %v719_v35, 0.0  ;;  %v848_v59 = vmax.f32 %v720_v1, 0.0  ;;  %v721_v20 = vadd.f32 %v2459_v14, %v587_v60  ;;  %v590_v50 = vmul.f32 %v2032_v51, %v2428_v45 }
  0x84   : > { %v722_v3 = vadd.f32 %v2459_v14, %v588_v47  ;;  %v723_v53 = vadd.f32 %v2459_v14, %v589_v58  ;;  %v591_v62 = vmul.f32 %v2033_v52, %v2428_v45  ;;  %v1810_v11 = vpack.c.bf16 %v846_v36, %v846_v36 }
  0x85   : > { %v1811_v5 = vpack.c.bf16 %v847_v48, %v847_v48  ;;  %v1812_v40 = vpack.c.bf16 %v848_v59, %v848_v59  ;;  %v849_v46 = vmax.f32 %v721_v20, 0.0  ;;  %v724_v22 = vadd.f32 %v2459_v14, %v590_v50 }
  0x86   : > { %v850_v18 = vmax.f32 %v722_v3, 0.0  ;;  %v851_v21 = vmax.f32 %v723_v53, 0.0  ;;  %v725_v8 = vadd.f32 %v2459_v14, %v591_v62  ;;  %1487 = vst.msk [vmem:[%s2495_s10 + $0x140] sm:$0xf] %vm1406_vm0, %v1810_v11  ;;  %v2036_v19 = vunpack.c.l.bf16 %v2157_v13  ;;  %v2163_v3 = vld [vmem:[%s2253_s28 + $0x190] sm:$0xff]  }
  0x87   : > { %1488 = vst.msk [vmem:[%s2495_s10 + $0x144] sm:$0xf] %vm1406_vm0, %v1811_v5  ;;  %1489 = vst.msk [vmem:[%s2495_s10 + $0x148] sm:$0xf] %vm1406_vm0, %v1812_v40  ;;  %v1813_v23 = vpack.c.bf16 %v849_v46, %v849_v46  ;;  %v2037_v61 = vunpack.c.h.bf16 %v2157_v13  ;;  %v2040_v26 = vunpack.c.l.bf16 %v2158_v9  ;;  %v852_v15 = vmax.f32 %v724_v22, 0.0  ;;  %v2164_v46 = vld [vmem:[%s2253_s28 + $0x198] sm:$0xff]  }
  0x88   : > { %v1814_v28 = vpack.c.bf16 %v850_v18, %v850_v18  ;;  %v1815_v2 = vpack.c.bf16 %v851_v21, %v851_v21  ;;  %v853_v49 = vmax.f32 %v725_v8, 0.0  ;;  %v592_v37 = vmul.f32 %v2036_v19, %v2428_v45 }
  0x89   : > { %1490 = vst.msk [vmem:[%s2495_s10 + $0x14c] sm:$0xf] %vm1406_vm0, %v1813_v23  ;;  %v593_v4 = vmul.f32 %v2037_v61, %v2428_v45  ;;  %v594_v44 = vmul.f32 %v2040_v26, %v2428_v45  ;;  %v2041_v56 = vunpack.c.h.bf16 %v2158_v9  ;;  %v1816_v41 = vpack.c.bf16 %v852_v15, %v852_v15 }
  0x8a   : > { %1491 = vst.msk [vmem:[%s2495_s10 + $0x150] sm:$0xf] %vm1406_vm0, %v1814_v28  ;;  %1492 = vst.msk [vmem:[%s2495_s10 + $0x154] sm:$0xf] %vm1406_vm0, %v1815_v2  ;;  %v1817_v31 = vpack.c.bf16 %v853_v49, %v853_v49  ;;  %v2044_v12 = vunpack.c.l.bf16 %v2159_v27  ;;  %v2045_v57 = vunpack.c.h.bf16 %v2159_v27  ;;  %v726_v54 = vadd.f32 %v2459_v14, %v592_v37 }
  0x8b   : > { %v727_v16 = vadd.f32 %v2459_v14, %v593_v4  ;;  %v728_v42 = vadd.f32 %v2459_v14, %v594_v44  ;;  %v595_v6 = vmul.f32 %v2041_v56, %v2428_v45  ;;  %1493 = vst.msk [vmem:[%s2495_s10 + $0x158] sm:$0xf] %vm1406_vm0, %v1816_v41  ;;  %v2048_v29 = vunpack.c.l.bf16 %v2160_v0 }
  0x8c   : > { %1494 = vst.msk [vmem:[%s2495_s10 + $0x15c] sm:$0xf] %vm1406_vm0, %v1817_v31  ;;  %v596_v55 = vmul.f32 %v2044_v12, %v2428_v45  ;;  %v597_v32 = vmul.f32 %v2045_v57, %v2428_v45  ;;  %v2049_v43 = vunpack.c.h.bf16 %v2160_v0  ;;  %v854_v30 = vmax.f32 %v726_v54, 0.0  ;;  %v2165_v12 = vld [vmem:[%s2253_s28 + $0x1a0] sm:$0xff]   ;;  %v2166_v57 = vld [vmem:[%s2253_s28 + $0x1a8] sm:$0xff]  }
  0x8d   : > { %v855_v33 = vmax.f32 %v727_v16, 0.0  ;;  %v856_v10 = vmax.f32 %v728_v42, 0.0  ;;  %v729_v63 = vadd.f32 %v2459_v14, %v595_v6  ;;  %v598_v34 = vmul.f32 %v2048_v29, %v2428_v45 }
  0x8e   : > { %v730_v17 = vadd.f32 %v2459_v14, %v596_v55  ;;  %v731_v24 = vadd.f32 %v2459_v14, %v597_v32  ;;  %v599_v38 = vmul.f32 %v2049_v43, %v2428_v45  ;;  %v1818_v39 = vpack.c.bf16 %v854_v30, %v854_v30 }
  0x8f   : > { %v1819_v35 = vpack.c.bf16 %v855_v33, %v855_v33  ;;  %v1820_v1 = vpack.c.bf16 %v856_v10, %v856_v10  ;;  %v857_v60 = vmax.f32 %v729_v63, 0.0  ;;  %v732_v51 = vadd.f32 %v2459_v14, %v598_v34 }
  0x90   : > { %v858_v47 = vmax.f32 %v730_v17, 0.0  ;;  %v859_v58 = vmax.f32 %v731_v24, 0.0  ;;  %v733_v52 = vadd.f32 %v2459_v14, %v599_v38  ;;  %1495 = vst.msk [vmem:[%s2495_s10 + $0x160] sm:$0xf] %vm1406_vm0, %v1818_v39  ;;  %v2052_v48 = vunpack.c.l.bf16 %v2161_v25  ;;  %v2167_v17 = vld [vmem:[%s2253_s28 + $0x1b0] sm:$0xff]  }
  0x91   : > { %1496 = vst.msk [vmem:[%s2495_s10 + $0x164] sm:$0xf] %vm1406_vm0, %v1819_v35  ;;  %1497 = vst.msk [vmem:[%s2495_s10 + $0x168] sm:$0xf] %vm1406_vm0, %v1820_v1  ;;  %v1821_v36 = vpack.c.bf16 %v857_v60, %v857_v60  ;;  %v2053_v59 = vunpack.c.h.bf16 %v2161_v25  ;;  %v2056_v20 = vunpack.c.l.bf16 %v2162_v7  ;;  %v860_v62 = vmax.f32 %v732_v51, 0.0  ;;  %v2168_v60 = vld [vmem:[%s2253_s28 + $0x1b8] sm:$0xff]  }
  0x92   : > { %v1822_v53 = vpack.c.bf16 %v858_v47, %v858_v47  ;;  %v1823_v50 = vpack.c.bf16 %v859_v58, %v859_v58  ;;  %v861_v13 = vmax.f32 %v733_v52, 0.0  ;;  %v600_v9 = vmul.f32 %v2052_v48, %v2428_v45 }
  0x93   : > { %1498 = vst.msk [vmem:[%s2495_s10 + $0x16c] sm:$0xf] %vm1406_vm0, %v1821_v36  ;;  %v601_v11 = vmul.f32 %v2053_v59, %v2428_v45  ;;  %v602_v5 = vmul.f32 %v2056_v20, %v2428_v45  ;;  %v2057_v40 = vunpack.c.h.bf16 %v2162_v7  ;;  %v1824_v18 = vpack.c.bf16 %v860_v62, %v860_v62 }
  0x94   : > { %1499 = vst.msk [vmem:[%s2495_s10 + $0x170] sm:$0xf] %vm1406_vm0, %v1822_v53  ;;  %1500 = vst.msk [vmem:[%s2495_s10 + $0x174] sm:$0xf] %vm1406_vm0, %v1823_v50  ;;  %v1825_v21 = vpack.c.bf16 %v861_v13, %v861_v13  ;;  %v2060_v22 = vunpack.c.l.bf16 %v2163_v3  ;;  %v2061_v8 = vunpack.c.h.bf16 %v2163_v3  ;;  %v734_v23 = vadd.f32 %v2459_v14, %v600_v9 }
  0x95   : > { %v735_v19 = vadd.f32 %v2459_v14, %v601_v11  ;;  %v736_v61 = vadd.f32 %v2459_v14, %v602_v5  ;;  %v603_v26 = vmul.f32 %v2057_v40, %v2428_v45  ;;  %1501 = vst.msk [vmem:[%s2495_s10 + $0x178] sm:$0xf] %vm1406_vm0, %v1824_v18  ;;  %v2064_v2 = vunpack.c.l.bf16 %v2164_v46 }
  0x96   : > { %1502 = vst.msk [vmem:[%s2495_s10 + $0x17c] sm:$0xf] %vm1406_vm0, %v1825_v21  ;;  %v604_v27 = vmul.f32 %v2060_v22, %v2428_v45  ;;  %v605_v28 = vmul.f32 %v2061_v8, %v2428_v45  ;;  %v2065_v15 = vunpack.c.h.bf16 %v2164_v46  ;;  %v862_v49 = vmax.f32 %v734_v23, 0.0  ;;  %v2169_v22 = vld [vmem:[%s2253_s28 + $0x1c0] sm:$0xff]   ;;  %v2170_v8 = vld [vmem:[%s2253_s28 + $0x1c8] sm:$0xff]  }
  0x97   : > { %v863_v37 = vmax.f32 %v735_v19, 0.0  ;;  %v864_v4 = vmax.f32 %v736_v61, 0.0  ;;  %v737_v44 = vadd.f32 %v2459_v14, %v603_v26  ;;  %v606_v41 = vmul.f32 %v2064_v2, %v2428_v45 }
  0x98   : > { %v738_v56 = vadd.f32 %v2459_v14, %v604_v27  ;;  %v739_v0 = vadd.f32 %v2459_v14, %v605_v28  ;;  %v607_v31 = vmul.f32 %v2065_v15, %v2428_v45  ;;  %v1826_v54 = vpack.c.bf16 %v862_v49, %v862_v49 }
  0x99   : > { %v1827_v16 = vpack.c.bf16 %v863_v37, %v863_v37  ;;  %v1828_v42 = vpack.c.bf16 %v864_v4, %v864_v4  ;;  %v865_v6 = vmax.f32 %v737_v44, 0.0  ;;  %v740_v29 = vadd.f32 %v2459_v14, %v606_v41 }
  0x9a   : > { %v866_v55 = vmax.f32 %v738_v56, 0.0  ;;  %v867_v32 = vmax.f32 %v739_v0, 0.0  ;;  %v741_v43 = vadd.f32 %v2459_v14, %v607_v31  ;;  %1503 = vst.msk [vmem:[%s2495_s10 + $0x180] sm:$0xf] %vm1406_vm0, %v1826_v54  ;;  %v2068_v33 = vunpack.c.l.bf16 %v2165_v12  ;;  %v2171_v56 = vld [vmem:[%s2253_s28 + $0x1d0] sm:$0xff]  }
  0x9b   : > { %1504 = vst.msk [vmem:[%s2495_s10 + $0x184] sm:$0xf] %vm1406_vm0, %v1827_v16  ;;  %1505 = vst.msk [vmem:[%s2495_s10 + $0x188] sm:$0xf] %vm1406_vm0, %v1828_v42  ;;  %v1829_v30 = vpack.c.bf16 %v865_v6, %v865_v6  ;;  %v2069_v10 = vunpack.c.h.bf16 %v2165_v12  ;;  %v2072_v63 = vunpack.c.l.bf16 %v2166_v57  ;;  %v868_v38 = vmax.f32 %v740_v29, 0.0  ;;  %v2172_v6 = vld [vmem:[%s2253_s28 + $0x1d8] sm:$0xff]  }
  0x9c   : > { %v1830_v24 = vpack.c.bf16 %v866_v55, %v866_v55  ;;  %v1831_v34 = vpack.c.bf16 %v867_v32, %v867_v32  ;;  %v869_v25 = vmax.f32 %v741_v43, 0.0  ;;  %v608_v7 = vmul.f32 %v2068_v33, %v2428_v45 }
  0x9d   : > { %1506 = vst.msk [vmem:[%s2495_s10 + $0x18c] sm:$0xf] %vm1406_vm0, %v1829_v30  ;;  %v609_v39 = vmul.f32 %v2069_v10, %v2428_v45  ;;  %v610_v35 = vmul.f32 %v2072_v63, %v2428_v45  ;;  %v2073_v1 = vunpack.c.h.bf16 %v2166_v57  ;;  %v1832_v47 = vpack.c.bf16 %v868_v38, %v868_v38 }
  0x9e   : > { %1507 = vst.msk [vmem:[%s2495_s10 + $0x190] sm:$0xf] %vm1406_vm0, %v1830_v24  ;;  %1508 = vst.msk [vmem:[%s2495_s10 + $0x194] sm:$0xf] %vm1406_vm0, %v1831_v34  ;;  %v1833_v58 = vpack.c.bf16 %v869_v25, %v869_v25  ;;  %v2076_v51 = vunpack.c.l.bf16 %v2167_v17  ;;  %v2077_v52 = vunpack.c.h.bf16 %v2167_v17  ;;  %v742_v36 = vadd.f32 %v2459_v14, %v608_v7 }
  0x9f   : > { %v743_v48 = vadd.f32 %v2459_v14, %v609_v39  ;;  %v744_v59 = vadd.f32 %v2459_v14, %v610_v35  ;;  %v611_v20 = vmul.f32 %v2073_v1, %v2428_v45  ;;  %1509 = vst.msk [vmem:[%s2495_s10 + $0x198] sm:$0xf] %vm1406_vm0, %v1832_v47  ;;  %v2080_v50 = vunpack.c.l.bf16 %v2168_v60 }
  0xa0   : > { %1510 = vst.msk [vmem:[%s2495_s10 + $0x19c] sm:$0xf] %vm1406_vm0, %v1833_v58  ;;  %v612_v3 = vmul.f32 %v2076_v51, %v2428_v45  ;;  %v613_v53 = vmul.f32 %v2077_v52, %v2428_v45  ;;  %v2081_v62 = vunpack.c.h.bf16 %v2168_v60  ;;  %v870_v13 = vmax.f32 %v742_v36, 0.0  ;;  %v2173_v51 = vld [vmem:[%s2253_s28 + $0x1e0] sm:$0xff]   ;;  %v2174_v52 = vld [vmem:[%s2253_s28 + $0x1e8] sm:$0xff]  }
  0xa1   : > { %v871_v9 = vmax.f32 %v743_v48, 0.0  ;;  %v872_v11 = vmax.f32 %v744_v59, 0.0  ;;  %v745_v5 = vadd.f32 %v2459_v14, %v611_v20  ;;  %v614_v18 = vmul.f32 %v2080_v50, %v2428_v45 }
  0xa2   : > { %v746_v40 = vadd.f32 %v2459_v14, %v612_v3  ;;  %v747_v46 = vadd.f32 %v2459_v14, %v613_v53  ;;  %v615_v21 = vmul.f32 %v2081_v62, %v2428_v45  ;;  %v1834_v23 = vpack.c.bf16 %v870_v13, %v870_v13 }
  0xa3   : > { %v1835_v19 = vpack.c.bf16 %v871_v9, %v871_v9  ;;  %v1836_v61 = vpack.c.bf16 %v872_v11, %v872_v11  ;;  %v873_v26 = vmax.f32 %v745_v5, 0.0  ;;  %v748_v2 = vadd.f32 %v2459_v14, %v614_v18 }
  0xa4   : > { %v874_v27 = vmax.f32 %v746_v40, 0.0  ;;  %v875_v28 = vmax.f32 %v747_v46, 0.0  ;;  %v749_v15 = vadd.f32 %v2459_v14, %v615_v21  ;;  %1511 = vst.msk [vmem:[%s2495_s10 + $0x1a0] sm:$0xf] %vm1406_vm0, %v1834_v23  ;;  %v2084_v37 = vunpack.c.l.bf16 %v2169_v22  ;;  %v2175_v40 = vld [vmem:[%s2253_s28 + $0x1f0] sm:$0xff]  }
  0xa5   : > { %1512 = vst.msk [vmem:[%s2495_s10 + $0x1a4] sm:$0xf] %vm1406_vm0, %v1835_v19  ;;  %1513 = vst.msk [vmem:[%s2495_s10 + $0x1a8] sm:$0xf] %vm1406_vm0, %v1836_v61  ;;  %v1837_v49 = vpack.c.bf16 %v873_v26, %v873_v26  ;;  %v2085_v4 = vunpack.c.h.bf16 %v2169_v22  ;;  %v2088_v44 = vunpack.c.l.bf16 %v2170_v8  ;;  %v876_v31 = vmax.f32 %v748_v2, 0.0  ;;  %v2176_v26 = vld [vmem:[%s2253_s28 + $0x1f8] sm:$0xff]  }
  0xa6   : > { %v1838_v0 = vpack.c.bf16 %v874_v27, %v874_v27  ;;  %v1839_v41 = vpack.c.bf16 %v875_v28, %v875_v28  ;;  %v877_v12 = vmax.f32 %v749_v15, 0.0  ;;  %v616_v57 = vmul.f32 %v2084_v37, %v2428_v45 }
  0xa7   : > { %1514 = vst.msk [vmem:[%s2495_s10 + $0x1ac] sm:$0xf] %vm1406_vm0, %v1837_v49  ;;  %v617_v54 = vmul.f32 %v2085_v4, %v2428_v45  ;;  %v618_v16 = vmul.f32 %v2088_v44, %v2428_v45  ;;  %v2089_v42 = vunpack.c.h.bf16 %v2170_v8  ;;  %v1840_v55 = vpack.c.bf16 %v876_v31, %v876_v31 }
  0xa8   : > { %1515 = vst.msk [vmem:[%s2495_s10 + $0x1b0] sm:$0xf] %vm1406_vm0, %v1838_v0  ;;  %1516 = vst.msk [vmem:[%s2495_s10 + $0x1b4] sm:$0xf] %vm1406_vm0, %v1839_v41  ;;  %v1841_v32 = vpack.c.bf16 %v877_v12, %v877_v12  ;;  %v2092_v29 = vunpack.c.l.bf16 %v2171_v56  ;;  %v2093_v43 = vunpack.c.h.bf16 %v2171_v56  ;;  %v750_v30 = vadd.f32 %v2459_v14, %v616_v57 }
  0xa9   : > { %v751_v33 = vadd.f32 %v2459_v14, %v617_v54  ;;  %v752_v10 = vadd.f32 %v2459_v14, %v618_v16  ;;  %v619_v63 = vmul.f32 %v2089_v42, %v2428_v45  ;;  %1517 = vst.msk [vmem:[%s2495_s10 + $0x1b8] sm:$0xf] %vm1406_vm0, %v1840_v55  ;;  %v2096_v34 = vunpack.c.l.bf16 %v2172_v6 }
  0xaa   : > { %1518 = vst.msk [vmem:[%s2495_s10 + $0x1bc] sm:$0xf] %vm1406_vm0, %v1841_v32  ;;  %v620_v17 = vmul.f32 %v2092_v29, %v2428_v45  ;;  %v621_v24 = vmul.f32 %v2093_v43, %v2428_v45  ;;  %v2097_v38 = vunpack.c.h.bf16 %v2172_v6  ;;  %v878_v25 = vmax.f32 %v750_v30, 0.0 }
  0xab   : > { %v879_v7 = vmax.f32 %v751_v33, 0.0  ;;  %v880_v39 = vmax.f32 %v752_v10, 0.0  ;;  %v753_v35 = vadd.f32 %v2459_v14, %v619_v63  ;;  %v622_v47 = vmul.f32 %v2096_v34, %v2428_v45 }
  0xac   : > { %v754_v1 = vadd.f32 %v2459_v14, %v620_v17  ;;  %v755_v60 = vadd.f32 %v2459_v14, %v621_v24  ;;  %v623_v58 = vmul.f32 %v2097_v38, %v2428_v45  ;;  %v1842_v36 = vpack.c.bf16 %v878_v25, %v878_v25 }
  0xad   : > { %v1843_v48 = vpack.c.bf16 %v879_v7, %v879_v7  ;;  %v1844_v59 = vpack.c.bf16 %v880_v39, %v880_v39  ;;  %v881_v20 = vmax.f32 %v753_v35, 0.0  ;;  %v756_v50 = vadd.f32 %v2459_v14, %v622_v47 }
  0xae   : > { %v882_v3 = vmax.f32 %v754_v1, 0.0  ;;  %v883_v53 = vmax.f32 %v755_v60, 0.0  ;;  %v757_v62 = vadd.f32 %v2459_v14, %v623_v58  ;;  %1519 = vst.msk [vmem:[%s2495_s10 + $0x1c0] sm:$0xf] %vm1406_vm0, %v1842_v36  ;;  %v2100_v9 = vunpack.c.l.bf16 %v2173_v51 }
  0xaf   : > { %1520 = vst.msk [vmem:[%s2495_s10 + $0x1c4] sm:$0xf] %vm1406_vm0, %v1843_v48  ;;  %1521 = vst.msk [vmem:[%s2495_s10 + $0x1c8] sm:$0xf] %vm1406_vm0, %v1844_v59  ;;  %v1845_v13 = vpack.c.bf16 %v881_v20, %v881_v20  ;;  %v2101_v11 = vunpack.c.h.bf16 %v2173_v51  ;;  %v2104_v5 = vunpack.c.l.bf16 %v2174_v52  ;;  %v884_v21 = vmax.f32 %v756_v50, 0.0 }
  0xb0   : > { %v1846_v46 = vpack.c.bf16 %v882_v3, %v882_v3  ;;  %v1847_v18 = vpack.c.bf16 %v883_v53, %v883_v53  ;;  %v885_v22 = vmax.f32 %v757_v62, 0.0  ;;  %v624_v8 = vmul.f32 %v2100_v9, %v2428_v45 }
  0xb1   : > { %1522 = vst.msk [vmem:[%s2495_s10 + $0x1cc] sm:$0xf] %vm1406_vm0, %v1845_v13  ;;  %v625_v23 = vmul.f32 %v2101_v11, %v2428_v45  ;;  %v626_v19 = vmul.f32 %v2104_v5, %v2428_v45  ;;  %v2105_v61 = vunpack.c.h.bf16 %v2174_v52  ;;  %v1848_v27 = vpack.c.bf16 %v884_v21, %v884_v21 }
  0xb2   : > { %1523 = vst.msk [vmem:[%s2495_s10 + $0x1d0] sm:$0xf] %vm1406_vm0, %v1846_v46  ;;  %1524 = vst.msk [vmem:[%s2495_s10 + $0x1d4] sm:$0xf] %vm1406_vm0, %v1847_v18  ;;  %v1849_v28 = vpack.c.bf16 %v885_v22, %v885_v22  ;;  %v2108_v2 = vunpack.c.l.bf16 %v2175_v40  ;;  %v2109_v15 = vunpack.c.h.bf16 %v2175_v40  ;;  %v758_v49 = vadd.f32 %v2459_v14, %v624_v8 }
  0xb3   : > { %v759_v37 = vadd.f32 %v2459_v14, %v625_v23  ;;  %v760_v4 = vadd.f32 %v2459_v14, %v626_v19  ;;  %v627_v44 = vmul.f32 %v2105_v61, %v2428_v45  ;;  %1525 = vst.msk [vmem:[%s2495_s10 + $0x1d8] sm:$0xf] %vm1406_vm0, %v1848_v27  ;;  %v2112_v41 = vunpack.c.l.bf16 %v2176_v26 }
  0xb4   : > { %1526 = vst.msk [vmem:[%s2495_s10 + $0x1dc] sm:$0xf] %vm1406_vm0, %v1849_v28  ;;  %v628_v56 = vmul.f32 %v2108_v2, %v2428_v45  ;;  %v629_v0 = vmul.f32 %v2109_v15, %v2428_v45  ;;  %v2113_v31 = vunpack.c.h.bf16 %v2176_v26  ;;  %v886_v12 = vmax.f32 %v758_v49, 0.0 }
  0xb5   : > { %v887_v57 = vmax.f32 %v759_v37, 0.0  ;;  %v888_v54 = vmax.f32 %v760_v4, 0.0  ;;  %v761_v16 = vadd.f32 %v2459_v14, %v627_v44  ;;  %v630_v55 = vmul.f32 %v2112_v41, %v2428_v45 }
  0xb6   : > { %v762_v42 = vadd.f32 %v2459_v14, %v628_v56  ;;  %v763_v6 = vadd.f32 %v2459_v14, %v629_v0  ;;  %v631_v32 = vmul.f32 %v2113_v31, %v2428_v45  ;;  %v1850_v29 = vpack.c.bf16 %v886_v12, %v886_v12 }
  0xb7   : > { %v1851_v43 = vpack.c.bf16 %v887_v57, %v887_v57  ;;  %v1852_v30 = vpack.c.bf16 %v888_v54, %v888_v54  ;;  %v889_v33 = vmax.f32 %v761_v16, 0.0  ;;  %v764_v17 = vadd.f32 %v2459_v14, %v630_v55 }
  0xb8   : > { %v890_v10 = vmax.f32 %v762_v42, 0.0  ;;  %v891_v63 = vmax.f32 %v763_v6, 0.0  ;;  %v765_v24 = vadd.f32 %v2459_v14, %v631_v32  ;;  %1527 = vst.msk [vmem:[%s2495_s10 + $0x1e0] sm:$0xf] %vm1406_vm0, %v1850_v29 }
  0xb9   : > { %1528 = vst.msk [vmem:[%s2495_s10 + $0x1e4] sm:$0xf] %vm1406_vm0, %v1851_v43  ;;  %1529 = vst.msk [vmem:[%s2495_s10 + $0x1e8] sm:$0xf] %vm1406_vm0, %v1852_v30  ;;  %v1853_v45 = vpack.c.bf16 %v889_v33, %v889_v33  ;;  %v892_v25 = vmax.f32 %v764_v17, 0.0 }
  0xba   : > { %v1854_v34 = vpack.c.bf16 %v890_v10, %v890_v10  ;;  %v1855_v38 = vpack.c.bf16 %v891_v63, %v891_v63  ;;  %v893_v7 = vmax.f32 %v765_v24, 0.0 }
  0xbb   : > { %1530 = vst.msk [vmem:[%s2495_s10 + $0x1ec] sm:$0xf] %vm1406_vm0, %v1853_v45  ;;  %v1856_v39 = vpack.c.bf16 %v892_v25, %v892_v25 }
  0xbc   : > { %1531 = vst.msk [vmem:[%s2495_s10 + $0x1f0] sm:$0xf] %vm1406_vm0, %v1854_v34  ;;  %1532 = vst.msk [vmem:[%s2495_s10 + $0x1f4] sm:$0xf] %vm1406_vm0, %v1855_v38  ;;  %v1857_v35 = vpack.c.bf16 %v893_v7, %v893_v7 }
  0xbd   : > { %1533 = vst.msk [vmem:[%s2495_s10 + $0x1f8] sm:$0xf] %vm1406_vm0, %v1856_v39 }
  0xbe   : > { %1534 = vst.msk [vmem:[%s2495_s10 + $0x1fc] sm:$0xf] %vm1406_vm0, %v1857_v35 }
  0xbf PF: > { %s15_s18 = sadd.s32 1, %s2193_s18  }
  0xc0   : > { %p12_p4 = scmp.ge.s32.totalorder %s15_s18, 4  }
  0xc2   :  { %14 = sbr.rel (!%p12_p4) target bundleno = 1 (0x1), region = 70 }

// kernel: generator_forward.46
= control target key start
LH: loop header
LB: loop body
LE: loop exit
PB: predicated region body
PF: predicated region fallthrough
CT: control target
= control target key end

     0   :  { %s1204_s9 = smov 0   ;;  %s1206_s10 = smov 0   ;;  %s1360_s0 = inlined_call_operand.vmem [shape: bf16[2048,256], index: 0, kind: input, shape index: {}]   ;;  %s1361_s1 = inlined_call_operand.vmem [shape: bf16[256,128], index: 1, kind: input, shape index: {}]   ;;  %s1362_s2 = inlined_call_operand.vmem [shape: f32[2048,128], index: 2, kind: output, shape index: {}]  }
   0x1   :  { %s1208_s11 = smov 0  }
   0x2 LB: > { %s24_s12 = sadd.s32 1, %s1183_s10  ;;  %p828_p0 = scmp.ge.s32.totalorder %s1187_s11, 1  ;;  %s1187_s11 = sphi %s1208_s11, %s12_s11   ;;  %s1183_s10 = sphi %s1206_s10, %s1364_s10   ;;  %s1179_s9 = sphi %s1204_s9, %s1363_s9  }
   0x3   : > { %p26_p1 = scmp.ge.s32.totalorder %s24_s12, 8  ;;  %p137_p2 = scmp.lt.s32.totalorder %s1187_s11, 9 }
   0x5   : > { %s1366_s12 = smov (%p26_p1, %s24_s12), 0  ;;  %p138_p3 = pnand %p828_p0, %p137_p2 }
   0x6   : > { %v1037_v0 = vld [vmem:[%s1361_s1 + $0x40] sm:$0xff] (!%p138_p3)   ;;  %s829_s15 = sshll.u32 (!%p138_p3), %s1179_s9, 5  ;;  %v1039_v2 = vld [vmem:[%s1361_s1 + $0x48] sm:$0xff] (!%p138_p3)   ;;  %v1041_v4 = vld [vmem:[%s1361_s1 + $0x50] sm:$0xff] (!%p138_p3)  }
   0x7   : > { %141 = sbr.rel (%p138_p3) target bundleno = 326 (0x146), region = 28  ;;  %v1038_v1 = vld [vmem:[%s1361_s1] sm:$0xff] (!%p138_p3)   ;;  %885 = vmatprep.subr.bf16.mxu0 (!%p138_p3), %v1037_v0  ;;  %997 = vmatprep.subr.bf16.mxu1 (!%p138_p3), %v1037_v0  ;;  %v1040_v3 = vld [vmem:[%s1361_s1 + $0x8] sm:$0xff] (!%p138_p3)   ;;  %p168_p4 = scmp.lt.s32.totalorder (!%p138_p3), %s829_s15, 255  ;;  %v1042_v5 = vld [vmem:[%s1361_s1 + $0x10] sm:$0xff] (!%p138_p3)  }
   0x8   : > { %886 = vmatpush3.bf16.msra.mxu0 (!%p138_p3), %v1038_v1  ;;  %1005 = vmatpush3.bf16.msra.mxu1 (!%p138_p3), %v1038_v1  ;;  %v1043_v6 = vld [vmem:[%s1361_s1 + $0x58] sm:$0xff] (!%p138_p3)   ;;  %v1045_v8 = vld [vmem:[%s1361_s1 + $0x60] sm:$0xff] (!%p138_p3)   ;;  %v1047_v10 = vld [vmem:[%s1361_s1 + $0x68] sm:$0xff] (!%p138_p3)  }
   0x9   : > { %887 = vmatprep.subr.bf16.mxu0 (!%p138_p3), %v1039_v2  ;;  %998 = vmatprep.subr.bf16.mxu1 (!%p138_p3), %v1039_v2  ;;  %v1044_v7 = vld [vmem:[%s1361_s1 + $0x18] sm:$0xff] (!%p138_p3)   ;;  %v1046_v9 = vld [vmem:[%s1361_s1 + $0x20] sm:$0xff] (!%p138_p3)   ;;  %v1048_v13 = vld [vmem:[%s1361_s1 + $0x28] sm:$0xff] (!%p138_p3)  }
   0xa   : > { %v1049_v14 = vld [vmem:[%s1361_s1 + $0x70] sm:$0xff] (!%p138_p3)   ;;  %v1051_v16 = vld [vmem:[%s1361_s1 + $0x78] sm:$0xff] (!%p138_p3)  }
   0xb   : > { %v1050_v15 = vld [vmem:[%s1361_s1 + $0x30] sm:$0xff] (!%p138_p3)   ;;  %v1052_v17 = vld [vmem:[%s1361_s1 + $0x38] sm:$0xff] (!%p138_p3)  }
   0xc   : > { %888 = vmatpush3.bf16.msra.mxu0 (!%p138_p3), %v1040_v3  ;;  %1006 = vmatpush3.bf16.msra.mxu1 (!%p138_p3), %v1040_v3 }
   0xd   : > { %889 = vmatprep.subr.bf16.mxu0 (!%p138_p3), %v1041_v4  ;;  %999 = vmatprep.subr.bf16.mxu1 (!%p138_p3), %v1041_v4 }
   0xe   : > { %s1368_s15 = smov (!%p168_p4, %s829_s15), 255 }
   0xf   : > { %s884_s30 = sshll.u32 %s1368_s15, 3 }
  0x10   : > { %890 = vmatpush3.bf16.msra.mxu0 %v1042_v5  ;;  %1007 = vmatpush3.bf16.msra.mxu1 %v1042_v5  ;;  %s1257_s7 = scalar_lea.vmem %s1360_s0, %s884_s30  ;;  %s1317_s28 = scalar_lea.vmem %s1362_s2, %s884_s30 }
  0x11   : > { %891 = vmatprep.subr.bf16.mxu0 %v1043_v6  ;;  %1000 = vmatprep.subr.bf16.mxu1 %v1043_v6  ;;  %v1055_v11 = vld [vmem:[%s1257_s7 + $0x4] ss:$8 sps:$4 sm:$0xff]   ;;  %v1053_v18 = vld [vmem:[%s1257_s7] ss:$8 sps:$4 sm:$0xff]   ;;  %v1059_v20 = vld [vmem:[%s1257_s7 + $0x14] ss:$8 sps:$4 sm:$0xff]  }
  0x12   : > { %v1058_v12 = vld [vmem:[%s1257_s7 + $0x84] ss:$8 sps:$4 sm:$0xff]   ;;  %540 = vmatprep.mubr.bf16.mxu0 %v1055_v11  ;;  %v1056_v19 = vld [vmem:[%s1257_s7 + $0x80] ss:$8 sps:$4 sm:$0xff]   ;;  %v1061_v21 = vld [vmem:[%s1257_s7 + $0x94] ss:$8 sps:$4 sm:$0xff]  }
  0x13   : > { %604 = vmatprep.mubr.bf16.mxu1 %v1058_v12  ;;  %v1063_v22 = vld [vmem:[%s1257_s7 + $0x10] ss:$8 sps:$4 sm:$0xff]   ;;  %v1065_v24 = vld [vmem:[%s1257_s7 + $0x24] ss:$8 sps:$4 sm:$0xff]   ;;  %v1069_v26 = vld [vmem:[%s1257_s7 + $0x20] ss:$8 sps:$4 sm:$0xff]  }
  0x14   : > { %892 = vmatpush3.bf16.msra.mxu0 %v1044_v7  ;;  %1008 = vmatpush3.bf16.msra.mxu1 %v1044_v7  ;;  %v1064_v23 = vld [vmem:[%s1257_s7 + $0x90] ss:$8 sps:$4 sm:$0xff]   ;;  %v1067_v25 = vld [vmem:[%s1257_s7 + $0xa4] ss:$8 sps:$4 sm:$0xff]   ;;  %v1070_v27 = vld [vmem:[%s1257_s7 + $0xa0] ss:$8 sps:$4 sm:$0xff]  }
  0x15   : > { %893 = vmatprep.subr.bf16.mxu0 %v1045_v8  ;;  %1001 = vmatprep.subr.bf16.mxu1 %v1045_v8  ;;  %v1071_v28 = vld [vmem:[%s1257_s7 + $0x34] ss:$8 sps:$4 sm:$0xff]   ;;  %v1075_v30 = vld [vmem:[%s1257_s7 + $0x30] ss:$8 sps:$4 sm:$0xff]   ;;  %v1077_v32 = vld [vmem:[%s1257_s7 + $0x44] ss:$8 sps:$4 sm:$0xff]  }
  0x16   : > { %v1073_v29 = vld [vmem:[%s1257_s7 + $0xb4] ss:$8 sps:$4 sm:$0xff]   ;;  %v1076_v31 = vld [vmem:[%s1257_s7 + $0xb0] ss:$8 sps:$4 sm:$0xff]   ;;  %v1079_v33 = vld [vmem:[%s1257_s7 + $0xc4] ss:$8 sps:$4 sm:$0xff]  }
  0x17   : > { %v1081_v34 = vld [vmem:[%s1257_s7 + $0x40] ss:$8 sps:$4 sm:$0xff]   ;;  %v1083_v36 = vld [vmem:[%s1257_s7 + $0x54] ss:$8 sps:$4 sm:$0xff]   ;;  %v1087_v38 = vld [vmem:[%s1257_s7 + $0x50] ss:$8 sps:$4 sm:$0xff]  }
  0x18   : > { %894 = vmatpush3.bf16.msra.mxu0 %v1046_v9  ;;  %1009 = vmatpush3.bf16.msra.mxu1 %v1046_v9  ;;  %v1082_v35 = vld [vmem:[%s1257_s7 + $0xc0] ss:$8 sps:$4 sm:$0xff]   ;;  %v1085_v37 = vld [vmem:[%s1257_s7 + $0xd4] ss:$8 sps:$4 sm:$0xff]   ;;  %v1088_v39 = vld [vmem:[%s1257_s7 + $0xd0] ss:$8 sps:$4 sm:$0xff]  }
  0x19   : > { %895 = vmatprep.subr.bf16.mxu0 %v1047_v10  ;;  %1002 = vmatprep.subr.bf16.mxu1 %v1047_v10  ;;  %v1089_v40 = vld [vmem:[%s1257_s7 + $0x64] ss:$8 sps:$4 sm:$0xff]   ;;  %v1093_v42 = vld [vmem:[%s1257_s7 + $0x60] ss:$8 sps:$4 sm:$0xff]   ;;  %v1095_v44 = vld [vmem:[%s1257_s7 + $0x74] ss:$8 sps:$4 sm:$0xff]  }
  0x1a   : > { %v1091_v41 = vld [vmem:[%s1257_s7 + $0xe4] ss:$8 sps:$4 sm:$0xff]   ;;  %v1094_v43 = vld [vmem:[%s1257_s7 + $0xe0] ss:$8 sps:$4 sm:$0xff]   ;;  %v1097_v45 = vld [vmem:[%s1257_s7 + $0xf4] ss:$8 sps:$4 sm:$0xff]  }
  0x1b   : > { %v1099_v46 = vld [vmem:[%s1257_s7 + $0x70] ss:$8 sps:$4 sm:$0xff]  }
  0x1c   : > { %896 = vmatpush3.bf16.msra.mxu0 %v1048_v13  ;;  %1010 = vmatpush3.bf16.msra.mxu1 %v1048_v13  ;;  %v1100_v47 = vld [vmem:[%s1257_s7 + $0xf0] ss:$8 sps:$4 sm:$0xff]  }
  0x1d   : > { %897 = vmatprep.subr.bf16.mxu0 %v1049_v14  ;;  %1003 = vmatprep.subr.bf16.mxu1 %v1049_v14 }
  0x20   : > { %898 = vmatpush3.bf16.msra.mxu0 %v1050_v15  ;;  %1011 = vmatpush3.bf16.msra.mxu1 %v1050_v15 }
  0x21   : > { %899 = vmatprep.subr.bf16.mxu0 %v1051_v16  ;;  %1004 = vmatprep.subr.bf16.mxu1 %v1051_v16 }
  0x24   : > { %900 = vmatpush3.bf16.msra.mxu0 %v1052_v17  ;;  %1012 = vmatpush3.bf16.msra.mxu1 %v1052_v17 }
  0x27   : > { %541 = vmatmul.mubr.bf16.vlgmr.msra.gmra.mrb[0].mxu0 %v1053_v18  ;;  %605 = vmatmul.mubr.bf16.vlgmr.msra.gmra.mrb[0].mxu1 %v1056_v19 }
  0x28   : > { %548 = vmatprep.mubr.bf16.mxu0 %v1059_v20  ;;  %612 = vmatprep.mubr.bf16.mxu1 %v1061_v21 }
  0x2f   : > { %549 = vmatmul.mubr.bf16.gmra.mrb[4].mxu0 %v1063_v22  ;;  %613 = vmatmul.mubr.bf16.gmra.mrb[4].mxu1 %v1064_v23 }
  0x30   : > { %556 = vmatprep.mubr.bf16.mxu0 %v1065_v24  ;;  %620 = vmatprep.mubr.bf16.mxu1 %v1067_v25 }
  0x37   : > { %557 = vmatmul.mubr.bf16.gmra.mrb[8].mxu0 %v1069_v26  ;;  %621 = vmatmul.mubr.bf16.gmra.mrb[8].mxu1 %v1070_v27 }
  0x38   : > { %564 = vmatprep.mubr.bf16.mxu0 %v1071_v28  ;;  %628 = vmatprep.mubr.bf16.mxu1 %v1073_v29 }
  0x3f   : > { %565 = vmatmul.mubr.bf16.gmra.mrb[12].mxu0 %v1075_v30  ;;  %629 = vmatmul.mubr.bf16.gmra.mrb[12].mxu1 %v1076_v31 }
  0x40   : > { %572 = vmatprep.mubr.bf16.mxu0 %v1077_v32  ;;  %636 = vmatprep.mubr.bf16.mxu1 %v1079_v33 }
  0x47   : > { %573 = vmatmul.mubr.bf16.gmra.mrb[16].mxu0 %v1081_v34  ;;  %637 = vmatmul.mubr.bf16.gmra.mrb[16].mxu1 %v1082_v35 }
  0x48   : > { %580 = vmatprep.mubr.bf16.mxu0 %v1083_v36  ;;  %644 = vmatprep.mubr.bf16.mxu1 %v1085_v37 }
  0x4f   : > { %581 = vmatmul.mubr.bf16.gmra.mrb[20].mxu0 %v1087_v38  ;;  %645 = vmatmul.mubr.bf16.gmra.mrb[20].mxu1 %v1088_v39 }
  0x50   : > { %588 = vmatprep.mubr.bf16.mxu0 %v1089_v40  ;;  %652 = vmatprep.mubr.bf16.mxu1 %v1091_v41 }
  0x57   : > { %589 = vmatmul.mubr.bf16.gmra.mrb[24].mxu0 %v1093_v42  ;;  %653 = vmatmul.mubr.bf16.gmra.mrb[24].mxu1 %v1094_v43 }
  0x58   : > { %596 = vmatprep.mubr.bf16.mxu0 %v1095_v44  ;;  %660 = vmatprep.mubr.bf16.mxu1 %v1097_v45 }
  0x5f   : > { %597 = vmatmul.mubr.bf16.gmra.mrb[28].mxu0 %v1099_v46  ;;  %661 = vmatmul.mubr.bf16.gmra.mrb[28].mxu1 %v1100_v47 }
  0xfa   : > { %v901_v48 = vpop.f32.mrb[0].mxu0  ;;  %v949_v49 = vpop.f32.mrb[0].mxu1 }
  0xfb   : > { %v902_v50 = vpop.f32.mrb[1].mxu0  ;;  %v950_v51 = vpop.f32.mrb[1].mxu1 }
  0xfc   : > { %v903_v52 = vadd.f32 %v902_v50, %v901_v48  ;;  %v951_v53 = vadd.f32 %v950_v51, %v949_v49  ;;  %v904_v54 = vpop.f32.mrb[2].mxu0  ;;  %v952_v55 = vpop.f32.mrb[2].mxu1 }
  0xfd   : > { %v905_v56 = vpop.f32.mrb[3].mxu0  ;;  %v953_v57 = vpop.f32.mrb[3].mxu1 }
  0xfe   : > { %1101 = vtanh.f32 %v903_v52  ;;  %v906_v58 = vadd.f32 %v905_v56, %v904_v54  ;;  %v954_v59 = vadd.f32 %v953_v57, %v952_v55 }
  0xff   : > { %1103 = vtanh.f32 %v951_v53 }
 0x100   : > { %1105 = vtanh.f32 %v906_v58 }
 0x101   : > { %1107 = vtanh.f32 %v954_v59 }
 0x102   : > { %v907_v60 = vpop.f32.mrb[4].mxu0  ;;  %v955_v61 = vpop.f32.mrb[4].mxu1 }
 0x103   : > { %v908_v62 = vpop.f32.mrb[5].mxu0  ;;  %v956_v63 = vpop.f32.mrb[5].mxu1 }
 0x104   : > { %v909_v0 = vadd.f32 %v908_v62, %v907_v60  ;;  %v957_v1 = vadd.f32 %v956_v63, %v955_v61  ;;  %v910_v2 = vpop.f32.mrb[6].mxu0  ;;  %v958_v3 = vpop.f32.mrb[6].mxu1 }
 0x105   : > { %v911_v4 = vpop.f32.mrb[7].mxu0  ;;  %v959_v5 = vpop.f32.mrb[7].mxu1 }
 0x106   : > { %1109 = vtanh.f32 %v909_v0  ;;  %v912_v6 = vadd.f32 %v911_v4, %v910_v2  ;;  %v960_v7 = vadd.f32 %v959_v5, %v958_v3 }
 0x107   : > { %1111 = vtanh.f32 %v957_v1 }
 0x108   : > { %v1102_v8 = vpop.eup %1101  ;;  %1113 = vtanh.f32 %v912_v6 }
 0x109   : > { %v1104_v9 = vpop.eup %1103  ;;  %701 = vst [vmem:[%s1317_s28] sm:$0xff] %v1102_v8  ;;  %1115 = vtanh.f32 %v960_v7 }
 0x10a   : > { %v1106_v10 = vpop.eup %1105  ;;  %717 = vst [vmem:[%s1317_s28 + $0x80] sm:$0xff] %v1104_v9  ;;  %v913_v11 = vpop.f32.mrb[8].mxu0 }
 0x10b   : > { %v961_v12 = vpop.f32.mrb[8].mxu1  ;;  %v1108_v13 = vpop.eup %1107  ;;  %702 = vst [vmem:[%s1317_s28 + $0x8] sm:$0xff] %v1106_v10 }
 0x10c   : > { %v914_v14 = vpop.f32.mrb[9].mxu0  ;;  %v962_v15 = vpop.f32.mrb[9].mxu1  ;;  %718 = vst [vmem:[%s1317_s28 + $0x88] sm:$0xff] %v1108_v13 }
 0x10d   : > { %v915_v16 = vadd.f32 %v914_v14, %v913_v11  ;;  %v963_v17 = vadd.f32 %v962_v15, %v961_v12  ;;  %v916_v18 = vpop.f32.mrb[10].mxu0  ;;  %v964_v19 = vpop.f32.mrb[10].mxu1 }
 0x10e   : > { %v917_v20 = vpop.f32.mrb[11].mxu0  ;;  %v965_v21 = vpop.f32.mrb[11].mxu1 }
 0x10f   : > { %1117 = vtanh.f32 %v915_v16  ;;  %v918_v22 = vadd.f32 %v917_v20, %v916_v18  ;;  %v966_v23 = vadd.f32 %v965_v21, %v964_v19 }
 0x110   : > { %1119 = vtanh.f32 %v963_v17  ;;  %v1110_v24 = vpop.eup %1109 }
 0x111   : > { %1121 = vtanh.f32 %v918_v22  ;;  %v1112_v25 = vpop.eup %1111  ;;  %703 = vst [vmem:[%s1317_s28 + $0x10] sm:$0xff] %v1110_v24 }
 0x112   : > { %1123 = vtanh.f32 %v966_v23  ;;  %v1114_v26 = vpop.eup %1113  ;;  %719 = vst [vmem:[%s1317_s28 + $0x90] sm:$0xff] %v1112_v25  ;;  %v919_v27 = vpop.f32.mrb[12].mxu0 }
 0x113   : > { %v967_v28 = vpop.f32.mrb[12].mxu1  ;;  %v1116_v29 = vpop.eup %1115  ;;  %704 = vst [vmem:[%s1317_s28 + $0x18] sm:$0xff] %v1114_v26 }
 0x114   : > { %v920_v30 = vpop.f32.mrb[13].mxu0  ;;  %v968_v31 = vpop.f32.mrb[13].mxu1  ;;  %720 = vst [vmem:[%s1317_s28 + $0x98] sm:$0xff] %v1116_v29 }
 0x115   : > { %v921_v32 = vadd.f32 %v920_v30, %v919_v27  ;;  %v969_v33 = vadd.f32 %v968_v31, %v967_v28  ;;  %v922_v34 = vpop.f32.mrb[14].mxu0  ;;  %v970_v35 = vpop.f32.mrb[14].mxu1 }
 0x116   : > { %v923_v36 = vpop.f32.mrb[15].mxu0  ;;  %v971_v37 = vpop.f32.mrb[15].mxu1 }
 0x117   : > { %1125 = vtanh.f32 %v921_v32  ;;  %v924_v38 = vadd.f32 %v923_v36, %v922_v34  ;;  %v972_v39 = vadd.f32 %v971_v37, %v970_v35 }
 0x118   : > { %1127 = vtanh.f32 %v969_v33 }
 0x119   : > { %v1118_v40 = vpop.eup %1117  ;;  %1129 = vtanh.f32 %v924_v38 }
 0x11a   : > { %v1120_v41 = vpop.eup %1119  ;;  %705 = vst [vmem:[%s1317_s28 + $0x20] sm:$0xff] %v1118_v40  ;;  %1131 = vtanh.f32 %v972_v39  ;;  %v925_v43 = vpop.f32.mrb[16].mxu0 }
 0x11b   : > { %v1122_v42 = vpop.eup %1121  ;;  %721 = vst [vmem:[%s1317_s28 + $0xa0] sm:$0xff] %v1120_v41  ;;  %v973_v44 = vpop.f32.mrb[16].mxu1 }
 0x11c   : > { %v1124_v45 = vpop.eup %1123  ;;  %706 = vst [vmem:[%s1317_s28 + $0x28] sm:$0xff] %v1122_v42  ;;  %v926_v46 = vpop.f32.mrb[17].mxu0 }
 0x11d   : > { %v974_v47 = vpop.f32.mrb[17].mxu1  ;;  %722 = vst [vmem:[%s1317_s28 + $0xa8] sm:$0xff] %v1124_v45  ;;  %v927_v48 = vadd.f32 %v926_v46, %v925_v43  ;;  %v928_v50 = vpop.f32.mrb[18].mxu0 }
 0x11e   : > { %v975_v49 = vadd.f32 %v974_v47, %v973_v44  ;;  %v976_v51 = vpop.f32.mrb[18].mxu1  ;;  %v929_v52 = vpop.f32.mrb[19].mxu0 }
 0x11f   : > { %v977_v53 = vpop.f32.mrb[19].mxu1  ;;  %1133 = vtanh.f32 %v927_v48  ;;  %v930_v54 = vadd.f32 %v929_v52, %v928_v50 }
 0x120   : > { %v978_v55 = vadd.f32 %v977_v53, %v976_v51  ;;  %1135 = vtanh.f32 %v975_v49 }
 0x121   : > { %v1126_v56 = vpop.eup %1125  ;;  %1137 = vtanh.f32 %v930_v54 }
 0x122   : > { %v1128_v57 = vpop.eup %1127  ;;  %707 = vst [vmem:[%s1317_s28 + $0x30] sm:$0xff] %v1126_v56  ;;  %1139 = vtanh.f32 %v978_v55  ;;  %v931_v59 = vpop.f32.mrb[20].mxu0 }
 0x123   : > { %v1130_v58 = vpop.eup %1129  ;;  %723 = vst [vmem:[%s1317_s28 + $0xb0] sm:$0xff] %v1128_v57  ;;  %v979_v60 = vpop.f32.mrb[20].mxu1 }
 0x124   : > { %v1132_v61 = vpop.eup %1131  ;;  %708 = vst [vmem:[%s1317_s28 + $0x38] sm:$0xff] %v1130_v58  ;;  %v932_v62 = vpop.f32.mrb[21].mxu0 }
 0x125   : > { %v980_v63 = vpop.f32.mrb[21].mxu1  ;;  %724 = vst [vmem:[%s1317_s28 + $0xb8] sm:$0xff] %v1132_v61  ;;  %v933_v0 = vadd.f32 %v932_v62, %v931_v59  ;;  %v934_v2 = vpop.f32.mrb[22].mxu0 }
 0x126   : > { %v981_v1 = vadd.f32 %v980_v63, %v979_v60  ;;  %v982_v3 = vpop.f32.mrb[22].mxu1  ;;  %v935_v4 = vpop.f32.mrb[23].mxu0 }
 0x127   : > { %v983_v5 = vpop.f32.mrb[23].mxu1  ;;  %1141 = vtanh.f32 %v933_v0  ;;  %v936_v6 = vadd.f32 %v935_v4, %v934_v2 }
 0x128   : > { %v984_v7 = vadd.f32 %v983_v5, %v982_v3  ;;  %1143 = vtanh.f32 %v981_v1 }
 0x129   : > { %v1134_v8 = vpop.eup %1133  ;;  %1145 = vtanh.f32 %v936_v6 }
 0x12a   : > { %v1136_v9 = vpop.eup %1135  ;;  %709 = vst [vmem:[%s1317_s28 + $0x40] sm:$0xff] %v1134_v8  ;;  %1147 = vtanh.f32 %v984_v7  ;;  %v937_v11 = vpop.f32.mrb[24].mxu0 }
 0x12b   : > { %v1138_v10 = vpop.eup %1137  ;;  %725 = vst [vmem:[%s1317_s28 + $0xc0] sm:$0xff] %v1136_v9  ;;  %v985_v12 = vpop.f32.mrb[24].mxu1 }
 0x12c   : > { %v1140_v13 = vpop.eup %1139  ;;  %710 = vst [vmem:[%s1317_s28 + $0x48] sm:$0xff] %v1138_v10  ;;  %v938_v14 = vpop.f32.mrb[25].mxu0 }
 0x12d   : > { %v986_v15 = vpop.f32.mrb[25].mxu1  ;;  %726 = vst [vmem:[%s1317_s28 + $0xc8] sm:$0xff] %v1140_v13  ;;  %v939_v16 = vadd.f32 %v938_v14, %v937_v11  ;;  %v940_v18 = vpop.f32.mrb[26].mxu0 }
 0x12e   : > { %v987_v17 = vadd.f32 %v986_v15, %v985_v12  ;;  %v988_v19 = vpop.f32.mrb[26].mxu1  ;;  %v941_v20 = vpop.f32.mrb[27].mxu0 }
 0x12f   : > { %v989_v21 = vpop.f32.mrb[27].mxu1  ;;  %1149 = vtanh.f32 %v939_v16  ;;  %v942_v22 = vadd.f32 %v941_v20, %v940_v18 }
 0x130   : > { %v990_v23 = vadd.f32 %v989_v21, %v988_v19  ;;  %1151 = vtanh.f32 %v987_v17 }
 0x131   : > { %v1142_v24 = vpop.eup %1141  ;;  %1153 = vtanh.f32 %v942_v22 }
 0x132   : > { %v1144_v25 = vpop.eup %1143  ;;  %711 = vst [vmem:[%s1317_s28 + $0x50] sm:$0xff] %v1142_v24  ;;  %1155 = vtanh.f32 %v990_v23  ;;  %v943_v27 = vpop.f32.mrb[28].mxu0 }
 0x133   : > { %v1146_v26 = vpop.eup %1145  ;;  %727 = vst [vmem:[%s1317_s28 + $0xd0] sm:$0xff] %v1144_v25  ;;  %v991_v28 = vpop.f32.mrb[28].mxu1 }
 0x134   : > { %v1148_v29 = vpop.eup %1147  ;;  %712 = vst [vmem:[%s1317_s28 + $0x58] sm:$0xff] %v1146_v26  ;;  %v944_v30 = vpop.f32.mrb[29].mxu0 }
 0x135   : > { %v992_v31 = vpop.f32.mrb[29].mxu1  ;;  %728 = vst [vmem:[%s1317_s28 + $0xd8] sm:$0xff] %v1148_v29  ;;  %v945_v32 = vadd.f32 %v944_v30, %v943_v27  ;;  %v946_v34 = vpop.f32.mrb[30].mxu0 }
 0x136   : > { %v993_v33 = vadd.f32 %v992_v31, %v991_v28  ;;  %v994_v35 = vpop.f32.mrb[30].mxu1  ;;  %v947_v36 = vpop.f32.mrb[31].mxu0 }
 0x137   : > { %v995_v37 = vpop.f32.mrb[31].mxu1  ;;  %1157 = vtanh.f32 %v945_v32  ;;  %v948_v38 = vadd.f32 %v947_v36, %v946_v34 }
 0x138   : > { %v996_v39 = vadd.f32 %v995_v37, %v994_v35  ;;  %1159 = vtanh.f32 %v993_v33 }
 0x139   : > { %v1150_v40 = vpop.eup %1149  ;;  %1161 = vtanh.f32 %v948_v38 }
 0x13a   : > { %v1152_v41 = vpop.eup %1151  ;;  %713 = vst [vmem:[%s1317_s28 + $0x60] sm:$0xff] %v1150_v40  ;;  %1163 = vtanh.f32 %v996_v39 }
 0x13b   : > { %v1154_v42 = vpop.eup %1153  ;;  %729 = vst [vmem:[%s1317_s28 + $0xe0] sm:$0xff] %v1152_v41 }
 0x13c   : > { %v1156_v43 = vpop.eup %1155  ;;  %714 = vst [vmem:[%s1317_s28 + $0x68] sm:$0xff] %v1154_v42 }
 0x13d   : > { %730 = vst [vmem:[%s1317_s28 + $0xe8] sm:$0xff] %v1156_v43 }
 0x141   : > { %v1158_v44 = vpop.eup %1157 }
 0x142   : > { %v1160_v45 = vpop.eup %1159  ;;  %715 = vst [vmem:[%s1317_s28 + $0x70] sm:$0xff] %v1158_v44 }
 0x143   : > { %v1162_v46 = vpop.eup %1161  ;;  %731 = vst [vmem:[%s1317_s28 + $0xf0] sm:$0xff] %v1160_v45 }
 0x144   : > { %v1164_v47 = vpop.eup %1163  ;;  %716 = vst [vmem:[%s1317_s28 + $0x78] sm:$0xff] %v1162_v46 }
 0x145   : > { %732 = vst [vmem:[%s1317_s28 + $0xf8] sm:$0xff] %v1164_v47 }
 0x146 PF: > { %s12_s11 = sadd.s32 1, %s1187_s11   ;;  %s1363_s9 = smov %s1183_s10 }
 0x147   : > { %p9_p5 = scmp.ge.s32.totalorder %s12_s11, 10   ;;  %s1364_s10 = smov %s1366_s12 }
 0x149   :  { %11 = sbr.rel (!%p9_p5) target bundleno = 2 (0x2), region = 61 }

</bundles_post_ra>
